<compile_context>
chip_gen: v6e
topology: v6e:2x2x1
jax: 0.10.0
libtpu: 0.0.40
codegen_flags: <defaults>
</compile_context>

<pallas_src>
import functools

import jax
import jax.numpy as jnp
import numpy as np
from jax import lax
from jax.experimental import pallas as pl
from jax.experimental.pallas import tpu as pltpu


def _hardswish(x):
    # PyTorch Hardswish: x * relu6(x + 3) / 6
    return x * jnp.clip(x + 3.0, 0.0, 6.0) / 6.0


def _round_up(x, m):
    return ((x + m - 1) // m) * m


# --------------------------------------------------------------------------
# 1x1 conv (BN scale pre-folded into weights) + bias + Hardswish, row matmul
# --------------------------------------------------------------------------
def _pw_conv_bias_act_kernel(x_ref, w_ref, b_ref, o_ref):
    y = jnp.dot(x_ref[...], w_ref[...], preferred_element_type=jnp.float32)
    o_ref[...] = _hardswish(y + b_ref[...]).astype(o_ref.dtype)


def pointwise_conv_bias_act(x2d, w_folded, bias_row, *, tile_m=1024,
                            out_dtype=jnp.float32):
    M, Cin = x2d.shape
    Cout = w_folded.shape[1]
    # Big tiles amortize the ~0.35us/step overhead; pad M instead of asserting.
    tile_m = max(8, min(tile_m, _round_up(M, 8)))
    Mpad = _round_up(M, tile_m)
    if Mpad != M:
        x2d = jnp.pad(x2d, ((0, Mpad - M), (0, 0)))
    out = pl.pallas_call(
        _pw_conv_bias_act_kernel,
        out_shape=jax.ShapeDtypeStruct((Mpad, Cout), out_dtype),
        grid=(Mpad // tile_m,),
        in_specs=[
            pl.BlockSpec((tile_m, Cin), lambda i: (i, 0)),
            pl.BlockSpec((Cin, Cout), lambda i: (0, 0)),
            pl.BlockSpec((1, Cout), lambda i: (0, 0)),
        ],
        out_specs=pl.BlockSpec((tile_m, Cout), lambda i: (i, 0)),
        compiler_params=pltpu.CompilerParams(
            dimension_semantics=("parallel",),
            vmem_limit_bytes=64 * 1024 * 1024,
        ),
    )(x2d, w_folded, bias_row)
    return out[:M] if Mpad != M else out


# --------------------------------------------------------------------------
# Fused SPP pooling (cascaded 5/9/13, stride 1, -inf "same" padding) + concat
# + conv2 (BN scale pre-folded) + bias + Hardswish.
# --------------------------------------------------------------------------
def _spp_pool_conv2_kernel(x_ref, w2_ref, b2_ref, o_ref, padbuf, rowbuf, acc,
                           *, plan, pmax, pad_l):
    # x_ref   : (1, H, W, tc)         conv1 output, one batch item / chan tile
    # w2_ref  : (nb, tc, Cout)        branch-major, BN-scale folded
    # b2_ref  : (1, Cout)
    # o_ref   : (1, H*W, Cout)        final activation (written at last c-tile)
    # padbuf  : VMEM (H+2*pmax, W+pad_l+pmax, tc)  -inf-bordered staging buffer
    # rowbuf  : VMEM (H, W+pad_l+pmax, tc)          row-max intermediate
    # acc     : VMEM (H*W, Cout) f32                conv2 accumulator
    _, H, W, tc = x_ref.shape

    @pl.when(pl.program_id(1) == 0)
    def _init():
        # Border of padbuf is never overwritten -> stays -inf for all stages.
        padbuf[...] = jnp.full(padbuf.shape, -jnp.inf, dtype=padbuf.dtype)
        acc[...] = jnp.zeros_like(acc)

    x = x_ref[0]                                           # (H, W, tc)
    # Identity branch goes straight into conv2.
    acc[...] += jnp.dot(x.reshape(H * W, tc), w2_ref[0],
                        preferred_element_type=jnp.float32)

    cur = x
    for b, (wk, from_prev) in enumerate(plan):
        src = cur if from_prev else x
        # Stage the source into the -inf-padded scratch (interior only).
        padbuf[pl.ds(pmax, H), pl.ds(pad_l, W), :] = src
        # Separable sliding max: rows then columns.
        off_r = pmax - wk // 2
        r = padbuf[pl.ds(off_r, H), :, :]
        for d in range(1, wk):
            r = jnp.maximum(r, padbuf[pl.ds(off_r + d, H), :, :])
        rowbuf[...] = r
        off_c = pad_l - wk // 2
        c = rowbuf[:, pl.ds(off_c, W), :]
        for d in range(1, wk):
            c = jnp.maximum(c, rowbuf[:, pl.ds(off_c + d, W), :])
        cur = c                                            # pooled branch b
        # Fused conv2 contribution of this branch (keeps concat out of HBM).
        acc[...] += jnp.dot(cur.reshape(H * W, tc), w2_ref[b + 1],
                            preferred_element_type=jnp.float32)

    @pl.when(pl.program_id(1) == pl.num_programs(1) - 1)
    def _finish():
        y = acc[...] + b2_ref[...]
        o_ref[0] = _hardswish(y).astype(o_ref.dtype)


def _pick_channel_tile(C):
    # Channels are independent for max pooling -> tiling costs no extra work.
    if C <= 256:
        return C
    for t in (256, 128):
        if C % t == 0:
            return t
    return C


def spp_pool_conv2(h_nhwc, w2r, bias2_row, kernel_sizes, *,
                   out_dtype=jnp.float32):
    N, H, W, C = h_nhwc.shape
    nb, _, Cout = w2r.shape
    ks = tuple(int(k) for k in kernel_sizes)
    assert nb == 1 + len(ks)
    assert all(k % 2 == 1 for k in ks), "SPP max-pool kernel sizes must be odd"

    # Pooling plan: cascade if sizes are increasing (pool_k composed with a
    # (k2-k1+1)-wide pool gives pool_k2 exactly under -inf same-padding),
    # otherwise pool each branch directly from the conv1 output.
    if list(ks) == sorted(ks):
        plan, prev = [], 1
        for k in ks:
            plan.append((k - prev + 1, True))
            prev = k
    else:
        plan = [(k, False) for k in ks]
    pmax = max(w for w, _ in plan) // 2
    pad_l = _round_up(max(pmax, 1), 8)      # sublane-aligned interior start

    tc = _pick_channel_tile(C)
    n_ct = C // tc
    wp = W + pad_l + pmax

    kern = functools.partial(_spp_pool_conv2_kernel,
                             plan=tuple(plan), pmax=pmax, pad_l=pad_l)
    out = pl.pallas_call(
        kern,
        out_shape=jax.ShapeDtypeStruct((N, H * W, Cout), out_dtype),
        grid=(N, n_ct),
        in_specs=[
            pl.BlockSpec((1, H, W, tc), lambda n, c: (n, 0, 0, c)),
            pl.BlockSpec((nb, tc, Cout), lambda n, c: (0, c, 0)),
            pl.BlockSpec((1, Cout), lambda n, c: (0, 0)),
        ],
        out_specs=pl.BlockSpec((1, H * W, Cout), lambda n, c: (n, 0, 0)),
        scratch_shapes=[
            pltpu.VMEM((H + 2 * pmax, wp, tc), jnp.float32),
            pltpu.VMEM((H, wp, tc), jnp.float32),
            pltpu.VMEM((H * W, Cout), jnp.float32),
        ],
        compiler_params=pltpu.CompilerParams(
            dimension_semantics=("parallel", "arbitrary"),
            vmem_limit_bytes=64 * 1024 * 1024,
        ),
    )(h_nhwc, w2r, bias2_row)
    return out.reshape(N, H, W, Cout)


# --------------------------------------------------------------------------
# Parameters (deterministic, synthetic).  BatchNorm is inference-mode affine.
# --------------------------------------------------------------------------
def init_params(key, in_channels, out_channels, kernel_sizes=(5, 9, 13)):
    hidden = in_channels // 2
    conv2_in = hidden * (len(kernel_sizes) + 1)
    ks = jax.random.split(key, 10)
    eps = 1e-5

    def bn(kg, kb, km, kv, c):
        gamma = jax.random.uniform(kg, (c,), minval=0.5, maxval=1.5)
        beta = 0.1 * jax.random.normal(kb, (c,))
        mean = 0.1 * jax.random.normal(km, (c,))
        var = jax.random.uniform(kv, (c,), minval=0.5, maxval=1.5)
        scale = gamma / jnp.sqrt(var + eps)
        bias = beta - mean * scale
        return scale.astype(jnp.float32), bias.astype(jnp.float32)

    w1 = 0.5 * jax.random.normal(ks[0], (in_channels, hidden), dtype=jnp.float32)
    s1, b1 = bn(ks[1], ks[2], ks[3], ks[4], hidden)
    w2 = 0.5 * jax.random.normal(ks[5], (conv2_in, out_channels), dtype=jnp.float32)
    s2, b2 = bn(ks[6], ks[7], ks[8], ks[9], out_channels)
    return dict(w1=w1, s1=s1, b1=b1, w2=w2, s2=s2, b2=b2)


# --------------------------------------------------------------------------
# Full SPPBottleneck forward (Pallas path)
# --------------------------------------------------------------------------
def spp_bottleneck_forward(x_nchw, params, kernel_sizes=(5, 9, 13)):
    N, Cin, H, W = x_nchw.shape
    w1, s1, b1 = params["w1"], params["s1"], params["b1"]
    w2, s2, b2 = params["w2"], params["s2"], params["b2"]
    Chid, Cout = w1.shape[1], w2.shape[1]
    nb = 1 + len(kernel_sizes)

    # Fold inference BatchNorm scale into the 1x1 conv weights (bias kept).
    w1f = (w1 * s1[None, :]).astype(jnp.float32)
    w2f = (w2 * s2[None, :]).astype(jnp.float32).reshape(nb, Chid, Cout)

    x_nhwc = jnp.transpose(x_nchw, (0, 2, 3, 1)).astype(jnp.float32)
    x2d = x_nhwc.reshape(N * H * W, Cin)

    # conv1 -> (folded BN) -> hardswish
    h2d = pointwise_conv_bias_act(x2d, w1f, b1.reshape(1, -1))
    h_nhwc = h2d.reshape(N, H, W, Chid)

    # Fused: SPP max-pool branches + concat + conv2 -> (folded BN) -> hardswish
    o_nhwc = spp_pool_conv2(h_nhwc, w2f, b2.reshape(1, -1), tuple(kernel_sizes))
    return jnp.transpose(o_nhwc, (0, 3, 1, 2))


# --------------------------------------------------------------------------
# Pure-JAX reference (for correctness check)
# --------------------------------------------------------------------------
def ref_forward(x_nchw, params, kernel_sizes=(5, 9, 13)):
    w1, s1, b1 = params["w1"], params["s1"], params["b1"]
    w2, s2, b2 = params["w2"], params["s2"], params["b2"]
    x = jnp.transpose(x_nchw, (0, 2, 3, 1)).astype(jnp.float32)
    h = _hardswish(jnp.einsum("nhwc,cd->nhwd", x, w1) * s1 + b1)
    pools = [h]
    for k in kernel_sizes:
        p = k // 2
        pools.append(
            lax.reduce_window(h, -jnp.inf, lax.max,
                              (1, k, k, 1), (1, 1, 1, 1),
                              ((0, 0), (p, p), (p, p), (0, 0))))
    cat = jnp.concatenate(pools, axis=-1)
    o = _hardswish(jnp.einsum("nhwc,cd->nhwd", cat, w2) * s2 + b2)
    return jnp.transpose(o, (0, 3, 1, 2))


if __name__ == "__main__":
    key = jax.random.PRNGKey(0)
    kx, kp = jax.random.split(key)
    N, Cin, H, W = 2, 4, 16, 16
    Cout = 8

    x = jax.random.normal(kx, (N, Cin, H, W), dtype=jnp.float32)
    params = init_params(kp, Cin, Cout)

    fwd = jax.jit(spp_bottleneck_forward)
    out = jax.block_until_ready(fwd(x, params))

    ref = jax.block_until_ready(ref_forward(x, params))
    np.testing.assert_allclose(np.asarray(out), np.asarray(ref),
                               rtol=1e-5, atol=1e-4)
    print("KERNEL_OK")
</pallas_src>

<mosaic_0001>
module attributes {stable_mosaic.version = 11 : i64} {
  func.func @_pw_conv_bias_act_kernel(%arg0: i32, %arg1: memref<512x4xf32, #tpu.memory_space<vmem>>, %arg2: memref<4x2xf32, #tpu.memory_space<vmem>>, %arg3: memref<1x2xf32, #tpu.memory_space<vmem>>, %arg4: memref<512x2xf32, #tpu.memory_space<vmem>>) attributes {dimension_semantics = [#tpu.dimension_semantics<parallel>], iteration_bounds = array<i64: 1>, scalar_prefetch = 0 : i64, scratch_operands = 0 : i64, tpu.core_type = #tpu.core_type<tc>, window_params = [{transform_indices = @transform_0, window_bounds = array<i64: 512, 4>}, {pipeline_mode = #tpu.pipeline_mode<synchronous>, transform_indices = @transform_1, window_bounds = array<i64: 4, 2>}, {pipeline_mode = #tpu.pipeline_mode<synchronous>, transform_indices = @transform_2, window_bounds = array<i64: 1, 2>}, {transform_indices = @transform_3, window_bounds = array<i64: 512, 2>}]} {
    %c0 = arith.constant 0 : index
    %c0_0 = arith.constant 0 : index
    %0 = vector.load %arg1[%c0, %c0_0] : memref<512x4xf32, #tpu.memory_space<vmem>>, vector<512x4xf32>
    %c0_1 = arith.constant 0 : index
    %c0_2 = arith.constant 0 : index
    %1 = vector.load %arg2[%c0_1, %c0_2] : memref<4x2xf32, #tpu.memory_space<vmem>>, vector<4x2xf32>
    %cst = arith.constant dense<0.000000e+00> : vector<512x2xf32>
    %2 = tpu.matmul %0, %1, %cst {dimension_numbers = #tpu.dot_dimension_numbers<[1], [0], [0], [1], [0, 0, 1, 1], [], []>} : vector<512x4xf32>, vector<4x2xf32>, vector<512x2xf32> -> vector<512x2xf32>
    %c0_3 = arith.constant 0 : index
    %c0_4 = arith.constant 0 : index
    %3 = vector.load %arg3[%c0_3, %c0_4] : memref<1x2xf32, #tpu.memory_space<vmem>>, vector<1x2xf32>
    %4 = vector.broadcast %3 : vector<1x2xf32> to vector<512x2xf32>
    %5 = arith.addf %2, %4 : vector<512x2xf32>
    %cst_5 = arith.constant 3.000000e+00 : f32
    %6 = vector.broadcast %cst_5 : f32 to vector<512x2xf32>
    %7 = arith.addf %5, %6 : vector<512x2xf32>
    %cst_6 = arith.constant 0.000000e+00 : f32
    %cst_7 = arith.constant 6.000000e+00 : f32
    %8 = vector.broadcast %cst_6 : f32 to vector<512x2xf32>
    %9 = arith.maximumf %8, %7 : vector<512x2xf32>
    %10 = vector.broadcast %cst_7 : f32 to vector<512x2xf32>
    %11 = arith.minimumf %10, %9 : vector<512x2xf32>
    %12 = arith.mulf %5, %11 : vector<512x2xf32>
    %cst_8 = arith.constant 6.000000e+00 : f32
    %13 = vector.broadcast %cst_8 : f32 to vector<512x2xf32>
    %14 = arith.divf %12, %13 : vector<512x2xf32>
    %c0_9 = arith.constant 0 : index
    %c0_10 = arith.constant 0 : index
    %15 = vector.load %arg4[%c0_9, %c0_10] : memref<512x2xf32, #tpu.memory_space<vmem>>, vector<512x2xf32>
    tpu.vector_store %arg4[%c0_9, %c0_10], %14 {strides = array<i32>} : memref<512x2xf32, #tpu.memory_space<vmem>>, vector<512x2xf32>,
    return
  }
  func.func @transform_0(%arg0: i32) -> (i32, i32) {
    %c0_i32 = arith.constant 0 : i32
    %c0_i32_0 = arith.constant 0 : i32
    return %arg0, %c0_i32 : i32, i32
  }
  func.func @transform_1(%arg0: i32) -> (i32, i32) {
    %c0_i32 = arith.constant 0 : i32
    %c0_i32_0 = arith.constant 0 : i32
    %c0_i32_1 = arith.constant 0 : i32
    return %c0_i32, %c0_i32_0 : i32, i32
  }
  func.func @transform_2(%arg0: i32) -> (i32, i32) {
    %c0_i32 = arith.constant 0 : i32
    %c0_i32_0 = arith.constant 0 : i32
    %c0_i32_1 = arith.constant 0 : i32
    return %c0_i32, %c0_i32_0 : i32, i32
  }
  func.func @transform_3(%arg0: i32) -> (i32, i32) {
    %c0_i32 = arith.constant 0 : i32
    %c0_i32_0 = arith.constant 0 : i32
    return %arg0, %c0_i32 : i32, i32
  }
}

module attributes {stable_mosaic.version = 11 : i64} {
  func.func @_spp_pool_conv2_kernel(%arg0: i32, %arg1: i32, %arg2: memref<1x16x16x2xf32, #tpu.memory_space<vmem>>, %arg3: memref<4x2x8xf32, #tpu.memory_space<vmem>>, %arg4: memref<1x8xf32, #tpu.memory_space<vmem>>, %arg5: memref<1x256x8xf32, #tpu.memory_space<vmem>>, %arg6: memref<20x26x2xf32, #tpu.memory_space<vmem>>, %arg7: memref<16x26x2xf32, #tpu.memory_space<vmem>>, %arg8: memref<256x8xf32, #tpu.memory_space<vmem>>) attributes {dimension_semantics = [#tpu.dimension_semantics<parallel>, #tpu.dimension_semantics<arbitrary>], iteration_bounds = array<i64: 2, 1>, scalar_prefetch = 0 : i64, scratch_operands = 3 : i64, tpu.core_type = #tpu.core_type<tc>, window_params = [{transform_indices = @transform_0, window_bounds = array<i64: 1, 16, 16, 2>}, {transform_indices = @transform_1, window_bounds = array<i64: 4, 2, 8>}, {pipeline_mode = #tpu.pipeline_mode<synchronous>, transform_indices = @transform_2, window_bounds = array<i64: 1, 8>}, {transform_indices = @transform_3, window_bounds = array<i64: 1, 256, 8>}]} {
    %c0_i32 = arith.constant 0 : i32
    %0 = arith.cmpi eq, %arg1, %c0_i32 : i32
    %1 = arith.extui %0 : i1 to i32
    %c0_i32_0 = arith.constant 0 : i32
    %2 = arith.cmpi ne, %1, %c0_i32_0 : i32
    scf.if %2 {
      %cst_136 = arith.constant 0xFF800000 : f32
      %96 = vector.broadcast %cst_136 : f32 to vector<20x26x2xf32>
      %c0_137 = arith.constant 0 : index
      %c0_138 = arith.constant 0 : index
      %c0_139 = arith.constant 0 : index
      %97 = vector.load %arg6[%c0_137, %c0_138, %c0_139] : memref<20x26x2xf32, #tpu.memory_space<vmem>>, vector<20x26x2xf32>
      tpu.vector_store %arg6[%c0_137, %c0_138, %c0_139], %96 {strides = array<i32>} : memref<20x26x2xf32, #tpu.memory_space<vmem>>, vector<20x26x2xf32>,
      %cst_140 = arith.constant 0.000000e+00 : f32
      %98 = vector.broadcast %cst_140 : f32 to vector<256x8xf32>
      %c0_141 = arith.constant 0 : index
      %c0_142 = arith.constant 0 : index
      %99 = vector.load %arg8[%c0_141, %c0_142] : memref<256x8xf32, #tpu.memory_space<vmem>>, vector<256x8xf32>
      tpu.vector_store %arg8[%c0_141, %c0_142], %98 {strides = array<i32>} : memref<256x8xf32, #tpu.memory_space<vmem>>, vector<256x8xf32>,
    } else {
    }
    %c0 = arith.constant 0 : index
    %c0_1 = arith.constant 0 : index
    %c0_2 = arith.constant 0 : index
    %c0_3 = arith.constant 0 : index
    %3 = vector.load %arg2[%c0, %c0_1, %c0_2, %c0_3] : memref<1x16x16x2xf32, #tpu.memory_space<vmem>>, vector<1x16x16x2xf32>
    %4 = vector.shape_cast %3 : vector<1x16x16x2xf32> to vector<16x16x2xf32>
    %c0_4 = arith.constant 0 : index
    %c0_5 = arith.constant 0 : index
    %5 = vector.load %arg8[%c0_4, %c0_5] : memref<256x8xf32, #tpu.memory_space<vmem>>, vector<256x8xf32>
    %6 = vector.shape_cast %4 : vector<16x16x2xf32> to vector<256x2xf32>
    %c0_6 = arith.constant 0 : index
    %c0_7 = arith.constant 0 : index
    %c0_8 = arith.constant 0 : index
    %7 = vector.load %arg3[%c0_6, %c0_7, %c0_8] : memref<4x2x8xf32, #tpu.memory_space<vmem>>, vector<1x2x8xf32>
    %8 = vector.shape_cast %7 : vector<1x2x8xf32> to vector<2x8xf32>
    %cst = arith.constant dense<0.000000e+00> : vector<256x8xf32>
    %9 = tpu.matmul %6, %8, %cst {dimension_numbers = #tpu.dot_dimension_numbers<[1], [0], [0], [1], [0, 0, 1, 1], [], []>} : vector<256x2xf32>, vector<2x8xf32>, vector<256x8xf32> -> vector<256x8xf32>
    %10 = arith.addf %5, %9 : vector<256x8xf32>
    %c0_9 = arith.constant 0 : index
    %c0_10 = arith.constant 0 : index
    %11 = vector.load %arg8[%c0_9, %c0_10] : memref<256x8xf32, #tpu.memory_space<vmem>>, vector<256x8xf32>
    tpu.vector_store %arg8[%c0_9, %c0_10], %10 {strides = array<i32>} : memref<256x8xf32, #tpu.memory_space<vmem>>, vector<256x8xf32>,
    %c2 = arith.constant 2 : index
    %c8 = arith.constant 8 : index
    %c0_11 = arith.constant 0 : index
    %12 = vector.load %arg6[%c2, %c8, %c0_11] : memref<20x26x2xf32, #tpu.memory_space<vmem>>, vector<16x16x2xf32>
    tpu.vector_store %arg6[%c2, %c8, %c0_11], %4 {strides = array<i32>} : memref<20x26x2xf32, #tpu.memory_space<vmem>>, vector<16x16x2xf32>,
    %c0_12 = arith.constant 0 : index
    %c0_13 = arith.constant 0 : index
    %c0_14 = arith.constant 0 : index
    %13 = vector.load %arg6[%c0_12, %c0_13, %c0_14] : memref<20x26x2xf32, #tpu.memory_space<vmem>>, vector<16x26x2xf32>
    %c1 = arith.constant 1 : index
    %c0_15 = arith.constant 0 : index
    %c0_16 = arith.constant 0 : index
    %14 = vector.load %arg6[%c1, %c0_15, %c0_16] : memref<20x26x2xf32, #tpu.memory_space<vmem>>, vector<16x26x2xf32>
    %15 = arith.maximumf %13, %14 : vector<16x26x2xf32>
    %c2_17 = arith.constant 2 : index
    %c0_18 = arith.constant 0 : index
    %c0_19 = arith.constant 0 : index
    %16 = vector.load %arg6[%c2_17, %c0_18, %c0_19] : memref<20x26x2xf32, #tpu.memory_space<vmem>>, vector<16x26x2xf32>
    %17 = arith.maximumf %15, %16 : vector<16x26x2xf32>
    %c3 = arith.constant 3 : index
    %c0_20 = arith.constant 0 : index
    %c0_21 = arith.constant 0 : index
    %18 = vector.load %arg6[%c3, %c0_20, %c0_21] : memref<20x26x2xf32, #tpu.memory_space<vmem>>, vector<16x26x2xf32>
    %19 = arith.maximumf %17, %18 : vector<16x26x2xf32>
    %c4 = arith.constant 4 : index
    %c0_22 = arith.constant 0 : index
    %c0_23 = arith.constant 0 : index
    %20 = vector.load %arg6[%c4, %c0_22, %c0_23] : memref<20x26x2xf32, #tpu.memory_space<vmem>>, vector<16x26x2xf32>
    %21 = arith.maximumf %19, %20 : vector<16x26x2xf32>
    %c0_24 = arith.constant 0 : index
    %c0_25 = arith.constant 0 : index
    %c0_26 = arith.constant 0 : index
    %22 = vector.load %arg7[%c0_24, %c0_25, %c0_26] : memref<16x26x2xf32, #tpu.memory_space<vmem>>, vector<16x26x2xf32>
    tpu.vector_store %arg7[%c0_24, %c0_25, %c0_26], %21 {strides = array<i32>} : memref<16x26x2xf32, #tpu.memory_space<vmem>>, vector<16x26x2xf32>,
    %c0_27 = arith.constant 0 : index
    %c6 = arith.constant 6 : index
    %c0_28 = arith.constant 0 : index
    %23 = vector.load %arg7[%c0_27, %c6, %c0_28] : memref<16x26x2xf32, #tpu.memory_space<vmem>>, vector<16x16x2xf32>
    %c0_29 = arith.constant 0 : index
    %c7 = arith.constant 7 : index
    %c0_30 = arith.constant 0 : index
    %24 = vector.load %arg7[%c0_29, %c7, %c0_30] : memref<16x26x2xf32, #tpu.memory_space<vmem>>, vector<16x16x2xf32>
    %25 = arith.maximumf %23, %24 : vector<16x16x2xf32>
    %c0_31 = arith.constant 0 : index
    %c8_32 = arith.constant 8 : index
    %c0_33 = arith.constant 0 : index
    %26 = vector.load %arg7[%c0_31, %c8_32, %c0_33] : memref<16x26x2xf32, #tpu.memory_space<vmem>>, vector<16x16x2xf32>
    %27 = arith.maximumf %25, %26 : vector<16x16x2xf32>
    %c0_34 = arith.constant 0 : index
    %c9 = arith.constant 9 : index
    %c0_35 = arith.constant 0 : index
    %28 = vector.load %arg7[%c0_34, %c9, %c0_35] : memref<16x26x2xf32, #tpu.memory_space<vmem>>, vector<16x16x2xf32>
    %29 = arith.maximumf %27, %28 : vector<16x16x2xf32>
    %c0_36 = arith.constant 0 : index
    %c10 = arith.constant 10 : index
    %c0_37 = arith.constant 0 : index
    %30 = vector.load %arg7[%c0_36, %c10, %c0_37] : memref<16x26x2xf32, #tpu.memory_space<vmem>>, vector<16x16x2xf32>
    %31 = arith.maximumf %29, %30 : vector<16x16x2xf32>
    %c0_38 = arith.constant 0 : index
    %c0_39 = arith.constant 0 : index
    %32 = vector.load %arg8[%c0_38, %c0_39] : memref<256x8xf32, #tpu.memory_space<vmem>>, vector<256x8xf32>
    %33 = vector.shape_cast %31 : vector<16x16x2xf32> to vector<256x2xf32>
    %c1_40 = arith.constant 1 : index
    %c0_41 = arith.constant 0 : index
    %c0_42 = arith.constant 0 : index
    %34 = vector.load %arg3[%c1_40, %c0_41, %c0_42] : memref<4x2x8xf32, #tpu.memory_space<vmem>>, vector<1x2x8xf32>
    %35 = vector.shape_cast %34 : vector<1x2x8xf32> to vector<2x8xf32>
    %cst_43 = arith.constant dense<0.000000e+00> : vector<256x8xf32>
    %36 = tpu.matmul %33, %35, %cst_43 {dimension_numbers = #tpu.dot_dimension_numbers<[1], [0], [0], [1], [0, 0, 1, 1], [], []>} : vector<256x2xf32>, vector<2x8xf32>, vector<256x8xf32> -> vector<256x8xf32>
    %37 = arith.addf %32, %36 : vector<256x8xf32>
    %c0_44 = arith.constant 0 : index
    %c0_45 = arith.constant 0 : index
    %38 = vector.load %arg8[%c0_44, %c0_45] : memref<256x8xf32, #tpu.memory_space<vmem>>, vector<256x8xf32>
    tpu.vector_store %arg8[%c0_44, %c0_45], %37 {strides = array<i32>} : memref<256x8xf32, #tpu.memory_space<vmem>>, vector<256x8xf32>,
    %c2_46 = arith.constant 2 : index
    %c8_47 = arith.constant 8 : index
    %c0_48 = arith.constant 0 : index
    %39 = vector.load %arg6[%c2_46, %c8_47, %c0_48] : memref<20x26x2xf32, #tpu.memory_space<vmem>>, vector<16x16x2xf32>
    tpu.vector_store %arg6[%c2_46, %c8_47, %c0_48], %31 {strides = array<i32>} : memref<20x26x2xf32, #tpu.memory_space<vmem>>, vector<16x16x2xf32>,
    %c0_49 = arith.constant 0 : index
    %c0_50 = arith.constant 0 : index
    %c0_51 = arith.constant 0 : index
    %40 = vector.load %arg6[%c0_49, %c0_50, %c0_51] : memref<20x26x2xf32, #tpu.memory_space<vmem>>, vector<16x26x2xf32>
    %c1_52 = arith.constant 1 : index
    %c0_53 = arith.constant 0 : index
    %c0_54 = arith.constant 0 : index
    %41 = vector.load %arg6[%c1_52, %c0_53, %c0_54] : memref<20x26x2xf32, #tpu.memory_space<vmem>>, vector<16x26x2xf32>
    %42 = arith.maximumf %40, %41 : vector<16x26x2xf32>
    %c2_55 = arith.constant 2 : index
    %c0_56 = arith.constant 0 : index
    %c0_57 = arith.constant 0 : index
    %43 = vector.load %arg6[%c2_55, %c0_56, %c0_57] : memref<20x26x2xf32, #tpu.memory_space<vmem>>, vector<16x26x2xf32>
    %44 = arith.maximumf %42, %43 : vector<16x26x2xf32>
    %c3_58 = arith.constant 3 : index
    %c0_59 = arith.constant 0 : index
    %c0_60 = arith.constant 0 : index
    %45 = vector.load %arg6[%c3_58, %c0_59, %c0_60] : memref<20x26x2xf32, #tpu.memory_space<vmem>>, vector<16x26x2xf32>
    %46 = arith.maximumf %44, %45 : vector<16x26x2xf32>
    %c4_61 = arith.constant 4 : index
    %c0_62 = arith.constant 0 : index
    %c0_63 = arith.constant 0 : index
    %47 = vector.load %arg6[%c4_61, %c0_62, %c0_63] : memref<20x26x2xf32, #tpu.memory_space<vmem>>, vector<16x26x2xf32>
    %48 = arith.maximumf %46, %47 : vector<16x26x2xf32>
    %c0_64 = arith.constant 0 : index
    %c0_65 = arith.constant 0 : index
    %c0_66 = arith.constant 0 : index
    %49 = vector.load %arg7[%c0_64, %c0_65, %c0_66] : memref<16x26x2xf32, #tpu.memory_space<vmem>>, vector<16x26x2xf32>
    tpu.vector_store %arg7[%c0_64, %c0_65, %c0_66], %48 {strides = array<i32>} : memref<16x26x2xf32, #tpu.memory_space<vmem>>, vector<16x26x2xf32>,
    %c0_67 = arith.constant 0 : index
    %c6_68 = arith.constant 6 : index
    %c0_69 = arith.constant 0 : index
    %50 = vector.load %arg7[%c0_67, %c6_68, %c0_69] : memref<16x26x2xf32, #tpu.memory_space<vmem>>, vector<16x16x2xf32>
    %c0_70 = arith.constant 0 : index
    %c7_71 = arith.constant 7 : index
    %c0_72 = arith.constant 0 : index
    %51 = vector.load %arg7[%c0_70, %c7_71, %c0_72] : memref<16x26x2xf32, #tpu.memory_space<vmem>>, vector<16x16x2xf32>
    %52 = arith.maximumf %50, %51 : vector<16x16x2xf32>
    %c0_73 = arith.constant 0 : index
    %c8_74 = arith.constant 8 : index
    %c0_75 = arith.constant 0 : index
    %53 = vector.load %arg7[%c0_73, %c8_74, %c0_75] : memref<16x26x2xf32, #tpu.memory_space<vmem>>, vector<16x16x2xf32>
    %54 = arith.maximumf %52, %53 : vector<16x16x2xf32>
    %c0_76 = arith.constant 0 : index
    %c9_77 = arith.constant 9 : index
    %c0_78 = arith.constant 0 : index
    %55 = vector.load %arg7[%c0_76, %c9_77, %c0_78] : memref<16x26x2xf32, #tpu.memory_space<vmem>>, vector<16x16x2xf32>
    %56 = arith.maximumf %54, %55 : vector<16x16x2xf32>
    %c0_79 = arith.constant 0 : index
    %c10_80 = arith.constant 10 : index
    %c0_81 = arith.constant 0 : index
    %57 = vector.load %arg7[%c0_79, %c10_80, %c0_81] : memref<16x26x2xf32, #tpu.memory_space<vmem>>, vector<16x16x2xf32>
    %58 = arith.maximumf %56, %57 : vector<16x16x2xf32>
    %c0_82 = arith.constant 0 : index
    %c0_83 = arith.constant 0 : index
    %59 = vector.load %arg8[%c0_82, %c0_83] : memref<256x8xf32, #tpu.memory_space<vmem>>, vector<256x8xf32>
    %60 = vector.shape_cast %58 : vector<16x16x2xf32> to vector<256x2xf32>
    %c2_84 = arith.constant 2 : index
    %c0_85 = arith.constant 0 : index
    %c0_86 = arith.constant 0 : index
    %61 = vector.load %arg3[%c2_84, %c0_85, %c0_86] : memref<4x2x8xf32, #tpu.memory_space<vmem>>, vector<1x2x8xf32>
    %62 = vector.shape_cast %61 : vector<1x2x8xf32> to vector<2x8xf32>
    %cst_87 = arith.constant dense<0.000000e+00> : vector<256x8xf32>
    %63 = tpu.matmul %60, %62, %cst_87 {dimension_numbers = #tpu.dot_dimension_numbers<[1], [0], [0], [1], [0, 0, 1, 1], [], []>} : vector<256x2xf32>, vector<2x8xf32>, vector<256x8xf32> -> vector<256x8xf32>
    %64 = arith.addf %59, %63 : vector<256x8xf32>
    %c0_88 = arith.constant 0 : index
    %c0_89 = arith.constant 0 : index
    %65 = vector.load %arg8[%c0_88, %c0_89] : memref<256x8xf32, #tpu.memory_space<vmem>>, vector<256x8xf32>
    tpu.vector_store %arg8[%c0_88, %c0_89], %64 {strides = array<i32>} : memref<256x8xf32, #tpu.memory_space<vmem>>, vector<256x8xf32>,
    %c2_90 = arith.constant 2 : index
    %c8_91 = arith.constant 8 : index
    %c0_92 = arith.constant 0 : index
    %66 = vector.load %arg6[%c2_90, %c8_91, %c0_92] : memref<20x26x2xf32, #tpu.memory_space<vmem>>, vector<16x16x2xf32>
    tpu.vector_store %arg6[%c2_90, %c8_91, %c0_92], %58 {strides = array<i32>} : memref<20x26x2xf32, #tpu.memory_space<vmem>>, vector<16x16x2xf32>,
    %c0_93 = arith.constant 0 : index
    %c0_94 = arith.constant 0 : index
    %c0_95 = arith.constant 0 : index
    %67 = vector.load %arg6[%c0_93, %c0_94, %c0_95] : memref<20x26x2xf32, #tpu.memory_space<vmem>>, vector<16x26x2xf32>
    %c1_96 = arith.constant 1 : index
    %c0_97 = arith.constant 0 : index
    %c0_98 = arith.constant 0 : index
    %68 = vector.load %arg6[%c1_96, %c0_97, %c0_98] : memref<20x26x2xf32, #tpu.memory_space<vmem>>, vector<16x26x2xf32>
    %69 = arith.maximumf %67, %68 : vector<16x26x2xf32>
    %c2_99 = arith.constant 2 : index
    %c0_100 = arith.constant 0 : index
    %c0_101 = arith.constant 0 : index
    %70 = vector.load %arg6[%c2_99, %c0_100, %c0_101] : memref<20x26x2xf32, #tpu.memory_space<vmem>>, vector<16x26x2xf32>
    %71 = arith.maximumf %69, %70 : vector<16x26x2xf32>
    %c3_102 = arith.constant 3 : index
    %c0_103 = arith.constant 0 : index
    %c0_104 = arith.constant 0 : index
    %72 = vector.load %arg6[%c3_102, %c0_103, %c0_104] : memref<20x26x2xf32, #tpu.memory_space<vmem>>, vector<16x26x2xf32>
    %73 = arith.maximumf %71, %72 : vector<16x26x2xf32>
    %c4_105 = arith.constant 4 : index
    %c0_106 = arith.constant 0 : index
    %c0_107 = arith.constant 0 : index
    %74 = vector.load %arg6[%c4_105, %c0_106, %c0_107] : memref<20x26x2xf32, #tpu.memory_space<vmem>>, vector<16x26x2xf32>
    %75 = arith.maximumf %73, %74 : vector<16x26x2xf32>
    %c0_108 = arith.constant 0 : index
    %c0_109 = arith.constant 0 : index
    %c0_110 = arith.constant 0 : index
    %76 = vector.load %arg7[%c0_108, %c0_109, %c0_110] : memref<16x26x2xf32, #tpu.memory_space<vmem>>, vector<16x26x2xf32>
    tpu.vector_store %arg7[%c0_108, %c0_109, %c0_110], %75 {strides = array<i32>} : memref<16x26x2xf32, #tpu.memory_space<vmem>>, vector<16x26x2xf32>,
    %c0_111 = arith.constant 0 : index
    %c6_112 = arith.constant 6 : index
    %c0_113 = arith.constant 0 : index
    %77 = vector.load %arg7[%c0_111, %c6_112, %c0_113] : memref<16x26x2xf32, #tpu.memory_space<vmem>>, vector<16x16x2xf32>
    %c0_114 = arith.constant 0 : index
    %c7_115 = arith.constant 7 : index
    %c0_116 = arith.constant 0 : index
    %78 = vector.load %arg7[%c0_114, %c7_115, %c0_116] : memref<16x26x2xf32, #tpu.memory_space<vmem>>, vector<16x16x2xf32>
    %79 = arith.maximumf %77, %78 : vector<16x16x2xf32>
    %c0_117 = arith.constant 0 : index
    %c8_118 = arith.constant 8 : index
    %c0_119 = arith.constant 0 : index
    %80 = vector.load %arg7[%c0_117, %c8_118, %c0_119] : memref<16x26x2xf32, #tpu.memory_space<vmem>>, vector<16x16x2xf32>
    %81 = arith.maximumf %79, %80 : vector<16x16x2xf32>
    %c0_120 = arith.constant 0 : index
    %c9_121 = arith.constant 9 : index
    %c0_122 = arith.constant 0 : index
    %82 = vector.load %arg7[%c0_120, %c9_121, %c0_122] : memref<16x26x2xf32, #tpu.memory_space<vmem>>, vector<16x16x2xf32>
    %83 = arith.maximumf %81, %82 : vector<16x16x2xf32>
    %c0_123 = arith.constant 0 : index
    %c10_124 = arith.constant 10 : index
    %c0_125 = arith.constant 0 : index
    %84 = vector.load %arg7[%c0_123, %c10_124, %c0_125] : memref<16x26x2xf32, #tpu.memory_space<vmem>>, vector<16x16x2xf32>
    %85 = arith.maximumf %83, %84 : vector<16x16x2xf32>
    %c0_126 = arith.constant 0 : index
    %c0_127 = arith.constant 0 : index
    %86 = vector.load %arg8[%c0_126, %c0_127] : memref<256x8xf32, #tpu.memory_space<vmem>>, vector<256x8xf32>
    %87 = vector.shape_cast %85 : vector<16x16x2xf32> to vector<256x2xf32>
    %c3_128 = arith.constant 3 : index
    %c0_129 = arith.constant 0 : index
    %c0_130 = arith.constant 0 : index
    %88 = vector.load %arg3[%c3_128, %c0_129, %c0_130] : memref<4x2x8xf32, #tpu.memory_space<vmem>>, vector<1x2x8xf32>
    %89 = vector.shape_cast %88 : vector<1x2x8xf32> to vector<2x8xf32>
    %cst_131 = arith.constant dense<0.000000e+00> : vector<256x8xf32>
    %90 = tpu.matmul %87, %89, %cst_131 {dimension_numbers = #tpu.dot_dimension_numbers<[1], [0], [0], [1], [0, 0, 1, 1], [], []>} : vector<256x2xf32>, vector<2x8xf32>, vector<256x8xf32> -> vector<256x8xf32>
    %91 = arith.addf %86, %90 : vector<256x8xf32>
    %c0_132 = arith.constant 0 : index
    %c0_133 = arith.constant 0 : index
    %92 = vector.load %arg8[%c0_132, %c0_133] : memref<256x8xf32, #tpu.memory_space<vmem>>, vector<256x8xf32>
    tpu.vector_store %arg8[%c0_132, %c0_133], %91 {strides = array<i32>} : memref<256x8xf32, #tpu.memory_space<vmem>>, vector<256x8xf32>,
    %c0_i32_134 = arith.constant 0 : i32
    %93 = arith.cmpi eq, %arg1, %c0_i32_134 : i32
    %94 = arith.extui %93 : i1 to i32
    %c0_i32_135 = arith.constant 0 : i32
    %95 = arith.cmpi ne, %94, %c0_i32_135 : i32
    scf.if %95 {
      %c0_136 = arith.constant 0 : index
      %c0_137 = arith.constant 0 : index
      %96 = vector.load %arg8[%c0_136, %c0_137] : memref<256x8xf32, #tpu.memory_space<vmem>>, vector<256x8xf32>
      %c0_138 = arith.constant 0 : index
      %c0_139 = arith.constant 0 : index
      %97 = vector.load %arg4[%c0_138, %c0_139] : memref<1x8xf32, #tpu.memory_space<vmem>>, vector<1x8xf32>
      %98 = vector.broadcast %97 : vector<1x8xf32> to vector<256x8xf32>
      %99 = arith.addf %96, %98 : vector<256x8xf32>
      %cst_140 = arith.constant 3.000000e+00 : f32
      %100 = vector.broadcast %cst_140 : f32 to vector<256x8xf32>
      %101 = arith.addf %99, %100 : vector<256x8xf32>
      %cst_141 = arith.constant 0.000000e+00 : f32
      %cst_142 = arith.constant 6.000000e+00 : f32
      %102 = vector.broadcast %cst_141 : f32 to vector<256x8xf32>
      %103 = arith.maximumf %102, %101 : vector<256x8xf32>
      %104 = vector.broadcast %cst_142 : f32 to vector<256x8xf32>
      %105 = arith.minimumf %104, %103 : vector<256x8xf32>
      %106 = arith.mulf %99, %105 : vector<256x8xf32>
      %cst_143 = arith.constant 6.000000e+00 : f32
      %107 = vector.broadcast %cst_143 : f32 to vector<256x8xf32>
      %108 = arith.divf %106, %107 : vector<256x8xf32>
      %c0_144 = arith.constant 0 : index
      %c0_145 = arith.constant 0 : index
      %c0_146 = arith.constant 0 : index
      %109 = vector.load %arg5[%c0_144, %c0_145, %c0_146] : memref<1x256x8xf32, #tpu.memory_space<vmem>>, vector<1x256x8xf32>
      %110 = vector.shape_cast %109 : vector<1x256x8xf32> to vector<256x8xf32>
      %111 = vector.shape_cast %108 : vector<256x8xf32> to vector<1x256x8xf32>
      tpu.vector_store %arg5[%c0_144, %c0_145, %c0_146], %111 {strides = array<i32>} : memref<1x256x8xf32, #tpu.memory_space<vmem>>, vector<1x256x8xf32>,
    } else {
    }
    return
  }
  func.func @transform_0(%arg0: i32, %arg1: i32) -> (i32, i32, i32, i32) {
    %c0_i32 = arith.constant 0 : i32
    %c0_i32_0 = arith.constant 0 : i32
    %c0_i32_1 = arith.constant 0 : i32
    return %arg0, %c0_i32, %c0_i32_0, %arg1 : i32, i32, i32, i32
  }
  func.func @transform_1(%arg0: i32, %arg1: i32) -> (i32, i32, i32) {
    %c0_i32 = arith.constant 0 : i32
    %c0_i32_0 = arith.constant 0 : i32
    %c0_i32_1 = arith.constant 0 : i32
    return %c0_i32, %arg1, %c0_i32_0 : i32, i32, i32
  }
  func.func @transform_2(%arg0: i32, %arg1: i32) -> (i32, i32) {
    %c0_i32 = arith.constant 0 : i32
    %c0_i32_0 = arith.constant 0 : i32
    %c0_i32_1 = arith.constant 0 : i32
    return %c0_i32, %c0_i32_0 : i32, i32
  }
  func.func @transform_3(%arg0: i32, %arg1: i32) -> (i32, i32, i32) {
    %c0_i32 = arith.constant 0 : i32
    %c0_i32_0 = arith.constant 0 : i32
    %c0_i32_1 = arith.constant 0 : i32
    return %arg0, %c0_i32, %c0_i32_0 : i32, i32, i32
  }
}

</mosaic_0001>

<bundles_post_ra>
// kernel: spp_bottleneck_forward.2
= control target key start
LH: loop header
LB: loop body
LE: loop exit
PB: predicated region body
PF: predicated region fallthrough
CT: control target
= control target key end

     0   :  { %vm279_vm0 = vcmask 1043456   ;;  %vm86_vm1 = vcmask 31744   ;;  %vm989_vm2 = vcmask 15360   ;;  %s1959_s1 = inlined_call_operand.vmem [shape: f32[4,2], index: 1, kind: input, shape index: {}]   ;;  %s1960_s0 = inlined_call_operand.vmem [shape: f32[512,4], index: 0, kind: input, shape index: {}]   ;;  %s1961_s2 = inlined_call_operand.vmem [shape: f32[1,2], index: 2, kind: input, shape index: {}]   ;;  %s1962_s3 = inlined_call_operand.vmem [shape: f32[512,2], index: 3, kind: output, shape index: {}]  }
   0x1   :  { %v78_v0 = vld [vmem:[%s1959_s1] sm:$0xf]  ;;  %v15_v3 = vld [vmem:[%s1960_s0 + $0x8] sm:$0xff]  ;;  %v16_v5 = vld [vmem:[%s1960_s0 + $0x10] sm:$0xff] }
   0x2   :  { %v14_v1 = vld [vmem:[%s1960_s0] sm:$0xff]  ;;  %1189 = vmatprep.subr.msk.mxu0 %vm279_vm0, %v78_v0  ;;  %1287 = vmatprep.subr.msk.mxu1 %vm279_vm0, %v78_v0  ;;  %v47_v4 = vld [vmem:[%s1960_s0 + $0x108] sm:$0xff]  ;;  %v48_v6 = vld [vmem:[%s1960_s0 + $0x110] sm:$0xff] }
   0x3   :  { %v46_v2 = vld [vmem:[%s1960_s0 + $0x100] sm:$0xff]  ;;  %1190 = vmatpush3.msk.msra.mxu0 %vm279_vm0, %v78_v0  ;;  %1288 = vmatpush3.msk.msra.mxu1 %vm279_vm0, %v78_v0  ;;  %v17_v7 = vld [vmem:[%s1960_s0 + $0x18] sm:$0xff]  ;;  %v19_v11 = vld [vmem:[%s1960_s0 + $0x28] sm:$0xff] }
   0x4   :  { %1191 = vmatprep.mubr.msk.f32.mxu0 %vm86_vm1, %v14_v1  ;;  %1239 = vmatprep.mubr.msk.f32.mxu1 %vm86_vm1, %v46_v2  ;;  %v49_v8 = vld [vmem:[%s1960_s0 + $0x118] sm:$0xff]  ;;  %v18_v9 = vld [vmem:[%s1960_s0 + $0x20] sm:$0xff]  ;;  %v51_v12 = vld [vmem:[%s1960_s0 + $0x128] sm:$0xff] }
   0x5   :  { %1192 = vmatmul.mubr.msk.f32.vlgmr.msra.gmra.mxu0 %vm86_vm1, %v15_v3  ;;  %1240 = vmatmul.mubr.msk.f32.vlgmr.msra.gmra.mxu1 %vm86_vm1, %v47_v4  ;;  %v50_v10 = vld [vmem:[%s1960_s0 + $0x120] sm:$0xff]  ;;  %v20_v13 = vld [vmem:[%s1960_s0 + $0x30] sm:$0xff]  ;;  %v21_v15 = vld [vmem:[%s1960_s0 + $0x38] sm:$0xff] }
   0x6   :  { %1194 = vmatprep.mubr.msk.f32.mxu0 %vm86_vm1, %v16_v5  ;;  %1242 = vmatprep.mubr.msk.f32.mxu1 %vm86_vm1, %v48_v6  ;;  %v52_v14 = vld [vmem:[%s1960_s0 + $0x130] sm:$0xff]  ;;  %v53_v16 = vld [vmem:[%s1960_s0 + $0x138] sm:$0xff]  ;;  %v22_v17 = vld [vmem:[%s1960_s0 + $0x40] sm:$0xff] }
   0x7   :  { %v54_v18 = vld [vmem:[%s1960_s0 + $0x140] sm:$0xff]  ;;  %v23_v19 = vld [vmem:[%s1960_s0 + $0x48] sm:$0xff]  ;;  %v24_v21 = vld [vmem:[%s1960_s0 + $0x50] sm:$0xff] }
   0x8   :  { %v55_v20 = vld [vmem:[%s1960_s0 + $0x148] sm:$0xff]  ;;  %v56_v22 = vld [vmem:[%s1960_s0 + $0x150] sm:$0xff]  ;;  %v25_v23 = vld [vmem:[%s1960_s0 + $0x58] sm:$0xff] }
   0x9   :  { %1195 = vmatmul.mubr.msk.f32.gmra.mxu0 %vm86_vm1, %v17_v7  ;;  %1243 = vmatmul.mubr.msk.f32.gmra.mxu1 %vm86_vm1, %v49_v8  ;;  %v57_v24 = vld [vmem:[%s1960_s0 + $0x158] sm:$0xff]  ;;  %v26_v25 = vld [vmem:[%s1960_s0 + $0x60] sm:$0xff]  ;;  %v27_v27 = vld [vmem:[%s1960_s0 + $0x68] sm:$0xff] }
   0xa   :  { %1197 = vmatprep.mubr.msk.f32.mxu0 %vm86_vm1, %v18_v9  ;;  %1245 = vmatprep.mubr.msk.f32.mxu1 %vm86_vm1, %v50_v10  ;;  %v58_v26 = vld [vmem:[%s1960_s0 + $0x160] sm:$0xff]  ;;  %v59_v28 = vld [vmem:[%s1960_s0 + $0x168] sm:$0xff]  ;;  %v28_v29 = vld [vmem:[%s1960_s0 + $0x70] sm:$0xff] }
   0xb   :  { %v60_v30 = vld [vmem:[%s1960_s0 + $0x170] sm:$0xff]  ;;  %v29_v31 = vld [vmem:[%s1960_s0 + $0x78] sm:$0xff]  ;;  %v30_v33 = vld [vmem:[%s1960_s0 + $0x80] sm:$0xff] }
   0xc   :  { %v61_v32 = vld [vmem:[%s1960_s0 + $0x178] sm:$0xff]  ;;  %v62_v34 = vld [vmem:[%s1960_s0 + $0x180] sm:$0xff]  ;;  %v31_v35 = vld [vmem:[%s1960_s0 + $0x88] sm:$0xff] }
   0xd   :  { %1198 = vmatmul.mubr.msk.f32.gmra.mxu0 %vm86_vm1, %v19_v11  ;;  %1246 = vmatmul.mubr.msk.f32.gmra.mxu1 %vm86_vm1, %v51_v12  ;;  %v63_v36 = vld [vmem:[%s1960_s0 + $0x188] sm:$0xff]  ;;  %v32_v37 = vld [vmem:[%s1960_s0 + $0x90] sm:$0xff]  ;;  %v33_v39 = vld [vmem:[%s1960_s0 + $0x98] sm:$0xff] }
   0xe   :  { %1200 = vmatprep.mubr.msk.f32.mxu0 %vm86_vm1, %v20_v13  ;;  %1248 = vmatprep.mubr.msk.f32.mxu1 %vm86_vm1, %v52_v14  ;;  %v64_v38 = vld [vmem:[%s1960_s0 + $0x190] sm:$0xff]  ;;  %v65_v40 = vld [vmem:[%s1960_s0 + $0x198] sm:$0xff]  ;;  %v34_v41 = vld [vmem:[%s1960_s0 + $0xa0] sm:$0xff] }
   0xf   :  { %v66_v42 = vld [vmem:[%s1960_s0 + $0x1a0] sm:$0xff]  ;;  %v35_v43 = vld [vmem:[%s1960_s0 + $0xa8] sm:$0xff]  ;;  %v36_v45 = vld [vmem:[%s1960_s0 + $0xb0] sm:$0xff] }
  0x10   :  { %v67_v44 = vld [vmem:[%s1960_s0 + $0x1a8] sm:$0xff]  ;;  %v68_v46 = vld [vmem:[%s1960_s0 + $0x1b0] sm:$0xff]  ;;  %v37_v47 = vld [vmem:[%s1960_s0 + $0xb8] sm:$0xff] }
  0x11   :  { %1201 = vmatmul.mubr.msk.f32.gmra.mxu0 %vm86_vm1, %v21_v15  ;;  %1249 = vmatmul.mubr.msk.f32.gmra.mxu1 %vm86_vm1, %v53_v16  ;;  %v69_v48 = vld [vmem:[%s1960_s0 + $0x1b8] sm:$0xff]  ;;  %v38_v49 = vld [vmem:[%s1960_s0 + $0xc0] sm:$0xff]  ;;  %v39_v51 = vld [vmem:[%s1960_s0 + $0xc8] sm:$0xff] }
  0x12   :  { %1203 = vmatprep.mubr.msk.f32.mxu0 %vm86_vm1, %v22_v17  ;;  %1251 = vmatprep.mubr.msk.f32.mxu1 %vm86_vm1, %v54_v18  ;;  %v70_v50 = vld [vmem:[%s1960_s0 + $0x1c0] sm:$0xff]  ;;  %v71_v52 = vld [vmem:[%s1960_s0 + $0x1c8] sm:$0xff]  ;;  %v40_v53 = vld [vmem:[%s1960_s0 + $0xd0] sm:$0xff] }
  0x13   :  { %v72_v54 = vld [vmem:[%s1960_s0 + $0x1d0] sm:$0xff]  ;;  %v41_v55 = vld [vmem:[%s1960_s0 + $0xd8] sm:$0xff]  ;;  %v42_v57 = vld [vmem:[%s1960_s0 + $0xe0] sm:$0xff] }
  0x14   :  { %v73_v56 = vld [vmem:[%s1960_s0 + $0x1d8] sm:$0xff]  ;;  %v74_v58 = vld [vmem:[%s1960_s0 + $0x1e0] sm:$0xff]  ;;  %v43_v59 = vld [vmem:[%s1960_s0 + $0xe8] sm:$0xff] }
  0x15   :  { %1204 = vmatmul.mubr.msk.f32.gmra.mxu0 %vm86_vm1, %v23_v19  ;;  %1252 = vmatmul.mubr.msk.f32.gmra.mxu1 %vm86_vm1, %v55_v20  ;;  %v75_v60 = vld [vmem:[%s1960_s0 + $0x1e8] sm:$0xff]  ;;  %v44_v61 = vld [vmem:[%s1960_s0 + $0xf0] sm:$0xff]  ;;  %v45_v63 = vld [vmem:[%s1960_s0 + $0xf8] sm:$0xff] }
  0x16   :  { %1206 = vmatprep.mubr.msk.f32.mxu0 %vm86_vm1, %v24_v21  ;;  %1254 = vmatprep.mubr.msk.f32.mxu1 %vm86_vm1, %v56_v22  ;;  %v76_v62 = vld [vmem:[%s1960_s0 + $0x1f0] sm:$0xff]  ;;  %v77_v0 = vld [vmem:[%s1960_s0 + $0x1f8] sm:$0xff]  ;;  %v1571_v1 = vld [vmem:[%s1961_s2] ss:$0 sm:$0xff] }
  0x19   :  { %1207 = vmatmul.mubr.msk.f32.gmra.mxu0 %vm86_vm1, %v25_v23  ;;  %1255 = vmatmul.mubr.msk.f32.gmra.mxu1 %vm86_vm1, %v57_v24 }
  0x1a   :  { %1209 = vmatprep.mubr.msk.f32.mxu0 %vm86_vm1, %v26_v25  ;;  %1257 = vmatprep.mubr.msk.f32.mxu1 %vm86_vm1, %v58_v26 }
  0x1d   :  { %1210 = vmatmul.mubr.msk.f32.gmra.mxu0 %vm86_vm1, %v27_v27  ;;  %1258 = vmatmul.mubr.msk.f32.gmra.mxu1 %vm86_vm1, %v59_v28 }
  0x1e   :  { %1212 = vmatprep.mubr.msk.f32.mxu0 %vm86_vm1, %v28_v29  ;;  %1260 = vmatprep.mubr.msk.f32.mxu1 %vm86_vm1, %v60_v30 }
  0x21   :  { %1213 = vmatmul.mubr.msk.f32.gmra.mxu0 %vm86_vm1, %v29_v31  ;;  %1261 = vmatmul.mubr.msk.f32.gmra.mxu1 %vm86_vm1, %v61_v32 }
  0x22   :  { %1215 = vmatprep.mubr.msk.f32.mxu0 %vm86_vm1, %v30_v33  ;;  %1263 = vmatprep.mubr.msk.f32.mxu1 %vm86_vm1, %v62_v34 }
  0x25   :  { %1216 = vmatmul.mubr.msk.f32.gmra.mxu0 %vm86_vm1, %v31_v35  ;;  %1264 = vmatmul.mubr.msk.f32.gmra.mxu1 %vm86_vm1, %v63_v36 }
  0x26   :  { %1218 = vmatprep.mubr.msk.f32.mxu0 %vm86_vm1, %v32_v37  ;;  %1266 = vmatprep.mubr.msk.f32.mxu1 %vm86_vm1, %v64_v38 }
  0x29   :  { %1219 = vmatmul.mubr.msk.f32.gmra.mxu0 %vm86_vm1, %v33_v39  ;;  %1267 = vmatmul.mubr.msk.f32.gmra.mxu1 %vm86_vm1, %v65_v40 }
  0x2a   :  { %1221 = vmatprep.mubr.msk.f32.mxu0 %vm86_vm1, %v34_v41  ;;  %1269 = vmatprep.mubr.msk.f32.mxu1 %vm86_vm1, %v66_v42 }
  0x2d   :  { %1222 = vmatmul.mubr.msk.f32.gmra.mxu0 %vm86_vm1, %v35_v43  ;;  %1270 = vmatmul.mubr.msk.f32.gmra.mxu1 %vm86_vm1, %v67_v44 }
  0x2e   :  { %1224 = vmatprep.mubr.msk.f32.mxu0 %vm86_vm1, %v36_v45  ;;  %1272 = vmatprep.mubr.msk.f32.mxu1 %vm86_vm1, %v68_v46 }
  0x31   :  { %1225 = vmatmul.mubr.msk.f32.gmra.mxu0 %vm86_vm1, %v37_v47  ;;  %1273 = vmatmul.mubr.msk.f32.gmra.mxu1 %vm86_vm1, %v69_v48 }
  0x32   :  { %1227 = vmatprep.mubr.msk.f32.mxu0 %vm86_vm1, %v38_v49  ;;  %1275 = vmatprep.mubr.msk.f32.mxu1 %vm86_vm1, %v70_v50 }
  0x35   :  { %1228 = vmatmul.mubr.msk.f32.gmra.mxu0 %vm86_vm1, %v39_v51  ;;  %1276 = vmatmul.mubr.msk.f32.gmra.mxu1 %vm86_vm1, %v71_v52 }
  0x36   :  { %1230 = vmatprep.mubr.msk.f32.mxu0 %vm86_vm1, %v40_v53  ;;  %1278 = vmatprep.mubr.msk.f32.mxu1 %vm86_vm1, %v72_v54 }
  0x39   :  { %1231 = vmatmul.mubr.msk.f32.gmra.mxu0 %vm86_vm1, %v41_v55  ;;  %1279 = vmatmul.mubr.msk.f32.gmra.mxu1 %vm86_vm1, %v73_v56 }
  0x3a   :  { %1233 = vmatprep.mubr.msk.f32.mxu0 %vm86_vm1, %v42_v57  ;;  %1281 = vmatprep.mubr.msk.f32.mxu1 %vm86_vm1, %v74_v58 }
  0x3d   :  { %1234 = vmatmul.mubr.msk.f32.gmra.mxu0 %vm86_vm1, %v43_v59  ;;  %1282 = vmatmul.mubr.msk.f32.gmra.mxu1 %vm86_vm1, %v75_v60 }
  0x3e   :  { %1236 = vmatprep.mubr.msk.f32.mxu0 %vm86_vm1, %v44_v61  ;;  %1284 = vmatprep.mubr.msk.f32.mxu1 %vm86_vm1, %v76_v62 }
  0x41   :  { %1237 = vmatmul.mubr.msk.f32.gmra.mxu0 %vm86_vm1, %v45_v63  ;;  %1285 = vmatmul.mubr.msk.f32.gmra.mxu1 %vm86_vm1, %v77_v0 }
  0xc5   :  { %v1193_v2 = vpop.f32.mrf.mxu0  ;;  %v1241_v3 = vpop.f32.mrf.mxu1 }
  0xc6   :  { %v355_v4 = vadd.f32 %v1193_v2, %v1571_v1  ;;  %v515_v5 = vadd.f32 %v1241_v3, %v1571_v1 }
  0xc7   :  { %v349_v6 = vpop.f32.mrf.mxu0  ;;  %v509_v7 = vpop.f32.mrf.mxu1 }
  0xc8   :  { %v669_v8 = vadd.f32 3.0, %v355_v4  ;;  %v701_v9 = vadd.f32 3.0, %v515_v5  ;;  %v350_v10 = vadd.f32 %v1571_v1, %v349_v6  ;;  %v510_v11 = vadd.f32 %v1571_v1, %v509_v7 }
  0xc9   :  { %v1196_v12 = vpop.f32.mrf.mxu0  ;;  %v1244_v13 = vpop.f32.mrf.mxu1 }
  0xca   :  { %v733_v14 = vmax.f32 %v669_v8, 0.0  ;;  %v765_v15 = vmax.f32 %v701_v9, 0.0  ;;  %v668_v16 = vadd.f32 3.0, %v350_v10  ;;  %v700_v17 = vadd.f32 3.0, %v510_v11 }
  0xcb   :  { %v365_v18 = vadd.f32 %v1196_v12, %v1571_v1  ;;  %v525_v19 = vadd.f32 %v1244_v13, %v1571_v1  ;;  %v359_v20 = vpop.f32.mrf.mxu0  ;;  %v519_v21 = vpop.f32.mrf.mxu1 }
  0xcc   :  { %v797_v22 = vmin.f32 %v733_v14, 6.0  ;;  %v829_v23 = vmin.f32 %v765_v15, 6.0  ;;  %v732_v24 = vmax.f32 %v668_v16, 0.0  ;;  %v764_v25 = vmax.f32 %v700_v17, 0.0 }
  0xcd   :  { %v671_v26 = vadd.f32 3.0, %v365_v18  ;;  %v703_v27 = vadd.f32 3.0, %v525_v19  ;;  %v360_v28 = vadd.f32 %v1571_v1, %v359_v20  ;;  %v520_v29 = vadd.f32 %v1571_v1, %v519_v21  ;;  %v1199_v30 = vpop.f32.mrf.mxu0  ;;  %v1247_v31 = vpop.f32.mrf.mxu1 }
  0xce   :  { %v861_v32 = vmul.f32 %v797_v22, %v355_v4  ;;  %v893_v33 = vmul.f32 %v829_v23, %v515_v5  ;;  %v796_v34 = vmin.f32 %v732_v24, 6.0  ;;  %v828_v35 = vmin.f32 %v764_v25, 6.0 }
  0xcf   :  { %v735_v36 = vmax.f32 %v671_v26, 0.0  ;;  %v767_v37 = vmax.f32 %v703_v27, 0.0  ;;  %v670_v38 = vadd.f32 3.0, %v360_v28  ;;  %v702_v39 = vadd.f32 3.0, %v520_v29  ;;  %v369_v40 = vpop.f32.mrf.mxu0  ;;  %v529_v41 = vpop.f32.mrf.mxu1 }
  0xd0   :  { %v926_v42 = vmul.f32 0.16666667, %v861_v32  ;;  %v958_v43 = vmul.f32 0.16666667, %v893_v33  ;;  %v860_v44 = vmul.f32 %v796_v34, %v350_v10  ;;  %v892_v45 = vmul.f32 %v828_v35, %v510_v11 }
  0xd1   :  { %v799_v46 = vmin.f32 %v735_v36, 6.0  ;;  %v831_v47 = vmin.f32 %v767_v37, 6.0  ;;  %v734_v48 = vmax.f32 %v670_v38, 0.0  ;;  %v766_v49 = vmax.f32 %v702_v39, 0.0  ;;  %v1202_v50 = vpop.f32.mrf.mxu0  ;;  %v1250_v51 = vpop.f32.mrf.mxu1 }
  0xd2   :  { %991 = vst.msk [vmem:[%s1962_s3 + $0x8] sm:$0xff] %vm989_vm2, %v926_v42  ;;  %1023 = vst.msk [vmem:[%s1962_s3 + $0x108] sm:$0xff] %vm989_vm2, %v958_v43  ;;  %v925_v52 = vmul.f32 0.16666667, %v860_v44  ;;  %v957_v53 = vmul.f32 0.16666667, %v892_v45  ;;  %v375_v54 = vadd.f32 %v1199_v30, %v1571_v1  ;;  %v535_v55 = vadd.f32 %v1247_v31, %v1571_v1 }
  0xd3   :  { %v863_v56 = vmul.f32 %v799_v46, %v365_v18  ;;  %v895_v57 = vmul.f32 %v831_v47, %v525_v19  ;;  %v798_v58 = vmin.f32 %v734_v48, 6.0  ;;  %v830_v59 = vmin.f32 %v766_v49, 6.0  ;;  %v379_v60 = vpop.f32.mrf.mxu0  ;;  %v539_v61 = vpop.f32.mrf.mxu1 }
  0xd4   :  { %990 = vst.msk [vmem:[%s1962_s3] sm:$0xff] %vm989_vm2, %v925_v52  ;;  %1022 = vst.msk [vmem:[%s1962_s3 + $0x100] sm:$0xff] %vm989_vm2, %v957_v53  ;;  %v673_v62 = vadd.f32 3.0, %v375_v54  ;;  %v705_v63 = vadd.f32 3.0, %v535_v55  ;;  %v370_v0 = vadd.f32 %v1571_v1, %v369_v40  ;;  %v530_v2 = vadd.f32 %v1571_v1, %v529_v41 }
  0xd5   :  { %v928_v3 = vmul.f32 0.16666667, %v863_v56  ;;  %v960_v4 = vmul.f32 0.16666667, %v895_v57  ;;  %v862_v5 = vmul.f32 %v798_v58, %v360_v28  ;;  %v894_v6 = vmul.f32 %v830_v59, %v520_v29  ;;  %v1205_v7 = vpop.f32.mrf.mxu0  ;;  %v1253_v8 = vpop.f32.mrf.mxu1 }
  0xd6   :  { %v737_v9 = vmax.f32 %v673_v62, 0.0  ;;  %v769_v10 = vmax.f32 %v705_v63, 0.0  ;;  %v672_v11 = vadd.f32 3.0, %v370_v0  ;;  %v704_v12 = vadd.f32 3.0, %v530_v2 }
  0xd7   :  { %993 = vst.msk [vmem:[%s1962_s3 + $0x18] sm:$0xff] %vm989_vm2, %v928_v3  ;;  %1025 = vst.msk [vmem:[%s1962_s3 + $0x118] sm:$0xff] %vm989_vm2, %v960_v4  ;;  %v927_v13 = vmul.f32 0.16666667, %v862_v5  ;;  %v959_v14 = vmul.f32 0.16666667, %v894_v6  ;;  %v385_v15 = vadd.f32 %v1202_v50, %v1571_v1  ;;  %v545_v16 = vadd.f32 %v1250_v51, %v1571_v1  ;;  %v389_v17 = vpop.f32.mrf.mxu0  ;;  %v549_v18 = vpop.f32.mrf.mxu1 }
  0xd8   :  { %v801_v19 = vmin.f32 %v737_v9, 6.0  ;;  %v833_v20 = vmin.f32 %v769_v10, 6.0  ;;  %v736_v21 = vmax.f32 %v672_v11, 0.0  ;;  %v768_v22 = vmax.f32 %v704_v12, 0.0 }
  0xd9   :  { %992 = vst.msk [vmem:[%s1962_s3 + $0x10] sm:$0xff] %vm989_vm2, %v927_v13  ;;  %1024 = vst.msk [vmem:[%s1962_s3 + $0x110] sm:$0xff] %vm989_vm2, %v959_v14  ;;  %v675_v23 = vadd.f32 3.0, %v385_v15  ;;  %v707_v24 = vadd.f32 3.0, %v545_v16  ;;  %v380_v25 = vadd.f32 %v1571_v1, %v379_v60  ;;  %v540_v26 = vadd.f32 %v1571_v1, %v539_v61  ;;  %v1208_v27 = vpop.f32.mrf.mxu0  ;;  %v1256_v28 = vpop.f32.mrf.mxu1 }
  0xda   :  { %v865_v29 = vmul.f32 %v801_v19, %v375_v54  ;;  %v897_v30 = vmul.f32 %v833_v20, %v535_v55  ;;  %v800_v31 = vmin.f32 %v736_v21, 6.0  ;;  %v832_v32 = vmin.f32 %v768_v22, 6.0 }
  0xdb   :  { %v739_v33 = vmax.f32 %v675_v23, 0.0  ;;  %v771_v34 = vmax.f32 %v707_v24, 0.0  ;;  %v674_v35 = vadd.f32 3.0, %v380_v25  ;;  %v706_v36 = vadd.f32 3.0, %v540_v26  ;;  %v399_v37 = vpop.f32.mrf.mxu0  ;;  %v559_v38 = vpop.f32.mrf.mxu1 }
  0xdc   :  { %v930_v39 = vmul.f32 0.16666667, %v865_v29  ;;  %v962_v40 = vmul.f32 0.16666667, %v897_v30  ;;  %v864_v41 = vmul.f32 %v800_v31, %v370_v0  ;;  %v896_v42 = vmul.f32 %v832_v32, %v530_v2 }
  0xdd   :  { %v803_v43 = vmin.f32 %v739_v33, 6.0  ;;  %v835_v44 = vmin.f32 %v771_v34, 6.0  ;;  %v738_v45 = vmax.f32 %v674_v35, 0.0  ;;  %v770_v46 = vmax.f32 %v706_v36, 0.0  ;;  %v1621_v47 = vpop.f32.mrf.mxu0  ;;  %v1623_v48 = vpop.f32.mrf.mxu1 }
  0xde   :  { %995 = vst.msk [vmem:[%s1962_s3 + $0x28] sm:$0xff] %vm989_vm2, %v930_v39  ;;  %1027 = vst.msk [vmem:[%s1962_s3 + $0x128] sm:$0xff] %vm989_vm2, %v962_v40  ;;  %v929_v49 = vmul.f32 0.16666667, %v864_v41  ;;  %v961_v50 = vmul.f32 0.16666667, %v896_v42  ;;  %v395_v51 = vadd.f32 %v1205_v7, %v1571_v1  ;;  %v555_v52 = vadd.f32 %v1253_v8, %v1571_v1 }
  0xdf   :  { %v867_v53 = vmul.f32 %v803_v43, %v385_v15  ;;  %v899_v54 = vmul.f32 %v835_v44, %v545_v16  ;;  %v802_v55 = vmin.f32 %v738_v45, 6.0  ;;  %v834_v56 = vmin.f32 %v770_v46, 6.0  ;;  %v1635_v57 = vpop.f32.mrf.mxu0  ;;  %v1637_v58 = vpop.f32.mrf.mxu1 }
  0xe0   :  { %994 = vst.msk [vmem:[%s1962_s3 + $0x20] sm:$0xff] %vm989_vm2, %v929_v49  ;;  %1026 = vst.msk [vmem:[%s1962_s3 + $0x120] sm:$0xff] %vm989_vm2, %v961_v50  ;;  %v677_v59 = vadd.f32 3.0, %v395_v51  ;;  %v709_v60 = vadd.f32 3.0, %v555_v52  ;;  %v390_v61 = vadd.f32 %v1571_v1, %v389_v17  ;;  %v550_v62 = vadd.f32 %v1571_v1, %v549_v18 }
  0xe1   :  { %v932_v63 = vmul.f32 0.16666667, %v867_v53  ;;  %v964_v0 = vmul.f32 0.16666667, %v899_v54  ;;  %v866_v2 = vmul.f32 %v802_v55, %v380_v25  ;;  %v898_v3 = vmul.f32 %v834_v56, %v540_v26  ;;  %v1649_v4 = vpop.f32.mrf.mxu0  ;;  %v1651_v5 = vpop.f32.mrf.mxu1 }
  0xe2   :  { %v741_v6 = vmax.f32 %v677_v59, 0.0  ;;  %v773_v7 = vmax.f32 %v709_v60, 0.0  ;;  %v676_v8 = vadd.f32 3.0, %v390_v61  ;;  %v708_v9 = vadd.f32 3.0, %v550_v62 }
  0xe3   :  { %997 = vst.msk [vmem:[%s1962_s3 + $0x38] sm:$0xff] %vm989_vm2, %v932_v63  ;;  %1029 = vst.msk [vmem:[%s1962_s3 + $0x138] sm:$0xff] %vm989_vm2, %v964_v0  ;;  %v931_v10 = vmul.f32 0.16666667, %v866_v2  ;;  %v963_v11 = vmul.f32 0.16666667, %v898_v3  ;;  %v405_v12 = vadd.f32 %v1208_v27, %v1571_v1  ;;  %v565_v13 = vadd.f32 %v1256_v28, %v1571_v1  ;;  %v1663_v14 = vpop.f32.mrf.mxu0  ;;  %v1665_v15 = vpop.f32.mrf.mxu1 }
  0xe4   :  { %v805_v16 = vmin.f32 %v741_v6, 6.0  ;;  %v837_v17 = vmin.f32 %v773_v7, 6.0  ;;  %v740_v18 = vmax.f32 %v676_v8, 0.0  ;;  %v772_v19 = vmax.f32 %v708_v9, 0.0 }
  0xe5   :  { %996 = vst.msk [vmem:[%s1962_s3 + $0x30] sm:$0xff] %vm989_vm2, %v931_v10  ;;  %1028 = vst.msk [vmem:[%s1962_s3 + $0x130] sm:$0xff] %vm989_vm2, %v963_v11  ;;  %v679_v20 = vadd.f32 3.0, %v405_v12  ;;  %v711_v21 = vadd.f32 3.0, %v565_v13  ;;  %v400_v22 = vadd.f32 %v1571_v1, %v399_v37  ;;  %v560_v23 = vadd.f32 %v1571_v1, %v559_v38  ;;  %v1677_v24 = vpop.f32.mrf.mxu0  ;;  %v1679_v25 = vpop.f32.mrf.mxu1 }
  0xe6   :  { %v869_v26 = vmul.f32 %v805_v16, %v395_v51  ;;  %v901_v27 = vmul.f32 %v837_v17, %v555_v52  ;;  %v804_v28 = vmin.f32 %v740_v18, 6.0  ;;  %v836_v29 = vmin.f32 %v772_v19, 6.0 }
  0xe7   :  { %v743_v30 = vmax.f32 %v679_v20, 0.0  ;;  %v775_v31 = vmax.f32 %v711_v21, 0.0  ;;  %v678_v32 = vadd.f32 3.0, %v400_v22  ;;  %v710_v33 = vadd.f32 3.0, %v560_v23  ;;  %v1681_v34 = vpop.f32.mrf.mxu0  ;;  %v1683_v35 = vpop.f32.mrf.mxu1 }
  0xe8   :  { %v934_v36 = vmul.f32 0.16666667, %v869_v26  ;;  %v966_v37 = vmul.f32 0.16666667, %v901_v27  ;;  %v868_v39 = vmul.f32 %v804_v28, %v390_v61  ;;  %v900_v38 = vmul.f32 %v836_v29, %v550_v62 }
  0xe9   :  { %v807_v40 = vmin.f32 %v743_v30, 6.0  ;;  %v839_v41 = vmin.f32 %v775_v31, 6.0  ;;  %v742_v42 = vmax.f32 %v678_v32, 0.0  ;;  %v774_v43 = vmax.f32 %v710_v33, 0.0  ;;  %v1697_v50 = vpop.f32.mrf.mxu0  ;;  %v1699_v51 = vpop.f32.mrf.mxu1 }
  0xea   :  { %999 = vst.msk [vmem:[%s1962_s3 + $0x48] sm:$0xff] %vm989_vm2, %v934_v36  ;;  %1031 = vst.msk [vmem:[%s1962_s3 + $0x148] sm:$0xff] %vm989_vm2, %v966_v37  ;;  %v933_v44 = vmul.f32 0.16666667, %v868_v39  ;;  %v965_v45 = vmul.f32 0.16666667, %v900_v38  ;;  %v415_v46 = vadd.f32 %v1621_v47, %v1571_v1  ;;  %v575_v49 = vadd.f32 %v1623_v48, %v1571_v1 }
  0xeb   :  { %v871_v52 = vmul.f32 %v807_v40, %v405_v12  ;;  %v903_v53 = vmul.f32 %v839_v41, %v565_v13  ;;  %v806_v54 = vmin.f32 %v742_v42, 6.0  ;;  %v838_v55 = vmin.f32 %v774_v43, 6.0  ;;  %v1713_v7 = vpop.f32.mrf.mxu0  ;;  %v1715_v8 = vpop.f32.mrf.mxu1 }
  0xec   :  { %998 = vst.msk [vmem:[%s1962_s3 + $0x40] sm:$0xff] %vm989_vm2, %v933_v44  ;;  %1030 = vst.msk [vmem:[%s1962_s3 + $0x140] sm:$0xff] %vm989_vm2, %v965_v45  ;;  %v681_v47 = vadd.f32 3.0, %v415_v46  ;;  %v713_v48 = vadd.f32 3.0, %v575_v49  ;;  %v410_v56 = vadd.f32 %v1571_v1, %v1635_v57  ;;  %v570_v59 = vadd.f32 %v1571_v1, %v1637_v58 }
  0xed   :  { %v936_v60 = vmul.f32 0.16666667, %v871_v52  ;;  %v968_v61 = vmul.f32 0.16666667, %v903_v53  ;;  %v870_v62 = vmul.f32 %v806_v54, %v400_v22  ;;  %v902_v63 = vmul.f32 %v838_v55, %v560_v23  ;;  %v1741_v23 = vpop.f32.mrf.mxu0  ;;  %v1743_v26 = vpop.f32.mrf.mxu1 }
  0xee   :  { %v745_v0 = vmax.f32 %v681_v47, 0.0  ;;  %v777_v2 = vmax.f32 %v713_v48, 0.0  ;;  %v680_v3 = vadd.f32 3.0, %v410_v56  ;;  %v712_v6 = vadd.f32 3.0, %v570_v59 }
  0xef   :  { %1001 = vst.msk [vmem:[%s1962_s3 + $0x58] sm:$0xff] %vm989_vm2, %v936_v60  ;;  %1033 = vst.msk [vmem:[%s1962_s3 + $0x158] sm:$0xff] %vm989_vm2, %v968_v61  ;;  %v935_v57 = vmul.f32 0.16666667, %v870_v62  ;;  %v967_v58 = vmul.f32 0.16666667, %v902_v63  ;;  %v425_v9 = vadd.f32 %v1649_v4, %v1571_v1  ;;  %v585_v10 = vadd.f32 %v1651_v5, %v1571_v1  ;;  %v1757_v43 = vpop.f32.mrf.mxu0  ;;  %v1759_v44 = vpop.f32.mrf.mxu1 }
  0xf0   :  { %v809_v11 = vmin.f32 %v745_v0, 6.0  ;;  %v841_v12 = vmin.f32 %v777_v2, 6.0  ;;  %v744_v13 = vmax.f32 %v680_v3, 0.0  ;;  %v776_v16 = vmax.f32 %v712_v6, 0.0 }
  0xf1   :  { %1000 = vst.msk [vmem:[%s1962_s3 + $0x50] sm:$0xff] %vm989_vm2, %v935_v57  ;;  %1032 = vst.msk [vmem:[%s1962_s3 + $0x150] sm:$0xff] %vm989_vm2, %v967_v58  ;;  %v683_v17 = vadd.f32 3.0, %v425_v9  ;;  %v715_v18 = vadd.f32 3.0, %v585_v10  ;;  %v420_v4 = vadd.f32 %v1571_v1, %v1663_v14  ;;  %v580_v5 = vadd.f32 %v1571_v1, %v1665_v15  ;;  %v1773_v63 = vpop.f32.mrf.mxu0  ;;  %v1775_v0 = vpop.f32.mrf.mxu1 }
  0xf2   :  { %v873_v19 = vmul.f32 %v809_v11, %v415_v46  ;;  %v905_v20 = vmul.f32 %v841_v12, %v575_v49  ;;  %v808_v21 = vmin.f32 %v744_v13, 6.0  ;;  %v840_v22 = vmin.f32 %v776_v16, 6.0 }
  0xf3   :  { %v747_v27 = vmax.f32 %v683_v17, 0.0  ;;  %v779_v28 = vmax.f32 %v715_v18, 0.0  ;;  %v682_v29 = vadd.f32 3.0, %v420_v4  ;;  %v714_v30 = vadd.f32 3.0, %v580_v5  ;;  %v459_v18 = vpop.f32.mrf.mxu0 }
  0xf4   :  { %v938_v31 = vmul.f32 0.16666667, %v873_v19  ;;  %v970_v32 = vmul.f32 0.16666667, %v905_v20  ;;  %v872_v33 = vmul.f32 %v808_v21, %v410_v56  ;;  %v904_v36 = vmul.f32 %v840_v22, %v570_v59 }
  0xf5   :  { %v811_v14 = vmin.f32 %v747_v27, 6.0  ;;  %v843_v37 = vmin.f32 %v779_v28, 6.0  ;;  %v746_v39 = vmax.f32 %v682_v29, 0.0  ;;  %v778_v15 = vmax.f32 %v714_v30, 0.0 }
  0xf6   :  { %1003 = vst.msk [vmem:[%s1962_s3 + $0x68] sm:$0xff] %vm989_vm2, %v938_v31  ;;  %1035 = vst.msk [vmem:[%s1962_s3 + $0x168] sm:$0xff] %vm989_vm2, %v970_v32  ;;  %v937_v38 = vmul.f32 0.16666667, %v872_v33  ;;  %v969_v40 = vmul.f32 0.16666667, %v904_v36  ;;  %v435_v41 = vadd.f32 %v1677_v24, %v1571_v1  ;;  %v595_v42 = vadd.f32 %v1679_v25, %v1571_v1 }
  0xf7   :  { %v875_v45 = vmul.f32 %v811_v14, %v425_v9  ;;  %v907_v46 = vmul.f32 %v843_v37, %v585_v10  ;;  %v810_v49 = vmin.f32 %v746_v39, 6.0  ;;  %v842_v52 = vmin.f32 %v778_v15, 6.0  ;;  %v1229_v37 = vpop.f32.mrf.mxu0 }
  0xf8   :  { %1002 = vst.msk [vmem:[%s1962_s3 + $0x60] sm:$0xff] %vm989_vm2, %v937_v38  ;;  %1034 = vst.msk [vmem:[%s1962_s3 + $0x160] sm:$0xff] %vm989_vm2, %v969_v40  ;;  %v685_v24 = vadd.f32 3.0, %v435_v41  ;;  %v717_v25 = vadd.f32 3.0, %v595_v42  ;;  %v430_v53 = vadd.f32 %v1571_v1, %v1681_v34  ;;  %v590_v54 = vadd.f32 %v1571_v1, %v1683_v35 }
  0xf9   :  { %v940_v55 = vmul.f32 0.16666667, %v875_v45  ;;  %v972_v47 = vmul.f32 0.16666667, %v907_v46  ;;  %v874_v48 = vmul.f32 %v810_v49, %v420_v4  ;;  %v906_v56 = vmul.f32 %v842_v52, %v580_v5  ;;  %v619_v4 = vpop.f32.mrf.mxu1 }
  0xfa   :  { %v749_v59 = vmax.f32 %v685_v24, 0.0  ;;  %v781_v60 = vmax.f32 %v717_v25, 0.0  ;;  %v684_v61 = vadd.f32 3.0, %v430_v53  ;;  %v716_v62 = vadd.f32 3.0, %v590_v54 }
  0xfb   :  { %1005 = vst.msk [vmem:[%s1962_s3 + $0x78] sm:$0xff] %vm989_vm2, %v940_v55  ;;  %1037 = vst.msk [vmem:[%s1962_s3 + $0x178] sm:$0xff] %vm989_vm2, %v972_v47  ;;  %v939_v34 = vmul.f32 0.16666667, %v874_v48  ;;  %v971_v35 = vmul.f32 0.16666667, %v906_v56  ;;  %v445_v2 = vadd.f32 %v1697_v50, %v1571_v1  ;;  %v605_v3 = vadd.f32 %v1699_v51, %v1571_v1  ;;  %v1277_v39 = vpop.f32.mrf.mxu1  ;;  %v469_v47 = vpop.f32.mrf.mxu0 }
  0xfc   :  { %v813_v6 = vmin.f32 %v749_v59, 6.0  ;;  %v845_v57 = vmin.f32 %v781_v60, 6.0  ;;  %v748_v58 = vmax.f32 %v684_v61, 0.0  ;;  %v780_v9 = vmax.f32 %v716_v62, 0.0 }
  0xfd   :  { %1004 = vst.msk [vmem:[%s1962_s3 + $0x70] sm:$0xff] %vm989_vm2, %v939_v34  ;;  %1036 = vst.msk [vmem:[%s1962_s3 + $0x170] sm:$0xff] %vm989_vm2, %v971_v35  ;;  %v687_v10 = vadd.f32 3.0, %v445_v2  ;;  %v719_v11 = vadd.f32 3.0, %v605_v3  ;;  %v440_v50 = vadd.f32 %v1571_v1, %v1713_v7  ;;  %v600_v51 = vadd.f32 %v1571_v1, %v1715_v8  ;;  %v629_v48 = vpop.f32.mrf.mxu1 }
  0xfe   :  { %v877_v12 = vmul.f32 %v813_v6, %v435_v41  ;;  %v909_v13 = vmul.f32 %v845_v57, %v595_v42  ;;  %v812_v16 = vmin.f32 %v748_v58, 6.0  ;;  %v844_v17 = vmin.f32 %v780_v9, 6.0  ;;  %v1232_v9 = vpop.f32.mrf.mxu0 }
  0xff   :  { %v751_v5 = vmax.f32 %v687_v10, 0.0  ;;  %v783_v19 = vmax.f32 %v719_v11, 0.0  ;;  %v686_v20 = vadd.f32 3.0, %v440_v50  ;;  %v718_v21 = vadd.f32 3.0, %v600_v51  ;;  %v1280_v10 = vpop.f32.mrf.mxu1 }
 0x100   :  { %v942_v22 = vmul.f32 0.16666667, %v877_v12  ;;  %v974_v27 = vmul.f32 0.16666667, %v909_v13  ;;  %v876_v28 = vmul.f32 %v812_v16, %v430_v53  ;;  %v908_v29 = vmul.f32 %v844_v17, %v590_v54 }
 0x101   :  { %v815_v30 = vmin.f32 %v751_v5, 6.0  ;;  %v847_v31 = vmin.f32 %v783_v19, 6.0  ;;  %v750_v7 = vmax.f32 %v686_v20, 0.0  ;;  %v782_v32 = vmax.f32 %v718_v21, 0.0 }
 0x102   :  { %1007 = vst.msk [vmem:[%s1962_s3 + $0x88] sm:$0xff] %vm989_vm2, %v942_v22  ;;  %1039 = vst.msk [vmem:[%s1962_s3 + $0x188] sm:$0xff] %vm989_vm2, %v974_v27  ;;  %v941_v8 = vmul.f32 0.16666667, %v876_v28  ;;  %v973_v33 = vmul.f32 0.16666667, %v908_v29  ;;  %v455_v36 = vadd.f32 %v1741_v23, %v1571_v1  ;;  %v615_v14 = vadd.f32 %v1743_v26, %v1571_v1  ;;  %v479_v29 = vpop.f32.mrf.mxu0 }
 0x103   :  { %v879_v15 = vmul.f32 %v815_v30, %v445_v2  ;;  %v911_v38 = vmul.f32 %v847_v31, %v605_v3  ;;  %v814_v40 = vmin.f32 %v750_v7, 6.0  ;;  %v846_v41 = vmin.f32 %v782_v32, 6.0  ;;  %v639_v30 = vpop.f32.mrf.mxu1 }
 0x104   :  { %1006 = vst.msk [vmem:[%s1962_s3 + $0x80] sm:$0xff] %vm989_vm2, %v941_v8  ;;  %1038 = vst.msk [vmem:[%s1962_s3 + $0x180] sm:$0xff] %vm989_vm2, %v973_v33  ;;  %v689_v23 = vadd.f32 3.0, %v455_v36  ;;  %v721_v42 = vadd.f32 3.0, %v615_v14  ;;  %v450_v26 = vadd.f32 %v1571_v1, %v1757_v43  ;;  %v610_v45 = vadd.f32 %v1571_v1, %v1759_v44 }
 0x105   :  { %v944_v46 = vmul.f32 0.16666667, %v879_v15  ;;  %v976_v49 = vmul.f32 0.16666667, %v911_v38  ;;  %v878_v52 = vmul.f32 %v814_v40, %v440_v50  ;;  %v910_v24 = vmul.f32 %v846_v41, %v600_v51 }
 0x106   :  { %v753_v25 = vmax.f32 %v689_v23, 0.0  ;;  %v785_v53 = vmax.f32 %v721_v42, 0.0  ;;  %v688_v54 = vadd.f32 3.0, %v450_v26  ;;  %v720_v55 = vadd.f32 3.0, %v610_v45 }
 0x107   :  { %1009 = vst.msk [vmem:[%s1962_s3 + $0x98] sm:$0xff] %vm989_vm2, %v944_v46  ;;  %1041 = vst.msk [vmem:[%s1962_s3 + $0x198] sm:$0xff] %vm989_vm2, %v976_v49  ;;  %v943_v43 = vmul.f32 0.16666667, %v878_v52  ;;  %v975_v44 = vmul.f32 0.16666667, %v910_v24  ;;  %v465_v56 = vadd.f32 %v1773_v63, %v1571_v1  ;;  %v625_v59 = vadd.f32 %v1775_v0, %v1571_v1  ;;  %v1283_v46 = vpop.f32.mrf.mxu1 }
 0x108   :  { %v817_v60 = vmin.f32 %v753_v25, 6.0  ;;  %v849_v61 = vmin.f32 %v785_v53, 6.0  ;;  %v752_v62 = vmax.f32 %v688_v54, 0.0  ;;  %v784_v34 = vmax.f32 %v720_v55, 0.0 }
 0x109   :  { %1008 = vst.msk [vmem:[%s1962_s3 + $0x90] sm:$0xff] %vm989_vm2, %v943_v43  ;;  %1040 = vst.msk [vmem:[%s1962_s3 + $0x190] sm:$0xff] %vm989_vm2, %v975_v44  ;;  %v691_v35 = vadd.f32 3.0, %v465_v56  ;;  %v723_v2 = vadd.f32 3.0, %v625_v59  ;;  %v460_v63 = vadd.f32 %v1571_v1, %v459_v18  ;;  %v620_v0 = vadd.f32 %v1571_v1, %v619_v4 }
 0x10a   :  { %v881_v3 = vmul.f32 %v817_v60, %v455_v36  ;;  %v913_v6 = vmul.f32 %v849_v61, %v615_v14  ;;  %v816_v57 = vmin.f32 %v752_v62, 6.0  ;;  %v848_v58 = vmin.f32 %v784_v34, 6.0 }
 0x10b   :  { %v755_v11 = vmax.f32 %v691_v35, 0.0  ;;  %v787_v50 = vmax.f32 %v723_v2, 0.0  ;;  %v690_v51 = vadd.f32 3.0, %v460_v63  ;;  %v722_v12 = vadd.f32 3.0, %v620_v0  ;;  %v649_v35 = vpop.f32.mrf.mxu1 }
 0x10c   :  { %v946_v13 = vmul.f32 0.16666667, %v881_v3  ;;  %v978_v16 = vmul.f32 0.16666667, %v913_v6  ;;  %v880_v17 = vmul.f32 %v816_v57, %v450_v26  ;;  %v912_v5 = vmul.f32 %v848_v58, %v610_v45  ;;  %v1235_v45 = vpop.f32.mrf.mxu0 }
 0x10d   :  { %v819_v19 = vmin.f32 %v755_v11, 6.0  ;;  %v851_v20 = vmin.f32 %v787_v50, 6.0  ;;  %v754_v21 = vmax.f32 %v690_v51, 0.0  ;;  %v786_v18 = vmax.f32 %v722_v12, 0.0 }
 0x10e   :  { %1011 = vst.msk [vmem:[%s1962_s3 + $0xa8] sm:$0xff] %vm989_vm2, %v946_v13  ;;  %1043 = vst.msk [vmem:[%s1962_s3 + $0x1a8] sm:$0xff] %vm989_vm2, %v978_v16  ;;  %v945_v4 = vmul.f32 0.16666667, %v880_v17  ;;  %v977_v22 = vmul.f32 0.16666667, %v912_v5  ;;  %v475_v27 = vadd.f32 %v1229_v37, %v1571_v1  ;;  %v635_v28 = vadd.f32 %v1277_v39, %v1571_v1  ;;  %v489_v34 = vpop.f32.mrf.mxu0 }
 0x10f   :  { %v883_v31 = vmul.f32 %v819_v19, %v465_v56  ;;  %v915_v7 = vmul.f32 %v851_v20, %v625_v59  ;;  %v818_v32 = vmin.f32 %v754_v21, 6.0  ;;  %v850_v8 = vmin.f32 %v786_v18, 6.0  ;;  %v1286_v19 = vpop.f32.mrf.mxu1 }
 0x110   :  { %1010 = vst.msk [vmem:[%s1962_s3 + $0xa0] sm:$0xff] %vm989_vm2, %v945_v4  ;;  %1042 = vst.msk [vmem:[%s1962_s3 + $0x1a0] sm:$0xff] %vm989_vm2, %v977_v22  ;;  %v693_v33 = vadd.f32 3.0, %v475_v27  ;;  %v725_v36 = vadd.f32 3.0, %v635_v28  ;;  %v470_v14 = vadd.f32 %v1571_v1, %v469_v47  ;;  %v630_v37 = vadd.f32 %v1571_v1, %v629_v48  ;;  %v1238_v5 = vpop.f32.mrf.mxu0 }
 0x111   :  { %v948_v39 = vmul.f32 0.16666667, %v883_v31  ;;  %v980_v15 = vmul.f32 0.16666667, %v915_v7  ;;  %v882_v38 = vmul.f32 %v818_v32, %v460_v63  ;;  %v914_v40 = vmul.f32 %v850_v8, %v620_v0 }
 0x112   :  { %v757_v41 = vmax.f32 %v693_v33, 0.0  ;;  %v789_v23 = vmax.f32 %v725_v36, 0.0  ;;  %v692_v42 = vadd.f32 3.0, %v470_v14  ;;  %v724_v26 = vadd.f32 3.0, %v630_v37 }
 0x113   :  { %1013 = vst.msk [vmem:[%s1962_s3 + $0xb8] sm:$0xff] %vm989_vm2, %v948_v39  ;;  %1045 = vst.msk [vmem:[%s1962_s3 + $0x1b8] sm:$0xff] %vm989_vm2, %v980_v15  ;;  %v947_v49 = vmul.f32 0.16666667, %v882_v38  ;;  %v979_v52 = vmul.f32 0.16666667, %v914_v40  ;;  %v485_v24 = vadd.f32 %v1232_v9, %v1571_v1  ;;  %v645_v25 = vadd.f32 %v1280_v10, %v1571_v1  ;;  %v659_v39 = vpop.f32.mrf.mxu1 }
 0x114   :  { %v821_v53 = vmin.f32 %v757_v41, 6.0  ;;  %v853_v54 = vmin.f32 %v789_v23, 6.0  ;;  %v756_v55 = vmax.f32 %v692_v42, 0.0  ;;  %v788_v47 = vmax.f32 %v724_v26, 0.0 }
 0x115   :  { %1012 = vst.msk [vmem:[%s1962_s3 + $0xb0] sm:$0xff] %vm989_vm2, %v947_v49  ;;  %1044 = vst.msk [vmem:[%s1962_s3 + $0x1b0] sm:$0xff] %vm989_vm2, %v979_v52  ;;  %v695_v48 = vadd.f32 3.0, %v485_v24  ;;  %v727_v43 = vadd.f32 3.0, %v645_v25  ;;  %v480_v44 = vadd.f32 %v1571_v1, %v479_v29  ;;  %v640_v56 = vadd.f32 %v1571_v1, %v639_v30 }
 0x116   :  { %v885_v59 = vmul.f32 %v821_v53, %v475_v27  ;;  %v917_v60 = vmul.f32 %v853_v54, %v635_v28  ;;  %v820_v61 = vmin.f32 %v756_v55, 6.0  ;;  %v852_v62 = vmin.f32 %v788_v47, 6.0 }
 0x117   :  { %v759_v2 = vmax.f32 %v695_v48, 0.0  ;;  %v791_v63 = vmax.f32 %v727_v43, 0.0  ;;  %v694_v0 = vadd.f32 3.0, %v480_v44  ;;  %v726_v3 = vadd.f32 3.0, %v640_v56 }
 0x118   :  { %v950_v6 = vmul.f32 0.16666667, %v885_v59  ;;  %v982_v57 = vmul.f32 0.16666667, %v917_v60  ;;  %v884_v58 = vmul.f32 %v820_v61, %v470_v14  ;;  %v916_v9 = vmul.f32 %v852_v62, %v630_v37  ;;  %v499_v37 = vpop.f32.mrf.mxu0 }
 0x119   :  { %v823_v10 = vmin.f32 %v759_v2, 6.0  ;;  %v855_v11 = vmin.f32 %v791_v63, 6.0  ;;  %v758_v50 = vmax.f32 %v694_v0, 0.0  ;;  %v790_v51 = vmax.f32 %v726_v3, 0.0 }
 0x11a   :  { %1015 = vst.msk [vmem:[%s1962_s3 + $0xc8] sm:$0xff] %vm989_vm2, %v950_v6  ;;  %1047 = vst.msk [vmem:[%s1962_s3 + $0x1c8] sm:$0xff] %vm989_vm2, %v982_v57  ;;  %v949_v12 = vmul.f32 0.16666667, %v884_v58  ;;  %v981_v13 = vmul.f32 0.16666667, %v916_v9  ;;  %v495_v16 = vadd.f32 %v1235_v45, %v1571_v1  ;;  %v655_v17 = vadd.f32 %v1283_v46, %v1571_v1 }
 0x11b   :  { %v887_v20 = vmul.f32 %v823_v10, %v485_v24  ;;  %v919_v21 = vmul.f32 %v855_v11, %v645_v25  ;;  %v822_v18 = vmin.f32 %v758_v50, 6.0  ;;  %v854_v4 = vmin.f32 %v790_v51, 6.0 }
 0x11c   :  { %1014 = vst.msk [vmem:[%s1962_s3 + $0xc0] sm:$0xff] %vm989_vm2, %v949_v12  ;;  %1046 = vst.msk [vmem:[%s1962_s3 + $0x1c0] sm:$0xff] %vm989_vm2, %v981_v13  ;;  %v697_v22 = vadd.f32 3.0, %v495_v16  ;;  %v729_v27 = vadd.f32 3.0, %v655_v17  ;;  %v490_v28 = vadd.f32 %v1571_v1, %v489_v34  ;;  %v650_v29 = vadd.f32 %v1571_v1, %v649_v35 }
 0x11d   :  { %v952_v30 = vmul.f32 0.16666667, %v887_v20  ;;  %v984_v31 = vmul.f32 0.16666667, %v919_v21  ;;  %v886_v7 = vmul.f32 %v822_v18, %v480_v44  ;;  %v918_v32 = vmul.f32 %v854_v4, %v640_v56 }
 0x11e   :  { %v761_v8 = vmax.f32 %v697_v22, 0.0  ;;  %v793_v33 = vmax.f32 %v729_v27, 0.0  ;;  %v696_v36 = vadd.f32 3.0, %v490_v28  ;;  %v728_v14 = vadd.f32 3.0, %v650_v29 }
 0x11f   :  { %1017 = vst.msk [vmem:[%s1962_s3 + $0xd8] sm:$0xff] %vm989_vm2, %v952_v30  ;;  %1049 = vst.msk [vmem:[%s1962_s3 + $0x1d8] sm:$0xff] %vm989_vm2, %v984_v31  ;;  %v951_v15 = vmul.f32 0.16666667, %v886_v7  ;;  %v983_v38 = vmul.f32 0.16666667, %v918_v32  ;;  %v505_v40 = vadd.f32 %v1238_v5, %v1571_v1  ;;  %v665_v41 = vadd.f32 %v1286_v19, %v1571_v1 }
 0x120   :  { %v825_v23 = vmin.f32 %v761_v8, 6.0  ;;  %v857_v42 = vmin.f32 %v793_v33, 6.0  ;;  %v760_v26 = vmax.f32 %v696_v36, 0.0  ;;  %v792_v45 = vmax.f32 %v728_v14, 0.0 }
 0x121   :  { %1016 = vst.msk [vmem:[%s1962_s3 + $0xd0] sm:$0xff] %vm989_vm2, %v951_v15  ;;  %1048 = vst.msk [vmem:[%s1962_s3 + $0x1d0] sm:$0xff] %vm989_vm2, %v983_v38  ;;  %v699_v46 = vadd.f32 3.0, %v505_v40  ;;  %v731_v49 = vadd.f32 3.0, %v665_v41  ;;  %v500_v52 = vadd.f32 %v1571_v1, %v499_v37  ;;  %v660_v24 = vadd.f32 %v1571_v1, %v659_v39 }
 0x122   :  { %v889_v25 = vmul.f32 %v825_v23, %v495_v16  ;;  %v921_v53 = vmul.f32 %v857_v42, %v655_v17  ;;  %v824_v54 = vmin.f32 %v760_v26, 6.0  ;;  %v856_v55 = vmin.f32 %v792_v45, 6.0 }
 0x123   :  { %v763_v47 = vmax.f32 %v699_v46, 0.0  ;;  %v795_v48 = vmax.f32 %v731_v49, 0.0  ;;  %v698_v43 = vadd.f32 3.0, %v500_v52  ;;  %v730_v44 = vadd.f32 3.0, %v660_v24 }
 0x124   :  { %v954_v56 = vmul.f32 0.16666667, %v889_v25  ;;  %v986_v59 = vmul.f32 0.16666667, %v921_v53  ;;  %v888_v60 = vmul.f32 %v824_v54, %v490_v28  ;;  %v920_v61 = vmul.f32 %v856_v55, %v650_v29 }
 0x125   :  { %v827_v62 = vmin.f32 %v763_v47, 6.0  ;;  %v859_v34 = vmin.f32 %v795_v48, 6.0  ;;  %v762_v35 = vmax.f32 %v698_v43, 0.0  ;;  %v794_v2 = vmax.f32 %v730_v44, 0.0 }
 0x126   :  { %1019 = vst.msk [vmem:[%s1962_s3 + $0xe8] sm:$0xff] %vm989_vm2, %v954_v56  ;;  %1051 = vst.msk [vmem:[%s1962_s3 + $0x1e8] sm:$0xff] %vm989_vm2, %v986_v59  ;;  %v953_v1 = vmul.f32 0.16666667, %v888_v60  ;;  %v985_v63 = vmul.f32 0.16666667, %v920_v61 }
 0x127   :  { %v891_v0 = vmul.f32 %v827_v62, %v505_v40  ;;  %v923_v3 = vmul.f32 %v859_v34, %v665_v41  ;;  %v826_v6 = vmin.f32 %v762_v35, 6.0  ;;  %v858_v57 = vmin.f32 %v794_v2, 6.0 }
 0x128   :  { %1018 = vst.msk [vmem:[%s1962_s3 + $0xe0] sm:$0xff] %vm989_vm2, %v953_v1  ;;  %1050 = vst.msk [vmem:[%s1962_s3 + $0x1e0] sm:$0xff] %vm989_vm2, %v985_v63 }
 0x129   :  { %v956_v58 = vmul.f32 0.16666667, %v891_v0  ;;  %v988_v9 = vmul.f32 0.16666667, %v923_v3  ;;  %v890_v10 = vmul.f32 %v826_v6, %v500_v52  ;;  %v922_v11 = vmul.f32 %v858_v57, %v660_v24 }
 0x12b   :  { %1021 = vst.msk [vmem:[%s1962_s3 + $0xf8] sm:$0xff] %vm989_vm2, %v956_v58  ;;  %1053 = vst.msk [vmem:[%s1962_s3 + $0x1f8] sm:$0xff] %vm989_vm2, %v988_v9  ;;  %v955_v50 = vmul.f32 0.16666667, %v890_v10  ;;  %v987_v51 = vmul.f32 0.16666667, %v922_v11 }
 0x12d   :  { %1020 = vst.msk [vmem:[%s1962_s3 + $0xf0] sm:$0xff] %vm989_vm2, %v955_v50  ;;  %1052 = vst.msk [vmem:[%s1962_s3 + $0x1f0] sm:$0xff] %vm989_vm2, %v987_v51 }

// kernel: spp_bottleneck_forward.3
= control target key start
LH: loop header
LB: loop body
LE: loop exit
PB: predicated region body
PF: predicated region fallthrough
CT: control target
= control target key end

     0   :  { %s5845_s12 = smov 0   ;;  %s5847_s13 = smov 0   ;;  %s8401_s0 = inlined_call_operand.vmem [shape: f32[2,16,16,2], index: 0, kind: input, shape index: {}]   ;;  %s8402_s1 = inlined_call_operand.vmem [shape: f32[4,2,8], index: 1, kind: input, shape index: {}]   ;;  %s8403_s2 = inlined_call_operand.vmem [shape: f32[1,8], index: 2, kind: input, shape index: {}]   ;;  %s8404_s3 = inlined_call_operand.vmem [shape: f32[2,256,8], index: 3, kind: output, shape index: {}]  }
   0x1   :  { %s5849_s14 = smov 0  }
   0x2 LB: > { %s25_s15 = sadd.s32 1, %s5817_s13  ;;  %p5294_p0 = scmp.ge.s32.totalorder %s5821_s14, 1  ;;  %s5821_s14 = sphi %s5849_s14, %s13_s14   ;;  %s5817_s13 = sphi %s5847_s13, %s8437_s13   ;;  %s5813_s12 = sphi %s5845_s12, %s8436_s12  }
   0x3   : > { %p27_p1 = scmp.ge.s32.totalorder %s25_s15, 2  ;;  %p163_p2 = scmp.lt.s32.totalorder %s5821_s14, 3 }
   0x5   : > { %s8439_s15 = smov (%p27_p1, %s25_s15), 0  ;;  %p164_p3 = pnand %p5294_p0, %p163_p2 }
   0x7   : > { %167 = sbr.rel (%p164_p3) target bundleno = 709 (0x2c5), region = 32 }
   0xc   : > { %v5868_v0 = vld [vmem:[%s8402_s1] sm:$0x3]  ;;  %vm492_vm0 = vcmask 1041408   ;;  %p194_p4 = scmp.lt.s32.totalorder %s5813_s12, 1  ;;  %vm215_vm1 = vcmask 15360   ;;  %v5823_v1 = vmov -inf  }
   0xd   : > { %5571 = vmatprep.subr.msk.mxu0 %vm492_vm0, %v5868_v0  ;;  %226 = vst.msk [vmem:[#allocation2 + $0x48] sm:$0xff] %vm215_vm1, %v5823_v1  ;;  %216 = vst.msk [vmem:[#allocation2] sm:$0xff] %vm215_vm1, %v5823_v1  ;;  %v5366_v2 = vld [vmem:[%s8402_s1 + $0x4] sm:$0x3]  ;;  %v5332_v3 = vld [vmem:[%s8402_s1 + $0x2] sm:$0x3] }
   0xe   : > { %217 = vst.msk [vmem:[#allocation2 + $0x8] sm:$0xff] %vm215_vm1, %v5823_v1  ;;  %218 = vst.msk [vmem:[#allocation2 + $0x10] sm:$0xff] %vm215_vm1, %v5823_v1  ;;  %v6002_v4 = vld [vmem:[%s8402_s1 + $0x6] sm:$0x3]  ;;  %5572 = vmatpush3.msk.msra.mxu0 %vm492_vm0, %v5868_v0  ;;  %s8441_s12 = smov (!%p194_p4, %s5813_s12), 1  ;;  %5621 = vmatprep.subr.msk.mxu1 %vm492_vm0, %v5332_v3  ;;  %vm219_vm2 = vcmask 9216  }
   0xf   : > { %221 = vst.msk [vmem:[#allocation2 + $0x20] sm:$0xff] %vm215_vm1, %v5823_v1  ;;  %222 = vst.msk [vmem:[#allocation2 + $0x28] sm:$0xff] %vm215_vm1, %v5823_v1  ;;  %5671 = vmatprep.subr.msk.mxu0 %vm492_vm0, %v5366_v2  ;;  %5622 = vmatpush3.msk.msra.mxu1 %vm492_vm0, %v5332_v3  ;;  %s5437_s24 = sshll.u32 %s8441_s12, 8  ;;  %vm297_vm3 = vcmask 64512  }
  0x10   : > { %223 = vst.msk [vmem:[#allocation2 + $0x30] sm:$0xff] %vm215_vm1, %v5823_v1  ;;  %225 = vst.msk [vmem:[#allocation2 + $0x40] sm:$0xff] %vm215_vm1, %v5823_v1  ;;  %5721 = vmatprep.subr.msk.mxu1 %vm492_vm0, %v6002_v4  ;;  %s6062_s27 = scalar_lea.vmem %s8401_s0, %s5437_s24  ;;  %s8253_s5 = scalar_lea.vmem %s8404_s3, %s5437_s24 }
  0x11   : > { %227 = vst.msk [vmem:[#allocation2 + $0x50] sm:$0xff] %vm215_vm1, %v5823_v1  ;;  %229 = vst.msk [vmem:[#allocation2 + $0x60] sm:$0xff] %vm215_vm1, %v5823_v1  ;;  %v330_v5 = vld [vmem:[%s6062_s27] sm:$0xff]  ;;  %v331_v6 = vld [vmem:[%s6062_s27 + $0x8] sm:$0xff] }
  0x12   : > { %230 = vst.msk [vmem:[#allocation2 + $0x68] sm:$0xff] %vm215_vm1, %v5823_v1  ;;  %231 = vst.msk [vmem:[#allocation2 + $0x70] sm:$0xff] %vm215_vm1, %v5823_v1  ;;  %v332_v7 = vld [vmem:[%s6062_s27 + $0x10] sm:$0xff]  ;;  %5573 = vmatprep.mubr.msk.f32.mxu0 %vm215_vm1, %v330_v5  ;;  %v333_v8 = vld [vmem:[%s6062_s27 + $0x18] sm:$0xff] }
  0x13   : > { %233 = vst.msk [vmem:[#allocation2 + $0x80] sm:$0xff] %vm215_vm1, %v5823_v1  ;;  %234 = vst.msk [vmem:[#allocation2 + $0x88] sm:$0xff] %vm215_vm1, %v5823_v1  ;;  %v334_v9 = vld [vmem:[%s6062_s27 + $0x20] sm:$0xff]  ;;  %v335_v10 = vld [vmem:[%s6062_s27 + $0x28] sm:$0xff]  ;;  %5574 = vmatmul.mubr.msk.f32.vlgmr.msra.gmra.mxu0 %vm215_vm1, %v331_v6 }
  0x14   : > { %235 = vst.msk [vmem:[#allocation2 + $0x90] sm:$0xff] %vm215_vm1, %v5823_v1  ;;  %237 = vst.msk [vmem:[#allocation2 + $0xa0] sm:$0xff] %vm215_vm1, %v5823_v1  ;;  %v336_v13 = vld [vmem:[%s6062_s27 + $0x30] sm:$0xff]  ;;  %5576 = vmatprep.mubr.msk.f32.mxu0 %vm215_vm1, %v332_v7  ;;  %v6084_v14 = vld [vmem:[%s6062_s27 + $0x38] sm:$0xff]  ;;  %5672 = vmatpush3.msk.msra.mxu0 %vm492_vm0, %v5366_v2 }
  0x15   : > { %238 = vst.msk [vmem:[#allocation2 + $0xa8] sm:$0xff] %vm215_vm1, %v5823_v1  ;;  %239 = vst.msk [vmem:[#allocation2 + $0xb0] sm:$0xff] %vm215_vm1, %v5823_v1  ;;  %v821_v11 = vld [vmem:[#allocation2 + $0x10] sm:$0xff]  ;;  %v6087_v15 = vld [vmem:[%s6062_s27 + $0x40] sm:$0xff] }
  0x16   : > { %241 = vst.msk [vmem:[#allocation2 + $0xc0] sm:$0xff] %vm215_vm1, %v5823_v1  ;;  %242 = vst.msk [vmem:[#allocation2 + $0xc8] sm:$0xff] %vm215_vm1, %v5823_v1  ;;  %v6090_v16 = vld [vmem:[%s6062_s27 + $0x48] sm:$0xff]  ;;  %v6100_v17 = vld [vmem:[%s6062_s27 + $0x50] sm:$0xff] }
  0x17   : > { %243 = vst.msk [vmem:[#allocation2 + $0xd0] sm:$0xff] %vm215_vm1, %v5823_v1  ;;  %245 = vst.msk [vmem:[#allocation2 + $0xe0] sm:$0xff] %vm215_vm1, %v5823_v1  ;;  %v6075_v12 = vld [vmem:[#allocation2 + $0x30] sm:$0xff]  ;;  %v6103_v18 = vld [vmem:[%s6062_s27 + $0x58] sm:$0xff]  ;;  %5577 = vmatmul.mubr.msk.f32.gmra.mxu0 %vm215_vm1, %v333_v8 }
  0x18   : > { %246 = vst.msk [vmem:[#allocation2 + $0xe8] sm:$0xff] %vm215_vm1, %v5823_v1  ;;  %247 = vst.msk [vmem:[#allocation2 + $0xf0] sm:$0xff] %vm215_vm1, %v5823_v1  ;;  %v6106_v19 = vld [vmem:[%s6062_s27 + $0x60] sm:$0xff]  ;;  %v6109_v20 = vmax.f32 %v821_v11, %v6075_v12  ;;  %v6118_v21 = vld [vmem:[%s6062_s27 + $0x68] sm:$0xff]  ;;  %5579 = vmatprep.mubr.msk.f32.mxu0 %vm215_vm1, %v334_v9 }
  0x19   : > { %249 = vst.msk [vmem:[#allocation2 + $0x100] sm:$0xff] %vm215_vm1, %v5823_v1  ;;  %250 = vst.msk [vmem:[#allocation2 + $0x108] sm:$0xff] %vm215_vm1, %v5823_v1  ;;  %v6121_v22 = vld [vmem:[%s6062_s27 + $0x70] sm:$0xff]  ;;  %v6124_v23 = vld [vmem:[%s6062_s27 + $0x78] sm:$0xff] }
  0x1a   : > { %251 = vst.msk [vmem:[#allocation2 + $0x110] sm:$0xff] %vm215_vm1, %v5823_v1  ;;  %253 = vst.msk [vmem:[#allocation2 + $0x120] sm:$0xff] %vm215_vm1, %v5823_v1  ;;  %v819_v24 = vld [vmem:[#allocation2] sm:$0xff]  ;;  %v820_v25 = vld [vmem:[#allocation2 + $0x8] sm:$0xff] }
  0x1b   : > { %254 = vst.msk [vmem:[#allocation2 + $0x128] sm:$0xff] %vm215_vm1, %v5823_v1  ;;  %255 = vst.msk [vmem:[#allocation2 + $0x130] sm:$0xff] %vm215_vm1, %v5823_v1  ;;  %v824_v26 = vld [vmem:[#allocation2 + $0x28] sm:$0xff]  ;;  %v6134_v27 = vld [vmem:[#allocation2 + $0x20] sm:$0xff]  ;;  %5580 = vmatmul.mubr.msk.f32.gmra.mxu0 %vm215_vm1, %v335_v10 }
  0x1c   : > { %257 = vst.msk [vmem:[#allocation2 + $0x140] sm:$0xff] %vm215_vm1, %v5823_v1  ;;  %258 = vst.msk [vmem:[#allocation2 + $0x148] sm:$0xff] %vm215_vm1, %v5823_v1  ;;  %v949_v28 = vmax.f32 %v820_v25, %v824_v26  ;;  %v6136_v29 = vld [vmem:[#allocation2 + $0x40] sm:$0xff]  ;;  %v948_v34 = vmax.f32 %v819_v24, %v6134_v27  ;;  %5582 = vmatprep.mubr.msk.f32.mxu0 %vm215_vm1, %v336_v13 }
  0x1d   : > { %259 = vst.msk [vmem:[#allocation2 + $0x150] sm:$0xff] %vm215_vm1, %v5823_v1  ;;  %261 = vst.msk [vmem:[#allocation2 + $0x160] sm:$0xff] %vm215_vm1, %v5823_v1  ;;  %v6138_v30 = vld [vmem:[#allocation2 + $0x60] sm:$0xff]  ;;  %v952_v39 = vmax.f32 %v6134_v27, %v6136_v29 }
  0x1e   : > { %262 = vst.msk [vmem:[#allocation2 + $0x168] sm:$0xff] %vm215_vm1, %v5823_v1  ;;  %263 = vst.msk [vmem:[#allocation2 + $0x170] sm:$0xff] %vm215_vm1, %v5823_v1  ;;  %v956_v40 = vmax.f32 %v6136_v29, %v6138_v30  ;;  %v6176_v51 = vmax.f32 %v948_v34, %v6136_v29  ;;  %v6223_v34 = vld [vmem:[%s6062_s27 + $0x80] sm:$0xff] }
  0x1f   : > { %265 = vst.msk [vmem:[#allocation2 + $0x180] sm:$0xff] %vm215_vm1, %v5823_v1  ;;  %266 = vst.msk [vmem:[#allocation2 + $0x188] sm:$0xff] %vm215_vm1, %v5823_v1  ;;  %5583 = vmatmul.mubr.msk.f32.gmra.mxu0 %vm215_vm1, %v6084_v14 }
  0x20   : > { %267 = vst.msk [vmem:[#allocation2 + $0x190] sm:$0xff] %vm215_vm1, %v5823_v1  ;;  %269 = vst.msk [vmem:[#allocation2 + $0x1a0] sm:$0xff] %vm215_vm1, %v5823_v1  ;;  %5585 = vmatprep.mubr.msk.f32.mxu0 %vm215_vm1, %v6087_v15 }
  0x21   : > { %270 = vst.msk [vmem:[#allocation2 + $0x1a8] sm:$0xff] %vm215_vm1, %v5823_v1  ;;  %271 = vst.msk [vmem:[#allocation2 + $0x1b0] sm:$0xff] %vm215_vm1, %v5823_v1 }
  0x22   : > { %273 = vst.msk [vmem:[#allocation2 + $0x1c0] sm:$0xff] %vm215_vm1, %v5823_v1  ;;  %274 = vst.msk [vmem:[#allocation2 + $0x1c8] sm:$0xff] %vm215_vm1, %v5823_v1 }
  0x23   : > { %275 = vst.msk [vmem:[#allocation2 + $0x1d0] sm:$0xff] %vm215_vm1, %v5823_v1  ;;  %277 = vst.msk [vmem:[#allocation2 + $0x1e0] sm:$0xff] %vm215_vm1, %v5823_v1  ;;  %5586 = vmatmul.mubr.msk.f32.gmra.mxu0 %vm215_vm1, %v6090_v16 }
  0x24   : > { %278 = vst.msk [vmem:[#allocation2 + $0x1e8] sm:$0xff] %vm215_vm1, %v5823_v1  ;;  %279 = vst.msk [vmem:[#allocation2 + $0x1f0] sm:$0xff] %vm215_vm1, %v5823_v1  ;;  %5588 = vmatprep.mubr.msk.f32.mxu0 %vm215_vm1, %v6100_v17 }
  0x25   : > { %281 = vst.msk [vmem:[#allocation2 + $0x200] sm:$0xff] %vm215_vm1, %v5823_v1  ;;  %282 = vst.msk [vmem:[#allocation2 + $0x208] sm:$0xff] %vm215_vm1, %v5823_v1 }
  0x26   : > { %283 = vst.msk [vmem:[#allocation2 + $0x210] sm:$0xff] %vm215_vm1, %v5823_v1  ;;  %285 = vst.msk [vmem:[#allocation2 + $0x220] sm:$0xff] %vm215_vm1, %v5823_v1 }
  0x27   : > { %286 = vst.msk [vmem:[#allocation2 + $0x228] sm:$0xff] %vm215_vm1, %v5823_v1  ;;  %287 = vst.msk [vmem:[#allocation2 + $0x230] sm:$0xff] %vm215_vm1, %v5823_v1  ;;  %5589 = vmatmul.mubr.msk.f32.gmra.mxu0 %vm215_vm1, %v6103_v18 }
  0x28   : > { %289 = vst.msk [vmem:[#allocation2 + $0x240] sm:$0xff] %vm215_vm1, %v5823_v1  ;;  %290 = vst.msk [vmem:[#allocation2 + $0x248] sm:$0xff] %vm215_vm1, %v5823_v1  ;;  %5591 = vmatprep.mubr.msk.f32.mxu0 %vm215_vm1, %v6106_v19 }
  0x29   : > { %291 = vst.msk [vmem:[#allocation2 + $0x250] sm:$0xff] %vm215_vm1, %v5823_v1  ;;  %293 = vst.msk [vmem:[#allocation2 + $0x260] sm:$0xff] %vm215_vm1, %v5823_v1 }
  0x2a   : > { %294 = vst.msk [vmem:[#allocation2 + $0x268] sm:$0xff] %vm215_vm1, %v5823_v1  ;;  %295 = vst.msk [vmem:[#allocation2 + $0x270] sm:$0xff] %vm215_vm1, %v5823_v1 }
  0x2b   : > { %220 = vst.msk [vmem:[#allocation2 + $0x18] sm:$0x3] %vm219_vm2, %v5823_v1  ;;  %224 = vst.msk [vmem:[#allocation2 + $0x38] sm:$0x3] %vm219_vm2, %v5823_v1  ;;  %5592 = vmatmul.mubr.msk.f32.gmra.mxu0 %vm215_vm1, %v6118_v21 }
  0x2c   : > { %228 = vst.msk [vmem:[#allocation2 + $0x58] sm:$0x3] %vm219_vm2, %v5823_v1  ;;  %232 = vst.msk [vmem:[#allocation2 + $0x78] sm:$0x3] %vm219_vm2, %v5823_v1  ;;  %5594 = vmatprep.mubr.msk.f32.mxu0 %vm215_vm1, %v6121_v22 }
  0x2d   : > { %236 = vst.msk [vmem:[#allocation2 + $0x98] sm:$0x3] %vm219_vm2, %v5823_v1  ;;  %240 = vst.msk [vmem:[#allocation2 + $0xb8] sm:$0x3] %vm219_vm2, %v5823_v1 }
  0x2e   : > { %244 = vst.msk [vmem:[#allocation2 + $0xd8] sm:$0x3] %vm219_vm2, %v5823_v1  ;;  %248 = vst.msk [vmem:[#allocation2 + $0xf8] sm:$0x3] %vm219_vm2, %v5823_v1 }
  0x2f   : > { %252 = vst.msk [vmem:[#allocation2 + $0x118] sm:$0x3] %vm219_vm2, %v5823_v1  ;;  %256 = vst.msk [vmem:[#allocation2 + $0x138] sm:$0x3] %vm219_vm2, %v5823_v1  ;;  %5595 = vmatmul.mubr.msk.f32.gmra.mxu0 %vm215_vm1, %v6124_v23 }
  0x30   : > { %260 = vst.msk [vmem:[#allocation2 + $0x158] sm:$0x3] %vm219_vm2, %v5823_v1  ;;  %264 = vst.msk [vmem:[#allocation2 + $0x178] sm:$0x3] %vm219_vm2, %v5823_v1  ;;  %5597 = vmatprep.mubr.msk.f32.mxu0 %vm215_vm1, %v6223_v34 }
  0x31   : > { %268 = vst.msk [vmem:[#allocation2 + $0x198] sm:$0x3] %vm219_vm2, %v5823_v1  ;;  %272 = vst.msk [vmem:[#allocation2 + $0x1b8] sm:$0x3] %vm219_vm2, %v5823_v1 }
  0x32   : > { %276 = vst.msk [vmem:[#allocation2 + $0x1d8] sm:$0x3] %vm219_vm2, %v5823_v1  ;;  %280 = vst.msk [vmem:[#allocation2 + $0x1f8] sm:$0x3] %vm219_vm2, %v5823_v1 }
  0x33   : > { %284 = vst.msk [vmem:[#allocation2 + $0x218] sm:$0x3] %vm219_vm2, %v5823_v1  ;;  %288 = vst.msk [vmem:[#allocation2 + $0x238] sm:$0x3] %vm219_vm2, %v5823_v1 }
  0x34   : > { %292 = vst.msk [vmem:[#allocation2 + $0x258] sm:$0x3] %vm219_vm2, %v5823_v1  ;;  %296 = vst.msk [vmem:[#allocation2 + $0x278] sm:$0x3] %vm219_vm2, %v5823_v1 }
  0x35   : > { %787 = vst.msk [vmem:[#allocation2 + $0x48] sm:$0xff] %vm215_vm1, %v330_v5  ;;  %788 = vst.msk [vmem:[#allocation2 + $0x50] sm:$0xff] %vm215_vm1, %v331_v6 }
  0x36   : > { %789 = vst.msk [vmem:[#allocation2 + $0x68] sm:$0xff] %vm215_vm1, %v332_v7  ;;  %790 = vst.msk [vmem:[#allocation2 + $0x70] sm:$0xff] %vm215_vm1, %v333_v8 }
  0x37   : > { %791 = vst.msk [vmem:[#allocation2 + $0x88] sm:$0xff] %vm215_vm1, %v334_v9  ;;  %792 = vst.msk [vmem:[#allocation2 + $0x90] sm:$0xff] %vm215_vm1, %v335_v10 }
  0x38   : > { %793 = vst.msk [vmem:[#allocation2 + $0xa8] sm:$0xff] %vm215_vm1, %v336_v13  ;;  %794 = vst.msk [vmem:[#allocation2 + $0xb0] sm:$0xff] %vm215_vm1, %v6084_v14 }
  0x39   : > { %795 = vst.msk [vmem:[#allocation2 + $0xc8] sm:$0xff] %vm215_vm1, %v6087_v15  ;;  %796 = vst.msk [vmem:[#allocation2 + $0xd0] sm:$0xff] %vm215_vm1, %v6090_v16 }
  0x3a   : > { %797 = vst.msk [vmem:[#allocation2 + $0xe8] sm:$0xff] %vm215_vm1, %v6100_v17  ;;  %798 = vst.msk [vmem:[#allocation2 + $0xf0] sm:$0xff] %vm215_vm1, %v6103_v18 }
  0x3b   : > { %799 = vst.msk [vmem:[#allocation2 + $0x108] sm:$0xff] %vm215_vm1, %v6106_v19  ;;  %800 = vst.msk [vmem:[#allocation2 + $0x110] sm:$0xff] %vm215_vm1, %v6118_v21 }
  0x3c   : > { %801 = vst.msk [vmem:[#allocation2 + $0x128] sm:$0xff] %vm215_vm1, %v6121_v22  ;;  %802 = vst.msk [vmem:[#allocation2 + $0x130] sm:$0xff] %vm215_vm1, %v6124_v23  ;;  %v6140_v31 = vld [vmem:[#allocation2 + $0x50] sm:$0xff]  ;;  %v828_v33 = vld [vmem:[#allocation2 + $0x48] sm:$0xff] }
  0x3d   : > { %v6142_v32 = vld [vmem:[#allocation2 + $0x68] sm:$0xff]  ;;  %v1078_v35 = vmax.f32 %v6109_v20, %v6140_v31  ;;  %v6147_v36 = vld [vmem:[#allocation2 + $0x70] sm:$0xff]  ;;  %v953_v44 = vmax.f32 %v824_v26, %v828_v33  ;;  %v6178_v52 = vmax.f32 %v949_v28, %v828_v33  ;;  %803 = vst.msk [vmem:[#allocation2 + $0x148] sm:$0xff] %vm215_vm1, %v6223_v34 }
  0x3e   : > { %v6149_v37 = vld [vmem:[#allocation2 + $0x88] sm:$0xff]  ;;  %v6151_v38 = vld [vmem:[#allocation2 + $0x90] sm:$0xff]  ;;  %v957_v45 = vmax.f32 %v828_v33, %v6142_v32 }
  0x3f   : > { %v961_v41 = vmax.f32 %v6142_v32, %v6149_v37  ;;  %v962_v42 = vmax.f32 %v6147_v36, %v6151_v38  ;;  %v6162_v43 = vld [vmem:[#allocation2 + $0xa8] sm:$0xff]  ;;  %v1207_v46 = vmax.f32 %v1078_v35, %v6147_v36  ;;  %v6169_v48 = vld [vmem:[#allocation2 + $0xb0] sm:$0xff]  ;;  %v1081_v28 = vmax.f32 %v953_v44, %v6142_v32 }
  0x40   : > { %v965_v47 = vmax.f32 %v6149_v37, %v6162_v43  ;;  %v6171_v49 = vld [vmem:[#allocation2 + $0xc8] sm:$0xff]  ;;  %v6173_v50 = vld [vmem:[#allocation2 + $0xd0] sm:$0xff]  ;;  %v966_v54 = vmax.f32 %v6151_v38, %v6169_v48  ;;  %v1085_v33 = vmax.f32 %v957_v45, %v6149_v37  ;;  %v887_v45 = vld [vmem:[#allocation2 + $0x38] sm:$0x3] }
  0x41   : > { %v1089_v53 = vmax.f32 %v961_v41, %v6162_v43  ;;  %v1090_v55 = vmax.f32 %v962_v42, %v6169_v48  ;;  %v969_v56 = vmax.f32 %v6162_v43, %v6171_v49  ;;  %v848_v57 = vld [vmem:[#allocation2 + $0xe8] sm:$0xff]  ;;  %v1336_v58 = vmax.f32 %v1207_v46, %v6151_v38  ;;  %v6191_v62 = vld [vmem:[#allocation2 + $0xf0] sm:$0xff]  ;;  %v822_v46 = vld [vmem:[#allocation2 + $0x18] sm:$0x3] }
  0x42   : > { %v1093_v59 = vmax.f32 %v965_v47, %v6171_v49  ;;  %v970_v60 = vmax.f32 %v6169_v48, %v6173_v50  ;;  %v973_v61 = vmax.f32 %v6171_v49, %v848_v57  ;;  %v1094_v0 = vmax.f32 %v966_v54, %v6173_v50  ;;  %v6198_v3 = vld [vmem:[#allocation2 + $0x108] sm:$0xff]  ;;  %v6207_v9 = vld [vmem:[#allocation2 + $0x110] sm:$0xff] }
  0x43   : > { %v1218_v63 = vmax.f32 %v1089_v53, %v6171_v49  ;;  %v1219_v1 = vmax.f32 %v1090_v55, %v6173_v50  ;;  %v1097_v2 = vmax.f32 %v969_v56, %v848_v57  ;;  %1400 = vst.msk [vmem:[#allocation3 + $0x10] sm:$0xff] %vm215_vm1, %v1336_v58  ;;  %v974_v6 = vmax.f32 %v6173_v50, %v6191_v62  ;;  %v6214_v15 = vld [vmem:[#allocation2 + $0x128] sm:$0xff]  ;;  %v6218_v26 = vld [vmem:[#allocation2 + $0x130] sm:$0xff]  ;;  %v6254_v55 = vld [vmem:[#allocation2 + $0x80] sm:$0xff] }
  0x44   : > { %v1222_v5 = vmax.f32 %v1093_v59, %v848_v57  ;;  %v1098_v7 = vmax.f32 %v970_v60, %v6191_v62  ;;  %v977_v8 = vmax.f32 %v848_v57, %v6198_v3  ;;  %v1223_v11 = vmax.f32 %v1094_v0, %v6191_v62  ;;  %v6226_v35 = vld [vmem:[%s6062_s27 + $0x88] sm:$0xff]  ;;  %v2208_v56 = vld [vmem:[#allocation2 + $0x18] sm:$0x3] }
  0x45   : > { %v1347_v10 = vmax.f32 %v1218_v63, %v848_v57  ;;  %v1348_v13 = vmax.f32 %v1219_v1, %v6191_v62  ;;  %v6212_v14 = vmax.f32 %v973_v61, %v6198_v3  ;;  %v1226_v24 = vmax.f32 %v1097_v2, %v6198_v3  ;;  %804 = vst.msk [vmem:[#allocation2 + $0x150] sm:$0xff] %vm215_vm1, %v6226_v35  ;;  %v2272_v57 = vld [vmem:[#allocation2 + $0x38] sm:$0x3] }
  0x46   : > { %v1351_v25 = vmax.f32 %v1222_v5, %v6198_v3  ;;  %v978_v41 = vmax.f32 %v6191_v62, %v6207_v9  ;;  %v1227_v42 = vmax.f32 %v1098_v7, %v6207_v9  ;;  %v1352_v44 = vmax.f32 %v1223_v11, %v6207_v9  ;;  %v1015_v61 = vld [vmem:[#allocation2 + $0x58] sm:$0x3]  ;;  %v6270_v5 = vld [vmem:[%s6062_s27 + $0x90] sm:$0xff]  ;;  %5598 = vmatmul.mubr.msk.f32.gmra.mxu0 %vm215_vm1, %v6226_v35 }
  0x47   : > { %1412 = vst.msk [vmem:[#allocation3 + $0x68] sm:$0xff] %vm215_vm1, %v1347_v10  ;;  %1413 = vst.msk [vmem:[#allocation3 + $0x70] sm:$0xff] %vm215_vm1, %v1348_v13  ;;  %v954_v47 = vmax.f32 %v6075_v12, %v6140_v31  ;;  %v6246_v16 = vmax.f32 %v974_v6, %v6207_v9  ;;  %v981_v53 = vmax.f32 %v6198_v3, %v6214_v15  ;;  %v2400_v2 = vld [vmem:[#allocation2 + $0x58] sm:$0x3]  ;;  %5600 = vmatprep.mubr.msk.f32.mxu0 %vm215_vm1, %v6270_v5 }
  0x48   : > { %1416 = vst.msk [vmem:[#allocation3 + $0x88] sm:$0xff] %vm215_vm1, %v1351_v25  ;;  %v6251_v54 = vmax.f32 %v977_v8, %v6214_v15  ;;  %v1355_v12 = vmax.f32 %v1226_v24, %v6214_v15  ;;  %1417 = vst.msk [vmem:[#allocation3 + $0x90] sm:$0xff] %vm215_vm1, %v1352_v44  ;;  %v1230_v17 = vmax.f32 %v6212_v14, %v6214_v15  ;;  %v6273_v6 = vld [vmem:[%s6062_s27 + $0x98] sm:$0xff] }
  0x49   : > { %v1356_v58 = vmax.f32 %v1227_v42, %v6218_v26  ;;  %v1205_v59 = vmax.f32 %v6176_v51, %v6138_v30  ;;  %v1206_v60 = vmax.f32 %v6178_v52, %v6142_v32  ;;  %v1210_v62 = vmax.f32 %v1081_v28, %v6149_v37  ;;  %v1144_v7 = vld [vmem:[#allocation2 + $0x78] sm:$0x3]  ;;  %805 = vst.msk [vmem:[#allocation2 + $0x168] sm:$0xff] %vm215_vm1, %v6270_v5  ;;  %v6310_v42 = vld [vmem:[#allocation2 + $0x148] sm:$0xff] }
  0x4a   : > { %1420 = vst.msk [vmem:[#allocation3 + $0xa8] sm:$0xff] %vm215_vm1, %v1355_v12  ;;  %v1214_v63 = vmax.f32 %v1085_v33, %v6162_v43  ;;  %v951_v0 = vmax.f32 %v822_v46, %v887_v45  ;;  %v958_v1 = vmax.f32 %v6140_v31, %v6147_v36  ;;  %v1082_v52 = vmax.f32 %v954_v47, %v6147_v36  ;;  %v826_v31 = vld [vmem:[#allocation2 + $0x38] sm:$0x3]  ;;  %v6324_v12 = vld [vmem:[%s6062_s27 + $0xa0] sm:$0xff] }
  0x4b   : > { %1421 = vst.msk [vmem:[#allocation3 + $0xb0] sm:$0xff] %vm215_vm1, %v1356_v58  ;;  %v6279_v32 = vmax.f32 %v1205_v59, %v6254_v55  ;;  %v1335_v51 = vmax.f32 %v1206_v60, %v6149_v37  ;;  %v2336_v8 = vmax.f32 %v2208_v56, %v2272_v57  ;;  %v891_v10 = vld [vmem:[#allocation2 + $0x58] sm:$0x3]  ;;  %806 = vst.msk [vmem:[#allocation2 + $0x170] sm:$0xff] %vm215_vm1, %v6273_v6  ;;  %v6332_v57 = vld [vmem:[#allocation2 + $0xa0] sm:$0xff]  ;;  %5601 = vmatmul.mubr.msk.f32.gmra.mxu0 %vm215_vm1, %v6273_v6 }
  0x4c   : > { %v1339_v18 = vmax.f32 %v1210_v62, %v6162_v43  ;;  %v1343_v11 = vmax.f32 %v1214_v63, %v6171_v49  ;;  %v1079_v37 = vmax.f32 %v951_v0, %v1015_v61  ;;  %v1086_v36 = vmax.f32 %v958_v1, %v6151_v38  ;;  %v6292_v13 = vld [vmem:[#allocation2 + $0x38] sm:$0x3]  ;;  %v6319_v45 = vld [vmem:[#allocation2 + $0x150] sm:$0xff]  ;;  %807 = vst.msk [vmem:[#allocation2 + $0x188] sm:$0xff] %vm215_vm1, %v6324_v12  ;;  %v6337_v58 = vld [vmem:[%s6062_s27 + $0xa8] sm:$0xff] }
  0x4d   : > { %v6294_v14 = vld [vmem:[#allocation2 + $0x58] sm:$0x3]  ;;  %v6297_v24 = vmax.f32 %v978_v41, %v6218_v26  ;;  %v1231_v25 = vmax.f32 %v6246_v16, %v6218_v26  ;;  %1398 = vst.msk [vmem:[#allocation3] sm:$0xff] %vm215_vm1, %v6279_v32  ;;  %1399 = vst.msk [vmem:[#allocation3 + $0x8] sm:$0xff] %vm215_vm1, %v1335_v51  ;;  %v1211_v19 = vmax.f32 %v1082_v52, %v6151_v38  ;;  %5603 = vmatprep.mubr.msk.f32.mxu0 %vm215_vm1, %v6324_v12 }
  0x4e   : > { %v1273_v43 = vld [vmem:[#allocation2 + $0x98] sm:$0x3]  ;;  %v6305_v49 = vmax.f32 %v2336_v8, %v2400_v2  ;;  %1404 = vst.msk [vmem:[#allocation3 + $0x28] sm:$0xff] %vm215_vm1, %v1339_v18  ;;  %1408 = vst.msk [vmem:[#allocation3 + $0x48] sm:$0xff] %vm215_vm1, %v1343_v11  ;;  %v1208_v28 = vmax.f32 %v1079_v37, %v1144_v7  ;;  %v1215_v33 = vmax.f32 %v1086_v36, %v6169_v48  ;;  %v1560_v18 = vld [vmem:[#allocation3 + $0x10] sm:$0xff] }
  0x4f   : > { %v2528_v41 = vld [vmem:[#allocation2 + $0x78] sm:$0x3]  ;;  %v1080_v44 = vmax.f32 %v952_v39, %v6138_v30  ;;  %v955_v38 = vmax.f32 %v826_v31, %v891_v10  ;;  %v1340_v46 = vmax.f32 %v1211_v19, %v6169_v48  ;;  %v2340_v16 = vmax.f32 %v6292_v13, %v6294_v14  ;;  %808 = vst.msk [vmem:[#allocation2 + $0x190] sm:$0xff] %vm215_vm1, %v6337_v58 }
  0x50   : > { %v1019_v47 = vld [vmem:[#allocation2 + $0x78] sm:$0x3]  ;;  %v1337_v27 = vmax.f32 %v1208_v28, %v1273_v43  ;;  %v1344_v39 = vmax.f32 %v1215_v33, %v6173_v50  ;;  %v1234_v21 = vmax.f32 %v6251_v54, %v6310_v42  ;;  %v1359_v48 = vmax.f32 %v1230_v17, %v6310_v42  ;;  %v6364_v63 = vld [vmem:[#allocation2 + $0x168] sm:$0xff]  ;;  %5604 = vmatmul.mubr.msk.f32.gmra.mxu0 %vm215_vm1, %v6337_v58 }
  0x51   : > { %v2656_v56 = vld [vmem:[#allocation2 + $0x98] sm:$0x3]  ;;  %v982_v59 = vmax.f32 %v6207_v9, %v6218_v26  ;;  %1405 = vst.msk [vmem:[#allocation3 + $0x30] sm:$0xff] %vm215_vm1, %v1340_v46  ;;  %v2592_v22 = vmax.f32 %v6305_v49, %v2528_v41  ;;  %v1235_v50 = vmax.f32 %v6297_v24, %v6319_v45  ;;  %v6349_v61 = vmax.f32 %v956_v40, %v6254_v55 }
  0x52   : > { %v1148_v54 = vld [vmem:[#allocation2 + $0x98] sm:$0x3]  ;;  %1402 = vst.msk [vmem:[#allocation3 + $0x18] sm:$0x3] %vm219_vm2, %v1337_v27  ;;  %v6359_v9 = vmax.f32 %v981_v53, %v6310_v42  ;;  %v1360_v62 = vmax.f32 %v1231_v25, %v6319_v45  ;;  %v1209_v29 = vmax.f32 %v1080_v44, %v6254_v55  ;;  %v1083_v40 = vmax.f32 %v955_v38, %v1019_v47  ;;  %v6366_v0 = vld [vmem:[#allocation2 + $0x170] sm:$0xff]  ;;  %v6373_v53 = vld [vmem:[#allocation2 + $0xc0] sm:$0xff] }
  0x53   : > { %v1277_v60 = vld [vmem:[#allocation2 + $0xb8] sm:$0x3]  ;;  %1409 = vst.msk [vmem:[#allocation3 + $0x50] sm:$0xff] %vm215_vm1, %v1344_v39  ;;  %1424 = vst.msk [vmem:[#allocation3 + $0xc8] sm:$0xff] %vm215_vm1, %v1359_v48  ;;  %v1363_v3 = vmax.f32 %v1234_v21, %v6364_v63  ;;  %v985_v11 = vmax.f32 %v6214_v15, %v6310_v42  ;;  %v2720_v24 = vmax.f32 %v2592_v22, %v2656_v56  ;;  %v6403_v21 = vld [vmem:[#allocation2 + $0x188] sm:$0xff] }
  0x54   : > { %v2404_v17 = vld [vmem:[#allocation2 + $0x78] sm:$0x3]  ;;  %v1463_v8 = vld [vmem:[#allocation3 + $0x6] sm:$0xff]  ;;  %1425 = vst.msk [vmem:[#allocation3 + $0xd0] sm:$0xff] %vm215_vm1, %v1360_v62  ;;  %v6381_v23 = vmax.f32 %v1209_v29, %v6332_v57  ;;  %v1212_v37 = vmax.f32 %v1083_v40, %v1148_v54  ;;  %v1464_v14 = vld [vmem:[#allocation3 + $0xe] sm:$0xff]  ;;  %v6388_v25 = vmax.f32 %v982_v59, %v6319_v45  ;;  %v1364_v34 = vmax.f32 %v1235_v50, %v6366_v0 }
  0x55   : > { %v830_v1 = vld [vmem:[#allocation2 + $0x58] sm:$0x3]  ;;  %v1495_v31 = vld [vmem:[#allocation3 + $0x7] sm:$0xff]  ;;  %v6383_v36 = vmax.f32 %v2340_v16, %v2404_v17  ;;  %1428 = vst.msk [vmem:[#allocation3 + $0xe8] sm:$0xff] %vm215_vm1, %v1363_v3  ;;  %v1496_v28 = vld [vmem:[#allocation3 + $0xf] sm:$0xff]  ;;  %v1213_v41 = vmax.f32 %v6349_v61, %v6332_v57  ;;  %v960_v48 = vmax.f32 %v6138_v30, %v6254_v55  ;;  %v986_v50 = vmax.f32 %v6218_v26, %v6319_v45 }
  0x56   : > { %v6370_v2 = vld [vmem:[#allocation2 + $0x98] sm:$0x3]  ;;  %v1559_v10 = vld [vmem:[#allocation3 + $0x8] sm:$0xff]  ;;  %v1527_v13 = vmax.f32 %v1463_v8, %v1495_v31  ;;  %2781 = vst.msk [vmem:[#allocation3] sm:$0xff] %vm215_vm1, %v6279_v32  ;;  %1403 = vst.msk [vmem:[#allocation3 + $0x20] sm:$0xff] %vm215_vm1, %v6381_v23  ;;  %v1341_v33 = vmax.f32 %v1212_v37, %v1277_v60  ;;  %v1238_v32 = vmax.f32 %v6359_v9, %v6364_v63 }
  0x57   : > { %v895_v51 = vld [vmem:[#allocation2 + $0x78] sm:$0x3]  ;;  %v1623_v49 = vld [vmem:[#allocation3 + $0x9] sm:$0xff]  ;;  %v1528_v47 = vmax.f32 %v1464_v14, %v1496_v28  ;;  %1429 = vst.msk [vmem:[#allocation3 + $0xf0] sm:$0xff] %vm215_vm1, %v1364_v34  ;;  %v2596_v54 = vmax.f32 %v6383_v36, %v6370_v2  ;;  %v6417_v60 = vmax.f32 %v1213_v41, %v6373_v53  ;;  %v1239_v26 = vmax.f32 %v6388_v25, %v6366_v0  ;;  %v6426_v8 = vld [vmem:[#allocation2 + $0xe0] sm:$0xff] }
  0x58   : > { %v2216_v52 = vld [vmem:[#allocation2 + $0x58] sm:$0x3]  ;;  %v959_v44 = vmax.f32 %v830_v1, %v895_v51  ;;  %v1591_v46 = vmax.f32 %v1527_v13, %v1559_v10  ;;  %v1687_v22 = vld [vmem:[#allocation3 + $0xa] sm:$0xff]  ;;  %1406 = vst.msk [vmem:[#allocation3 + $0x38] sm:$0x3] %vm219_vm2, %v1341_v33  ;;  %v6446_v12 = vmax.f32 %v985_v11, %v6364_v63 }
  0x59   : > { %v2280_v7 = vld [vmem:[#allocation2 + $0x78] sm:$0x3]  ;;  %v1466_v35 = vld [vmem:[#allocation3 + $0x2e] sm:$0xff]  ;;  %v1592_v9 = vmax.f32 %v1528_v47, %v1560_v18  ;;  %1407 = vst.msk [vmem:[#allocation3 + $0x40] sm:$0xff] %vm215_vm1, %v6417_v60 }
  0x5a   : > { %v1023_v19 = vld [vmem:[#allocation2 + $0x98] sm:$0x3]  ;;  %v2344_v39 = vmax.f32 %v2216_v52, %v2280_v7  ;;  %v1655_v61 = vmax.f32 %v1591_v46, %v1623_v49  ;;  %v1498_v40 = vld [vmem:[#allocation3 + $0x2f] sm:$0xff]  ;;  %v1367_v52 = vmax.f32 %v1238_v32, %v6403_v21  ;;  %v1088_v7 = vmax.f32 %v960_v48, %v6332_v57 }
  0x5b   : > { %v1152_v43 = vld [vmem:[#allocation2 + $0xb8] sm:$0x3]  ;;  %v1087_v17 = vmax.f32 %v959_v44, %v1023_v19  ;;  %v1530_v2 = vmax.f32 %v1466_v35, %v1498_v40  ;;  %v1562_v3 = vld [vmem:[#allocation3 + $0x30] sm:$0xff]  ;;  %v1563_v15 = vld [vmem:[#allocation3 + $0x48] sm:$0xff] }
  0x5c   : > { %v2408_v38 = vld [vmem:[#allocation2 + $0x98] sm:$0x3]  ;;  %v1719_v31 = vmax.f32 %v1655_v61, %v1687_v22  ;;  %v1468_v18 = vld [vmem:[#allocation3 + $0x4e] sm:$0xff]  ;;  %1432 = vst.msk [vmem:[#allocation3 + $0x108] sm:$0xff] %vm215_vm1, %v1367_v52  ;;  %v1217_v6 = vmax.f32 %v1088_v7, %v6373_v53 }
  0x5d   : > { %v2660_v16 = vld [vmem:[#allocation2 + $0xb8] sm:$0x3]  ;;  %v2472_v1 = vmax.f32 %v2344_v39, %v2408_v38  ;;  %v1216_v5 = vmax.f32 %v1087_v17, %v1152_v43  ;;  %v1500_v37 = vld [vmem:[#allocation3 + $0x4f] sm:$0xff]  ;;  %v1594_v25 = vmax.f32 %v1530_v2, %v1562_v3  ;;  %v1465_v32 = vld [vmem:[#allocation3 + $0x26] sm:$0xff]  ;;  %v968_v2 = vmax.f32 %v6332_v57, %v6373_v53 }
  0x5e   : > { %v1281_v27 = vld [vmem:[#allocation2 + $0xd8] sm:$0x3]  ;;  %v2724_v34 = vmax.f32 %v2596_v54, %v2660_v16  ;;  %v6435_v43 = vld [vmem:[#allocation2 + $0x190] sm:$0xff]  ;;  %5623 = vmatprep.mubr.msk.f32.mxu1 %vm215_vm1, %v1719_v31  ;;  %2173 = vst.msk [vmem:[#allocation2 + $0x48] sm:$0xff] %vm215_vm1, %v1719_v31  ;;  %v1497_v41 = vld [vmem:[#allocation3 + $0x27] sm:$0xff]  ;;  %v1532_v44 = vmax.f32 %v1468_v18, %v1500_v37  ;;  %v6449_v16 = vmax.f32 %v986_v50, %v6366_v0 }
  0x5f   : > { %v6401_v56 = vld [vmem:[#allocation2 + $0xb8] sm:$0x3]  ;;  %v1345_v19 = vmax.f32 %v1216_v5, %v1281_v27  ;;  %v1529_v46 = vmax.f32 %v1465_v32, %v1497_v41  ;;  %v1625_v47 = vld [vmem:[#allocation3 + $0x29] sm:$0xff]  ;;  %2785 = vst.msk [vmem:[#allocation3 + $0x20] sm:$0xff] %vm215_vm1, %v6381_v23  ;;  %v1368_v39 = vmax.f32 %v1239_v26, %v6435_v43  ;;  %v6458_v22 = vmax.f32 %v1217_v6, %v6426_v8 }
  0x60   : > { %v6407_v59 = vld [vmem:[#allocation2 + $0x78] sm:$0x3]  ;;  %v2600_v36 = vmax.f32 %v2472_v1, %v6401_v56  ;;  %v1564_v27 = vld [vmem:[#allocation3 + $0x50] sm:$0xff]  ;;  %v1499_v40 = vld [vmem:[#allocation3 + $0x47] sm:$0xff]  ;;  %v964_v1 = vmax.f32 %v6254_v55, %v6332_v57  ;;  %v6484_v57 = vmax.f32 %v968_v2, %v6426_v8 }
  0x61   : > { %v899_v30 = vld [vmem:[#allocation2 + $0x98] sm:$0x3]  ;;  %1410 = vst.msk [vmem:[#allocation3 + $0x58] sm:$0x3] %vm219_vm2, %v1345_v19  ;;  %v352_v35 = vld [vmem:[%s6062_s27 + $0xb0] sm:$0xff]  ;;  %v6529_v2 = vld [vmem:[#allocation2 + $0x120] sm:$0xff] }
  0x62   : > { %v1624_v62 = vld [vmem:[#allocation3 + $0x11] sm:$0xff]  ;;  %v963_v13 = vmax.f32 %v6407_v59, %v899_v30  ;;  %1433 = vst.msk [vmem:[#allocation3 + $0x110] sm:$0xff] %vm215_vm1, %v1368_v39  ;;  %5606 = vmatprep.mubr.msk.f32.mxu0 %vm215_vm1, %v352_v35  ;;  %809 = vst.msk [vmem:[#allocation2 + $0x1a8] sm:$0xff] %vm215_vm1, %v352_v35  ;;  %v1627_v18 = vld [vmem:[#allocation3 + $0x49] sm:$0xff] }
  0x63   : > { %v1688_v29 = vld [vmem:[#allocation3 + $0x12] sm:$0xff]  ;;  %v1656_v10 = vmax.f32 %v1592_v9, %v1624_v62  ;;  %v1689_v62 = vld [vmem:[#allocation3 + $0x2a] sm:$0xff]  ;;  %1411 = vst.msk [vmem:[#allocation3 + $0x60] sm:$0xff] %vm215_vm1, %v6458_v22 }
  0x64   : > { %2784 = vst.msk [vmem:[#allocation3 + $0x18] sm:$0x3] %vm219_vm2, %v2720_v24  ;;  %v2664_v51 = vld [vmem:[#allocation2 + $0xd8] sm:$0x3]  ;;  %v1561_v24 = vld [vmem:[#allocation3 + $0x28] sm:$0xff] }
  0x65   : > { %v1027_v14 = vld [vmem:[#allocation2 + $0xb8] sm:$0x3]  ;;  %v1720_v33 = vmax.f32 %v1656_v10, %v1688_v29  ;;  %v2728_v11 = vmax.f32 %v2600_v36, %v2664_v51  ;;  %v1593_v54 = vmax.f32 %v1529_v46, %v1561_v24  ;;  %v6465_v30 = vld [vmem:[#allocation3 + $0x6e] sm:$0xff]  ;;  %v1467_v29 = vld [vmem:[#allocation3 + $0x46] sm:$0xff]  ;;  %v1092_v36 = vmax.f32 %v964_v1, %v6373_v53 }
  0x66   : > { %v1156_v49 = vld [vmem:[#allocation2 + $0xd8] sm:$0x3]  ;;  %v1091_v50 = vmax.f32 %v963_v13, %v1027_v14  ;;  %v6467_v61 = vld [vmem:[#allocation3 + $0x6f] sm:$0xff]  ;;  %v1531_v51 = vmax.f32 %v1467_v29, %v1499_v40  ;;  %2789 = vst.msk [vmem:[#allocation3 + $0x40] sm:$0xff] %vm215_vm1, %v6417_v60  ;;  %v354_v1 = vld [vmem:[%s6062_s27 + $0xc0] sm:$0xff] }
  0x67   : > { %v2220_v28 = vld [vmem:[#allocation2 + $0x78] sm:$0x3]  ;;  %5624 = vmatmul.mubr.msk.f32.vlgmr.msra.gmra.mxu1 %vm215_vm1, %v1720_v33  ;;  %2174 = vst.msk [vmem:[#allocation2 + $0x50] sm:$0xff] %vm215_vm1, %v1720_v33  ;;  %v1657_v3 = vmax.f32 %v1593_v54, %v1625_v47  ;;  %v1691_v60 = vld [vmem:[#allocation3 + $0x4a] sm:$0xff]  ;;  %v1221_v41 = vmax.f32 %v1092_v36, %v6426_v8  ;;  %v990_v54 = vmax.f32 %v6319_v45, %v6366_v0  ;;  %811 = vst.msk [vmem:[#allocation2 + $0x1c8] sm:$0xff] %vm215_vm1, %v354_v1 }
  0x68   : > { %v2284_v38 = vld [vmem:[#allocation2 + $0x98] sm:$0x3]  ;;  %5722 = vmatpush3.msk.msra.mxu1 %vm492_vm0, %v6002_v4  ;;  %v1596_v4 = vmax.f32 %v1532_v44, %v1564_v27  ;;  %v1220_v26 = vmax.f32 %v1091_v50, %v1156_v49  ;;  %v1595_v24 = vmax.f32 %v1531_v51, %v1563_v15  ;;  %v1566_v33 = vld [vmem:[#allocation3 + $0x70] sm:$0xff]  ;;  %v1565_v27 = vld [vmem:[#allocation3 + $0x68] sm:$0xff] }
  0x69   : > { %v1285_v56 = vld [vmem:[#allocation2 + $0xf8] sm:$0x3]  ;;  %v2348_v9 = vmax.f32 %v2220_v28, %v2284_v38  ;;  %v1721_v14 = vmax.f32 %v1657_v3, %v1689_v62  ;;  %v1242_v28 = vmax.f32 %v6446_v12, %v6403_v21  ;;  %v989_v38 = vmax.f32 %v6310_v42, %v6364_v63  ;;  %v6512_v50 = vld [vmem:[#allocation3 + $0x8e] sm:$0xff] }
  0x6a   : > { %v2412_v48 = vld [vmem:[#allocation2 + $0xb8] sm:$0x3]  ;;  %v1349_v37 = vmax.f32 %v1220_v26, %v1285_v56  ;;  %v1659_v46 = vmax.f32 %v1595_v24, %v1627_v18  ;;  %v1243_v12 = vmax.f32 %v6449_v16, %v6435_v43  ;;  %v355_v45 = vld [vmem:[%s6062_s27 + $0xc8] sm:$0xff]  ;;  %v972_v3 = vmax.f32 %v6373_v53, %v6426_v8 }
  0x6b   : > { %v1626_v23 = vld [vmem:[#allocation3 + $0x31] sm:$0xff]  ;;  %v2476_v52 = vmax.f32 %v2348_v9, %v2412_v48  ;;  %5626 = vmatprep.mubr.msk.f32.mxu1 %vm215_vm1, %v1721_v14  ;;  %2175 = vst.msk [vmem:[#allocation2 + $0x68] sm:$0xff] %vm215_vm1, %v1721_v14  ;;  %v1501_v9 = vld [vmem:[#allocation3 + $0x67] sm:$0xff]  ;;  %812 = vst.msk [vmem:[#allocation2 + $0x1d0] sm:$0xff] %vm215_vm1, %v355_v45 }
  0x6c   : > { %v1690_v59 = vld [vmem:[#allocation3 + $0x32] sm:$0xff]  ;;  %v1658_v17 = vmax.f32 %v1594_v25, %v1626_v23  ;;  %v1534_v25 = vmax.f32 %v6465_v30, %v6467_v61  ;;  %1414 = vst.msk [vmem:[#allocation3 + $0x78] sm:$0x3] %vm219_vm2, %v1349_v37  ;;  %v1469_v61 = vld [vmem:[#allocation3 + $0x66] sm:$0xff] }
  0x6d   : > { %2788 = vst.msk [vmem:[#allocation3 + $0x38] sm:$0x3] %vm219_vm2, %v2724_v34  ;;  %v353_v58 = vld [vmem:[%s6062_s27 + $0xb8] sm:$0xff]  ;;  %v6489_v34 = vld [vmem:[#allocation2 + $0x100] sm:$0xff]  ;;  %v1533_v40 = vmax.f32 %v1469_v61, %v1501_v9  ;;  %v1693_v51 = vld [vmem:[#allocation3 + $0x6a] sm:$0xff] }
  0x6e   : > { %810 = vst.msk [vmem:[#allocation2 + $0x1b0] sm:$0xff] %vm215_vm1, %v353_v58  ;;  %v1722_v5 = vmax.f32 %v1658_v17, %v1690_v59  ;;  %v2540_v7 = vld [vmem:[#allocation2 + $0xd8] sm:$0x3]  ;;  %5607 = vmatmul.mubr.msk.f32.gmra.mxu0 %vm215_vm1, %v353_v58  ;;  %v6504_v23 = vld [vmem:[#allocation2 + $0x50] sm:$0xff]  ;;  %v6507_v59 = vld [vmem:[#allocation2 + $0x1a8] sm:$0xff]  ;;  %v6510_v42 = vmax.f32 %v1221_v41, %v6489_v34  ;;  %v1225_v35 = vmax.f32 %v6484_v57, %v6489_v34 }
  0x6f   : > { %v838_v31 = vld [vmem:[#allocation2 + $0x98] sm:$0x3]  ;;  %v2604_v32 = vmax.f32 %v2476_v52, %v2540_v7  ;;  %v1723_v17 = vmax.f32 %v1659_v46, %v1691_v60  ;;  %v1629_v58 = vld [vmem:[#allocation3 + $0x69] sm:$0xff]  ;;  %v1598_v62 = vmax.f32 %v1534_v25, %v1566_v33  ;;  %2793 = vst.msk [vmem:[#allocation3 + $0x60] sm:$0xff] %vm215_vm1, %v6458_v22  ;;  %v1371_v26 = vmax.f32 %v1242_v28, %v6507_v59 }
  0x70   : > { %v903_v10 = vld [vmem:[#allocation2 + $0xb8] sm:$0x3]  ;;  %2176 = vst.msk [vmem:[#allocation2 + $0x70] sm:$0xff] %vm215_vm1, %v1722_v5  ;;  %5627 = vmatmul.mubr.msk.f32.gmra.mxu1 %vm215_vm1, %v1722_v5  ;;  %1415 = vst.msk [vmem:[#allocation3 + $0x80] sm:$0xff] %vm215_vm1, %v6510_v42  ;;  %v2463_v5 = vmax.f32 %v6109_v20, %v6504_v23  ;;  %v6539_v22 = vmax.f32 %v989_v38, %v6403_v21  ;;  %v1597_v53 = vmax.f32 %v1533_v40, %v1565_v27  ;;  %v1567_v46 = vld [vmem:[#allocation3 + $0x88] sm:$0xff] }
  0x71   : > { %v967_v55 = vmax.f32 %v838_v31, %v903_v10  ;;  %v1031_v13 = vld [vmem:[#allocation2 + $0xd8] sm:$0x3]  ;;  %5629 = vmatprep.mubr.msk.f32.mxu1 %vm215_vm1, %v1723_v17  ;;  %2177 = vst.msk [vmem:[#allocation2 + $0x88] sm:$0xff] %vm215_vm1, %v1723_v17  ;;  %1436 = vst.msk [vmem:[#allocation3 + $0x128] sm:$0xff] %vm215_vm1, %v1371_v26  ;;  %5609 = vmatprep.mubr.msk.f32.mxu0 %vm215_vm1, %v354_v1  ;;  %v6549_v37 = vmax.f32 %v1225_v35, %v6529_v2  ;;  %v1631_v17 = vld [vmem:[#allocation3 + $0x89] sm:$0xff] }
  0x72   : > { %v1160_v19 = vld [vmem:[#allocation2 + $0xf8] sm:$0x3]  ;;  %v6554_v57 = vmax.f32 %v990_v54, %v6435_v43  ;;  %5610 = vmatmul.mubr.msk.f32.gmra.mxu0 %vm215_vm1, %v355_v45  ;;  %v1246_v38 = vmax.f32 %v6539_v22, %v6507_v59  ;;  %v6584_v40 = vld [vmem:[#allocation2 + $0x1c8] sm:$0xff]  ;;  %v356_v22 = vld [vmem:[%s6062_s27 + $0xd0] sm:$0xff] }
  0x73   : > { %v1628_v6 = vld [vmem:[#allocation3 + $0x51] sm:$0xff]  ;;  %v1095_v44 = vmax.f32 %v967_v55, %v1031_v13  ;;  %v993_v13 = vmax.f32 %v6364_v63, %v6403_v21  ;;  %1419 = vst.msk [vmem:[#allocation3 + $0xa0] sm:$0xff] %vm215_vm1, %v6549_v37  ;;  %5612 = vmatprep.mubr.msk.f32.mxu0 %vm215_vm1, %v356_v22  ;;  %813 = vst.msk [vmem:[#allocation2 + $0x1e8] sm:$0xff] %vm215_vm1, %v356_v22 }
  0x74   : > { %v1692_v49 = vld [vmem:[#allocation3 + $0x52] sm:$0xff]  ;;  %v1660_v47 = vmax.f32 %v1596_v4, %v1628_v6  ;;  %v1661_v6 = vmax.f32 %v1597_v53, %v1629_v58  ;;  %v1569_v53 = vld [vmem:[#allocation3 + $0xa8] sm:$0xff] }
  0x75   : > { %2792 = vst.msk [vmem:[#allocation3 + $0x58] sm:$0x3] %vm219_vm2, %v2728_v11  ;;  %v2668_v39 = vld [vmem:[#allocation2 + $0xf8] sm:$0x3]  ;;  %v1224_v15 = vmax.f32 %v1095_v44, %v1160_v19  ;;  %v6514_v11 = vld [vmem:[#allocation3 + $0x8f] sm:$0xff]  ;;  %v994_v44 = vmax.f32 %v6366_v0, %v6435_v43 }
  0x76   : > { %v1289_v56 = vld [vmem:[#allocation2 + $0x118] sm:$0x3]  ;;  %v1724_v30 = vmax.f32 %v1660_v47, %v1692_v49  ;;  %v6520_v29 = vld [vmem:[#allocation2 + $0x1b0] sm:$0xff]  ;;  %v2732_v4 = vmax.f32 %v2604_v32, %v2668_v39  ;;  %v1536_v60 = vmax.f32 %v6512_v50, %v6514_v11  ;;  %v6565_v32 = vmax.f32 %v972_v3, %v6489_v34 }
  0x77   : > { %v6502_v48 = vld [vmem:[#allocation2 + $0x98] sm:$0x3]  ;;  %v1372_v52 = vmax.f32 %v1243_v12, %v6520_v29  ;;  %v1353_v7 = vmax.f32 %v1224_v15, %v1289_v56  ;;  %v2527_v20 = vld [vmem:[#allocation2 + $0x70] sm:$0xff]  ;;  %v1725_v39 = vmax.f32 %v1661_v6, %v1693_v51  ;;  %v1247_v0 = vmax.f32 %v6554_v57, %v6520_v29  ;;  %v1471_v35 = vld [vmem:[#allocation3 + $0x86] sm:$0xff] }
  0x78   : > { %v2288_v16 = vld [vmem:[#allocation2 + $0xb8] sm:$0x3]  ;;  %2178 = vst.msk [vmem:[#allocation2 + $0x90] sm:$0xff] %vm215_vm1, %v1724_v30  ;;  %5630 = vmatmul.mubr.msk.f32.gmra.mxu1 %vm215_vm1, %v1724_v30  ;;  %v1568_v63 = vld [vmem:[#allocation3 + $0x90] sm:$0xff]  ;;  %v2591_v41 = vmax.f32 %v2463_v5, %v2527_v20  ;;  %v1503_v54 = vld [vmem:[#allocation3 + $0x87] sm:$0xff]  ;;  %v1229_v1 = vmax.f32 %v6565_v32, %v6529_v2  ;;  %v6592_v3 = vmax.f32 %v993_v13, %v6507_v59 }
  0x79   : > { %v2416_v31 = vld [vmem:[#allocation2 + $0xd8] sm:$0x3]  ;;  %v2352_v18 = vmax.f32 %v6502_v48, %v2288_v16  ;;  %1437 = vst.msk [vmem:[#allocation3 + $0x130] sm:$0xff] %vm215_vm1, %v1372_v52  ;;  %v6571_v15 = vld [vmem:[#allocation3 + $0xae] sm:$0xff]  ;;  %v976_v16 = vmax.f32 %v6426_v8, %v6489_v34  ;;  %v1600_v30 = vmax.f32 %v1536_v60, %v1568_v63  ;;  %5632 = vmatprep.mubr.msk.f32.mxu1 %vm215_vm1, %v1725_v39  ;;  %2179 = vst.msk [vmem:[#allocation2 + $0xa8] sm:$0xff] %vm215_vm1, %v1725_v39 }
  0x7a   : > { %v2544_v10 = vld [vmem:[#allocation2 + $0xf8] sm:$0x3]  ;;  %1418 = vst.msk [vmem:[#allocation3 + $0x98] sm:$0x3] %vm219_vm2, %v1353_v7  ;;  %v6573_v50 = vld [vmem:[#allocation3 + $0xaf] sm:$0xff]  ;;  %v6596_v52 = vld [vmem:[#allocation2 + $0x140] sm:$0xff]  ;;  %v1375_v20 = vmax.f32 %v1246_v38, %v6584_v40  ;;  %v997_v32 = vmax.f32 %v6403_v21, %v6507_v59  ;;  %v1250_v21 = vmax.f32 %v6592_v3, %v6584_v40 }
  0x7b   : > { %v842_v36 = vld [vmem:[#allocation2 + $0xb8] sm:$0x3]  ;;  %v2480_v28 = vmax.f32 %v2352_v18, %v2416_v31  ;;  %2797 = vst.msk [vmem:[#allocation3 + $0x80] sm:$0xff] %vm215_vm1, %v6510_v42  ;;  %v1695_v5 = vld [vmem:[#allocation3 + $0x8a] sm:$0xff]  ;;  %v6599_v42 = vmax.f32 %v994_v44, %v6520_v29  ;;  %v6606_v18 = vmax.f32 %v976_v16, %v6529_v2  ;;  %v6618_v63 = vmax.f32 %v1229_v1, %v6596_v52 }
  0x7c   : > { %v907_v55 = vld [vmem:[#allocation2 + $0xd8] sm:$0x3]  ;;  %v1473_v13 = vld [vmem:[#allocation3 + $0xa6] sm:$0xff]  ;;  %1440 = vst.msk [vmem:[#allocation3 + $0x148] sm:$0xff] %vm215_vm1, %v1375_v20  ;;  %v1570_v6 = vld [vmem:[#allocation3 + $0xb0] sm:$0xff] }
  0x7d   : > { %v1630_v14 = vld [vmem:[#allocation3 + $0x71] sm:$0xff]  ;;  %v971_v25 = vmax.f32 %v842_v36, %v907_v55  ;;  %v2608_v48 = vmax.f32 %v2480_v28, %v2544_v10  ;;  %v1505_v57 = vld [vmem:[#allocation3 + $0xa7] sm:$0xff]  ;;  %1423 = vst.msk [vmem:[#allocation3 + $0xc0] sm:$0xff] %vm215_vm1, %v6618_v63 }
  0x7e   : > { %v1694_v24 = vld [vmem:[#allocation3 + $0x72] sm:$0xff]  ;;  %v1662_v49 = vmax.f32 %v1598_v62, %v1630_v14  ;;  %v1535_v62 = vmax.f32 %v1471_v35, %v1503_v54  ;;  %2801 = vst.msk [vmem:[#allocation3 + $0xa0] sm:$0xff] %vm215_vm1, %v6549_v37  ;;  %v1633_v44 = vld [vmem:[#allocation3 + $0xa9] sm:$0xff]  ;;  %v998_v37 = vmax.f32 %v6435_v43, %v6520_v29 }
  0x7f   : > { %v1035_v19 = vld [vmem:[#allocation2 + $0xf8] sm:$0x3]  ;;  %2796 = vst.msk [vmem:[#allocation3 + $0x78] sm:$0x3] %vm219_vm2, %v2732_v4  ;;  %v2655_v58 = vld [vmem:[#allocation2 + $0x90] sm:$0xff] }
  0x80   : > { %v1164_v33 = vld [vmem:[#allocation2 + $0x118] sm:$0x3]  ;;  %v1099_v12 = vmax.f32 %v971_v25, %v1035_v19  ;;  %v1726_v56 = vmax.f32 %v1662_v49, %v1694_v24  ;;  %v6586_v4 = vld [vmem:[#allocation2 + $0x1d0] sm:$0xff]  ;;  %v2719_v45 = vmax.f32 %v2591_v41, %v2655_v58  ;;  %v1599_v7 = vmax.f32 %v1535_v62, %v1567_v46  ;;  %v6646_v58 = vld [vmem:[#allocation2 + $0x1e8] sm:$0xff] }
  0x81   : > { %v2672_v47 = vld [vmem:[#allocation2 + $0x118] sm:$0x3]  ;;  %v1376_v55 = vmax.f32 %v1247_v0, %v6586_v4  ;;  %v1538_v24 = vmax.f32 %v6571_v15, %v6573_v50  ;;  %v1537_v19 = vmax.f32 %v1473_v13, %v1505_v57  ;;  %v1251_v16 = vmax.f32 %v6599_v42, %v6586_v4  ;;  %v1508_v3 = vld [vmem:[#allocation3 + $0xcf] sm:$0xff] }
  0x82   : > { %v2228_v27 = vld [vmem:[#allocation2 + $0xb8] sm:$0x3]  ;;  %v1228_v61 = vmax.f32 %v1099_v12, %v1164_v33  ;;  %2180 = vst.msk [vmem:[#allocation2 + $0xb0] sm:$0xff] %vm215_vm1, %v1726_v56  ;;  %v2736_v8 = vmax.f32 %v2608_v48, %v2672_v47  ;;  %5633 = vmatmul.mubr.msk.f32.gmra.mxu1 %vm215_vm1, %v1726_v56  ;;  %2783 = vst.msk [vmem:[#allocation3 + $0x10] sm:$0xff] %vm215_vm1, %v2719_v45  ;;  %v1663_v25 = vmax.f32 %v1599_v7, %v1631_v17  ;;  %v1697_v48 = vld [vmem:[#allocation3 + $0xaa] sm:$0xff] }
  0x83   : > { %v1293_v23 = vld [vmem:[#allocation2 + $0x138] sm:$0x3]  ;;  %1441 = vst.msk [vmem:[#allocation3 + $0x150] sm:$0xff] %vm215_vm1, %v1376_v55  ;;  %v1601_v12 = vmax.f32 %v1537_v19, %v1569_v53  ;;  %v1476_v45 = vld [vmem:[#allocation3 + $0xce] sm:$0xff]  ;;  %v6658_v22 = vmax.f32 %v998_v37, %v6586_v4 }
  0x84   : > { %v2292_v11 = vld [vmem:[#allocation2 + $0xd8] sm:$0x3]  ;;  %v1357_v14 = vmax.f32 %v1228_v61, %v1293_v23  ;;  %v1727_v47 = vmax.f32 %v1663_v25, %v1695_v5  ;;  %v6631_v23 = vmax.f32 %v1538_v24, %v1570_v6  ;;  %v1233_v61 = vmax.f32 %v6606_v18, %v6596_v52  ;;  %v6655_v5 = vld [vmem:[#allocation2 + $0x160] sm:$0xff]  ;;  %v1571_v19 = vld [vmem:[#allocation3 + $0xc8] sm:$0xff] }
  0x85   : > { %v2420_v9 = vld [vmem:[#allocation2 + $0xf8] sm:$0x3]  ;;  %v2356_v26 = vmax.f32 %v2228_v27, %v2292_v11  ;;  %v980_v11 = vmax.f32 %v6489_v34, %v6529_v2  ;;  %v1665_v0 = vmax.f32 %v1601_v12, %v1633_v44  ;;  %v6644_v34 = vmax.f32 %v997_v32, %v6584_v40  ;;  %v1507_v25 = vld [vmem:[#allocation3 + $0xc7] sm:$0xff] }
  0x86   : > { %v357_v51 = vld [vmem:[%s6062_s27 + $0xd8] sm:$0xff]  ;;  %1422 = vst.msk [vmem:[#allocation3 + $0xb8] sm:$0x3] %vm219_vm2, %v1357_v14  ;;  %5635 = vmatprep.mubr.msk.f32.mxu1 %vm215_vm1, %v1727_v47  ;;  %v6668_v13 = vmax.f32 %v1233_v61, %v6655_v5  ;;  %v1540_v6 = vmax.f32 %v1476_v45, %v1508_v3  ;;  %v1635_v32 = vld [vmem:[#allocation3 + $0xc9] sm:$0xff] }
  0x87   : > { %v1632_v31 = vld [vmem:[#allocation3 + $0x91] sm:$0xff]  ;;  %814 = vst.msk [vmem:[#allocation2 + $0x1f0] sm:$0xff] %vm215_vm1, %v357_v51  ;;  %5613 = vmatmul.mubr.msk.f32.gmra.mxu0 %vm215_vm1, %v357_v51  ;;  %v2484_v49 = vmax.f32 %v2356_v26, %v2420_v9  ;;  %2181 = vst.msk [vmem:[#allocation2 + $0xc8] sm:$0xff] %vm215_vm1, %v1727_v47  ;;  %v359_v26 = vld [vmem:[%s6062_s27 + $0xe8] sm:$0xff]  ;;  %v1729_v1 = vmax.f32 %v1665_v0, %v1697_v48  ;;  %v1379_v51 = vmax.f32 %v1250_v21, %v6646_v58 }
  0x88   : > { %v1696_v10 = vld [vmem:[#allocation3 + $0x92] sm:$0xff]  ;;  %v1664_v36 = vmax.f32 %v1600_v30, %v1632_v31  ;;  %v358_v30 = vld [vmem:[%s6062_s27 + $0xe0] sm:$0xff]  ;;  %816 = vst.msk [vmem:[#allocation2 + $0x210] sm:$0xff] %vm215_vm1, %v359_v26  ;;  %v1254_v24 = vmax.f32 %v6644_v34, %v6646_v58  ;;  %1427 = vst.msk [vmem:[#allocation3 + $0xe0] sm:$0xff] %vm215_vm1, %v6668_v13 }
  0x89   : > { %2800 = vst.msk [vmem:[#allocation3 + $0x98] sm:$0x3] %vm219_vm2, %v2736_v8  ;;  %v2548_v60 = vld [vmem:[#allocation2 + $0x118] sm:$0x3]  ;;  %5615 = vmatprep.mubr.msk.f32.mxu0 %vm215_vm1, %v358_v30  ;;  %v1699_v47 = vld [vmem:[#allocation3 + $0xca] sm:$0xff] }
  0x8a   : > { %v846_v28 = vld [vmem:[#allocation2 + $0xd8] sm:$0x3]  ;;  %v1728_v41 = vmax.f32 %v1664_v36, %v1696_v10  ;;  %v2612_v27 = vmax.f32 %v2484_v49, %v2548_v60  ;;  %815 = vst.msk [vmem:[#allocation2 + $0x208] sm:$0xff] %vm215_vm1, %v358_v30  ;;  %v6662_v10 = vmax.f32 %v980_v11, %v6596_v52  ;;  %2183 = vst.msk [vmem:[#allocation2 + $0xe8] sm:$0xff] %vm215_vm1, %v1729_v1  ;;  %v1475_v60 = vld [vmem:[#allocation3 + $0xc6] sm:$0xff] }
  0x8b   : > { %v911_v33 = vld [vmem:[#allocation2 + $0xf8] sm:$0x3]  ;;  %5616 = vmatmul.mubr.msk.f32.gmra.mxu0 %vm215_vm1, %v359_v26  ;;  %1444 = vst.msk [vmem:[#allocation3 + $0x168] sm:$0xff] %vm215_vm1, %v1379_v51  ;;  %2805 = vst.msk [vmem:[#allocation3 + $0xc0] sm:$0xff] %vm215_vm1, %v6618_v63  ;;  %v1574_v51 = vld [vmem:[#allocation3 + $0xf0] sm:$0xff] }
  0x8c   : > { %v975_v38 = vmax.f32 %v846_v28, %v911_v33  ;;  %v1039_v46 = vld [vmem:[#allocation2 + $0x118] sm:$0x3]  ;;  %2182 = vst.msk [vmem:[#allocation2 + $0xd0] sm:$0xff] %vm215_vm1, %v1728_v41  ;;  %5636 = vmatmul.mubr.msk.f32.gmra.mxu1 %vm215_vm1, %v1728_v41  ;;  %v1001_v28 = vmax.f32 %v6507_v59, %v6584_v40  ;;  %v1539_v33 = vmax.f32 %v1475_v60, %v1507_v25  ;;  %v1572_v41 = vld [vmem:[#allocation3 + $0xd0] sm:$0xff] }
  0x8d   : > { %v2676_v39 = vld [vmem:[#allocation2 + $0x138] sm:$0x3]  ;;  %5638 = vmatprep.mubr.msk.f32.mxu1 %vm215_vm1, %v1729_v1  ;;  %v1604_v11 = vmax.f32 %v1540_v6, %v1572_v41  ;;  %v1327_v41 = vld [vmem:[#allocation2 + $0x248] sm:$0xff] }
  0x8e   : > { %v1168_v56 = vld [vmem:[#allocation2 + $0x138] sm:$0x3]  ;;  %v1103_v15 = vmax.f32 %v975_v38, %v1039_v46  ;;  %v2740_v9 = vmax.f32 %v2612_v27, %v2676_v39  ;;  %v6648_v62 = vld [vmem:[#allocation2 + $0x1f0] sm:$0xff]  ;;  %v1002_v46 = vmax.f32 %v6520_v29, %v6586_v4  ;;  %v984_v29 = vmax.f32 %v6529_v2, %v6596_v52 }
  0x8f   : > { %v2232_v50 = vld [vmem:[#allocation2 + $0xd8] sm:$0x3]  ;;  %v1380_v18 = vmax.f32 %v1251_v16, %v6648_v62  ;;  %v1255_v59 = vmax.f32 %v6658_v22, %v6648_v62  ;;  %v6698_v0 = vld [vmem:[#allocation2 + $0x210] sm:$0xff]  ;;  %v6702_v30 = vmax.f32 %v1001_v28, %v6646_v58  ;;  %v1006_v2 = vmax.f32 %v6586_v4, %v6648_v62  ;;  %v6716_v4 = vld [vmem:[#allocation2 + $0x180] sm:$0xff] }
  0x90   : > { %v2296_v43 = vld [vmem:[#allocation2 + $0xf8] sm:$0x3]  ;;  %v1232_v8 = vmax.f32 %v1103_v15, %v1168_v56  ;;  %v1603_v56 = vmax.f32 %v1539_v33, %v1571_v19  ;;  %v6710_v26 = vmax.f32 %v1002_v46, %v6648_v62  ;;  %v1573_v22 = vld [vmem:[#allocation3 + $0xe8] sm:$0xff]  ;;  %v1010_v60 = vmax.f32 %v6648_v62, %v6698_v0 }
  0x91   : > { %v1297_v35 = vld [vmem:[#allocation2 + $0x158] sm:$0x3]  ;;  %v2360_v54 = vmax.f32 %v2232_v50, %v2296_v43  ;;  %1445 = vst.msk [vmem:[#allocation3 + $0x170] sm:$0xff] %vm215_vm1, %v1380_v18  ;;  %v6687_v21 = vld [vmem:[#allocation2 + $0x208] sm:$0xff]  ;;  %v1237_v50 = vmax.f32 %v6662_v10, %v6655_v5  ;;  %v1005_v43 = vmax.f32 %v6584_v40, %v6646_v58  ;;  %v1384_v58 = vmax.f32 %v1255_v59, %v6698_v0 }
  0x92   : > { %v2424_v17 = vld [vmem:[#allocation2 + $0x118] sm:$0x3]  ;;  %v1361_v36 = vmax.f32 %v1232_v8, %v1297_v35  ;;  %v1383_v16 = vmax.f32 %v1254_v24, %v6687_v21  ;;  %v1667_v61 = vmax.f32 %v1603_v56, %v1635_v32  ;;  %v1258_v24 = vmax.f32 %v6702_v30, %v6687_v21  ;;  %v1509_v25 = vld [vmem:[#allocation3 + $0xe7] sm:$0xff] }
  0x93   : > { %v2552_v42 = vld [vmem:[#allocation2 + $0x138] sm:$0x3]  ;;  %v2488_v55 = vmax.f32 %v2360_v54, %v2424_v17  ;;  %v1478_v54 = vld [vmem:[#allocation3 + $0xee] sm:$0xff]  ;;  %1449 = vst.msk [vmem:[#allocation3 + $0x190] sm:$0xff] %vm215_vm1, %v1384_v58  ;;  %v1259_v28 = vmax.f32 %v6710_v26, %v6698_v0 }
  0x94   : > { %v850_v7 = vld [vmem:[#allocation2 + $0xf8] sm:$0x3]  ;;  %1426 = vst.msk [vmem:[#allocation3 + $0xd8] sm:$0x3] %vm219_vm2, %v1361_v36  ;;  %v360_v17 = vld [vmem:[%s6062_s27 + $0xf0] sm:$0xff]  ;;  %v1731_v3 = vmax.f32 %v1667_v61, %v1699_v47  ;;  %v2206_v61 = vld [vmem:[#allocation2 + $0x8] sm:$0xff] }
  0x95   : > { %v915_v31 = vld [vmem:[#allocation2 + $0x118] sm:$0x3]  ;;  %v2616_v44 = vmax.f32 %v2488_v55, %v2552_v42  ;;  %5618 = vmatprep.mubr.msk.f32.mxu0 %vm215_vm1, %v360_v17  ;;  %817 = vst.msk [vmem:[#allocation2 + $0x228] sm:$0xff] %vm215_vm1, %v360_v17  ;;  %1448 = vst.msk [vmem:[#allocation3 + $0x188] sm:$0xff] %vm215_vm1, %v1383_v16  ;;  %v6724_v55 = vmax.f32 %v984_v29, %v6655_v5  ;;  %v1637_v32 = vld [vmem:[#allocation3 + $0xe9] sm:$0xff] }
  0x96   : > { %v1634_v20 = vld [vmem:[#allocation3 + $0xb1] sm:$0xff]  ;;  %v979_v49 = vmax.f32 %v850_v7, %v915_v31  ;;  %v6719_v7 = vmax.f32 %v1237_v50, %v6716_v4  ;;  %2185 = vst.msk [vmem:[#allocation2 + $0x108] sm:$0xff] %vm215_vm1, %v1731_v3 }
  0x97   : > { %v1698_v53 = vld [vmem:[#allocation3 + $0xb2] sm:$0xff]  ;;  %v1666_v14 = vmax.f32 %v6631_v23, %v1634_v20  ;;  %v1701_v46 = vld [vmem:[#allocation3 + $0xea] sm:$0xff] }
  0x98   : > { %v1043_v57 = vld [vmem:[#allocation2 + $0x138] sm:$0x3]  ;;  %2804 = vst.msk [vmem:[#allocation3 + $0xb8] sm:$0x3] %vm219_vm2, %v2740_v9  ;;  %v1510_v9 = vld [vmem:[#allocation3 + $0xef] sm:$0xff] }
  0x99   : > { %v1172_v38 = vld [vmem:[#allocation2 + $0x158] sm:$0x3]  ;;  %v1730_v37 = vmax.f32 %v1666_v14, %v1698_v53  ;;  %v1107_v27 = vmax.f32 %v979_v49, %v1043_v57  ;;  %v1477_v53 = vld [vmem:[#allocation3 + $0xe6] sm:$0xff]  ;;  %v1542_v18 = vmax.f32 %v1478_v54, %v1510_v9  ;;  %v1133_v14 = vmax.f32 %v1005_v43, %v6687_v21  ;;  %1431 = vst.msk [vmem:[#allocation3 + $0x100] sm:$0xff] %vm215_vm1, %v6719_v7  ;;  %v6741_v59 = vld [vmem:[#allocation3 + $0x10e] sm:$0xff] }
  0x9a   : > { %v2680_v12 = vld [vmem:[#allocation2 + $0x158] sm:$0x3]  ;;  %v1134_v49 = vmax.f32 %v1006_v2, %v6698_v0  ;;  %v1541_v33 = vmax.f32 %v1477_v53, %v1509_v25  ;;  %2809 = vst.msk [vmem:[#allocation3 + $0xe0] sm:$0xff] %vm215_vm1, %v6668_v13  ;;  %v6743_v47 = vld [vmem:[#allocation3 + $0x10f] sm:$0xff]  ;;  %v1241_v0 = vmax.f32 %v6724_v55, %v6716_v4  ;;  %v3587_v25 = vld [vmem:[#allocation2] sm:$0xff] }
  0x9b   : > { %v2236_v39 = vld [vmem:[#allocation2 + $0xf8] sm:$0x3]  ;;  %5639 = vmatmul.mubr.msk.f32.gmra.mxu1 %vm215_vm1, %v1730_v37  ;;  %2184 = vst.msk [vmem:[#allocation2 + $0xf0] sm:$0xff] %vm215_vm1, %v1730_v37  ;;  %v1236_v35 = vmax.f32 %v1107_v27, %v1172_v38  ;;  %v2744_v34 = vmax.f32 %v2616_v44, %v2680_v12  ;;  %v1203_v37 = vld [vmem:[#allocation2 + $0x250] sm:$0xff]  ;;  %v1575_v2 = vld [vmem:[#allocation3 + $0x108] sm:$0xff] }
  0x9c   : > { %v2300_v63 = vld [vmem:[#allocation2 + $0x118] sm:$0x3]  ;;  %5641 = vmatprep.mubr.msk.f32.mxu1 %vm215_vm1, %v1731_v3  ;;  %v1605_v27 = vmax.f32 %v1541_v33, %v1573_v22  ;;  %v1198_v56 = vld [vmem:[#allocation2 + $0x228] sm:$0xff]  ;;  %v1332_v29 = vld [vmem:[#allocation2 + $0x270] sm:$0xff] }
  0x9d   : > { %v1301_v48 = vld [vmem:[#allocation2 + $0x178] sm:$0x3]  ;;  %v2364_v23 = vmax.f32 %v2236_v39, %v2300_v63  ;;  %v1606_v39 = vmax.f32 %v1542_v18, %v1574_v51  ;;  %v1262_v13 = vmax.f32 %v1133_v14, %v1198_v56  ;;  %v2214_v9 = vld [vmem:[#allocation2 + $0x48] sm:$0xff]  ;;  %v1576_v53 = vld [vmem:[#allocation3 + $0x110] sm:$0xff] }
  0x9e   : > { %v2428_v15 = vld [vmem:[#allocation2 + $0x138] sm:$0x3]  ;;  %v1365_v1 = vmax.f32 %v1236_v35, %v1301_v48  ;;  %v1669_v35 = vmax.f32 %v1605_v27, %v1637_v32  ;;  %v6756_v3 = vld [vmem:[#allocation2 + $0x68] sm:$0xff]  ;;  %v3651_v33 = vld [vmem:[#allocation2 + $0x20] sm:$0xff] }
  0x9f   : > { %v2556_v8 = vld [vmem:[#allocation2 + $0x158] sm:$0x3]  ;;  %v2492_v45 = vmax.f32 %v2364_v23, %v2428_v15  ;;  %v1387_v15 = vmax.f32 %v1258_v24, %v1198_v56  ;;  %v1391_v26 = vmax.f32 %v1262_v13, %v1327_v41  ;;  %v6774_v32 = vld [vmem:[#allocation2 + $0x40] sm:$0xff] }
  0xa0   : > { %v361_v40 = vld [vmem:[%s6062_s27 + $0xf8] sm:$0xff]  ;;  %1430 = vst.msk [vmem:[#allocation3 + $0xf8] sm:$0x3] %vm219_vm2, %v1365_v1  ;;  %v1544_v1 = vmax.f32 %v6741_v59, %v6743_v47  ;;  %v1733_v22 = vmax.f32 %v1669_v35, %v1701_v46  ;;  %v3715_v46 = vmax.f32 %v3587_v25, %v3651_v33  ;;  %v6784_v59 = vld [vmem:[#allocation2 + $0x50] sm:$0xff] }
  0xa1   : > { %5619 = vmatmul.mubr.msk.f32.gmra.mxu0 %vm215_vm1, %v361_v40  ;;  %818 = vst.msk [vmem:[#allocation2 + $0x230] sm:$0xff] %vm215_vm1, %v361_v40  ;;  %v2684_v42 = vld [vmem:[#allocation2 + $0x178] sm:$0x3]  ;;  %v2620_v36 = vmax.f32 %v2492_v45, %v2556_v8  ;;  %1452 = vst.msk [vmem:[#allocation3 + $0x1a8] sm:$0xff] %vm215_vm1, %v1387_v15  ;;  %v1703_v47 = vld [vmem:[#allocation3 + $0x10a] sm:$0xff] }
  0xa2   : > { %v854_v31 = vld [vmem:[#allocation2 + $0x118] sm:$0x3]  ;;  %1456 = vst.msk [vmem:[#allocation3 + $0x1c8] sm:$0xff] %vm215_vm1, %v1391_v26  ;;  %2187 = vst.msk [vmem:[#allocation2 + $0x128] sm:$0xff] %vm215_vm1, %v1733_v22  ;;  %v3843_v13 = vmax.f32 %v3715_v46, %v6774_v32  ;;  %v6799_v15 = vld [vmem:[#allocation2 + $0x60] sm:$0xff] }
  0xa3   : > { %v1636_v10 = vld [vmem:[#allocation3 + $0xd1] sm:$0xff]  ;;  %v2748_v63 = vmax.f32 %v2620_v36, %v2684_v42  ;;  %v1639_v36 = vld [vmem:[#allocation3 + $0x109] sm:$0xff] }
  0xa4   : > { %v1700_v20 = vld [vmem:[#allocation3 + $0xd2] sm:$0xff]  ;;  %v1668_v57 = vmax.f32 %v1604_v11, %v1636_v10  ;;  %v1479_v10 = vld [vmem:[#allocation3 + $0x106] sm:$0xff] }
  0xa5   : > { %2808 = vst.msk [vmem:[#allocation3 + $0xd8] sm:$0x3] %vm219_vm2, %v2744_v34  ;;  %v919_v19 = vld [vmem:[#allocation2 + $0x138] sm:$0x3]  ;;  %v6751_v34 = vld [vmem:[#allocation2 + $0x28] sm:$0xff] }
  0xa6   : > { %v1047_v6 = vld [vmem:[#allocation2 + $0x158] sm:$0x3]  ;;  %v983_v44 = vmax.f32 %v854_v31, %v919_v19  ;;  %v1732_v62 = vmax.f32 %v1668_v57, %v1700_v20  ;;  %v1511_v20 = vld [vmem:[#allocation3 + $0x107] sm:$0xff]  ;;  %v6765_v24 = vmax.f32 %v2206_v61, %v6751_v34 }
  0xa7   : > { %v1176_v38 = vld [vmem:[#allocation2 + $0x178] sm:$0x3]  ;;  %v1543_v18 = vmax.f32 %v1479_v10, %v1511_v20  ;;  %2813 = vst.msk [vmem:[#allocation3 + $0x100] sm:$0xff] %vm215_vm1, %v6719_v7  ;;  %v2338_v7 = vmax.f32 %v6751_v34, %v2214_v9 }
  0xa8   : > { %v2240_v12 = vld [vmem:[#allocation2 + $0x118] sm:$0x3]  ;;  %v1111_v21 = vmax.f32 %v983_v44, %v1047_v6  ;;  %5642 = vmatmul.mubr.msk.f32.gmra.mxu1 %vm215_vm1, %v1732_v62  ;;  %2186 = vst.msk [vmem:[#allocation2 + $0x110] sm:$0xff] %vm215_vm1, %v1732_v62  ;;  %v1074_v50 = vld [vmem:[#allocation2 + $0x230] sm:$0xff]  ;;  %v6777_v44 = vmax.f32 %v1544_v1, %v1576_v53  ;;  %v6780_v62 = vld [vmem:[#allocation2 + $0xa8] sm:$0xff] }
  0xa9   : > { %v2304_v48 = vld [vmem:[#allocation2 + $0x138] sm:$0x3]  ;;  %v1138_v54 = vmax.f32 %v1010_v60, %v1074_v50  ;;  %v1263_v17 = vmax.f32 %v1134_v49, %v1074_v50  ;;  %v1388_v30 = vmax.f32 %v1259_v28, %v1074_v50  ;;  %v6767_v60 = vld [vmem:[#allocation2 + $0x88] sm:$0xff]  ;;  %5644 = vmatprep.mubr.msk.f32.mxu1 %vm215_vm1, %v1733_v22  ;;  %v2342_v28 = vmax.f32 %v2214_v9, %v6756_v3  ;;  %v6801_v50 = vld [vmem:[#allocation2 + $0x90] sm:$0xff] }
  0xaa   : > { %v2432_v23 = vld [vmem:[#allocation2 + $0x158] sm:$0x3]  ;;  %v2368_v11 = vmax.f32 %v2240_v12, %v2304_v48  ;;  %v1240_v58 = vmax.f32 %v1111_v21, %v1176_v38  ;;  %v1607_v41 = vmax.f32 %v1543_v18, %v1575_v2  ;;  %v2462_v38 = vmax.f32 %v6765_v24, %v2214_v9  ;;  %v6807_v9 = vld [vmem:[#allocation2 + $0xb0] sm:$0xff] }
  0xab   : > { %v1305_v43 = vld [vmem:[#allocation2 + $0x198] sm:$0x3]  ;;  %v1267_v42 = vmax.f32 %v1138_v54, %v1203_v37  ;;  %v1392_v31 = vmax.f32 %v1263_v17, %v1203_v37  ;;  %1453 = vst.msk [vmem:[#allocation3 + $0x1b0] sm:$0xff] %vm215_vm1, %v1388_v30  ;;  %v6782_v37 = vld [vmem:[#allocation2 + $0x30] sm:$0xff]  ;;  %v2466_v12 = vmax.f32 %v2338_v7, %v6756_v3  ;;  %v2470_v27 = vmax.f32 %v2342_v28, %v6767_v60 }
  0xac   : > { %v6747_v16 = vld [vmem:[#allocation2 + $0x178] sm:$0x3]  ;;  %v2496_v45 = vmax.f32 %v2368_v11, %v2432_v23  ;;  %v1369_v57 = vmax.f32 %v1240_v58, %v1305_v43  ;;  %v2346_v56 = vmax.f32 %v6756_v3, %v6767_v60  ;;  %v1671_v21 = vmax.f32 %v1607_v41, %v1639_v36  ;;  %v6796_v23 = vld [vmem:[#allocation2 + $0xc8] sm:$0xff] }
  0xad   : > { %v1638_v8 = vld [vmem:[#allocation3 + $0xf1] sm:$0xff]  ;;  %v1396_v6 = vmax.f32 %v1267_v42, %v1332_v29  ;;  %1457 = vst.msk [vmem:[#allocation3 + $0x1d0] sm:$0xff] %vm215_vm1, %v1392_v31  ;;  %v2590_v48 = vmax.f32 %v2462_v38, %v6756_v3  ;;  %v3719_v29 = vmax.f32 %v3651_v33, %v6774_v32  ;;  %v2594_v11 = vmax.f32 %v2466_v12, %v6767_v60 }
  0xae   : > { %v1702_v40 = vld [vmem:[#allocation3 + $0xf2] sm:$0xff]  ;;  %v1670_v51 = vmax.f32 %v1606_v39, %v1638_v8  ;;  %v2624_v14 = vmax.f32 %v2496_v45, %v6747_v16  ;;  %1434 = vst.msk [vmem:[#allocation3 + $0x118] sm:$0x3] %vm219_vm2, %v1369_v57  ;;  %v2339_v39 = vmax.f32 %v6782_v37, %v6784_v59  ;;  %v2598_v16 = vmax.f32 %v2470_v27, %v6780_v62  ;;  %v6814_v45 = vld [vmem:[#allocation2 + $0x80] sm:$0xff] }
  0xaf   : > { %2812 = vst.msk [vmem:[#allocation3 + $0xf8] sm:$0x3] %vm219_vm2, %v2748_v63  ;;  %v2688_v49 = vld [vmem:[#allocation2 + $0x198] sm:$0x3]  ;;  %v2403_v63 = vld [vmem:[#allocation2 + $0x70] sm:$0xff]  ;;  %v1735_v2 = vmax.f32 %v1671_v21, %v1703_v47  ;;  %v2718_v61 = vmax.f32 %v2590_v48, %v6767_v60  ;;  %v2474_v26 = vmax.f32 %v2346_v56, %v6780_v62  ;;  %v2722_v58 = vmax.f32 %v2594_v11, %v6780_v62 }
  0xb0   : > { %v1734_v19 = vmax.f32 %v1670_v51, %v1702_v40  ;;  %1461 = vst.msk [vmem:[#allocation3 + $0x1f0] sm:$0xff] %vm215_vm1, %v1396_v6  ;;  %v2752_v43 = vmax.f32 %v2624_v14, %v2688_v49  ;;  %v2467_v35 = vmax.f32 %v2339_v39, %v2403_v63  ;;  %v3590_v54 = vld [vmem:[#allocation2 + $0x18] sm:$0x3]  ;;  %v6809_v40 = vld [vmem:[#allocation2 + $0x1a0] sm:$0xff]  ;;  %v2726_v1 = vmax.f32 %v2598_v16, %v6796_v23  ;;  %v1514_v16 = vld [vmem:[#allocation3 + $0x12f] sm:$0xff] }
  0xb1   : > { %v3654_v17 = vld [vmem:[#allocation2 + $0x38] sm:$0x3]  ;;  %v6821_v51 = vmax.f32 %v1241_v0, %v6809_v40  ;;  %2189 = vst.msk [vmem:[#allocation2 + $0x148] sm:$0xff] %vm215_vm1, %v1735_v2  ;;  %2782 = vst.msk [vmem:[#allocation3 + $0x8] sm:$0xff] %vm215_vm1, %v2718_v61  ;;  %v3971_v42 = vmax.f32 %v3843_v13, %v6799_v15  ;;  %v3847_v18 = vmax.f32 %v3719_v29, %v6799_v15  ;;  %v6851_v13 = vld [vmem:[#allocation2 + $0xe8] sm:$0xff] }
  0xb2   : > { %5645 = vmatmul.mubr.msk.f32.gmra.mxu1 %vm215_vm1, %v1734_v19  ;;  %2188 = vst.msk [vmem:[#allocation2 + $0x130] sm:$0xff] %vm215_vm1, %v1734_v19  ;;  %v3782_v30 = vld [vmem:[#allocation2 + $0x58] sm:$0x3]  ;;  %v3718_v8 = vmax.f32 %v3590_v54, %v3654_v17  ;;  %v2595_v3 = vmax.f32 %v2467_v35, %v6801_v50  ;;  %2786 = vst.msk [vmem:[#allocation3 + $0x28] sm:$0xff] %vm215_vm1, %v2722_v58  ;;  %v2343_v25 = vmax.f32 %v6784_v59, %v2403_v63  ;;  %v6853_v29 = vld [vmem:[#allocation2 + $0xa0] sm:$0xff] }
  0xb3   : > { %v3910_v22 = vld [vmem:[#allocation2 + $0x78] sm:$0x3]  ;;  %5647 = vmatprep.mubr.msk.f32.mxu1 %vm215_vm1, %v1735_v2  ;;  %2790 = vst.msk [vmem:[#allocation3 + $0x48] sm:$0xff] %vm215_vm1, %v2726_v1  ;;  %1435 = vst.msk [vmem:[#allocation3 + $0x120] sm:$0xff] %vm215_vm1, %v6821_v51  ;;  %v2347_v19 = vmax.f32 %v2403_v63, %v6801_v50  ;;  %v2602_v28 = vmax.f32 %v2474_v26, %v6796_v23  ;;  %v988_v33 = vmax.f32 %v6596_v52, %v6655_v5  ;;  %v6849_v5 = vld [vmem:[#allocation3 + $0x12e] sm:$0xff] }
  0xb4   : > { %v3846_v31 = vmax.f32 %v3718_v8, %v3782_v30  ;;  %v858_v10 = vld [vmem:[#allocation2 + $0x138] sm:$0x3]  ;;  %v2723_v55 = vmax.f32 %v2595_v3, %v6807_v9  ;;  %v2471_v12 = vmax.f32 %v2343_v25, %v6801_v50  ;;  %v4099_v63 = vmax.f32 %v3971_v42, %v6814_v45  ;;  %v6863_v2 = vld [vmem:[#allocation2 + $0xf0] sm:$0xff]  ;;  %v1577_v1 = vld [vmem:[#allocation3 + $0x128] sm:$0xff] }
  0xb5   : > { %v923_v20 = vld [vmem:[#allocation2 + $0x158] sm:$0x3]  ;;  %v2475_v27 = vmax.f32 %v2347_v19, %v6807_v9  ;;  %v2730_v17 = vmax.f32 %v2602_v28, %v6851_v13  ;;  %v2942_v58 = vld [vmem:[#allocation3 + $0x10] sm:$0xff]  ;;  %v1546_v19 = vmax.f32 %v6849_v5, %v1514_v16 }
  0xb6   : > { %v1051_v53 = vld [vmem:[#allocation2 + $0x178] sm:$0x3]  ;;  %v987_v14 = vmax.f32 %v858_v10, %v923_v20  ;;  %v3974_v49 = vmax.f32 %v3846_v31, %v3910_v22  ;;  %2787 = vst.msk [vmem:[#allocation3 + $0x30] sm:$0xff] %vm215_vm1, %v2723_v55  ;;  %v2599_v11 = vmax.f32 %v2471_v12, %v6807_v9  ;;  %v1116_v31 = vmax.f32 %v988_v33, %v6716_v4  ;;  %v1641_v25 = vld [vmem:[#allocation3 + $0x129] sm:$0xff] }
  0xb7   : > { %v1640_v36 = vld [vmem:[#allocation3 + $0x111] sm:$0xff]  ;;  %2794 = vst.msk [vmem:[#allocation3 + $0x68] sm:$0xff] %vm215_vm1, %v2730_v17 }
  0xb8   : > { %v1704_v57 = vld [vmem:[#allocation3 + $0x112] sm:$0xff]  ;;  %v1672_v6 = vmax.f32 %v6777_v44, %v1640_v36  ;;  %v1115_v46 = vmax.f32 %v987_v14, %v1051_v53  ;;  %v3975_v44 = vmax.f32 %v3847_v18, %v6814_v45  ;;  %v2845_v61 = vld [vmem:[#allocation3 + $0x6] sm:$0xff] }
  0xb9   : > { %v4038_v0 = vld [vmem:[#allocation2 + $0x98] sm:$0x3]  ;;  %2816 = vst.msk [vmem:[#allocation3 + $0x118] sm:$0x3] %vm219_vm2, %v2752_v43  ;;  %v6855_v43 = vld [vmem:[#allocation2 + $0xd0] sm:$0xff]  ;;  %v2877_v8 = vld [vmem:[#allocation3 + $0x7] sm:$0xff] }
  0xba   : > { %v1180_v7 = vld [vmem:[#allocation2 + $0x198] sm:$0x3]  ;;  %v1736_v39 = vmax.f32 %v1672_v6, %v1704_v57  ;;  %v4102_v56 = vmax.f32 %v3974_v49, %v4038_v0  ;;  %v2603_v30 = vmax.f32 %v2475_v27, %v6855_v43  ;;  %v2941_v26 = vld [vmem:[#allocation3 + $0x8] sm:$0xff]  ;;  %v4103_v22 = vmax.f32 %v3975_v44, %v6853_v29  ;;  %4163 = vst.msk [vmem:[#allocation3] sm:$0xff] %vm215_vm1, %v4099_v63  ;;  %v1578_v18 = vld [vmem:[#allocation3 + $0x130] sm:$0xff] }
  0xbb   : > { %v6840_v41 = vld [vmem:[#allocation3 + $0x11] sm:$0xff]  ;;  %v1244_v23 = vmax.f32 %v1115_v46, %v1180_v7  ;;  %v2727_v42 = vmax.f32 %v2599_v11, %v6855_v43  ;;  %v2909_v10 = vmax.f32 %v2845_v61, %v2877_v8  ;;  %v3005_v20 = vld [vmem:[#allocation3 + $0x9] sm:$0xff]  ;;  %v3723_v63 = vmax.f32 %v6774_v32, %v6799_v15 }
  0xbc   : > { %v6842_v38 = vld [vmem:[#allocation3 + $0x12] sm:$0xff]  ;;  %5648 = vmatmul.mubr.msk.f32.gmra.mxu1 %vm215_vm1, %v1736_v39  ;;  %2190 = vst.msk [vmem:[#allocation2 + $0x150] sm:$0xff] %vm215_vm1, %v1736_v39  ;;  %v2731_v57 = vmax.f32 %v2603_v30, %v6863_v2  ;;  %v1481_v0 = vld [vmem:[#allocation3 + $0x126] sm:$0xff]  ;;  %v1245_v39 = vmax.f32 %v1116_v31, %v6809_v40  ;;  %v1610_v11 = vmax.f32 %v1546_v19, %v1578_v18 }
  0xbd   : > { %v2244_v59 = vld [vmem:[#allocation2 + $0x138] sm:$0x3]  ;;  %4166 = vst.msk [vmem:[#allocation3 + $0x18] sm:$0x3] %vm219_vm2, %v4102_v56  ;;  %v2846_v53 = vld [vmem:[#allocation3 + $0xe] sm:$0xff]  ;;  %v2973_v49 = vmax.f32 %v2909_v10, %v2941_v26  ;;  %v2847_v33 = vld [vmem:[#allocation3 + $0x26] sm:$0xff] }
  0xbe   : > { %v2308_v47 = vld [vmem:[#allocation2 + $0x158] sm:$0x3]  ;;  %v2878_v55 = vld [vmem:[#allocation3 + $0xf] sm:$0xff]  ;;  %v1513_v14 = vld [vmem:[#allocation3 + $0x127] sm:$0xff]  ;;  %2791 = vst.msk [vmem:[#allocation3 + $0x50] sm:$0xff] %vm215_vm1, %v2727_v42 }
  0xbf   : > { %v1309_v52 = vld [vmem:[#allocation2 + $0x1b8] sm:$0x3]  ;;  %v2372_v21 = vmax.f32 %v2244_v59, %v2308_v47  ;;  %v2910_v7 = vmax.f32 %v2846_v53, %v2878_v55  ;;  %v1545_v28 = vmax.f32 %v1481_v0, %v1513_v14  ;;  %2817 = vst.msk [vmem:[#allocation3 + $0x120] sm:$0xff] %vm215_vm1, %v6821_v51  ;;  %v2879_v46 = vld [vmem:[#allocation3 + $0x27] sm:$0xff]  ;;  %2795 = vst.msk [vmem:[#allocation3 + $0x70] sm:$0xff] %vm215_vm1, %v2731_v57 }
  0xc0   : > { %v2436_v48 = vld [vmem:[#allocation2 + $0x178] sm:$0x3]  ;;  %v1373_v3 = vmax.f32 %v1244_v23, %v1309_v52  ;;  %v2943_v59 = vld [vmem:[#allocation3 + $0x28] sm:$0xff]  ;;  %v2911_v44 = vmax.f32 %v2847_v33, %v2879_v46  ;;  %4167 = vst.msk [vmem:[#allocation3 + $0x20] sm:$0xff] %vm215_vm1, %v4103_v22  ;;  %v3037_v56 = vmax.f32 %v2973_v49, %v3005_v20  ;;  %v6882_v42 = vld [vmem:[#allocation2 + $0x1c0] sm:$0xff]  ;;  %v3851_v53 = vmax.f32 %v3723_v63, %v6814_v45 }
  0xc1   : > { %v2500_v35 = vmax.f32 %v2372_v21, %v2436_v48  ;;  %v2564_v54 = vld [vmem:[#allocation2 + $0x198] sm:$0x3]  ;;  %v3069_v47 = vld [vmem:[#allocation3 + $0xa] sm:$0xff]  ;;  %v2974_v52 = vmax.f32 %v2910_v7, %v2942_v58  ;;  %v1609_v5 = vmax.f32 %v1545_v28, %v1577_v1  ;;  %v6885_v20 = vmax.f32 %v1245_v39, %v6882_v42 }
  0xc2   : > { %v2692_v36 = vld [vmem:[#allocation2 + $0x1b8] sm:$0x3]  ;;  %1438 = vst.msk [vmem:[#allocation3 + $0x138] sm:$0x3] %vm219_vm2, %v1373_v3  ;;  %v2848_v12 = vld [vmem:[#allocation3 + $0x2e] sm:$0xff]  ;;  %v3101_v61 = vmax.f32 %v3037_v56, %v3069_v47 }
  0xc3   : > { %v2628_v6 = vmax.f32 %v2500_v35, %v2564_v54  ;;  %v3594_v27 = vld [vmem:[#allocation2 + $0x38] sm:$0x3]  ;;  %v3007_v51 = vld [vmem:[#allocation3 + $0x29] sm:$0xff]  ;;  %v2975_v35 = vmax.f32 %v2911_v44, %v2943_v59  ;;  %v3038_v8 = vmax.f32 %v2974_v52, %v6840_v41  ;;  %v1673_v26 = vmax.f32 %v1609_v5, %v1641_v25  ;;  %1439 = vst.msk [vmem:[#allocation3 + $0x140] sm:$0xff] %vm215_vm1, %v6885_v20 }
  0xc4   : > { %v2880_v21 = vld [vmem:[#allocation3 + $0x2f] sm:$0xff]  ;;  %v3658_v17 = vld [vmem:[#allocation2 + $0x58] sm:$0x3]  ;;  %5673 = vmatprep.mubr.msk.f32.mxu0 %vm215_vm1, %v3101_v61  ;;  %3555 = vst.msk [vmem:[#allocation2 + $0x48] sm:$0xff] %vm215_vm1, %v3101_v61 }
  0xc5   : > { %v2944_v48 = vld [vmem:[#allocation3 + $0x30] sm:$0xff]  ;;  %v2756_v16 = vmax.f32 %v2628_v6, %v2692_v36  ;;  %v2912_v54 = vmax.f32 %v2848_v12, %v2880_v21  ;;  %v3786_v30 = vld [vmem:[#allocation2 + $0x78] sm:$0x3]  ;;  %v3722_v32 = vmax.f32 %v3594_v27, %v3658_v17  ;;  %v3039_v58 = vmax.f32 %v2975_v35, %v3007_v51  ;;  %v2849_v21 = vld [vmem:[#allocation3 + $0x46] sm:$0xff] }
  0xc6   : > { %v1705_v23 = vld [vmem:[#allocation3 + $0x12a] sm:$0xff]  ;;  %v3072_v31 = vld [vmem:[#allocation3 + $0x32] sm:$0xff]  ;;  %v3102_v41 = vmax.f32 %v3038_v8, %v6842_v38  ;;  %v3979_v12 = vmax.f32 %v3851_v53, %v6853_v29  ;;  %v2351_v53 = vmax.f32 %v6801_v50, %v6807_v9 }
  0xc7   : > { %v3071_v3 = vld [vmem:[#allocation3 + $0x2a] sm:$0xff]  ;;  %v2976_v1 = vmax.f32 %v2912_v54, %v2944_v48  ;;  %v3914_v10 = vld [vmem:[#allocation2 + $0x98] sm:$0x3]  ;;  %v1737_v18 = vmax.f32 %v1673_v26, %v1705_v23  ;;  %v3850_v55 = vmax.f32 %v3722_v32, %v3786_v30  ;;  %v6908_v30 = vld [vmem:[#allocation2 + $0xc0] sm:$0xff] }
  0xc8   : > { %v3008_v22 = vld [vmem:[#allocation3 + $0x31] sm:$0xff]  ;;  %v3103_v25 = vmax.f32 %v3039_v58, %v3071_v3  ;;  %5674 = vmatmul.mubr.msk.f32.vlgmr.msra.gmra.mxu0 %vm215_vm1, %v3102_v41  ;;  %3556 = vst.msk [vmem:[#allocation2 + $0x50] sm:$0xff] %vm215_vm1, %v3102_v41  ;;  %v2881_v48 = vld [vmem:[#allocation3 + $0x47] sm:$0xff]  ;;  %v4107_v8 = vmax.f32 %v3979_v12, %v6908_v30 }
  0xc9   : > { %v1642_v36 = vld [vmem:[#allocation3 + $0x131] sm:$0xff]  ;;  %v3040_v19 = vmax.f32 %v2976_v1, %v3008_v22  ;;  %5650 = vmatprep.mubr.msk.f32.mxu1 %vm215_vm1, %v1737_v18  ;;  %2191 = vst.msk [vmem:[#allocation2 + $0x168] sm:$0xff] %vm215_vm1, %v1737_v18  ;;  %v3978_v38 = vmax.f32 %v3850_v55, %v3914_v10  ;;  %v2913_v54 = vmax.f32 %v2849_v21, %v2881_v48  ;;  %v2945_v17 = vld [vmem:[#allocation3 + $0x48] sm:$0xff] }
  0xca   : > { %v1706_v57 = vld [vmem:[#allocation3 + $0x132] sm:$0xff]  ;;  %v1674_v14 = vmax.f32 %v1610_v11, %v1642_v36  ;;  %5676 = vmatprep.mubr.msk.f32.mxu0 %vm215_vm1, %v3103_v25  ;;  %3557 = vst.msk [vmem:[#allocation2 + $0x68] sm:$0xff] %vm215_vm1, %v3103_v25  ;;  %v1579_v61 = vld [vmem:[#allocation3 + $0x148] sm:$0xff]  ;;  %v3727_v10 = vmax.f32 %v6799_v15, %v6814_v45  ;;  %4171 = vst.msk [vmem:[#allocation3 + $0x40] sm:$0xff] %vm215_vm1, %v4107_v8 }
  0xcb   : > { %v862_v0 = vld [vmem:[#allocation2 + $0x158] sm:$0x3]  ;;  %2820 = vst.msk [vmem:[#allocation3 + $0x138] sm:$0x3] %vm219_vm2, %v2756_v16  ;;  %v3104_v46 = vmax.f32 %v3040_v19, %v3072_v31  ;;  %v1484_v56 = vld [vmem:[#allocation3 + $0x14e] sm:$0xff]  ;;  %v1483_v22 = vld [vmem:[#allocation3 + $0x146] sm:$0xff] }
  0xcc   : > { %v4042_v6 = vld [vmem:[#allocation2 + $0xb8] sm:$0x3]  ;;  %v1738_v33 = vmax.f32 %v1674_v14, %v1706_v57  ;;  %v1516_v51 = vld [vmem:[#allocation3 + $0x14f] sm:$0xff]  ;;  %v1515_v32 = vld [vmem:[#allocation3 + $0x147] sm:$0xff]  ;;  %v2977_v57 = vmax.f32 %v2913_v54, %v2945_v17 }
  0xcd   : > { %v927_v49 = vld [vmem:[#allocation2 + $0x178] sm:$0x3]  ;;  %v4106_v27 = vmax.f32 %v3978_v38, %v4042_v6  ;;  %3558 = vst.msk [vmem:[#allocation2 + $0x70] sm:$0xff] %vm215_vm1, %v3104_v46  ;;  %5677 = vmatmul.mubr.msk.f32.gmra.mxu0 %vm215_vm1, %v3104_v46  ;;  %v6905_v23 = vld [vmem:[#allocation2 + $0x10] sm:$0xff]  ;;  %v1548_v31 = vmax.f32 %v1484_v56, %v1516_v51  ;;  %v1547_v41 = vmax.f32 %v1483_v22, %v1515_v32  ;;  %2821 = vst.msk [vmem:[#allocation3 + $0x140] sm:$0xff] %vm215_vm1, %v6885_v20 }
  0xce   : > { %v1055_v7 = vld [vmem:[#allocation2 + $0x198] sm:$0x3]  ;;  %v991_v28 = vmax.f32 %v862_v0, %v927_v49  ;;  %5651 = vmatmul.mubr.msk.f32.gmra.mxu1 %vm215_vm1, %v1738_v33  ;;  %2192 = vst.msk [vmem:[#allocation2 + $0x170] sm:$0xff] %vm215_vm1, %v1738_v33  ;;  %v2850_v26 = vld [vmem:[#allocation3 + $0x4e] sm:$0xff]  ;;  %v3717_v50 = vmax.f32 %v6905_v23, %v6782_v37  ;;  %v6936_v8 = vld [vmem:[#allocation2 + $0x1e0] sm:$0xff] }
  0xcf   : > { %v1184_v59 = vld [vmem:[#allocation2 + $0x1b8] sm:$0x3]  ;;  %4170 = vst.msk [vmem:[#allocation3 + $0x38] sm:$0x3] %vm219_vm2, %v4106_v27  ;;  %v2882_v3 = vld [vmem:[#allocation3 + $0x4f] sm:$0xff]  ;;  %v1611_v45 = vmax.f32 %v1547_v41, %v1579_v61 }
  0xd0   : > { %v2248_v47 = vld [vmem:[#allocation2 + $0x158] sm:$0x3]  ;;  %v1119_v39 = vmax.f32 %v991_v28, %v1055_v7  ;;  %v1643_v58 = vld [vmem:[#allocation3 + $0x149] sm:$0xff]  ;;  %v2914_v0 = vmax.f32 %v2850_v26, %v2882_v3 }
  0xd1   : > { %v2312_v44 = vld [vmem:[#allocation2 + $0x178] sm:$0x3]  ;;  %v1580_v18 = vld [vmem:[#allocation3 + $0x150] sm:$0xff]  ;;  %v6921_v7 = vld [vmem:[#allocation2 + $0x48] sm:$0xff]  ;;  %v1675_v12 = vmax.f32 %v1611_v45, %v1643_v58 }
  0xd2   : > { %v1313_v63 = vld [vmem:[#allocation2 + $0x1d8] sm:$0x3]  ;;  %v2376_v52 = vmax.f32 %v2248_v47, %v2312_v44  ;;  %v1248_v11 = vmax.f32 %v1119_v39, %v1184_v59  ;;  %v3009_v55 = vld [vmem:[#allocation3 + $0x49] sm:$0xff]  ;;  %v863_v59 = vld [vmem:[#allocation2 + $0x160] sm:$0xff]  ;;  %v6924_v47 = vmax.f32 %v3727_v10, %v6853_v29  ;;  %v1612_v27 = vmax.f32 %v1548_v31, %v1580_v18 }
  0xd3   : > { %v2440_v5 = vld [vmem:[#allocation2 + $0x198] sm:$0x3]  ;;  %v2946_v14 = vld [vmem:[#allocation3 + $0x50] sm:$0xff]  ;;  %v3041_v28 = vmax.f32 %v2977_v57, %v3009_v55  ;;  %v992_v23 = vmax.f32 %v863_v59, %v6716_v4  ;;  %v3844_v54 = vmax.f32 %v6765_v24, %v6921_v7 }
  0xd4   : > { %v2504_v16 = vmax.f32 %v2376_v52, %v2440_v5  ;;  %v2568_v35 = vld [vmem:[#allocation2 + $0x1b8] sm:$0x3]  ;;  %v1377_v1 = vmax.f32 %v1248_v11, %v1313_v63  ;;  %v3073_v6 = vld [vmem:[#allocation3 + $0x4a] sm:$0xff]  ;;  %v2978_v33 = vmax.f32 %v2914_v0, %v2946_v14  ;;  %v6929_v52 = vmax.f32 %v2351_v53, %v6855_v43 }
  0xd5   : > { %v2696_v25 = vld [vmem:[#allocation2 + $0x1d8] sm:$0x3]  ;;  %v1707_v38 = vld [vmem:[#allocation3 + $0x14a] sm:$0xff]  ;;  %v3105_v51 = vmax.f32 %v3041_v28, %v3073_v6  ;;  %v1120_v58 = vmax.f32 %v992_v23, %v6809_v40  ;;  %v3983_v57 = vmax.f32 %v6924_v47, %v6908_v30 }
  0xd6   : > { %v2632_v36 = vmax.f32 %v2504_v16, %v2568_v35  ;;  %1442 = vst.msk [vmem:[#allocation3 + $0x158] sm:$0x3] %vm219_vm2, %v1377_v1  ;;  %v3598_v19 = vld [vmem:[#allocation2 + $0x58] sm:$0x3]  ;;  %v6926_v44 = vld [vmem:[#allocation2 + $0x50] sm:$0xff]  ;;  %v6931_v5 = vld [vmem:[#allocation2 + $0x68] sm:$0xff]  ;;  %v1739_v17 = vmax.f32 %v1675_v12, %v1707_v38  ;;  %v2607_v55 = vmax.f32 %v6929_v52, %v6863_v2 }
  0xd7   : > { %v3662_v15 = vld [vmem:[#allocation2 + $0x78] sm:$0x3]  ;;  %v6938_v22 = vld [vmem:[#allocation2 + $0x70] sm:$0xff]  ;;  %5679 = vmatprep.mubr.msk.f32.mxu0 %vm215_vm1, %v3105_v51  ;;  %3559 = vst.msk [vmem:[#allocation2 + $0x88] sm:$0xff] %vm215_vm1, %v3105_v51  ;;  %v6946_v10 = vmax.f32 %v3717_v50, %v6926_v44  ;;  %v3972_v6 = vmax.f32 %v3844_v54, %v6931_v5  ;;  %v2883_v38 = vld [vmem:[#allocation3 + $0x67] sm:$0xff] }
  0xd8   : > { %v3010_v49 = vld [vmem:[#allocation3 + $0x51] sm:$0xff]  ;;  %v3726_v46 = vmax.f32 %v3598_v19, %v3662_v15  ;;  %v2760_v39 = vmax.f32 %v2632_v36, %v2696_v25  ;;  %5653 = vmatprep.mubr.msk.f32.mxu1 %vm215_vm1, %v1739_v17  ;;  %2193 = vst.msk [vmem:[#allocation2 + $0x188] sm:$0xff] %vm215_vm1, %v1739_v17  ;;  %v1249_v25 = vmax.f32 %v1120_v58, %v6882_v42  ;;  %v2947_v28 = vld [vmem:[#allocation3 + $0x68] sm:$0xff] }
  0xd9   : > { %v3790_v20 = vld [vmem:[#allocation2 + $0x98] sm:$0x3]  ;;  %v3042_v21 = vmax.f32 %v2978_v33, %v3010_v49  ;;  %v6943_v31 = vld [vmem:[#allocation3 + $0x16e] sm:$0xff]  ;;  %v2355_v33 = vmax.f32 %v6807_v9, %v6855_v43 }
  0xda   : > { %v3074_v63 = vld [vmem:[#allocation3 + $0x52] sm:$0xff]  ;;  %v3854_v48 = vmax.f32 %v3726_v46, %v3790_v20  ;;  %v2851_v20 = vld [vmem:[#allocation3 + $0x66] sm:$0xff]  ;;  %v6963_v59 = vmax.f32 %v1249_v25, %v6936_v8 }
  0xdb   : > { %v3918_v56 = vld [vmem:[#allocation2 + $0xb8] sm:$0x3]  ;;  %v3106_v32 = vmax.f32 %v3042_v21, %v3074_v63  ;;  %v1518_v19 = vld [vmem:[#allocation3 + $0x16f] sm:$0xff]  ;;  %v2915_v12 = vmax.f32 %v2851_v20, %v2883_v38 }
  0xdc   : > { %v866_v11 = vld [vmem:[#allocation2 + $0x178] sm:$0x3]  ;;  %v3982_v4 = vmax.f32 %v3854_v48, %v3918_v56  ;;  %v1550_v56 = vmax.f32 %v6943_v31, %v1518_v19  ;;  %v1582_v52 = vld [vmem:[#allocation3 + $0x170] sm:$0xff]  ;;  %1443 = vst.msk [vmem:[#allocation3 + $0x160] sm:$0xff] %vm215_vm1, %v6963_v59  ;;  %v1581_v38 = vld [vmem:[#allocation3 + $0x168] sm:$0xff] }
  0xdd   : > { %v931_v16 = vld [vmem:[#allocation2 + $0x198] sm:$0x3]  ;;  %5680 = vmatmul.mubr.msk.f32.gmra.mxu0 %vm215_vm1, %v3106_v32  ;;  %3560 = vst.msk [vmem:[#allocation2 + $0x90] sm:$0xff] %vm215_vm1, %v3106_v32  ;;  %v6971_v9 = vld [vmem:[#allocation2 + $0x110] sm:$0xff] }
  0xde   : > { %v1059_v35 = vld [vmem:[#allocation2 + $0x1b8] sm:$0x3]  ;;  %v995_v26 = vmax.f32 %v866_v11, %v931_v16  ;;  %v2852_v21 = vld [vmem:[#allocation3 + $0x6e] sm:$0xff]  ;;  %v2979_v16 = vmax.f32 %v2915_v12, %v2947_v28  ;;  %v2735_v54 = vmax.f32 %v2607_v55, %v6971_v9  ;;  %v3721_v55 = vmax.f32 %v6782_v37, %v6926_v44 }
  0xdf   : > { %v4046_v61 = vld [vmem:[#allocation2 + $0xd8] sm:$0x3]  ;;  %v2884_v48 = vld [vmem:[#allocation3 + $0x6f] sm:$0xff]  ;;  %v2350_v37 = vmax.f32 %v6767_v60, %v6780_v62 }
  0xe0   : > { %v1188_v3 = vld [vmem:[#allocation2 + $0x1d8] sm:$0x3]  ;;  %v1123_v18 = vmax.f32 %v995_v26, %v1059_v35  ;;  %v4110_v14 = vmax.f32 %v3982_v4, %v4046_v61  ;;  %v3011_v35 = vld [vmem:[#allocation3 + $0x69] sm:$0xff]  ;;  %v2916_v17 = vmax.f32 %v2852_v21, %v2884_v48  ;;  %2799 = vst.msk [vmem:[#allocation3 + $0x90] sm:$0xff] %vm215_vm1, %v2735_v54  ;;  %v7008_v60 = vmax.f32 %v3721_v55, %v6938_v22 }
  0xe1   : > { %v1317_v1 = vld [vmem:[#allocation2 + $0x1f8] sm:$0x3]  ;;  %v2948_v61 = vld [vmem:[#allocation3 + $0x70] sm:$0xff]  ;;  %v6978_v26 = vld [vmem:[#allocation2 + $0x88] sm:$0xff] }
  0xe2   : > { %v2252_v24 = vld [vmem:[#allocation2 + $0x178] sm:$0x3]  ;;  %v1252_v49 = vmax.f32 %v1123_v18, %v1188_v3  ;;  %4174 = vst.msk [vmem:[#allocation3 + $0x58] sm:$0x3] %vm219_vm2, %v4110_v14  ;;  %v4100_v4 = vmax.f32 %v3972_v6, %v6978_v26  ;;  %v3075_v58 = vld [vmem:[#allocation3 + $0x6a] sm:$0xff]  ;;  %v2980_v18 = vmax.f32 %v2916_v17, %v2948_v61  ;;  %v1614_v14 = vmax.f32 %v1550_v56, %v1582_v52 }
  0xe3   : > { %v1644_v53 = vld [vmem:[#allocation3 + $0x151] sm:$0xff]  ;;  %v1485_v12 = vld [vmem:[#allocation3 + $0x166] sm:$0xff] }
  0xe4   : > { %v1708_v41 = vld [vmem:[#allocation3 + $0x152] sm:$0xff]  ;;  %v1676_v0 = vmax.f32 %v1612_v27, %v1644_v53  ;;  %v6965_v27 = vld [vmem:[#allocation2 + $0xe0] sm:$0xff]  ;;  %v1381_v63 = vmax.f32 %v1252_v49, %v1317_v1  ;;  %4164 = vst.msk [vmem:[#allocation3 + $0x8] sm:$0xff] %vm215_vm1, %v4100_v4 }
  0xe5   : > { %v2316_v36 = vld [vmem:[#allocation2 + $0x198] sm:$0x3]  ;;  %2824 = vst.msk [vmem:[#allocation3 + $0x158] sm:$0x3] %vm219_vm2, %v2760_v39  ;;  %v3973_v39 = vmax.f32 %v6946_v10, %v6938_v22  ;;  %v4111_v51 = vmax.f32 %v3983_v57, %v6965_v27  ;;  %v3720_v10 = vmax.f32 %v6751_v34, %v6921_v7  ;;  %v6989_v53 = vld [vmem:[#allocation2 + $0x90] sm:$0xff]  ;;  %v867_v57 = vld [vmem:[#allocation2 + $0x180] sm:$0xff] }
  0xe6   : > { %v2380_v15 = vmax.f32 %v2252_v24, %v2316_v36  ;;  %v2444_v50 = vld [vmem:[#allocation2 + $0x1b8] sm:$0x3]  ;;  %v1740_v46 = vmax.f32 %v1676_v0, %v1708_v41  ;;  %1446 = vst.msk [vmem:[#allocation3 + $0x178] sm:$0x3] %vm219_vm2, %v1381_v63  ;;  %v6985_v24 = vmax.f32 %v2355_v33, %v6863_v2  ;;  %v3043_v41 = vmax.f32 %v2979_v16, %v3011_v35  ;;  %v6999_v33 = vld [vmem:[#allocation2 + $0x200] sm:$0xff]  ;;  %v1645_v63 = vld [vmem:[#allocation3 + $0x169] sm:$0xff] }
  0xe7   : > { %v2572_v45 = vld [vmem:[#allocation2 + $0x1d8] sm:$0x3]  ;;  %4175 = vst.msk [vmem:[#allocation3 + $0x60] sm:$0xff] %vm215_vm1, %v4111_v51  ;;  %v4101_v0 = vmax.f32 %v3973_v39, %v6989_v53  ;;  %v1517_v39 = vld [vmem:[#allocation3 + $0x167] sm:$0xff] }
  0xe8   : > { %v2508_v47 = vmax.f32 %v2380_v15, %v2444_v50  ;;  %5654 = vmatmul.mubr.msk.f32.gmra.mxu1 %vm215_vm1, %v1740_v46  ;;  %2194 = vst.msk [vmem:[#allocation2 + $0x190] sm:$0xff] %vm215_vm1, %v1740_v46  ;;  %v2700_v11 = vld [vmem:[#allocation2 + $0x1f8] sm:$0x3]  ;;  %v3107_v15 = vmax.f32 %v3043_v41, %v3075_v58  ;;  %v1549_v21 = vmax.f32 %v1485_v12, %v1517_v39  ;;  %2825 = vst.msk [vmem:[#allocation3 + $0x160] sm:$0xff] %vm215_vm1, %v6963_v59  ;;  %v7018_v41 = vld [vmem:[#allocation2 + $0xc8] sm:$0xff] }
  0xe9   : > { %v3602_v3 = vld [vmem:[#allocation2 + $0x78] sm:$0x3]  ;;  %4165 = vst.msk [vmem:[#allocation3 + $0x10] sm:$0xff] %vm215_vm1, %v4101_v0  ;;  %v2611_v59 = vmax.f32 %v6985_v24, %v6971_v9  ;;  %v2478_v24 = vmax.f32 %v2350_v37, %v7018_v41 }
  0xea   : > { %v2636_v23 = vmax.f32 %v2508_v47, %v2572_v45  ;;  %v3666_v32 = vld [vmem:[#allocation2 + $0x98] sm:$0x3]  ;;  %v996_v45 = vmax.f32 %v867_v57, %v6809_v40  ;;  %v7002_v47 = vmax.f32 %v3720_v10, %v6931_v5  ;;  %5682 = vmatprep.mubr.msk.f32.mxu0 %vm215_vm1, %v3107_v15  ;;  %3561 = vst.msk [vmem:[#allocation2 + $0xa8] sm:$0xff] %vm215_vm1, %v3107_v15 }
  0xeb   : > { %v3012_v1 = vld [vmem:[#allocation3 + $0x71] sm:$0xff]  ;;  %v3730_v36 = vmax.f32 %v3602_v3, %v3666_v32  ;;  %v1613_v4 = vmax.f32 %v1549_v21, %v1581_v38 }
  0xec   : > { %v3794_v31 = vld [vmem:[#allocation2 + $0xb8] sm:$0x3]  ;;  %v2764_v25 = vmax.f32 %v2636_v23, %v2700_v11  ;;  %v3044_v50 = vmax.f32 %v2980_v18, %v3012_v1  ;;  %v1124_v52 = vmax.f32 %v996_v45, %v6882_v42  ;;  %v1488_v1 = vld [vmem:[#allocation3 + $0x18e] sm:$0xff]  ;;  %v3976_v18 = vmax.f32 %v7002_v47, %v6978_v26 }
  0xed   : > { %v3076_v2 = vld [vmem:[#allocation3 + $0x72] sm:$0xff]  ;;  %v3858_v34 = vmax.f32 %v3730_v36, %v3794_v31  ;;  %v1709_v36 = vld [vmem:[#allocation3 + $0x16a] sm:$0xff]  ;;  %v3977_v45 = vmax.f32 %v7008_v60, %v6989_v53 }
  0xee   : > { %v3922_v19 = vld [vmem:[#allocation2 + $0xd8] sm:$0x3]  ;;  %v3108_v40 = vmax.f32 %v3044_v50, %v3076_v2  ;;  %v1253_v17 = vmax.f32 %v1124_v52, %v6936_v8  ;;  %v1520_v31 = vld [vmem:[#allocation3 + $0x18f] sm:$0xff]  ;;  %v871_v52 = vld [vmem:[#allocation2 + $0x1a0] sm:$0xff] }
  0xef   : > { %v870_v6 = vld [vmem:[#allocation2 + $0x198] sm:$0x3]  ;;  %v3986_v56 = vmax.f32 %v3858_v34, %v3922_v19  ;;  %v1584_v19 = vld [vmem:[#allocation3 + $0x190] sm:$0xff] }
  0xf0   : > { %v935_v49 = vld [vmem:[#allocation2 + $0x1b8] sm:$0x3]  ;;  %5683 = vmatmul.mubr.msk.f32.gmra.mxu0 %vm215_vm1, %v3108_v40  ;;  %3562 = vst.msk [vmem:[#allocation2 + $0xb0] sm:$0xff] %vm215_vm1, %v3108_v40  ;;  %v7024_v55 = vmax.f32 %v1253_v17, %v6999_v33  ;;  %v7028_v34 = vld [vmem:[#allocation2 + $0x130] sm:$0xff]  ;;  %v1583_v17 = vld [vmem:[#allocation3 + $0x188] sm:$0xff] }
  0xf1   : > { %v1063_v20 = vld [vmem:[#allocation2 + $0x1d8] sm:$0x3]  ;;  %v999_v46 = vmax.f32 %v870_v6, %v935_v49  ;;  %v1552_v6 = vmax.f32 %v1488_v1, %v1520_v31  ;;  %v2606_v49 = vmax.f32 %v2478_v24, %v6851_v13  ;;  %v2739_v38 = vmax.f32 %v2611_v59, %v7028_v34 }
  0xf2   : > { %v4050_v28 = vld [vmem:[#allocation2 + $0xf8] sm:$0x3]  ;;  %1447 = vst.msk [vmem:[#allocation3 + $0x180] sm:$0xff] %vm215_vm1, %v7024_v55  ;;  %v1000_v59 = vmax.f32 %v871_v52, %v6882_v42 }
  0xf3   : > { %v1192_v51 = vld [vmem:[#allocation2 + $0x1f8] sm:$0x3]  ;;  %v1127_v11 = vmax.f32 %v999_v46, %v1063_v20  ;;  %v4114_v54 = vmax.f32 %v3986_v56, %v4050_v28  ;;  %v7036_v20 = vld [vmem:[#allocation2 + $0x108] sm:$0xff]  ;;  %2803 = vst.msk [vmem:[#allocation3 + $0xb0] sm:$0xff] %vm215_vm1, %v2739_v38 }
  0xf4   : > { %v1646_v48 = vld [vmem:[#allocation3 + $0x171] sm:$0xff]  ;;  %v7039_v46 = vld [vmem:[#allocation2 + $0xa8] sm:$0xff]  ;;  %v2734_v60 = vmax.f32 %v2606_v49, %v7036_v20  ;;  %v1128_v42 = vmax.f32 %v1000_v59, %v6936_v8  ;;  %v3724_v59 = vmax.f32 %v6921_v7, %v6931_v5 }
  0xf5   : > { %v1710_v23 = vld [vmem:[#allocation3 + $0x172] sm:$0xff]  ;;  %v1678_v35 = vmax.f32 %v1614_v14, %v1646_v48  ;;  %v1256_v58 = vmax.f32 %v1127_v11, %v1192_v51  ;;  %4178 = vst.msk [vmem:[#allocation3 + $0x78] sm:$0x3] %vm219_vm2, %v4114_v54  ;;  %v3603_v14 = vld [vmem:[#allocation2 + $0x80] sm:$0xff]  ;;  %v4104_v56 = vmax.f32 %v3976_v18, %v7039_v46  ;;  %v1647_v38 = vld [vmem:[#allocation3 + $0x189] sm:$0xff] }
  0xf6   : > { %v1321_v16 = vld [vmem:[#allocation2 + $0x218] sm:$0x3]  ;;  %2828 = vst.msk [vmem:[#allocation3 + $0x178] sm:$0x3] %vm219_vm2, %v2764_v25  ;;  %v1677_v25 = vmax.f32 %v1613_v4, %v1645_v63  ;;  %v3731_v50 = vmax.f32 %v3603_v14, %v6853_v29  ;;  %v7063_v18 = vld [vmem:[#allocation2 + $0x220] sm:$0xff]  ;;  %v7104_v7 = vld [vmem:[#allocation2 + $0x208] sm:$0xff] }
  0xf7   : > { %v2256_v61 = vld [vmem:[#allocation2 + $0x198] sm:$0x3]  ;;  %v1742_v57 = vmax.f32 %v1678_v35, %v1710_v23  ;;  %v1385_v2 = vmax.f32 %v1256_v58, %v1321_v16  ;;  %v7047_v51 = vld [vmem:[#allocation2 + $0xb0] sm:$0xff]  ;;  %4168 = vst.msk [vmem:[#allocation3 + $0x28] sm:$0xff] %vm215_vm1, %v4104_v56  ;;  %v1616_v23 = vmax.f32 %v1552_v6, %v1584_v19  ;;  %2798 = vst.msk [vmem:[#allocation3 + $0x88] sm:$0xff] %vm215_vm1, %v2734_v60 }
  0xf8   : > { %v2320_v3 = vld [vmem:[#allocation2 + $0x1b8] sm:$0x3]  ;;  %v1741_v29 = vmax.f32 %v1677_v25, %v1709_v36  ;;  %v3859_v39 = vmax.f32 %v3731_v50, %v6908_v30  ;;  %v4105_v48 = vmax.f32 %v3977_v45, %v7047_v51  ;;  %v2354_v6 = vmax.f32 %v6780_v62, %v7018_v41  ;;  %v3607_v62 = vld [vmem:[#allocation2 + $0xa0] sm:$0xff]  ;;  %v1711_v56 = vld [vmem:[#allocation3 + $0x18a] sm:$0xff] }
  0xf9   : > { %v2448_v32 = vld [vmem:[#allocation2 + $0x1d8] sm:$0x3]  ;;  %v2384_v10 = vmax.f32 %v2256_v61, %v2320_v3  ;;  %2196 = vst.msk [vmem:[#allocation2 + $0x1b0] sm:$0xff] %vm215_vm1, %v1742_v57  ;;  %v7055_v3 = vld [vmem:[#allocation2 + $0x100] sm:$0xff] }
  0xfa   : > { %v2576_v0 = vld [vmem:[#allocation2 + $0x1f8] sm:$0x3]  ;;  %1450 = vst.msk [vmem:[#allocation3 + $0x198] sm:$0x3] %vm219_vm2, %v1385_v2  ;;  %5656 = vmatprep.mubr.msk.f32.mxu1 %vm215_vm1, %v1741_v29  ;;  %v3987_v61 = vmax.f32 %v3859_v39, %v6965_v27  ;;  %v1487_v24 = vld [vmem:[#allocation3 + $0x186] sm:$0xff] }
  0xfb   : > { %v2512_v15 = vmax.f32 %v2384_v10, %v2448_v32  ;;  %v3606_v37 = vld [vmem:[#allocation2 + $0x98] sm:$0x3]  ;;  %2195 = vst.msk [vmem:[#allocation2 + $0x1a8] sm:$0xff] %vm215_vm1, %v1741_v29  ;;  %5657 = vmatmul.mubr.msk.f32.gmra.mxu1 %vm215_vm1, %v1742_v57  ;;  %4169 = vst.msk [vmem:[#allocation3 + $0x30] sm:$0xff] %vm215_vm1, %v4105_v48  ;;  %v7065_v57 = vld [vmem:[#allocation3 + $0x1ae] sm:$0xff]  ;;  %v1257_v29 = vmax.f32 %v1128_v42, %v6999_v33 }
  0xfc   : > { %v3670_v28 = vld [vmem:[#allocation2 + $0xb8] sm:$0x3]  ;;  %v1519_v14 = vld [vmem:[#allocation3 + $0x187] sm:$0xff] }
  0xfd   : > { %v2640_v47 = vmax.f32 %v2512_v15, %v2576_v0  ;;  %v2704_v12 = vld [vmem:[#allocation2 + $0x218] sm:$0x3]  ;;  %v3734_v63 = vmax.f32 %v3606_v37, %v3670_v28  ;;  %v7067_v0 = vld [vmem:[#allocation3 + $0x1af] sm:$0xff]  ;;  %v1551_v15 = vmax.f32 %v1487_v24, %v1519_v14  ;;  %2829 = vst.msk [vmem:[#allocation3 + $0x180] sm:$0xff] %vm215_vm1, %v7024_v55  ;;  %v4115_v28 = vmax.f32 %v3987_v61, %v7055_v3 }
  0xfe   : > { %v3798_v40 = vld [vmem:[#allocation2 + $0xd8] sm:$0x3]  ;;  %v1554_v55 = vmax.f32 %v7065_v57, %v7067_v0  ;;  %v7083_v52 = vmax.f32 %v1257_v29, %v7063_v18  ;;  %v3013_v24 = vld [vmem:[#allocation3 + $0x89] sm:$0xff] }
  0xff   : > { %v3926_v13 = vld [vmem:[#allocation2 + $0xf8] sm:$0x3]  ;;  %v3862_v21 = vmax.f32 %v3734_v63, %v3798_v40  ;;  %v2768_v11 = vmax.f32 %v2640_v47, %v2704_v12  ;;  %v1615_v39 = vmax.f32 %v1551_v15, %v1583_v17  ;;  %v7080_v40 = vld [vmem:[#allocation2 + $0xe8] sm:$0xff] }
 0x100   : > { %v4054_v16 = vld [vmem:[#allocation2 + $0x118] sm:$0x3]  ;;  %v2358_v48 = vmax.f32 %v7018_v41, %v7080_v40  ;;  %v2482_v61 = vmax.f32 %v2354_v6, %v7080_v40  ;;  %v2854_v41 = vld [vmem:[#allocation3 + $0x8e] sm:$0xff]  ;;  %1451 = vst.msk [vmem:[#allocation3 + $0x1a0] sm:$0xff] %vm215_vm1, %v7083_v52 }
 0x101   : > { %v874_v35 = vld [vmem:[#allocation2 + $0x1b8] sm:$0x3]  ;;  %v3990_v32 = vmax.f32 %v3862_v21, %v3926_v13  ;;  %v2886_v14 = vld [vmem:[#allocation3 + $0x8f] sm:$0xff] }
 0x102   : > { %v939_v54 = vld [vmem:[#allocation2 + $0x1d8] sm:$0x3] }
 0x103   : > { %v1003_v4 = vmax.f32 %v874_v35, %v939_v54  ;;  %v1067_v58 = vld [vmem:[#allocation2 + $0x1f8] sm:$0x3]  ;;  %v4118_v25 = vmax.f32 %v3990_v32, %v4054_v16  ;;  %v2853_v16 = vld [vmem:[#allocation3 + $0x86] sm:$0xff]  ;;  %v3735_v32 = vmax.f32 %v3607_v62, %v6908_v30 }
 0x104   : > { %v1196_v1 = vld [vmem:[#allocation2 + $0x218] sm:$0x3]  ;;  %v2885_v35 = vld [vmem:[#allocation3 + $0x87] sm:$0xff] }
 0x105   : > { %v7059_v31 = vld [vmem:[#allocation3 + $0x91] sm:$0xff]  ;;  %v1131_v2 = vmax.f32 %v1003_v4, %v1067_v58  ;;  %v2949_v54 = vld [vmem:[#allocation3 + $0x88] sm:$0xff]  ;;  %v2917_v4 = vmax.f32 %v2853_v16, %v2885_v35  ;;  %4179 = vst.msk [vmem:[#allocation3 + $0x80] sm:$0xff] %vm215_vm1, %v4115_v28 }
 0x106   : > { %v7061_v10 = vld [vmem:[#allocation3 + $0x92] sm:$0xff]  ;;  %v1585_v16 = vld [vmem:[#allocation3 + $0x1a8] sm:$0xff] }
 0x107   : > { %v1325_v36 = vld [vmem:[#allocation2 + $0x238] sm:$0x3]  ;;  %4182 = vst.msk [vmem:[#allocation3 + $0x98] sm:$0x3] %vm219_vm2, %v4118_v25  ;;  %v1260_v47 = vmax.f32 %v1131_v2, %v1196_v1  ;;  %v1586_v58 = vld [vmem:[#allocation3 + $0x1b0] sm:$0xff]  ;;  %v7098_v1 = vld [vmem:[#allocation2 + $0x128] sm:$0xff]  ;;  %v2610_v2 = vmax.f32 %v2482_v61, %v7036_v20  ;;  %v2981_v15 = vmax.f32 %v2917_v4, %v2949_v54 }
 0x108   : > { %v2260_v19 = vld [vmem:[#allocation2 + $0x1b8] sm:$0x3]  ;;  %v2950_v25 = vld [vmem:[#allocation3 + $0x90] sm:$0xff]  ;;  %v7117_v28 = vmax.f32 %v1554_v55, %v1586_v58 }
 0x109   : > { %v1648_v50 = vld [vmem:[#allocation3 + $0x191] sm:$0xff]  ;;  %v1389_v60 = vmax.f32 %v1260_v47, %v1325_v36  ;;  %v7102_v36 = vld [vmem:[#allocation2 + $0x1e8] sm:$0xff]  ;;  %v2738_v29 = vmax.f32 %v2610_v2, %v7098_v1  ;;  %v3045_v62 = vmax.f32 %v2981_v15, %v3013_v24 }
 0x10a   : > { %v1712_v45 = vld [vmem:[#allocation3 + $0x192] sm:$0xff]  ;;  %v1680_v37 = vmax.f32 %v1616_v23, %v1648_v50  ;;  %v1009_v57 = vmax.f32 %v7102_v36, %v7104_v7  ;;  %v2918_v50 = vmax.f32 %v2854_v41, %v2886_v14  ;;  %v1489_v24 = vld [vmem:[#allocation3 + $0x1a6] sm:$0xff] }
 0x10b   : > { %v2324_v49 = vld [vmem:[#allocation2 + $0x1d8] sm:$0x3]  ;;  %2832 = vst.msk [vmem:[#allocation3 + $0x198] sm:$0x3] %vm219_vm2, %v2768_v11  ;;  %v7087_v23 = vld [vmem:[#allocation2 + $0xf0] sm:$0xff]  ;;  %v1679_v11 = vmax.f32 %v1615_v39, %v1647_v38  ;;  %v1521_v14 = vld [vmem:[#allocation3 + $0x1a7] sm:$0xff] }
 0x10c   : > { %v2452_v12 = vld [vmem:[#allocation2 + $0x1f8] sm:$0x3]  ;;  %v2388_v63 = vmax.f32 %v2260_v19, %v2324_v49  ;;  %v1744_v13 = vmax.f32 %v1680_v37, %v1712_v45  ;;  %1454 = vst.msk [vmem:[#allocation3 + $0x1b8] sm:$0x3] %vm219_vm2, %v1389_v60  ;;  %v2359_v30 = vmax.f32 %v6855_v43, %v7087_v23  ;;  %v7110_v19 = vmax.f32 %v3735_v32, %v6965_v27  ;;  %v3077_v37 = vld [vmem:[#allocation3 + $0x8a] sm:$0xff] }
 0x10d   : > { %v2580_v21 = vld [vmem:[#allocation2 + $0x218] sm:$0x3]  ;;  %v1743_v0 = vmax.f32 %v1679_v11, %v1711_v56  ;;  %v3725_v43 = vmax.f32 %v6926_v44, %v6938_v22  ;;  %v7120_v47 = vld [vmem:[#allocation2 + $0x150] sm:$0xff]  ;;  %v2982_v56 = vmax.f32 %v2918_v50, %v2950_v25  ;;  %v875_v11 = vld [vmem:[#allocation2 + $0x1c0] sm:$0xff]  ;;  %v2363_v55 = vmax.f32 %v7087_v23, %v6971_v9  ;;  %2802 = vst.msk [vmem:[#allocation3 + $0xa8] sm:$0xff] %vm215_vm1, %v2738_v29 }
 0x10e   : > { %v2516_v17 = vmax.f32 %v2388_v63, %v2452_v12  ;;  %2198 = vst.msk [vmem:[#allocation2 + $0x1d0] sm:$0xff] %vm215_vm1, %v1744_v13  ;;  %v2708_v45 = vld [vmem:[#allocation2 + $0x238] sm:$0x3]  ;;  %v2487_v6 = vmax.f32 %v2359_v30, %v6971_v9  ;;  %v7123_v63 = vmax.f32 %v2358_v48, %v7036_v20  ;;  %v3991_v54 = vmax.f32 %v7110_v19, %v7055_v3  ;;  %v7132_v48 = vld [vmem:[#allocation2 + $0x120] sm:$0xff]  ;;  %v7140_v25 = vld [vmem:[#allocation3 + $0x1a9] sm:$0xff] }
 0x10f   : > { %v3610_v49 = vld [vmem:[#allocation2 + $0xb8] sm:$0x3]  ;;  %5659 = vmatprep.mubr.msk.f32.mxu1 %vm215_vm1, %v1743_v0  ;;  %2197 = vst.msk [vmem:[#allocation2 + $0x1c8] sm:$0xff] %vm215_vm1, %v1743_v0  ;;  %v7136_v32 = vmax.f32 %v3724_v59, %v6978_v26  ;;  %v3109_v4 = vmax.f32 %v3045_v62, %v3077_v37  ;;  %v3046_v41 = vmax.f32 %v2982_v56, %v7059_v31  ;;  %2833 = vst.msk [vmem:[#allocation3 + $0x1a0] sm:$0xff] %vm215_vm1, %v7083_v52  ;;  %v7164_v56 = vld [vmem:[#allocation3 + $0x1ce] sm:$0xff] }
 0x110   : > { %v2644_v42 = vmax.f32 %v2516_v17, %v2580_v21  ;;  %v3674_v38 = vld [vmem:[#allocation2 + $0xd8] sm:$0x3]  ;;  %5660 = vmatmul.mubr.msk.f32.gmra.mxu1 %vm215_vm1, %v1744_v13  ;;  %v2615_v60 = vmax.f32 %v2487_v6, %v7028_v34  ;;  %v1004_v13 = vmax.f32 %v875_v11, %v6936_v8  ;;  %v7144_v59 = vmax.f32 %v2363_v55, %v7028_v34 }
 0x111   : > { %v3738_v12 = vmax.f32 %v3610_v49, %v3674_v38  ;;  %v3802_v39 = vld [vmem:[#allocation2 + $0xf8] sm:$0x3]  ;;  %5685 = vmatprep.mubr.msk.f32.mxu0 %vm215_vm1, %v3109_v4  ;;  %3563 = vst.msk [vmem:[#allocation2 + $0xc8] sm:$0xff] %vm215_vm1, %v3109_v4  ;;  %v3110_v31 = vmax.f32 %v3046_v41, %v7061_v10  ;;  %v1553_v15 = vmax.f32 %v1489_v24, %v1521_v14  ;;  %v7157_v38 = vld [vmem:[#allocation2 + $0x240] sm:$0xff]  ;;  %v1713_v10 = vld [vmem:[#allocation3 + $0x1aa] sm:$0xff] }
 0x112   : > { %v3930_v21 = vld [vmem:[#allocation2 + $0x118] sm:$0x3]  ;;  %v2772_v35 = vmax.f32 %v2644_v42, %v2708_v45  ;;  %v2743_v23 = vmax.f32 %v2615_v60, %v7120_v47  ;;  %v1132_v8 = vmax.f32 %v1004_v13, %v6999_v33  ;;  %v2614_v29 = vmax.f32 %v7123_v63, %v7098_v1  ;;  %v3611_v4 = vld [vmem:[#allocation2 + $0xc0] sm:$0xff] }
 0x113   : > { %v3866_v17 = vmax.f32 %v3738_v12, %v3802_v39  ;;  %v878_v61 = vld [vmem:[#allocation2 + $0x1d8] sm:$0x3]  ;;  %v4119_v52 = vmax.f32 %v3991_v54, %v7132_v48  ;;  %v7172_v63 = vmax.f32 %v3725_v43, %v6989_v53  ;;  %5686 = vmatmul.mubr.msk.f32.gmra.mxu0 %vm215_vm1, %v3110_v31  ;;  %3564 = vst.msk [vmem:[#allocation2 + $0xd0] sm:$0xff] %vm215_vm1, %v3110_v31  ;;  %v7182_v43 = vld [vmem:[#allocation2 + $0x148] sm:$0xff] }
 0x114   : > { %v4058_v58 = vld [vmem:[#allocation2 + $0x138] sm:$0x3]  ;;  %2807 = vst.msk [vmem:[#allocation3 + $0xd0] sm:$0xff] %vm215_vm1, %v2743_v23  ;;  %v1617_v11 = vmax.f32 %v1553_v15, %v1585_v16  ;;  %v2619_v41 = vmax.f32 %v7144_v59, %v7120_v47  ;;  %v3980_v16 = vmax.f32 %v7136_v32, %v7039_v46  ;;  %v2742_v24 = vmax.f32 %v2614_v29, %v7182_v43 }
 0x115   : > { %v943_v30 = vld [vmem:[#allocation2 + $0x1f8] sm:$0x3]  ;;  %v3994_v2 = vmax.f32 %v3866_v17, %v3930_v21  ;;  %v3728_v21 = vmax.f32 %v6931_v5, %v6978_v26  ;;  %v3739_v14 = vmax.f32 %v3611_v4, %v6965_v27  ;;  %v3981_v31 = vmax.f32 %v7172_v63, %v7047_v51  ;;  %v2888_v27 = vld [vmem:[#allocation3 + $0xaf] sm:$0xff] }
 0x116   : > { %v1071_v0 = vld [vmem:[#allocation2 + $0x218] sm:$0x3]  ;;  %v1007_v19 = vmax.f32 %v878_v61, %v943_v30  ;;  %v1681_v23 = vmax.f32 %v1617_v11, %v7140_v25  ;;  %v2887_v30 = vld [vmem:[#allocation3 + $0xa7] sm:$0xff]  ;;  %v1588_v25 = vld [vmem:[#allocation3 + $0x1d0] sm:$0xff]  ;;  %2806 = vst.msk [vmem:[#allocation3 + $0xc8] sm:$0xff] %vm215_vm1, %v2742_v24  ;;  %v2362_v63 = vmax.f32 %v7080_v40, %v7036_v20 }
 0x117   : > { %v1650_v42 = vld [vmem:[#allocation3 + $0x1b1] sm:$0xff]  ;;  %v4122_v12 = vmax.f32 %v3994_v2, %v4058_v58  ;;  %v2855_v58 = vld [vmem:[#allocation3 + $0xa6] sm:$0xff] }
 0x118   : > { %v1682_v50 = vmax.f32 %v7117_v28, %v1650_v42  ;;  %v1714_v45 = vld [vmem:[#allocation3 + $0x1b2] sm:$0xff]  ;;  %v1261_v28 = vmax.f32 %v1132_v8, %v7063_v18  ;;  %v1135_v39 = vmax.f32 %v1007_v19, %v1071_v0  ;;  %v2951_v0 = vld [vmem:[#allocation3 + $0xa8] sm:$0xff]  ;;  %v3729_v42 = vmax.f32 %v6938_v22, %v6989_v53  ;;  %4183 = vst.msk [vmem:[#allocation3 + $0xa0] sm:$0xff] %vm215_vm1, %v4119_v52  ;;  %v7216_v11 = vld [vmem:[#allocation2 + $0x140] sm:$0xff] }
 0x119   : > { %v7152_v6 = vld [vmem:[#allocation3 + $0xb1] sm:$0xff]  ;;  %2836 = vst.msk [vmem:[#allocation3 + $0x1b8] sm:$0x3] %vm219_vm2, %v2772_v35  ;;  %v2919_v2 = vmax.f32 %v2855_v58, %v2887_v30  ;;  %v1745_v15 = vmax.f32 %v1681_v23, %v1713_v10  ;;  %v7205_v29 = vld [vmem:[#allocation2 + $0xc8] sm:$0xff]  ;;  %v879_v58 = vld [vmem:[#allocation2 + $0x1e0] sm:$0xff] }
 0x11a   : > { %v7154_v49 = vld [vmem:[#allocation3 + $0xb2] sm:$0xff]  ;;  %v1746_v55 = vmax.f32 %v1682_v50, %v1714_v45  ;;  %v7180_v5 = vmax.f32 %v1261_v28, %v7157_v38  ;;  %v3015_v50 = vld [vmem:[#allocation3 + $0xa9] sm:$0xff]  ;;  %v3867_v45 = vmax.f32 %v3739_v14, %v7055_v3  ;;  %v7229_v40 = vmax.f32 %v3729_v42, %v7047_v51 }
 0x11b   : > { %v1200_v37 = vld [vmem:[#allocation2 + $0x238] sm:$0x3]  ;;  %v7176_v35 = vld [vmem:[#allocation3 + $0x1cf] sm:$0xff]  ;;  %4186 = vst.msk [vmem:[#allocation3 + $0xb8] sm:$0x3] %vm219_vm2, %v4122_v12  ;;  %v2983_v52 = vmax.f32 %v2919_v2, %v2951_v0  ;;  %5662 = vmatprep.mubr.msk.f32.mxu1 %vm215_vm1, %v1745_v15 }
 0x11c   : > { %v1329_v62 = vld [vmem:[#allocation2 + $0x258] sm:$0x3]  ;;  %v1264_v13 = vmax.f32 %v1135_v39, %v1200_v37  ;;  %2200 = vst.msk [vmem:[#allocation2 + $0x1f0] sm:$0xff] %vm215_vm1, %v1746_v55  ;;  %v2856_v8 = vld [vmem:[#allocation3 + $0xae] sm:$0xff]  ;;  %1455 = vst.msk [vmem:[#allocation3 + $0x1c0] sm:$0xff] %vm215_vm1, %v7180_v5  ;;  %v1556_v22 = vmax.f32 %v7164_v56, %v7176_v35  ;;  %v3732_v56 = vmax.f32 %v6978_v26, %v7039_v46  ;;  %5663 = vmatmul.mubr.msk.f32.gmra.mxu1 %vm215_vm1, %v1746_v55 }
 0x11d   : > { %v2264_v60 = vld [vmem:[#allocation2 + $0x1d8] sm:$0x3]  ;;  %v2952_v19 = vld [vmem:[#allocation3 + $0xb0] sm:$0xff]  ;;  %v2920_v28 = vmax.f32 %v2856_v8, %v2888_v27  ;;  %2199 = vst.msk [vmem:[#allocation2 + $0x1e8] sm:$0xff] %vm215_vm1, %v1745_v15  ;;  %v1073_v30 = vld [vmem:[#allocation2 + $0x228] sm:$0xff]  ;;  %v7243_v27 = vmax.f32 %v2362_v63, %v7098_v1 }
 0x11e   : > { %v2328_v54 = vld [vmem:[#allocation2 + $0x1f8] sm:$0x3]  ;;  %v1393_v32 = vmax.f32 %v1264_v13, %v1329_v62  ;;  %v7203_v37 = vld [vmem:[#allocation2 + $0x170] sm:$0xff]  ;;  %v7221_v13 = vmax.f32 %v3728_v21, %v7039_v46  ;;  %v1587_v24 = vld [vmem:[#allocation3 + $0x1c8] sm:$0xff]  ;;  %v1137_v15 = vmax.f32 %v1009_v57, %v1073_v30 }
 0x11f   : > { %v2456_v17 = vld [vmem:[#allocation2 + $0x218] sm:$0x3]  ;;  %v2392_v61 = vmax.f32 %v2264_v60, %v2328_v54  ;;  %v3079_v12 = vld [vmem:[#allocation3 + $0xaa] sm:$0xff]  ;;  %v2747_v62 = vmax.f32 %v2619_v41, %v7203_v37  ;;  %v4108_v60 = vmax.f32 %v3980_v16, %v7205_v29  ;;  %v2984_v4 = vmax.f32 %v2920_v28, %v2952_v19 }
 0x120   : > { %v2584_v44 = vld [vmem:[#allocation2 + $0x238] sm:$0x3]  ;;  %1458 = vst.msk [vmem:[#allocation3 + $0x1d8] sm:$0x3] %vm219_vm2, %v1393_v32  ;;  %v3995_v41 = vmax.f32 %v3867_v45, %v7132_v48  ;;  %v1620_v16 = vmax.f32 %v1556_v22, %v1588_v25  ;;  %v1202_v19 = vld [vmem:[#allocation2 + $0x248] sm:$0xff]  ;;  %v1008_v25 = vmax.f32 %v879_v58, %v6999_v33  ;;  %v2954_v57 = vld [vmem:[#allocation3 + $0xd0] sm:$0xff] }
 0x121   : > { %v2520_v59 = vmax.f32 %v2392_v61, %v2456_v17  ;;  %v2712_v10 = vld [vmem:[#allocation2 + $0x258] sm:$0x3]  ;;  %v2367_v17 = vmax.f32 %v6971_v9, %v7028_v34  ;;  %v7223_v61 = vld [vmem:[#allocation2 + $0xd0] sm:$0xff]  ;;  %2811 = vst.msk [vmem:[#allocation3 + $0xf0] sm:$0xff] %vm215_vm1, %v2747_v62  ;;  %4172 = vst.msk [vmem:[#allocation3 + $0x48] sm:$0xff] %vm215_vm1, %v4108_v60  ;;  %v3048_v55 = vmax.f32 %v2984_v4, %v7152_v6 }
 0x122   : > { %v3614_v35 = vld [vmem:[#allocation2 + $0xd8] sm:$0x3]  ;;  %v4109_v9 = vmax.f32 %v3981_v31, %v7223_v61  ;;  %v4123_v14 = vmax.f32 %v3995_v41, %v7216_v11  ;;  %v2366_v6 = vmax.f32 %v7036_v20, %v7098_v1  ;;  %v2857_v33 = vld [vmem:[#allocation3 + $0xc6] sm:$0xff]  ;;  %v1266_v60 = vmax.f32 %v1137_v15, %v1202_v19  ;;  %v2858_v4 = vld [vmem:[#allocation3 + $0xce] sm:$0xff] }
 0x123   : > { %v2648_v39 = vmax.f32 %v2520_v59, %v2584_v44  ;;  %v3678_v54 = vld [vmem:[#allocation2 + $0xf8] sm:$0x3]  ;;  %v3047_v44 = vmax.f32 %v2983_v52, %v3015_v50  ;;  %v1491_v42 = vld [vmem:[#allocation3 + $0x1c6] sm:$0xff]  ;;  %v3112_v22 = vmax.f32 %v3048_v55, %v7154_v49  ;;  %v7251_v28 = vmax.f32 %v2367_v17, %v7120_v47  ;;  %v2890_v41 = vld [vmem:[#allocation3 + $0xcf] sm:$0xff] }
 0x124   : > { %v3806_v23 = vld [vmem:[#allocation2 + $0x118] sm:$0x3]  ;;  %v3742_v2 = vmax.f32 %v3614_v35, %v3678_v54  ;;  %4173 = vst.msk [vmem:[#allocation3 + $0x50] sm:$0xff] %vm215_vm1, %v4109_v9  ;;  %v1523_v32 = vld [vmem:[#allocation3 + $0x1c7] sm:$0xff]  ;;  %v1136_v49 = vmax.f32 %v1008_v25, %v7063_v18  ;;  %v3984_v35 = vmax.f32 %v7221_v13, %v7205_v29  ;;  %v2922_v58 = vmax.f32 %v2858_v4, %v2890_v41  ;;  %v7322_v4 = vld [vmem:[#allocation2 + $0x1d0] sm:$0xff] }
 0x125   : > { %v2776_v21 = vmax.f32 %v2648_v39, %v2712_v10  ;;  %v3111_v0 = vmax.f32 %v3047_v44, %v3079_v12  ;;  %v3934_v8 = vld [vmem:[#allocation2 + $0x138] sm:$0x3]  ;;  %v1651_v59 = vld [vmem:[#allocation3 + $0x1c9] sm:$0xff]  ;;  %v1555_v45 = vmax.f32 %v1491_v42, %v1523_v32  ;;  %2837 = vst.msk [vmem:[#allocation3 + $0x1c0] sm:$0xff] %vm215_vm1, %v7180_v5  ;;  %v1330_v12 = vld [vmem:[#allocation2 + $0x260] sm:$0xff]  ;;  %v2371_v5 = vmax.f32 %v7028_v34, %v7120_v47 }
 0x126   : > { %v4062_v31 = vld [vmem:[#allocation2 + $0x158] sm:$0x3]  ;;  %v1331_v50 = vld [vmem:[#allocation2 + $0x268] sm:$0xff]  ;;  %v3870_v52 = vmax.f32 %v3742_v2, %v3806_v23  ;;  %3566 = vst.msk [vmem:[#allocation2 + $0xf0] sm:$0xff] %vm215_vm1, %v3112_v22  ;;  %v1265_v34 = vmax.f32 %v1136_v49, %v7157_v38  ;;  %v2986_v32 = vmax.f32 %v2922_v58, %v2954_v57  ;;  %v3985_v15 = vmax.f32 %v7229_v40, %v7223_v61  ;;  %v1590_v58 = vld [vmem:[#allocation3 + $0x1f0] sm:$0xff] }
 0x127   : > { %5688 = vmatprep.mubr.msk.f32.mxu0 %vm215_vm1, %v3111_v0  ;;  %3565 = vst.msk [vmem:[#allocation2 + $0xe8] sm:$0xff] %vm215_vm1, %v3111_v0  ;;  %v2889_v36 = vld [vmem:[#allocation3 + $0xc7] sm:$0xff]  ;;  %v1652_v39 = vld [vmem:[#allocation3 + $0x1d1] sm:$0xff]  ;;  %v1619_v54 = vmax.f32 %v1555_v45, %v1587_v24  ;;  %v1395_v30 = vmax.f32 %v1266_v60, %v1331_v50  ;;  %v2370_v57 = vmax.f32 %v7098_v1, %v7182_v43 }
 0x128   : > { %v2953_v7 = vld [vmem:[#allocation3 + $0xc8] sm:$0xff]  ;;  %v1716_v10 = vld [vmem:[#allocation3 + $0x1d2] sm:$0xff]  ;;  %v2921_v62 = vmax.f32 %v2857_v33, %v2889_v36  ;;  %4187 = vst.msk [vmem:[#allocation3 + $0xc0] sm:$0xff] %vm215_vm1, %v4123_v14  ;;  %5689 = vmatmul.mubr.msk.f32.gmra.mxu0 %vm215_vm1, %v3112_v22  ;;  %v1684_v17 = vmax.f32 %v1620_v16, %v1652_v39  ;;  %v3998_v18 = vmax.f32 %v3870_v52, %v3934_v8  ;;  %v3615_v39 = vld [vmem:[#allocation2 + $0xe0] sm:$0xff] }
 0x129   : > { %v882_v63 = vld [vmem:[#allocation2 + $0x1f8] sm:$0x3]  ;;  %2840 = vst.msk [vmem:[#allocation3 + $0x1d8] sm:$0x3] %vm219_vm2, %v2776_v21  ;;  %v3017_v44 = vld [vmem:[#allocation3 + $0xc9] sm:$0xff]  ;;  %v1683_v55 = vmax.f32 %v1619_v54, %v1651_v59  ;;  %v3733_v21 = vmax.f32 %v6989_v53, %v7047_v51  ;;  %v7265_v25 = vmax.f32 %v1265_v34, %v1330_v12  ;;  %v2618_v53 = vmax.f32 %v7243_v27, %v7182_v43 }
 0x12a   : > { %v1715_v9 = vld [vmem:[#allocation3 + $0x1ca] sm:$0xff]  ;;  %v2985_v23 = vmax.f32 %v2921_v62, %v2953_v7  ;;  %v947_v0 = vld [vmem:[#allocation2 + $0x218] sm:$0x3]  ;;  %v1748_v14 = vmax.f32 %v1684_v17, %v1716_v10  ;;  %v4126_v24 = vmax.f32 %v3998_v18, %v4062_v31  ;;  %1460 = vst.msk [vmem:[#allocation3 + $0x1e8] sm:$0xff] %vm215_vm1, %v1395_v30  ;;  %v2623_v10 = vmax.f32 %v7251_v28, %v7203_v37 }
 0x12b   : > { %v1075_v13 = vld [vmem:[#allocation2 + $0x238] sm:$0x3]  ;;  %v3081_v2 = vld [vmem:[#allocation3 + $0xca] sm:$0xff]  ;;  %v1011_v16 = vmax.f32 %v882_v63, %v947_v0  ;;  %v1747_v59 = vmax.f32 %v1683_v55, %v1715_v9  ;;  %1459 = vst.msk [vmem:[#allocation3 + $0x1e0] sm:$0xff] %vm215_vm1, %v7265_v25  ;;  %v7291_v62 = vmax.f32 %v2366_v6, %v7182_v43  ;;  %v7294_v49 = vmax.f32 %v2371_v5, %v7203_v37 }
 0x12c   : > { %v3018_v19 = vld [vmem:[#allocation3 + $0xd1] sm:$0xff]  ;;  %v3049_v42 = vmax.f32 %v2985_v23, %v3017_v44  ;;  %2202 = vst.msk [vmem:[#allocation2 + $0x210] sm:$0xff] %vm215_vm1, %v1748_v14  ;;  %v7283_v27 = vld [vmem:[#allocation2 + $0x168] sm:$0xff]  ;;  %v7300_v60 = vmax.f32 %v3732_v56, %v7205_v29  ;;  %v3736_v5 = vmax.f32 %v7039_v46, %v7205_v29  ;;  %v3737_v26 = vmax.f32 %v7047_v51, %v7223_v61 }
 0x12d   : > { %v3082_v8 = vld [vmem:[#allocation3 + $0xd2] sm:$0xff]  ;;  %v1139_v31 = vmax.f32 %v1011_v16, %v1075_v13  ;;  %v3050_v36 = vmax.f32 %v2986_v32, %v3018_v19  ;;  %5665 = vmatprep.mubr.msk.f32.mxu1 %vm215_vm1, %v1747_v59  ;;  %2201 = vst.msk [vmem:[#allocation2 + $0x208] sm:$0xff] %vm215_vm1, %v1747_v59  ;;  %v7314_v56 = vmax.f32 %v3733_v21, %v7223_v61 }
 0x12e   : > { %v2268_v38 = vld [vmem:[#allocation2 + $0x1f8] sm:$0x3]  ;;  %4190 = vst.msk [vmem:[#allocation3 + $0xd8] sm:$0x3] %vm219_vm2, %v4126_v24  ;;  %v7274_v45 = vld [vmem:[#allocation2 + $0xe8] sm:$0xff]  ;;  %v3113_v33 = vmax.f32 %v3049_v42, %v3081_v2  ;;  %v7302_v63 = vld [vmem:[#allocation2 + $0xf0] sm:$0xff]  ;;  %5666 = vmatmul.mubr.msk.f32.gmra.mxu1 %vm215_vm1, %v1748_v14  ;;  %v2746_v41 = vmax.f32 %v2618_v53, %v7283_v27  ;;  %v3743_v18 = vmax.f32 %v3615_v39, %v7055_v3 }
 0x12f   : > { %v1204_v50 = vld [vmem:[#allocation2 + $0x258] sm:$0x3]  ;;  %v4112_v52 = vmax.f32 %v3984_v35, %v7274_v45  ;;  %v3114_v20 = vmax.f32 %v3050_v36, %v3082_v8  ;;  %v7307_v28 = vld [vmem:[#allocation2 + $0x190] sm:$0xff]  ;;  %v4113_v35 = vmax.f32 %v3985_v15, %v7302_v63  ;;  %v3988_v3 = vmax.f32 %v7300_v60, %v7274_v45  ;;  %v7339_v42 = vld [vmem:[#allocation2 + $0x160] sm:$0xff] }
 0x130   : > { %v2332_v22 = vld [vmem:[#allocation2 + $0x218] sm:$0x3]  ;;  %5691 = vmatprep.mubr.msk.f32.mxu0 %vm215_vm1, %v3113_v33  ;;  %3567 = vst.msk [vmem:[#allocation2 + $0x108] sm:$0xff] %vm215_vm1, %v3113_v33  ;;  %v1268_v6 = vmax.f32 %v1139_v31, %v1204_v50  ;;  %v7318_v54 = vld [vmem:[#allocation2 + $0x1b0] sm:$0xff]  ;;  %v2751_v13 = vmax.f32 %v2623_v10, %v7307_v28  ;;  %v2627_v2 = vmax.f32 %v7294_v49, %v7307_v28  ;;  %2810 = vst.msk [vmem:[#allocation3 + $0xe8] sm:$0xff] %vm215_vm1, %v2746_v41 }
 0x131   : > { %v1333_v7 = vld [vmem:[#allocation2 + $0x278] sm:$0x3]  ;;  %v2396_v40 = vmax.f32 %v2268_v38, %v2332_v22  ;;  %4176 = vst.msk [vmem:[#allocation3 + $0x68] sm:$0xff] %vm215_vm1, %v4112_v52  ;;  %5692 = vmatmul.mubr.msk.f32.gmra.mxu0 %vm215_vm1, %v3114_v20  ;;  %3568 = vst.msk [vmem:[#allocation2 + $0x110] sm:$0xff] %vm215_vm1, %v3114_v20  ;;  %v7327_v34 = vld [vmem:[#allocation2 + $0x1f0] sm:$0xff]  ;;  %v2387_v30 = vmax.f32 %v7318_v54, %v7322_v4  ;;  %v3871_v21 = vmax.f32 %v3743_v18, %v7132_v48 }
 0x132   : > { %v2460_v12 = vld [vmem:[#allocation2 + $0x238] sm:$0x3]  ;;  %v1397_v44 = vmax.f32 %v1268_v6, %v1333_v7  ;;  %4177 = vst.msk [vmem:[#allocation3 + $0x70] sm:$0xff] %vm215_vm1, %v4113_v35  ;;  %v1494_v19 = vld [vmem:[#allocation3 + $0x1ee] sm:$0xff]  ;;  %v2375_v32 = vmax.f32 %v7120_v47, %v7203_v37  ;;  %v3740_v8 = vmax.f32 %v7205_v29, %v7274_v45  ;;  %v7346_v38 = vmax.f32 %v3736_v5, %v7274_v45  ;;  %v1493_v15 = vld [vmem:[#allocation3 + $0x1e6] sm:$0xff] }
 0x133   : > { %v2588_v17 = vld [vmem:[#allocation2 + $0x258] sm:$0x3]  ;;  %v2524_v46 = vmax.f32 %v2396_v40, %v2460_v12  ;;  %v1526_v24 = vld [vmem:[#allocation3 + $0x1ef] sm:$0xff]  ;;  %v1525_v59 = vld [vmem:[#allocation3 + $0x1e7] sm:$0xff]  ;;  %v2391_v22 = vmax.f32 %v7322_v4, %v7327_v34  ;;  %2815 = vst.msk [vmem:[#allocation3 + $0x110] sm:$0xff] %vm215_vm1, %v2751_v13  ;;  %v3989_v53 = vmax.f32 %v7314_v56, %v7302_v63  ;;  %v3999_v36 = vmax.f32 %v3871_v21, %v7216_v11 }
 0x134   : > { %v3618_v9 = vld [vmem:[#allocation2 + $0xf8] sm:$0x3]  ;;  %1462 = vst.msk [vmem:[#allocation3 + $0x1f8] sm:$0x3] %vm219_vm2, %v1397_v44  ;;  %v1589_v31 = vld [vmem:[#allocation3 + $0x1e8] sm:$0xff]  ;;  %v1558_v50 = vmax.f32 %v1494_v19, %v1526_v24  ;;  %v1557_v33 = vmax.f32 %v1493_v15, %v1525_v59  ;;  %v7361_v49 = vmax.f32 %v2387_v30, %v7327_v34  ;;  %v2755_v5 = vmax.f32 %v2627_v2, %v7318_v54  ;;  %v7371_v2 = vpop.f32.mrf.mxu0  ;;  %v4324_v19 = vld [vmem:[#allocation3 + $0x10] sm:$0xff] }
 0x135   : > { %v3682_v23 = vld [vmem:[#allocation2 + $0x118] sm:$0x3]  ;;  %v2652_v16 = vmax.f32 %v2524_v46, %v2588_v17  ;;  %v1653_v47 = vld [vmem:[#allocation3 + $0x1e9] sm:$0xff]  ;;  %2841 = vst.msk [vmem:[#allocation3 + $0x1e0] sm:$0xff] %vm215_vm1, %v7265_v25  ;;  %v2622_v41 = vmax.f32 %v7291_v62, %v7283_v27  ;;  %v4127_v30 = vmax.f32 %v3999_v36, %v7339_v42  ;;  %v2374_v21 = vmax.f32 %v7182_v43, %v7283_v27 }
 0x136   : > { %v2716_v0 = vld [vmem:[#allocation2 + $0x278] sm:$0x3]  ;;  %v3746_v55 = vmax.f32 %v3618_v9, %v3682_v23  ;;  %v4227_v52 = vld [vmem:[#allocation3 + $0x6] sm:$0xff]  ;;  %v1622_v56 = vmax.f32 %v1558_v50, %v1590_v58  ;;  %v4228_v44 = vld [vmem:[#allocation3 + $0xe] sm:$0xff]  ;;  %v1621_v9 = vmax.f32 %v1557_v33, %v1589_v31  ;;  %2819 = vst.msk [vmem:[#allocation3 + $0x130] sm:$0xff] %vm215_vm1, %v2755_v5  ;;  %v7377_v58 = vmax.f32 %v3737_v26, %v7302_v63  ;;  %v7390_v36 = vpop.f32.mrf.mxu0 }
 0x137   : > { %v3810_v14 = vld [vmem:[#allocation2 + $0x138] sm:$0x3]  ;;  %v4259_v12 = vld [vmem:[#allocation3 + $0x7] sm:$0xff]  ;;  %v2780_v35 = vmax.f32 %v2652_v16, %v2716_v0  ;;  %v4260_v46 = vld [vmem:[#allocation3 + $0xf] sm:$0xff]  ;;  %v2503_v15 = vmax.f32 %v2375_v32, %v7307_v28 }
 0x138   : > { %v3874_v7 = vmax.f32 %v3746_v55, %v3810_v14  ;;  %v3938_v40 = vld [vmem:[#allocation2 + $0x158] sm:$0x3]  ;;  %v7358_v10 = vld [vmem:[#allocation2 + $0x108] sm:$0xff]  ;;  %v4291_v20 = vmax.f32 %v4227_v52, %v4259_v12  ;;  %v7367_v18 = vld [vmem:[#allocation2 + $0x110] sm:$0xff]  ;;  %v1685_v51 = vmax.f32 %v1621_v9, %v1653_v47  ;;  %v7400_v47 = vmax.f32 %v2370_v57, %v7283_v27 }
 0x139   : > { %v4066_v60 = vld [vmem:[#allocation2 + $0x178] sm:$0x3]  ;;  %v4323_v6 = vld [vmem:[#allocation3 + $0x8] sm:$0xff]  ;;  %v4116_v25 = vmax.f32 %v3988_v3, %v7358_v10  ;;  %v4117_v62 = vmax.f32 %v3989_v53, %v7367_v18  ;;  %v3619_v16 = vld [vmem:[#allocation2 + $0x100] sm:$0xff]  ;;  %v4292_v53 = vmax.f32 %v4228_v44, %v4260_v46  ;;  %v7404_v44 = vpop.f32.mrf.mxu0 }
 0x13a   : > { %v4387_v17 = vld [vmem:[#allocation3 + $0x9] sm:$0xff]  ;;  %v4002_v13 = vmax.f32 %v3874_v7, %v3938_v40  ;;  %v4355_v55 = vmax.f32 %v4291_v20, %v4323_v6  ;;  %v7381_v0 = vld [vmem:[#allocation3 + $0xf1] sm:$0xff]  ;;  %v3747_v32 = vmax.f32 %v3619_v16, %v7132_v48 }
 0x13b   : > { %v1717_v23 = vld [vmem:[#allocation3 + $0x1ea] sm:$0xff]  ;;  %4180 = vst.msk [vmem:[#allocation3 + $0x88] sm:$0xff] %vm215_vm1, %v4116_v25  ;;  %v7383_v3 = vld [vmem:[#allocation3 + $0xf2] sm:$0xff]  ;;  %4181 = vst.msk [vmem:[#allocation3 + $0x90] sm:$0xff] %vm215_vm1, %v4117_v62 }
 0x13c   : > { %v4451_v14 = vld [vmem:[#allocation3 + $0xa] sm:$0xff]  ;;  %v1718_v59 = vld [vmem:[#allocation3 + $0x1f2] sm:$0xff]  ;;  %v4130_v50 = vmax.f32 %v4002_v13, %v4066_v60  ;;  %v4419_v33 = vmax.f32 %v4355_v55, %v4387_v17  ;;  %v1749_v60 = vmax.f32 %v1685_v51, %v1717_v23  ;;  %v4356_v17 = vmax.f32 %v4292_v53, %v4324_v19  ;;  %v7421_v62 = vld [vmem:[#allocation2 + $0x180] sm:$0xff] }
 0x13d   : > { %v7385_v24 = vld [vmem:[#allocation2 + $0x188] sm:$0xff]  ;;  %v1654_v26 = vld [vmem:[#allocation3 + $0x1f1] sm:$0xff]  ;;  %v3875_v9 = vmax.f32 %v3747_v32, %v7216_v11  ;;  %v2631_v23 = vmax.f32 %v2503_v15, %v7318_v54  ;;  %v7423_v15 = vpop.f32.mrf.mxu0  ;;  %v2379_v32 = vmax.f32 %v7203_v37, %v7307_v28 }
 0x13e   : > { %v2859_v31 = vld [vmem:[#allocation3 + $0xe6] sm:$0xff]  ;;  %v1686_v7 = vmax.f32 %v1622_v56, %v1654_v26  ;;  %2844 = vst.msk [vmem:[#allocation3 + $0x1f8] sm:$0x3] %vm219_vm2, %v2780_v35  ;;  %v4388_v12 = vld [vmem:[#allocation3 + $0x11] sm:$0xff]  ;;  %v2750_v20 = vmax.f32 %v2622_v41, %v7385_v24  ;;  %4194 = vst.msk [vmem:[#allocation3 + $0xf8] sm:$0x3] %vm219_vm2, %v4130_v50  ;;  %v4483_v35 = vmax.f32 %v4419_v33, %v4451_v14  ;;  %5668 = vmatprep.mubr.msk.f32.mxu1 %vm215_vm1, %v1749_v60 }
 0x13f   : > { %v2891_v40 = vld [vmem:[#allocation3 + $0xe7] sm:$0xff]  ;;  %v2892_v25 = vld [vmem:[#allocation3 + $0xef] sm:$0xff]  ;;  %2203 = vst.msk [vmem:[#allocation2 + $0x228] sm:$0xff] %vm215_vm1, %v1749_v60  ;;  %v4420_v14 = vmax.f32 %v4356_v17, %v4388_v12  ;;  %v3622_v19 = vld [vmem:[#allocation2 + $0x118] sm:$0x3]  ;;  %v2759_v33 = vmax.f32 %v2631_v23, %v7322_v4  ;;  %v7434_v60 = vpop.f32.mrf.mxu0 }
 0x140   : > { %v2955_v52 = vld [vmem:[#allocation3 + $0xe8] sm:$0xff]  ;;  %v2923_v6 = vmax.f32 %v2859_v31, %v2891_v40  ;;  %4191 = vst.msk [vmem:[#allocation3 + $0xe0] sm:$0xff] %vm215_vm1, %v4127_v30  ;;  %v2956_v56 = vld [vmem:[#allocation3 + $0xf0] sm:$0xff]  ;;  %v1750_v46 = vmax.f32 %v1686_v7, %v1718_v59  ;;  %2814 = vst.msk [vmem:[#allocation3 + $0x108] sm:$0xff] %vm215_vm1, %v2750_v20  ;;  %v4003_v59 = vmax.f32 %v3875_v9, %v7339_v42 }
 0x141   : > { %v2860_v5 = vld [vmem:[#allocation3 + $0xee] sm:$0xff]  ;;  %v3686_v16 = vld [vmem:[#allocation2 + $0x138] sm:$0x3]  ;;  %v4229_v40 = vld [vmem:[#allocation3 + $0x26] sm:$0xff]  ;;  %v2626_v20 = vmax.f32 %v7400_v47, %v7385_v24  ;;  %2823 = vst.msk [vmem:[#allocation3 + $0x150] sm:$0xff] %vm215_vm1, %v2759_v33  ;;  %v7444_v9 = vpop.f32.mrf.mxu0 }
 0x142   : > { %v7406_v48 = vld [vmem:[#allocation2 + $0x210] sm:$0xff]  ;;  %v2924_v1 = vmax.f32 %v2860_v5, %v2892_v25  ;;  %v2987_v55 = vmax.f32 %v2923_v6, %v2955_v52  ;;  %5669 = vmatmul.mubr.msk.f32.gmra.mxu1 %vm215_vm1, %v1750_v46  ;;  %2204 = vst.msk [vmem:[#allocation2 + $0x230] sm:$0xff] %vm215_vm1, %v1750_v46  ;;  %v3750_v31 = vmax.f32 %v3622_v19, %v3686_v16  ;;  %v3814_v50 = vld [vmem:[#allocation2 + $0x158] sm:$0x3]  ;;  %v4261_v52 = vld [vmem:[#allocation3 + $0x27] sm:$0xff] }
 0x143   : > { %v3019_v41 = vld [vmem:[#allocation3 + $0xe9] sm:$0xff]  ;;  %v4452_v57 = vld [vmem:[#allocation3 + $0x12] sm:$0xff]  ;;  %v2395_v30 = vmax.f32 %v7327_v34, %v7406_v48  ;;  %v7419_v13 = vmax.f32 %v2391_v22, %v7406_v48  ;;  %5723 = vmatprep.mubr.msk.f32.mxu1 %vm215_vm1, %v4483_v35  ;;  %v4131_v5 = vmax.f32 %v4003_v59, %v7421_v62  ;;  %v4293_v17 = vmax.f32 %v4229_v40, %v4261_v52  ;;  %v7463_v40 = vpop.f32.mrf.mxu0 }
 0x144   : > { %v3083_v51 = vld [vmem:[#allocation3 + $0xea] sm:$0xff]  ;;  %v2988_v26 = vmax.f32 %v2924_v1, %v2956_v56  ;;  %v3942_v22 = vld [vmem:[#allocation2 + $0x178] sm:$0x3]  ;;  %v3051_v53 = vmax.f32 %v2987_v55, %v3019_v41  ;;  %v4484_v7 = vmax.f32 %v4420_v14, %v4452_v57  ;;  %v3878_v25 = vmax.f32 %v3750_v31, %v3814_v50 }
 0x145   : > { %v4325_v12 = vld [vmem:[#allocation3 + $0x28] sm:$0xff]  ;;  %v4070_v56 = vld [vmem:[#allocation2 + $0x198] sm:$0x3]  ;;  %v3992_v46 = vmax.f32 %v7346_v38, %v7358_v10  ;;  %v2643_v47 = vmax.f32 %v7361_v49, %v7406_v48  ;;  %v4326_v57 = vld [vmem:[#allocation3 + $0x30] sm:$0xff] }
 0x146   : > { %v3052_v6 = vmax.f32 %v2988_v26, %v7381_v0  ;;  %v4230_v35 = vld [vmem:[#allocation3 + $0x2e] sm:$0xff]  ;;  %v3115_v41 = vmax.f32 %v3051_v53, %v3083_v51  ;;  %v2507_v0 = vmax.f32 %v2379_v32, %v7318_v54  ;;  %5724 = vmatmul.mubr.msk.f32.vlgmr.msra.gmra.mxu1 %vm215_vm1, %v4484_v7  ;;  %v4006_v55 = vmax.f32 %v3878_v25, %v3942_v22  ;;  %v3623_v26 = vld [vmem:[#allocation2 + $0x120] sm:$0xff]  ;;  %v3626_v49 = vld [vmem:[#allocation2 + $0x138] sm:$0x3] }
 0x147   : > { %v4389_v37 = vld [vmem:[#allocation3 + $0x29] sm:$0xff]  ;;  %v4357_v14 = vmax.f32 %v4293_v17, %v4325_v12  ;;  %v7456_v50 = vld [vmem:[#allocation3 + $0x111] sm:$0xff]  ;;  %v3751_v53 = vmax.f32 %v3623_v26, %v7216_v11 }
 0x148   : > { %v4262_v1 = vld [vmem:[#allocation3 + $0x2f] sm:$0xff]  ;;  %v3116_v23 = vmax.f32 %v3052_v6, %v7383_v3  ;;  %5694 = vmatprep.mubr.msk.f32.mxu0 %vm215_vm1, %v3115_v41  ;;  %3569 = vst.msk [vmem:[#allocation2 + $0x128] sm:$0xff] %vm215_vm1, %v3115_v41  ;;  %v2861_v59 = vld [vmem:[#allocation3 + $0x106] sm:$0xff]  ;;  %v2635_v7 = vmax.f32 %v2507_v0, %v7322_v4  ;;  %v4134_v32 = vmax.f32 %v4006_v55, %v4070_v56  ;;  %v3690_v39 = vld [vmem:[#allocation2 + $0x158] sm:$0x3] }
 0x149   : > { %v4294_v19 = vmax.f32 %v4230_v35, %v4262_v1  ;;  %v7448_v16 = vld [vmem:[#allocation2 + $0x1a8] sm:$0xff]  ;;  %v7452_v51 = vld [vmem:[#allocation2 + $0x250] sm:$0xff]  ;;  %v4421_v6 = vmax.f32 %v4357_v14, %v4389_v37  ;;  %v3879_v0 = vmax.f32 %v3751_v53, %v7339_v42  ;;  %v7479_v37 = vpop.f32.mrf.mxu0 }
 0x14a   : > { %v2893_v31 = vld [vmem:[#allocation3 + $0x107] sm:$0xff]  ;;  %v7458_v22 = vld [vmem:[#allocation3 + $0x112] sm:$0xff]  ;;  %v2754_v33 = vmax.f32 %v2626_v20, %v7448_v16  ;;  %5695 = vmatmul.mubr.msk.f32.gmra.mxu0 %vm215_vm1, %v3116_v23  ;;  %3570 = vst.msk [vmem:[#allocation2 + $0x130] sm:$0xff] %vm215_vm1, %v3116_v23  ;;  %v7474_v23 = vmax.f32 %v2374_v21, %v7385_v24  ;;  %v2763_v56 = vmax.f32 %v2635_v7, %v7327_v34 }
 0x14b   : > { %v2957_v3 = vld [vmem:[#allocation3 + $0x108] sm:$0xff]  ;;  %v2925_v52 = vmax.f32 %v2861_v59, %v2893_v31  ;;  %4195 = vst.msk [vmem:[#allocation3 + $0x100] sm:$0xff] %vm215_vm1, %v4131_v5  ;;  %v4358_v17 = vmax.f32 %v4294_v19, %v4326_v57  ;;  %v4390_v35 = vld [vmem:[#allocation3 + $0x31] sm:$0xff]  ;;  %v3755_v5 = vmax.f32 %v7216_v11, %v7339_v42  ;;  %v7486_v21 = vld [vmem:[#allocation2 + $0x1a0] sm:$0xff]  ;;  %v4007_v7 = vmax.f32 %v3879_v0, %v7421_v62  ;;  %v7490_v48 = vpop.f32.mrf.mxu0 }
 0x14c   : > { %v3021_v12 = vld [vmem:[#allocation3 + $0x109] sm:$0xff]  ;;  %2818 = vst.msk [vmem:[#allocation3 + $0x128] sm:$0xff] %vm215_vm1, %v2754_v33  ;;  %v4454_v43 = vld [vmem:[#allocation3 + $0x32] sm:$0xff]  ;;  %2827 = vst.msk [vmem:[#allocation3 + $0x170] sm:$0xff] %vm215_vm1, %v2763_v56 }
 0x14d   : > { %v4453_v25 = vld [vmem:[#allocation3 + $0x2a] sm:$0xff]  ;;  %v2989_v19 = vmax.f32 %v2925_v52, %v2957_v3  ;;  %4198 = vst.msk [vmem:[#allocation3 + $0x118] sm:$0x3] %vm219_vm2, %v4134_v32  ;;  %v4422_v53 = vmax.f32 %v4358_v17, %v4390_v35  ;;  %v3754_v3 = vmax.f32 %v3626_v49, %v3690_v39  ;;  %v3818_v52 = vld [vmem:[#allocation2 + $0x178] sm:$0x3] }
 0x14e   : > { %v2459_v20 = vld [vmem:[#allocation2 + $0x230] sm:$0xff]  ;;  %v4485_v33 = vmax.f32 %v4421_v6, %v4453_v25  ;;  %v4135_v25 = vmax.f32 %v4007_v7, %v7486_v21  ;;  %v3946_v17 = vld [vmem:[#allocation2 + $0x198] sm:$0x3]  ;;  %v4231_v35 = vld [vmem:[#allocation3 + $0x46] sm:$0xff] }
 0x14f   : > { %v2715_v41 = vld [vmem:[#allocation2 + $0x270] sm:$0xff]  ;;  %v2523_v57 = vmax.f32 %v2395_v30, %v2459_v20  ;;  %v2647_v55 = vmax.f32 %v7419_v13, %v2459_v20  ;;  %v2771_v14 = vmax.f32 %v2643_v47, %v2459_v20  ;;  %v3053_v47 = vmax.f32 %v2989_v19, %v3021_v12  ;;  %v4263_v20 = vld [vmem:[#allocation3 + $0x47] sm:$0xff]  ;;  %v4074_v0 = vld [vmem:[#allocation2 + $0x1b8] sm:$0x3] }
 0x150   : > { %v2862_v1 = vld [vmem:[#allocation3 + $0x10e] sm:$0xff]  ;;  %5726 = vmatprep.mubr.msk.f32.mxu1 %vm215_vm1, %v4485_v33  ;;  %v4486_v6 = vmax.f32 %v4422_v53, %v4454_v43  ;;  %v3882_v49 = vmax.f32 %v3754_v3, %v3818_v52  ;;  %v4295_v56 = vmax.f32 %v4231_v35, %v4263_v20  ;;  %v2630_v53 = vmax.f32 %v7474_v23, %v7448_v16 }
 0x151   : > { %v2894_v26 = vld [vmem:[#allocation3 + $0x10f] sm:$0xff]  ;;  %v2651_v30 = vmax.f32 %v2523_v57, %v7452_v51  ;;  %v2775_v13 = vmax.f32 %v2647_v55, %v7452_v51  ;;  %2835 = vst.msk [vmem:[#allocation3 + $0x1b0] sm:$0xff] %vm215_vm1, %v2771_v14  ;;  %v3744_v55 = vmax.f32 %v7274_v45, %v7358_v10 }
 0x152   : > { %v2958_v59 = vld [vmem:[#allocation3 + $0x110] sm:$0xff]  ;;  %v2926_v11 = vmax.f32 %v2862_v1, %v2894_v26  ;;  %v2378_v1 = vmax.f32 %v7283_v27, %v7385_v24  ;;  %v7499_v26 = vpop.f32.mrf.mxu0  ;;  %v7502_v12 = vld [vmem:[#allocation2 + $0x128] sm:$0xff]  ;;  %v7510_v27 = vmax.f32 %v3740_v8, %v7358_v10  ;;  %5727 = vmatmul.mubr.msk.f32.gmra.mxu1 %vm215_vm1, %v4486_v6  ;;  %v8406_v8 = vmax.f32 %v7377_v58, %v7367_v18 }
 0x153   : > { %v3085_v31 = vld [vmem:[#allocation3 + $0x10a] sm:$0xff]  ;;  %v2779_v51 = vmax.f32 %v2651_v30, %v2715_v41  ;;  %2839 = vst.msk [vmem:[#allocation3 + $0x1d0] sm:$0xff] %vm215_vm1, %v2775_v13  ;;  %v4120_v41 = vmax.f32 %v3992_v46, %v7502_v12 }
 0x154   : > { %v2990_v32 = vmax.f32 %v2926_v11, %v2958_v59  ;;  %v3117_v39 = vmax.f32 %v3053_v47, %v3085_v31  ;;  %v4327_v57 = vld [vmem:[#allocation3 + $0x48] sm:$0xff]  ;;  %v7516_v14 = vld [vmem:[#allocation2 + $0x130] sm:$0xff]  ;;  %v7519_v43 = vpop.f32.mrf.mxu0  ;;  %v8405_v31 = vmax.f32 %v7223_v61, %v7302_v63  ;;  %v7537_v61 = vmax.f32 %v3755_v5, %v7421_v62 }
 0x155   : > { %v4232_v19 = vld [vmem:[#allocation3 + $0x4e] sm:$0xff]  ;;  %2843 = vst.msk [vmem:[#allocation3 + $0x1f0] sm:$0xff] %vm215_vm1, %v2779_v51  ;;  %v4121_v38 = vmax.f32 %v8406_v8, %v7516_v14  ;;  %v2863_v46 = vld [vmem:[#allocation3 + $0x126] sm:$0xff]  ;;  %4184 = vst.msk [vmem:[#allocation3 + $0xa8] sm:$0xff] %vm215_vm1, %v4120_v41  ;;  %v4010_v47 = vmax.f32 %v3882_v49, %v3946_v17  ;;  %v4359_v3 = vmax.f32 %v4295_v56, %v4327_v57 }
 0x156   : > { %v4264_v59 = vld [vmem:[#allocation3 + $0x4f] sm:$0xff]  ;;  %v7525_v29 = vmax.f32 %v8405_v31, %v7367_v18  ;;  %5697 = vmatprep.mubr.msk.f32.mxu0 %vm215_vm1, %v3117_v39  ;;  %3571 = vst.msk [vmem:[#allocation2 + $0x148] sm:$0xff] %vm215_vm1, %v3117_v39  ;;  %v2895_v11 = vld [vmem:[#allocation3 + $0x127] sm:$0xff]  ;;  %v3054_v7 = vmax.f32 %v2990_v32, %v7456_v50  ;;  %v7544_v5 = vmax.f32 %v2378_v1, %v7448_v16 }
 0x157   : > { %v2959_v33 = vld [vmem:[#allocation3 + $0x128] sm:$0xff]  ;;  %v2927_v30 = vmax.f32 %v2863_v46, %v2895_v11  ;;  %4199 = vst.msk [vmem:[#allocation3 + $0x120] sm:$0xff] %vm215_vm1, %v4135_v25  ;;  %v2960_v13 = vld [vmem:[#allocation3 + $0x130] sm:$0xff]  ;;  %4185 = vst.msk [vmem:[#allocation3 + $0xb0] sm:$0xff] %vm215_vm1, %v4121_v38  ;;  %v4296_v23 = vmax.f32 %v4232_v19, %v4264_v59  ;;  %v3759_v50 = vmax.f32 %v7339_v42, %v7421_v62  ;;  %v7550_v25 = vpop.f32.mrf.mxu0 }
 0x158   : > { %v2864_v58 = vld [vmem:[#allocation3 + $0x12e] sm:$0xff]  ;;  %v2383_v32 = vmax.f32 %v7307_v28, %v7318_v54  ;;  %v3118_v17 = vmax.f32 %v3054_v7, %v7458_v22  ;;  %v4138_v49 = vmax.f32 %v4010_v47, %v4074_v0  ;;  %v3996_v1 = vmax.f32 %v7510_v27, %v7502_v12  ;;  %v3630_v38 = vld [vmem:[#allocation2 + $0x158] sm:$0x3] }
 0x159   : > { %v4391_v52 = vld [vmem:[#allocation3 + $0x49] sm:$0xff]  ;;  %v2991_v51 = vmax.f32 %v2927_v30, %v2959_v33  ;;  %v4392_v57 = vld [vmem:[#allocation3 + $0x51] sm:$0xff]  ;;  %v3745_v54 = vmax.f32 %v7302_v63, %v7367_v18  ;;  %v4011_v27 = vmax.f32 %v7537_v61, %v7486_v21  ;;  %v7567_v47 = vpop.f32.mrf.mxu0 }
 0x15a   : > { %v3023_v6 = vld [vmem:[#allocation3 + $0x129] sm:$0xff]  ;;  %v3024_v59 = vld [vmem:[#allocation3 + $0x131] sm:$0xff]  ;;  %v4423_v31 = vmax.f32 %v4359_v3, %v4391_v52  ;;  %5698 = vmatmul.mubr.msk.f32.gmra.mxu0 %vm215_vm1, %v3118_v17  ;;  %3572 = vst.msk [vmem:[#allocation2 + $0x150] sm:$0xff] %vm215_vm1, %v3118_v17 }
 0x15b   : > { %v2896_v35 = vld [vmem:[#allocation3 + $0x12f] sm:$0xff]  ;;  %v3055_v22 = vmax.f32 %v2991_v51, %v3023_v6  ;;  %v3694_v46 = vld [vmem:[#allocation2 + $0x178] sm:$0x3]  ;;  %v4233_v30 = vld [vmem:[#allocation3 + $0x66] sm:$0xff] }
 0x15c   : > { %v4328_v20 = vld [vmem:[#allocation3 + $0x50] sm:$0xff]  ;;  %v2928_v39 = vmax.f32 %v2864_v58, %v2896_v35  ;;  %v7553_v41 = vld [vmem:[#allocation2 + $0x1c8] sm:$0xff]  ;;  %v3822_v63 = vld [vmem:[#allocation2 + $0x198] sm:$0x3]  ;;  %v2511_v58 = vmax.f32 %v2383_v32, %v7322_v4  ;;  %v2382_v35 = vmax.f32 %v7385_v24, %v7448_v16  ;;  %v7581_v4 = vmax.f32 %v3744_v55, %v7502_v12 }
 0x15d   : > { %v4455_v56 = vld [vmem:[#allocation3 + $0x4a] sm:$0xff]  ;;  %v3088_v42 = vld [vmem:[#allocation3 + $0x132] sm:$0xff]  ;;  %v4360_v8 = vmax.f32 %v4296_v23, %v4328_v20  ;;  %v2758_v28 = vmax.f32 %v2630_v53, %v7553_v41  ;;  %v3758_v53 = vmax.f32 %v3630_v38, %v3694_v46  ;;  %v7571_v6 = vld [vmem:[#allocation2 + $0x1c0] sm:$0xff]  ;;  %v2634_v23 = vmax.f32 %v7544_v5, %v7553_v41 }
 0x15e   : > { %v3087_v19 = vld [vmem:[#allocation3 + $0x12a] sm:$0xff]  ;;  %v2992_v0 = vmax.f32 %v2928_v39, %v2960_v13  ;;  %4202 = vst.msk [vmem:[#allocation3 + $0x138] sm:$0x3] %vm219_vm2, %v4138_v49  ;;  %v4487_v11 = vmax.f32 %v4423_v31, %v4455_v56  ;;  %v4456_v7 = vld [vmem:[#allocation3 + $0x52] sm:$0xff]  ;;  %v3997_v20 = vmax.f32 %v7525_v29, %v7516_v14  ;;  %v7588_v49 = vmax.f32 %v3759_v50, %v7486_v21 }
 0x15f   : > { %v4424_v33 = vmax.f32 %v4360_v8, %v4392_v57  ;;  %2822 = vst.msk [vmem:[#allocation3 + $0x148] sm:$0xff] %vm215_vm1, %v2758_v28  ;;  %v7569_v13 = vld [vmem:[#allocation2 + $0x148] sm:$0xff]  ;;  %v3119_v3 = vmax.f32 %v3055_v22, %v3087_v19  ;;  %v3950_v17 = vld [vmem:[#allocation2 + $0x1b8] sm:$0x3]  ;;  %v3886_v5 = vmax.f32 %v3758_v53, %v3822_v63  ;;  %v4330_v29 = vld [vmem:[#allocation3 + $0x70] sm:$0xff]  ;;  %v4139_v19 = vmax.f32 %v4011_v27, %v7571_v6  ;;  %v7600_v28 = vpop.f32.mrf.mxu0 }
 0x160   : > { %v3056_v52 = vmax.f32 %v2992_v0, %v3024_v59  ;;  %v4265_v61 = vld [vmem:[#allocation3 + $0x67] sm:$0xff]  ;;  %v4124_v32 = vmax.f32 %v3996_v1, %v7569_v13  ;;  %5729 = vmatprep.mubr.msk.f32.mxu1 %vm215_vm1, %v4487_v11  ;;  %v4266_v57 = vld [vmem:[#allocation3 + $0x6f] sm:$0xff]  ;;  %v7593_v1 = vmax.f32 %v3745_v54, %v7516_v14  ;;  %v4078_v59 = vld [vmem:[#allocation2 + $0x1d8] sm:$0x3]  ;;  %v2639_v8 = vmax.f32 %v2511_v58, %v7327_v34 }
 0x161   : > { %v4329_v51 = vld [vmem:[#allocation3 + $0x68] sm:$0xff]  ;;  %5700 = vmatprep.mubr.msk.f32.mxu0 %vm215_vm1, %v3119_v3  ;;  %3573 = vst.msk [vmem:[#allocation2 + $0x168] sm:$0xff] %vm215_vm1, %v3119_v3  ;;  %v4488_v55 = vmax.f32 %v4424_v33, %v4456_v7  ;;  %v4297_v56 = vmax.f32 %v4233_v30, %v4265_v61  ;;  %v4394_v0 = vld [vmem:[#allocation3 + $0x71] sm:$0xff]  ;;  %v3748_v46 = vmax.f32 %v7358_v10, %v7502_v12 }
 0x162   : > { %v4234_v39 = vld [vmem:[#allocation3 + $0x6e] sm:$0xff]  ;;  %v3120_v45 = vmax.f32 %v3056_v52, %v3088_v42  ;;  %4188 = vst.msk [vmem:[#allocation3 + $0xc8] sm:$0xff] %vm215_vm1, %v4124_v32  ;;  %v4014_v42 = vmax.f32 %v3886_v5, %v3950_v17  ;;  %v3749_v34 = vmax.f32 %v7367_v18, %v7516_v14  ;;  %v4000_v30 = vmax.f32 %v7581_v4, %v7569_v13  ;;  %v7625_v5 = vld [vmem:[#allocation2 + $0x1e0] sm:$0xff] }
 0x163   : > { %v4298_v50 = vmax.f32 %v4234_v39, %v4266_v57  ;;  %v7597_v31 = vld [vmem:[#allocation2 + $0x1e8] sm:$0xff]  ;;  %5730 = vmatmul.mubr.msk.f32.gmra.mxu1 %vm215_vm1, %v4488_v55  ;;  %v4361_v54 = vmax.f32 %v4297_v56, %v4329_v51  ;;  %v2703_v38 = vld [vmem:[#allocation2 + $0x210] sm:$0xff]  ;;  %v4015_v17 = vmax.f32 %v7588_v49, %v7571_v6  ;;  %v3763_v51 = vmax.f32 %v7421_v62, %v7486_v21  ;;  %v3634_v56 = vld [vmem:[#allocation2 + $0x178] sm:$0x3]  ;;  %v7628_v57 = vpop.f32.mrf.mxu0 }
 0x164   : > { %5701 = vmatmul.mubr.msk.f32.gmra.mxu0 %vm215_vm1, %v3120_v45  ;;  %3574 = vst.msk [vmem:[#allocation2 + $0x170] sm:$0xff] %vm215_vm1, %v3120_v45  ;;  %v4393_v22 = vld [vmem:[#allocation3 + $0x69] sm:$0xff]  ;;  %v2762_v27 = vmax.f32 %v2634_v23, %v7597_v31  ;;  %v4458_v53 = vld [vmem:[#allocation3 + $0x72] sm:$0xff]  ;;  %v2767_v63 = vmax.f32 %v2639_v8, %v2703_v38  ;;  %v3752_v49 = vmax.f32 %v7502_v12, %v7569_v13  ;;  %v5824_v18 = vmov 0.0  }
 0x165   : > { %v7610_v11 = vld [vmem:[#allocation2 + $0x150] sm:$0xff]  ;;  %v4362_v7 = vmax.f32 %v4298_v50, %v4330_v29  ;;  %v4425_v45 = vmax.f32 %v4361_v54, %v4393_v22  ;;  %v2386_v8 = vmax.f32 %v7448_v16, %v7553_v41  ;;  %v4235_v24 = vld [vmem:[#allocation3 + $0x86] sm:$0xff]  ;;  %299 = vst.msk [vmem:[#allocation4 + $0x8] sm:$0xff] %vm297_vm3, %v5824_v18  ;;  %298 = vst.msk [vmem:[#allocation4] sm:$0xff] %vm297_vm3, %v5824_v18 }
 0x166   : > { %v4457_v33 = vld [vmem:[#allocation3 + $0x6a] sm:$0xff]  ;;  %v4125_v58 = vmax.f32 %v3997_v20, %v7610_v11  ;;  %v7617_v10 = vld [vmem:[#allocation3 + $0x152] sm:$0xff]  ;;  %2826 = vst.msk [vmem:[#allocation3 + $0x168] sm:$0xff] %vm215_vm1, %v2762_v27  ;;  %v4142_v20 = vmax.f32 %v4014_v42, %v4078_v59  ;;  %2831 = vst.msk [vmem:[#allocation3 + $0x190] sm:$0xff] %vm215_vm1, %v2767_v63  ;;  %v4001_v29 = vmax.f32 %v7593_v1, %v7610_v11 }
 0x167   : > { %v2865_v3 = vld [vmem:[#allocation3 + $0x146] sm:$0xff]  ;;  %v2962_v23 = vld [vmem:[#allocation3 + $0x150] sm:$0xff]  ;;  %v4426_v55 = vmax.f32 %v4362_v7, %v4394_v0  ;;  %v3698_v59 = vld [vmem:[#allocation2 + $0x198] sm:$0x3]  ;;  %v7641_v42 = vmax.f32 %v2382_v35, %v7553_v41  ;;  %v4489_v1 = vmax.f32 %v4425_v45, %v4457_v33  ;;  %v7647_v63 = vmax.f32 %v3748_v46, %v7569_v13  ;;  %300 = vst.msk [vmem:[#allocation4 + $0x10] sm:$0xff] %vm297_vm3, %v5824_v18 }
 0x168   : > { %v2897_v52 = vld [vmem:[#allocation3 + $0x147] sm:$0xff]  ;;  %v7615_v32 = vld [vmem:[#allocation3 + $0x151] sm:$0xff]  ;;  %4189 = vst.msk [vmem:[#allocation3 + $0xd0] sm:$0xff] %vm215_vm1, %v4125_v58  ;;  %v3762_v33 = vmax.f32 %v3634_v56, %v3698_v59  ;;  %v7672_v56 = vmax.f32 %v2386_v8, %v7597_v31 }
 0x169   : > { %v2961_v61 = vld [vmem:[#allocation3 + $0x148] sm:$0xff]  ;;  %v2929_v39 = vmax.f32 %v2865_v3, %v2897_v52  ;;  %4203 = vst.msk [vmem:[#allocation3 + $0x140] sm:$0xff] %vm215_vm1, %v4139_v19  ;;  %v4490_v38 = vmax.f32 %v4426_v55, %v4458_v53  ;;  %v3826_v7 = vld [vmem:[#allocation2 + $0x1b8] sm:$0x3]  ;;  %v4143_v3 = vmax.f32 %v4015_v17, %v7625_v5  ;;  %v3767_v52 = vmax.f32 %v7486_v21, %v7571_v6 }
 0x16a   : > { %v2866_v4 = vld [vmem:[#allocation3 + $0x14e] sm:$0xff]  ;;  %4206 = vst.msk [vmem:[#allocation3 + $0x158] sm:$0x3] %vm219_vm2, %v4142_v20  ;;  %5732 = vmatprep.mubr.msk.f32.mxu1 %vm215_vm1, %v4489_v1  ;;  %v7656_v53 = vld [vmem:[#allocation2 + $0x1d8] sm:$0x3]  ;;  %v3753_v21 = vmax.f32 %v7516_v14, %v7610_v11 }
 0x16b   : > { %v3025_v19 = vld [vmem:[#allocation3 + $0x149] sm:$0xff]  ;;  %v2993_v22 = vmax.f32 %v2929_v39, %v2961_v61  ;;  %5733 = vmatmul.mubr.msk.f32.gmra.mxu1 %vm215_vm1, %v4490_v38  ;;  %v7679_v38 = vmax.f32 %v3762_v33, %v3826_v7  ;;  %v7693_v7 = vmax.f32 %v3763_v51, %v7571_v6  ;;  %v7710_v33 = vld [vmem:[#allocation3 + $0x91] sm:$0xff]  ;;  %301 = vst.msk [vmem:[#allocation4 + $0x18] sm:$0xff] %vm297_vm3, %v5824_v18  ;;  %302 = vst.msk [vmem:[#allocation4 + $0x20] sm:$0xff] %vm297_vm3, %v5824_v18 }
 0x16c   : > { %v2898_v50 = vld [vmem:[#allocation3 + $0x14f] sm:$0xff]  ;;  %v4267_v16 = vld [vmem:[#allocation3 + $0x87] sm:$0xff]  ;;  %303 = vst.msk [vmem:[#allocation4 + $0x28] sm:$0xff] %vm297_vm3, %v5824_v18  ;;  %304 = vst.msk [vmem:[#allocation4 + $0x30] sm:$0xff] %vm297_vm3, %v5824_v18 }
 0x16d   : > { %v7643_v54 = vld [vmem:[#allocation2 + $0x168] sm:$0xff]  ;;  %v2930_v27 = vmax.f32 %v2866_v4, %v2898_v50  ;;  %v7653_v61 = vld [vmem:[#allocation2 + $0x170] sm:$0xff]  ;;  %v3057_v39 = vmax.f32 %v2993_v22, %v3025_v19  ;;  %v4299_v46 = vmax.f32 %v4235_v24, %v4267_v16  ;;  %v2638_v19 = vmax.f32 %v7641_v42, %v7597_v31  ;;  %v4082_v16 = vld [vmem:[#allocation2 + $0x1f8] sm:$0x3]  ;;  %305 = vst.msk [vmem:[#allocation4 + $0x38] sm:$0xff] %vm297_vm3, %v5824_v18 }
 0x16e   : > { %v3089_v0 = vld [vmem:[#allocation3 + $0x14a] sm:$0xff]  ;;  %v4128_v58 = vmax.f32 %v4000_v30, %v7643_v54  ;;  %v7660_v30 = vpop.f32.mrf.mxu0  ;;  %v4129_v17 = vmax.f32 %v4001_v29, %v7653_v61  ;;  %v4018_v62 = vmax.f32 %v7679_v38, %v7656_v53  ;;  %306 = vst.msk [vmem:[#allocation4 + $0x40] sm:$0xff] %vm297_vm3, %v5824_v18  ;;  %307 = vst.msk [vmem:[#allocation4 + $0x48] sm:$0xff] %vm297_vm3, %v5824_v18  ;;  %v3638_v38 = vld [vmem:[#allocation2 + $0x198] sm:$0x3] }
 0x16f   : > { %v4331_v35 = vld [vmem:[#allocation3 + $0x88] sm:$0xff]  ;;  %v2994_v4 = vmax.f32 %v2930_v27, %v2962_v23  ;;  %v7669_v23 = vld [vmem:[#allocation3 + $0x90] sm:$0xff]  ;;  %v3121_v50 = vmax.f32 %v3057_v39, %v3089_v0  ;;  %308 = vst.msk [vmem:[#allocation4 + $0x50] sm:$0xff] %vm297_vm3, %v5824_v18  ;;  %309 = vst.msk [vmem:[#allocation4 + $0x58] sm:$0xff] %vm297_vm3, %v5824_v18  ;;  %v4019_v14 = vmax.f32 %v7693_v7, %v7625_v5 }
 0x170   : > { %v7658_v20 = vld [vmem:[#allocation3 + $0x89] sm:$0xff]  ;;  %4192 = vst.msk [vmem:[#allocation3 + $0xe8] sm:$0xff] %vm215_vm1, %v4128_v58  ;;  %v7681_v58 = vmax.f32 %v4299_v46, %v4331_v35  ;;  %4193 = vst.msk [vmem:[#allocation3 + $0xf0] sm:$0xff] %vm215_vm1, %v4129_v17  ;;  %v7699_v35 = vmax.f32 %v3749_v34, %v7610_v11  ;;  %v7744_v34 = vpop.f32.mrf.mxu0  ;;  %v7786_v7 = vmax.f32 %v3752_v49, %v7643_v54  ;;  %v4086_v49 = vld [vmem:[#allocation2 + $0x218] sm:$0x3] }
 0x171   : > { %v7665_v45 = vld [vmem:[#allocation3 + $0x8e] sm:$0xff]  ;;  %v3058_v59 = vmax.f32 %v2994_v4, %v7615_v32  ;;  %v2867_v22 = vld [vmem:[#allocation3 + $0x166] sm:$0xff]  ;;  %5703 = vmatprep.mubr.msk.f32.mxu0 %vm215_vm1, %v3121_v50  ;;  %3575 = vst.msk [vmem:[#allocation2 + $0x188] sm:$0xff] %vm215_vm1, %v3121_v50 }
 0x172   : > { %v7667_v55 = vld [vmem:[#allocation3 + $0x8f] sm:$0xff]  ;;  %v2899_v29 = vld [vmem:[#allocation3 + $0x167] sm:$0xff]  ;;  %v4427_v51 = vmax.f32 %v7681_v58, %v7658_v20  ;;  %310 = vst.msk [vmem:[#allocation4 + $0x60] sm:$0xff] %vm297_vm3, %v5824_v18  ;;  %311 = vst.msk [vmem:[#allocation4 + $0x68] sm:$0xff] %vm297_vm3, %v5824_v18 }
 0x173   : > { %v2963_v27 = vld [vmem:[#allocation3 + $0x168] sm:$0xff]  ;;  %v7677_v1 = vld [vmem:[#allocation3 + $0x170] sm:$0xff]  ;;  %v2931_v8 = vmax.f32 %v2867_v22, %v2899_v29  ;;  %4207 = vst.msk [vmem:[#allocation3 + $0x160] sm:$0xff] %vm215_vm1, %v4143_v3  ;;  %v4300_v32 = vmax.f32 %v7665_v45, %v7667_v55  ;;  %v3122_v3 = vmax.f32 %v3058_v59, %v7617_v10  ;;  %v7754_v55 = vmax.f32 %v3767_v52, %v7625_v5 }
 0x174   : > { %v7685_v24 = vld [vmem:[#allocation3 + $0x16e] sm:$0xff]  ;;  %312 = vst.msk [vmem:[#allocation4 + $0x70] sm:$0xff] %vm297_vm3, %v5824_v18  ;;  %313 = vst.msk [vmem:[#allocation4 + $0x78] sm:$0xff] %vm297_vm3, %v5824_v18  ;;  %v4146_v59 = vmax.f32 %v4018_v62, %v4082_v16  ;;  %v3702_v16 = vld [vmem:[#allocation2 + $0x1b8] sm:$0x3] }
 0x175   : > { %v4459_v0 = vld [vmem:[#allocation3 + $0x8a] sm:$0xff]  ;;  %314 = vst.msk [vmem:[#allocation4 + $0x80] sm:$0xff] %vm297_vm3, %v5824_v18  ;;  %315 = vst.msk [vmem:[#allocation4 + $0x88] sm:$0xff] %vm297_vm3, %v5824_v18  ;;  %v2995_v53 = vmax.f32 %v2931_v8, %v2963_v27  ;;  %v4364_v17 = vmax.f32 %v4300_v32, %v7669_v23  ;;  %5704 = vmatmul.mubr.msk.f32.gmra.mxu0 %vm215_vm1, %v3122_v3  ;;  %v4460_v29 = vld [vmem:[#allocation3 + $0x92] sm:$0xff] }
 0x176   : > { %v7704_v39 = vld [vmem:[#allocation3 + $0x169] sm:$0xff]  ;;  %316 = vst.msk [vmem:[#allocation4 + $0x90] sm:$0xff] %vm297_vm3, %v5824_v18  ;;  %317 = vst.msk [vmem:[#allocation4 + $0x98] sm:$0xff] %vm297_vm3, %v5824_v18  ;;  %v3028_v20 = vld [vmem:[#allocation3 + $0x171] sm:$0xff]  ;;  %v4491_v22 = vmax.f32 %v4427_v51, %v4459_v0 }
 0x177   : > { %v2900_v4 = vld [vmem:[#allocation3 + $0x16f] sm:$0xff]  ;;  %318 = vst.msk [vmem:[#allocation4 + $0xa0] sm:$0xff] %vm297_vm3, %v5824_v18  ;;  %319 = vst.msk [vmem:[#allocation4 + $0xa8] sm:$0xff] %vm297_vm3, %v5824_v18  ;;  %v3059_v52 = vmax.f32 %v2995_v53, %v7704_v39  ;;  %v3830_v0 = vld [vmem:[#allocation2 + $0x1d8] sm:$0x3]  ;;  %v7778_v39 = vpop.f32.mrf.mxu1 }
 0x178   : > { %320 = vst.msk [vmem:[#allocation4 + $0xb0] sm:$0xff] %vm297_vm3, %v5824_v18  ;;  %321 = vst.msk [vmem:[#allocation4 + $0xb8] sm:$0xff] %vm297_vm3, %v5824_v18  ;;  %v2706_v10 = vld [vmem:[#allocation2 + $0x228] sm:$0xff]  ;;  %v2932_v46 = vmax.f32 %v7685_v24, %v2900_v4  ;;  %v3092_v8 = vld [vmem:[#allocation3 + $0x172] sm:$0xff]  ;;  %v4428_v24 = vmax.f32 %v4364_v17, %v7710_v33  ;;  %5735 = vmatprep.mubr.msk.f32.mxu1 %vm215_vm1, %v4491_v22  ;;  %v7780_v4 = vpop.f32.mrf.mxu0 }
 0x179   : > { %322 = vst.msk [vmem:[#allocation4 + $0xc0] sm:$0xff] %vm297_vm3, %v5824_v18  ;;  %323 = vst.msk [vmem:[#allocation4 + $0xc8] sm:$0xff] %vm297_vm3, %v5824_v18  ;;  %v7748_v45 = vld [vmem:[#allocation2 + $0x208] sm:$0xff]  ;;  %v3958_v33 = vld [vmem:[#allocation2 + $0x1f8] sm:$0x3] }
 0x17a   : > { %324 = vst.msk [vmem:[#allocation4 + $0xd0] sm:$0xff] %vm297_vm3, %v5824_v18  ;;  %325 = vst.msk [vmem:[#allocation4 + $0xd8] sm:$0xff] %vm297_vm3, %v5824_v18  ;;  %v3091_v50 = vld [vmem:[#allocation3 + $0x16a] sm:$0xff]  ;;  %v2642_v27 = vmax.f32 %v7672_v56, %v7748_v45  ;;  %v2766_v23 = vmax.f32 %v2638_v19, %v7748_v45  ;;  %v2996_v58 = vmax.f32 %v2932_v46, %v7677_v1  ;;  %v7776_v19 = vld [vmem:[#allocation2 + $0x200] sm:$0xff] }
 0x17b   : > { %326 = vst.msk [vmem:[#allocation4 + $0xe0] sm:$0xff] %vm297_vm3, %v5824_v18  ;;  %327 = vst.msk [vmem:[#allocation4 + $0xe8] sm:$0xff] %vm297_vm3, %v5824_v18  ;;  %v4004_v56 = vmax.f32 %v7647_v63, %v7643_v54  ;;  %v3766_v1 = vmax.f32 %v3638_v38, %v3702_v16  ;;  %v4237_v32 = vld [vmem:[#allocation3 + $0xa6] sm:$0xff]  ;;  %v3123_v63 = vmax.f32 %v3059_v52, %v3091_v50  ;;  %v4270_v50 = vld [vmem:[#allocation3 + $0xaf] sm:$0xff]  ;;  %v7804_v16 = vpop.f32.mrf.mxu0 }
 0x17c   : > { %328 = vst.msk [vmem:[#allocation4 + $0xf0] sm:$0xff] %vm297_vm3, %v5824_v18  ;;  %329 = vst.msk [vmem:[#allocation4 + $0xf8] sm:$0xff] %vm297_vm3, %v5824_v18  ;;  %v2770_v42 = vmax.f32 %v2642_v27, %v2706_v10  ;;  %v3060_v62 = vmax.f32 %v2996_v58, %v3028_v20  ;;  %v4492_v51 = vmax.f32 %v4428_v24, %v4460_v29  ;;  %v4333_v10 = vld [vmem:[#allocation3 + $0xa8] sm:$0xff]  ;;  %v4334_v20 = vld [vmem:[#allocation3 + $0xb0] sm:$0xff] }
 0x17d   : > { %3576 = vst.msk [vmem:[#allocation2 + $0x190] sm:$0xff] %vm215_vm1, %v3122_v3  ;;  %2830 = vst.msk [vmem:[#allocation3 + $0x188] sm:$0xff] %vm215_vm1, %v2766_v23  ;;  %v4269_v3 = vld [vmem:[#allocation3 + $0xa7] sm:$0xff]  ;;  %v4005_v46 = vmax.f32 %v7699_v35, %v7653_v61  ;;  %v3894_v17 = vmax.f32 %v3766_v1, %v3830_v0  ;;  %v4023_v22 = vmax.f32 %v7754_v55, %v7776_v19  ;;  %5706 = vmatprep.mubr.msk.f32.mxu0 %vm215_vm1, %v3123_v63  ;;  %v4398_v58 = vld [vmem:[#allocation3 + $0xb1] sm:$0xff]  ;;  %v7802_v55 = vpop.f32.mrf.mxu1 }
 0x17e   : > { %4210 = vst.msk [vmem:[#allocation3 + $0x178] sm:$0x3] %vm219_vm2, %v4146_v59  ;;  %8407 = vst [vmem:[#allocation5_spill] sm:$0xff] %v7778_v39  ;;  %v4301_v18 = vmax.f32 %v4237_v32, %v4269_v3  ;;  %v4397_v53 = vld [vmem:[#allocation3 + $0xa9] sm:$0xff]  ;;  %v3124_v12 = vmax.f32 %v3060_v62, %v3092_v8  ;;  %5736 = vmatmul.mubr.msk.f32.gmra.mxu1 %vm215_vm1, %v4492_v51  ;;  %v4147_v38 = vmax.f32 %v4019_v14, %v7776_v19  ;;  %v7800_v24 = vld [vmem:[#allocation2 + $0x220] sm:$0xff]  ;;  %v7828_v39 = vpop.f32.mrf.mxu0 }
 0x17f   : > { %2834 = vst.msk [vmem:[#allocation3 + $0x1a8] sm:$0xff] %vm215_vm1, %v2770_v42  ;;  %v4238_v59 = vld [vmem:[#allocation3 + $0xae] sm:$0xff]  ;;  %3577 = vst.msk [vmem:[#allocation2 + $0x1a8] sm:$0xff] %vm215_vm1, %v3123_v63  ;;  %v7807_v0 = vmax.f32 %v3753_v21, %v7653_v61  ;;  %v3642_v1 = vld [vmem:[#allocation2 + $0x1b8] sm:$0x3]  ;;  %v4151_v51 = vmax.f32 %v4023_v22, %v7800_v24 }
 0x180   : > { %v7793_v29 = vld [vmem:[#allocation2 + $0x188] sm:$0xff]  ;;  %v4365_v35 = vmax.f32 %v4301_v18, %v4333_v10  ;;  %v4302_v27 = vmax.f32 %v4238_v59, %v4270_v50  ;;  %8408 = vst [vmem:[#allocation6_spill] sm:$0xff] %v7802_v55  ;;  %8409 = vst [vmem:[#allocation7_spill] sm:$0xff] %v7804_v16  ;;  %5707 = vmatmul.mubr.msk.f32.gmra.mxu0 %vm215_vm1, %v3124_v12  ;;  %v7817_v63 = vld [vmem:[#allocation3 + $0x191] sm:$0xff]  ;;  %v7826_v55 = vpop.f32.mrf.mxu1 }
 0x181   : > { %v4132_v23 = vmax.f32 %v4004_v56, %v7793_v29  ;;  %v4461_v52 = vld [vmem:[#allocation3 + $0xaa] sm:$0xff]  ;;  %3578 = vst.msk [vmem:[#allocation2 + $0x1b0] sm:$0xff] %vm215_vm1, %v3124_v12  ;;  %v4022_v56 = vmax.f32 %v3894_v17, %v3958_v33  ;;  %v4008_v32 = vmax.f32 %v7786_v7, %v7793_v29  ;;  %v7819_v21 = vld [vmem:[#allocation3 + $0x192] sm:$0xff]  ;;  %v2390_v33 = vmax.f32 %v7553_v41, %v7597_v31 }
 0x182   : > { %v4429_v42 = vmax.f32 %v4365_v35, %v4397_v53  ;;  %v4366_v14 = vmax.f32 %v4302_v27, %v4334_v20  ;;  %v4462_v62 = vld [vmem:[#allocation3 + $0xb2] sm:$0xff]  ;;  %8410 = vst [vmem:[#allocation8_spill] sm:$0xff] %v7826_v55  ;;  %8411 = vst [vmem:[#allocation9_spill] sm:$0xff] %v7828_v39  ;;  %v4271_v55 = vld [vmem:[#allocation3 + $0xc7] sm:$0xff] }
 0x183   : > { %4196 = vst.msk [vmem:[#allocation3 + $0x108] sm:$0xff] %vm215_vm1, %v4132_v23  ;;  %v3706_v18 = vld [vmem:[#allocation2 + $0x1d8] sm:$0x3]  ;;  %v2966_v7 = vld [vmem:[#allocation3 + $0x190] sm:$0xff]  ;;  %v4150_v50 = vmax.f32 %v4022_v56, %v4086_v49 }
 0x184   : > { %v7809_v8 = vld [vmem:[#allocation2 + $0x190] sm:$0xff]  ;;  %v3834_v10 = vld [vmem:[#allocation2 + $0x1f8] sm:$0x3]  ;;  %v2869_v53 = vld [vmem:[#allocation3 + $0x186] sm:$0xff]  ;;  %v4493_v20 = vmax.f32 %v4429_v42, %v4461_v52  ;;  %v4430_v12 = vmax.f32 %v4366_v14, %v4398_v58 }
 0x185   : > { %v4133_v3 = vmax.f32 %v4005_v46, %v7809_v8  ;;  %v2901_v17 = vld [vmem:[#allocation3 + $0x187] sm:$0xff]  ;;  %v3770_v46 = vmax.f32 %v3642_v1, %v3706_v18  ;;  %v3962_v23 = vld [vmem:[#allocation2 + $0x218] sm:$0x3]  ;;  %v4009_v41 = vmax.f32 %v7807_v0, %v7809_v8  ;;  %v2902_v16 = vld [vmem:[#allocation3 + $0x18f] sm:$0xff]  ;;  %4214 = vst.msk [vmem:[#allocation3 + $0x198] sm:$0x3] %vm219_vm2, %v4150_v50 }
 0x186   : > { %v2965_v59 = vld [vmem:[#allocation3 + $0x188] sm:$0xff]  ;;  %v2933_v35 = vmax.f32 %v2869_v53, %v2901_v17  ;;  %4211 = vst.msk [vmem:[#allocation3 + $0x180] sm:$0xff] %vm215_vm1, %v4147_v38  ;;  %5738 = vmatprep.mubr.msk.f32.mxu1 %vm215_vm1, %v4493_v20  ;;  %v4494_v49 = vmax.f32 %v4430_v12, %v4462_v62  ;;  %v2968_v56 = vld [vmem:[#allocation3 + $0x1b0] sm:$0xff]  ;;  %v3771_v38 = vmax.f32 %v7571_v6, %v7625_v5 }
 0x187   : > { %4197 = vst.msk [vmem:[#allocation3 + $0x110] sm:$0xff] %vm215_vm1, %v4133_v3  ;;  %v3029_v27 = vld [vmem:[#allocation3 + $0x189] sm:$0xff]  ;;  %v3898_v42 = vmax.f32 %v3770_v46, %v3834_v10  ;;  %v3756_v17 = vmax.f32 %v7569_v13, %v7643_v54  ;;  %v3757_v62 = vmax.f32 %v7610_v11, %v7653_v61  ;;  %v4090_v13 = vld [vmem:[#allocation2 + $0x238] sm:$0x3]  ;;  %v7852_v11 = vpop.f32.mrf.mxu0 }
 0x188   : > { %v2870_v22 = vld [vmem:[#allocation3 + $0x18e] sm:$0xff]  ;;  %v2871_v52 = vld [vmem:[#allocation3 + $0x1a6] sm:$0xff]  ;;  %v2997_v1 = vmax.f32 %v2933_v35, %v2965_v59  ;;  %5739 = vmatmul.mubr.msk.f32.gmra.mxu1 %vm215_vm1, %v4494_v49  ;;  %v7846_v59 = vmax.f32 %v2390_v33, %v7748_v45  ;;  %8413 = vst [vmem:[#allocation11_spill] sm:$0xff] %v7852_v11  ;;  %v7857_v39 = vmax.f32 %v3771_v38, %v7776_v19 }
 0x189   : > { %v2903_v58 = vld [vmem:[#allocation3 + $0x1a7] sm:$0xff]  ;;  %v2934_v18 = vmax.f32 %v2870_v22, %v2902_v16  ;;  %v2904_v20 = vld [vmem:[#allocation3 + $0x1af] sm:$0xff]  ;;  %v4026_v33 = vmax.f32 %v3898_v42, %v3962_v23 }
 0x18a   : > { %v7836_v14 = vld [vmem:[#allocation2 + $0x1a8] sm:$0xff]  ;;  %v2935_v53 = vmax.f32 %v2871_v52, %v2903_v58  ;;  %4215 = vst.msk [vmem:[#allocation3 + $0x1a0] sm:$0xff] %vm215_vm1, %v4151_v51  ;;  %v7848_v16 = vld [vmem:[#allocation2 + $0x1b0] sm:$0xff]  ;;  %v3061_v12 = vmax.f32 %v2997_v1, %v3029_v27  ;;  %v7850_v52 = vpop.f32.mrf.mxu1 }
 0x18b   : > { %v3093_v3 = vld [vmem:[#allocation3 + $0x18a] sm:$0xff]  ;;  %v4136_v10 = vmax.f32 %v4008_v32, %v7836_v14  ;;  %v2998_v51 = vmax.f32 %v2934_v18, %v2966_v7  ;;  %8412 = vst [vmem:[#allocation10_spill] sm:$0xff] %v7850_v52  ;;  %v4137_v32 = vmax.f32 %v4009_v41, %v7848_v16  ;;  %v2394_v7 = vmax.f32 %v7597_v31, %v7748_v45  ;;  %v3096_v23 = vld [vmem:[#allocation3 + $0x1b2] sm:$0xff] }
 0x18c   : > { %v2967_v0 = vld [vmem:[#allocation3 + $0x1a8] sm:$0xff]  ;;  %v3032_v58 = vld [vmem:[#allocation3 + $0x1b1] sm:$0xff]  ;;  %v3125_v27 = vmax.f32 %v3061_v12, %v3093_v3  ;;  %v3760_v41 = vmax.f32 %v7643_v54, %v7793_v29  ;;  %v4154_v42 = vmax.f32 %v4026_v33, %v4090_v13  ;;  %v7866_v31 = vmax.f32 %v3756_v17, %v7793_v29  ;;  %v7873_v12 = vpop.f32.mrf.mxu1 }
 0x18d   : > { %v3031_v6 = vld [vmem:[#allocation3 + $0x1a9] sm:$0xff]  ;;  %v2999_v46 = vmax.f32 %v2935_v53, %v2967_v0  ;;  %4200 = vst.msk [vmem:[#allocation3 + $0x128] sm:$0xff] %vm215_vm1, %v4136_v10  ;;  %v3062_v1 = vmax.f32 %v2998_v51, %v7817_v63  ;;  %4201 = vst.msk [vmem:[#allocation3 + $0x130] sm:$0xff] %vm215_vm1, %v4137_v32  ;;  %v4400_v54 = vld [vmem:[#allocation3 + $0xd1] sm:$0xff]  ;;  %v7884_v32 = vmax.f32 %v3757_v62, %v7809_v8 }
 0x18e   : > { %v2872_v50 = vld [vmem:[#allocation3 + $0x1ae] sm:$0xff]  ;;  %v4239_v22 = vld [vmem:[#allocation3 + $0xc6] sm:$0xff]  ;;  %5709 = vmatprep.mubr.msk.f32.mxu0 %vm215_vm1, %v3125_v27  ;;  %3579 = vst.msk [vmem:[#allocation2 + $0x1c8] sm:$0xff] %vm215_vm1, %v3125_v27  ;;  %v3710_v33 = vld [vmem:[#allocation2 + $0x1f8] sm:$0x3]  ;;  %v7892_v27 = vmax.f32 %v3760_v41, %v7836_v14 }
 0x18f   : > { %v2936_v35 = vmax.f32 %v2872_v50, %v2904_v20  ;;  %v3095_v49 = vld [vmem:[#allocation3 + $0x1aa] sm:$0xff]  ;;  %v3063_v18 = vmax.f32 %v2999_v46, %v3031_v6  ;;  %v4303_v38 = vmax.f32 %v4239_v22, %v4271_v55  ;;  %v3126_v45 = vmax.f32 %v3062_v1, %v7819_v21  ;;  %v7875_v55 = vpop.f32.mrf.mxu0  ;;  %4218 = vst.msk [vmem:[#allocation3 + $0x1b8] sm:$0x3] %vm219_vm2, %v4154_v42 }
 0x190   : > { %v4335_v0 = vld [vmem:[#allocation3 + $0xc8] sm:$0xff]  ;;  %v4336_v11 = vld [vmem:[#allocation3 + $0xd0] sm:$0xff]  ;;  %v3775_v21 = vmax.f32 %v7625_v5, %v7776_v19  ;;  %v3761_v22 = vmax.f32 %v7653_v61, %v7809_v8  ;;  %v4012_v1 = vmax.f32 %v7866_v31, %v7836_v14 }
 0x191   : > { %v3000_v53 = vmax.f32 %v2936_v35, %v2968_v56  ;;  %v4240_v50 = vld [vmem:[#allocation3 + $0xce] sm:$0xff]  ;;  %v3127_v63 = vmax.f32 %v3063_v18, %v3095_v49  ;;  %v4367_v17 = vmax.f32 %v4303_v38, %v4335_v0  ;;  %5710 = vmatmul.mubr.msk.f32.gmra.mxu0 %vm215_vm1, %v3126_v45  ;;  %3580 = vst.msk [vmem:[#allocation2 + $0x1d0] sm:$0xff] %vm215_vm1, %v3126_v45  ;;  %v4241_v62 = vld [vmem:[#allocation3 + $0xe6] sm:$0xff]  ;;  %v3966_v18 = vld [vmem:[#allocation2 + $0x238] sm:$0x3] }
 0x192   : > { %v4272_v10 = vld [vmem:[#allocation3 + $0xcf] sm:$0xff]  ;;  %v7905_v38 = vld [vmem:[#allocation2 + $0x240] sm:$0xff] }
 0x193   : > { %v4399_v20 = vld [vmem:[#allocation3 + $0xc9] sm:$0xff]  ;;  %v4304_v52 = vmax.f32 %v4240_v50, %v4272_v10  ;;  %v3064_v56 = vmax.f32 %v3000_v53, %v3032_v58  ;;  %v4464_v35 = vld [vmem:[#allocation3 + $0xd2] sm:$0xff]  ;;  %3581 = vst.msk [vmem:[#allocation2 + $0x1e8] sm:$0xff] %vm215_vm1, %v3127_v63  ;;  %5712 = vmatprep.mubr.msk.f32.mxu0 %vm215_vm1, %v3127_v63  ;;  %v7900_v10 = vpop.f32.mrf.mxu1 }
 0x194   : > { %v2582_v3 = vld [vmem:[#allocation2 + $0x228] sm:$0xff]  ;;  %v3646_v58 = vld [vmem:[#allocation2 + $0x1d8] sm:$0x3]  ;;  %v4431_v5 = vmax.f32 %v4367_v17, %v4399_v20 }
 0x195   : > { %v7871_v6 = vld [vmem:[#allocation2 + $0x248] sm:$0xff]  ;;  %v4368_v46 = vmax.f32 %v4304_v52, %v4336_v11  ;;  %v2646_v13 = vmax.f32 %v7846_v59, %v2582_v3  ;;  %v3128_v49 = vmax.f32 %v3064_v56, %v3096_v23  ;;  %v3838_v52 = vld [vmem:[#allocation2 + $0x218] sm:$0x3]  ;;  %v2522_v11 = vmax.f32 %v2394_v7, %v2582_v3  ;;  %v7902_v23 = vpop.f32.mrf.mxu0 }
 0x196   : > { %v4463_v51 = vld [vmem:[#allocation3 + $0xca] sm:$0xff]  ;;  %v3774_v59 = vmax.f32 %v3646_v58, %v3710_v33  ;;  %v4027_v7 = vmax.f32 %v7857_v39, %v7800_v24  ;;  %8414 = vst [vmem:[#allocation12_spill] sm:$0xff] %v7902_v23  ;;  %v3889_v39 = vmax.f32 %v3761_v22, %v7848_v16  ;;  %v4013_v56 = vmax.f32 %v7884_v32, %v7848_v16 }
 0x197   : > { %v4432_v19 = vmax.f32 %v4368_v46, %v4400_v54  ;;  %v2774_v61 = vmax.f32 %v2646_v13, %v7871_v6  ;;  %3582 = vst.msk [vmem:[#allocation2 + $0x1f0] sm:$0xff] %vm215_vm1, %v3128_v49  ;;  %v4273_v53 = vld [vmem:[#allocation3 + $0xe7] sm:$0xff]  ;;  %v2650_v50 = vmax.f32 %v2522_v11, %v7871_v6  ;;  %v4495_v42 = vmax.f32 %v4431_v5, %v4463_v51  ;;  %v4274_v63 = vld [vmem:[#allocation3 + $0xef] sm:$0xff]  ;;  %v4094_v54 = vld [vmem:[#allocation2 + $0x258] sm:$0x3] }
 0x198   : > { %v4337_v0 = vld [vmem:[#allocation3 + $0xe8] sm:$0xff]  ;;  %v3902_v20 = vmax.f32 %v3774_v59, %v3838_v52  ;;  %v4305_v31 = vmax.f32 %v4241_v62, %v4273_v53  ;;  %5713 = vmatmul.mubr.msk.f32.gmra.mxu0 %vm215_vm1, %v3128_v49  ;;  %v4338_v51 = vld [vmem:[#allocation3 + $0xf0] sm:$0xff]  ;;  %v3903_v22 = vmax.f32 %v3775_v21, %v7800_v24  ;;  %v4155_v62 = vmax.f32 %v4027_v7, %v7905_v38 }
 0x199   : > { %v4496_v41 = vmax.f32 %v4432_v19, %v4464_v35  ;;  %2838 = vst.msk [vmem:[#allocation3 + $0x1c8] sm:$0xff] %vm215_vm1, %v2774_v61  ;;  %v4242_v45 = vld [vmem:[#allocation3 + $0xee] sm:$0xff]  ;;  %5741 = vmatprep.mubr.msk.f32.mxu1 %vm215_vm1, %v4495_v42  ;;  %v7923_v19 = vpop.f32.mrf.mxu1  ;;  %v7925_v61 = vpop.f32.mrf.mxu0 }
 0x19a   : > { %v4401_v3 = vld [vmem:[#allocation3 + $0xe9] sm:$0xff]  ;;  %v4306_v17 = vmax.f32 %v4242_v45, %v4274_v63  ;;  %v4030_v35 = vmax.f32 %v3902_v20, %v3966_v18  ;;  %v4369_v13 = vmax.f32 %v4305_v31, %v4337_v0  ;;  %v4402_v58 = vld [vmem:[#allocation3 + $0xf1] sm:$0xff]  ;;  %8415 = vst [vmem:[#allocation13_spill] sm:$0xff] %v7923_v19  ;;  %8416 = vst [vmem:[#allocation14_spill] sm:$0xff] %v7925_v61 }
 0x19b   : > { %v7911_v46 = vld [vmem:[#allocation2 + $0x1c8] sm:$0xff]  ;;  %5742 = vmatmul.mubr.msk.f32.gmra.mxu1 %vm215_vm1, %v4496_v41  ;;  %v7921_v52 = vld [vmem:[#allocation3 + $0x1d1] sm:$0xff]  ;;  %v4095_v20 = vld [vmem:[#allocation2 + $0x260] sm:$0xff] }
 0x19c   : > { %v7914_v33 = vld [vmem:[#allocation2 + $0x268] sm:$0xff]  ;;  %v4016_v32 = vmax.f32 %v7892_v27, %v7911_v46  ;;  %v4140_v49 = vmax.f32 %v4012_v1, %v7911_v46  ;;  %v4370_v5 = vmax.f32 %v4306_v17, %v4338_v51  ;;  %v7927_v59 = vld [vmem:[#allocation2 + $0x1d0] sm:$0xff]  ;;  %v4158_v24 = vmax.f32 %v4030_v35, %v4094_v54  ;;  %v3650_v31 = vld [vmem:[#allocation2 + $0x1f8] sm:$0x3] }
 0x19d   : > { %v4465_v11 = vld [vmem:[#allocation3 + $0xea] sm:$0xff]  ;;  %v4433_v21 = vmax.f32 %v4369_v13, %v4401_v3  ;;  %v4466_v18 = vld [vmem:[#allocation3 + $0xf2] sm:$0xff]  ;;  %v2778_v27 = vmax.f32 %v2650_v50, %v7914_v33  ;;  %v4017_v53 = vmax.f32 %v3889_v39, %v7927_v59  ;;  %v4141_v0 = vmax.f32 %v4013_v56, %v7927_v59 }
 0x19e   : > { %v7931_v1 = vld [vmem:[#allocation2 + $0x1e8] sm:$0xff]  ;;  %4204 = vst.msk [vmem:[#allocation3 + $0x148] sm:$0xff] %vm215_vm1, %v4140_v49  ;;  %v7936_v42 = vld [vmem:[#allocation3 + $0x1d2] sm:$0xff]  ;;  %v4434_v41 = vmax.f32 %v4370_v5, %v4402_v58  ;;  %v4031_v50 = vmax.f32 %v3903_v22, %v7905_v38  ;;  %v7946_v58 = vpop.f32.mrf.mxu1  ;;  %v7948_v49 = vpop.f32.mrf.mxu0 }
 0x19f   : > { %v7938_v45 = vld [vmem:[#allocation2 + $0x1f0] sm:$0xff]  ;;  %4222 = vst.msk [vmem:[#allocation3 + $0x1d8] sm:$0x3] %vm219_vm2, %v4158_v24  ;;  %v4497_v7 = vmax.f32 %v4433_v21, %v4465_v11  ;;  %v3714_v63 = vld [vmem:[#allocation2 + $0x218] sm:$0x3]  ;;  %v4144_v13 = vmax.f32 %v4016_v32, %v7931_v1  ;;  %8417 = vst [vmem:[#allocation15_spill] sm:$0xff] %v7946_v58 }
 0x1a0   : > { %2842 = vst.msk [vmem:[#allocation3 + $0x1e8] sm:$0xff] %vm215_vm1, %v2778_v27  ;;  %v3842_v54 = vld [vmem:[#allocation2 + $0x238] sm:$0x3]  ;;  %4205 = vst.msk [vmem:[#allocation3 + $0x150] sm:$0xff] %vm215_vm1, %v4141_v0  ;;  %v4145_v39 = vmax.f32 %v4017_v53, %v7938_v45  ;;  %v2873_v56 = vld [vmem:[#allocation3 + $0x1c6] sm:$0xff]  ;;  %v4498_v35 = vmax.f32 %v4434_v41, %v4466_v18  ;;  %v3778_v32 = vmax.f32 %v3650_v31, %v3714_v63  ;;  %v7957_v23 = vpop.f32.mrf.mxu1 }
 0x1a1   : > { %v2905_v3 = vld [vmem:[#allocation3 + $0x1c7] sm:$0xff]  ;;  %v2970_v51 = vld [vmem:[#allocation3 + $0x1d0] sm:$0xff]  ;;  %8418 = vst [vmem:[#allocation16_spill] sm:$0xff] %v7948_v49  ;;  %5744 = vmatprep.mubr.msk.f32.mxu1 %vm215_vm1, %v4497_v7  ;;  %v3970_v22 = vld [vmem:[#allocation2 + $0x258] sm:$0x3]  ;;  %v4159_v0 = vmax.f32 %v4031_v50, %v4095_v20  ;;  %v3764_v7 = vmax.f32 %v7793_v29, %v7836_v14 }
 0x1a2   : > { %v2969_v17 = vld [vmem:[#allocation3 + $0x1c8] sm:$0xff]  ;;  %v2937_v11 = vmax.f32 %v2873_v56, %v2905_v3  ;;  %4219 = vst.msk [vmem:[#allocation3 + $0x1c0] sm:$0xff] %vm215_vm1, %v4155_v62  ;;  %4209 = vst.msk [vmem:[#allocation3 + $0x170] sm:$0xff] %vm215_vm1, %v4145_v39  ;;  %5745 = vmatmul.mubr.msk.f32.gmra.mxu1 %vm215_vm1, %v4498_v35  ;;  %v4098_v41 = vld [vmem:[#allocation2 + $0x278] sm:$0x3]  ;;  %v3906_v3 = vmax.f32 %v3778_v32, %v3842_v54  ;;  %v7959_v35 = vpop.f32.mrf.mxu0 }
 0x1a3   : > { %v3033_v5 = vld [vmem:[#allocation3 + $0x1c9] sm:$0xff]  ;;  %4208 = vst.msk [vmem:[#allocation3 + $0x168] sm:$0xff] %vm215_vm1, %v4144_v13  ;;  %8419 = vst [vmem:[#allocation17_spill] sm:$0xff] %v7957_v23  ;;  %v4404_v50 = vld [vmem:[#allocation3 + $0x111] sm:$0xff] }
 0x1a4   : > { %v2874_v38 = vld [vmem:[#allocation3 + $0x1ce] sm:$0xff]  ;;  %v4243_v18 = vld [vmem:[#allocation3 + $0x106] sm:$0xff]  ;;  %v3001_v27 = vmax.f32 %v2937_v11, %v2969_v17  ;;  %8420 = vst [vmem:[#allocation18_spill] sm:$0xff] %v7959_v35  ;;  %v3765_v11 = vmax.f32 %v7809_v8, %v7848_v16  ;;  %v4034_v32 = vmax.f32 %v3906_v3, %v3970_v22  ;;  %v7968_v8 = vmax.f32 %v3764_v7, %v7911_v46  ;;  %v7974_v3 = vpop.f32.mrf.mxu0 }
 0x1a5   : > { %v3097_v24 = vld [vmem:[#allocation3 + $0x1ca] sm:$0xff] }
 0x1a6   : > { %v2906_v21 = vld [vmem:[#allocation3 + $0x1cf] sm:$0xff]  ;;  %v4275_v56 = vld [vmem:[#allocation3 + $0x107] sm:$0xff]  ;;  %v3065_v31 = vmax.f32 %v3001_v27, %v3033_v5  ;;  %v3768_v27 = vmax.f32 %v7836_v14, %v7911_v46 }
 0x1a7   : > { %v2938_v53 = vmax.f32 %v2874_v38, %v2906_v21  ;;  %v4339_v62 = vld [vmem:[#allocation3 + $0x108] sm:$0xff]  ;;  %v4307_v49 = vmax.f32 %v4243_v18, %v4275_v56  ;;  %v4340_v20 = vld [vmem:[#allocation3 + $0x110] sm:$0xff] }
 0x1a8   : > { %v4403_v39 = vld [vmem:[#allocation3 + $0x109] sm:$0xff]  ;;  %v3129_v56 = vmax.f32 %v3065_v31, %v3097_v24  ;;  %v4468_v5 = vld [vmem:[#allocation3 + $0x112] sm:$0xff] }
 0x1a9   : > { %v4244_v61 = vld [vmem:[#allocation3 + $0x10e] sm:$0xff]  ;;  %v3002_v63 = vmax.f32 %v2938_v53, %v2970_v51  ;;  %v2875_v38 = vld [vmem:[#allocation3 + $0x1e6] sm:$0xff]  ;;  %v4371_v18 = vmax.f32 %v4307_v49, %v4339_v62  ;;  %v4162_v49 = vmax.f32 %v4034_v32, %v4098_v41  ;;  %v7972_v62 = vpop.f32.mrf.mxu1  ;;  %v7980_v41 = vmax.f32 %v3765_v11, %v7927_v59 }
 0x1aa   : > { %v4276_v58 = vld [vmem:[#allocation3 + $0x10f] sm:$0xff]  ;;  %v2907_v29 = vld [vmem:[#allocation3 + $0x1e7] sm:$0xff]  ;;  %5715 = vmatprep.mubr.msk.f32.mxu0 %vm215_vm1, %v3129_v56  ;;  %3583 = vst.msk [vmem:[#allocation2 + $0x208] sm:$0xff] %vm215_vm1, %v3129_v56 }
 0x1ab   : > { %v4467_v17 = vld [vmem:[#allocation3 + $0x10a] sm:$0xff]  ;;  %v4308_v13 = vmax.f32 %v4244_v61, %v4276_v58  ;;  %v3066_v23 = vmax.f32 %v3002_v63, %v7921_v52  ;;  %v2939_v19 = vmax.f32 %v2875_v38, %v2907_v29  ;;  %4223 = vst.msk [vmem:[#allocation3 + $0x1e0] sm:$0xff] %vm215_vm1, %v4159_v0  ;;  %v4435_v24 = vmax.f32 %v4371_v18, %v4403_v39 }
 0x1ac   : > { %v2971_v54 = vld [vmem:[#allocation3 + $0x1e8] sm:$0xff]  ;;  %v2972_v21 = vld [vmem:[#allocation3 + $0x1f0] sm:$0xff]  ;;  %v3769_v39 = vmax.f32 %v7848_v16, %v7927_v59  ;;  %v3772_v16 = vmax.f32 %v7911_v46, %v7931_v1 }
 0x1ad   : > { %v3035_v35 = vld [vmem:[#allocation3 + $0x1e9] sm:$0xff]  ;;  %v7965_v61 = vld [vmem:[#allocation3 + $0x1f1] sm:$0xff]  ;;  %v4372_v58 = vmax.f32 %v4308_v13, %v4340_v20  ;;  %v3130_v0 = vmax.f32 %v3066_v23, %v7936_v42  ;;  %v3003_v7 = vmax.f32 %v2939_v19, %v2971_v54  ;;  %v4499_v38 = vmax.f32 %v4435_v24, %v4467_v17  ;;  %v7997_v24 = vpop.f32.mrf.mxu0 }
 0x1ae   : > { %v2876_v51 = vld [vmem:[#allocation3 + $0x1ee] sm:$0xff]  ;;  %v4245_v53 = vld [vmem:[#allocation3 + $0x126] sm:$0xff]  ;;  %v7990_v17 = vmax.f32 %v3768_v27, %v7931_v1 }
 0x1af   : > { %v2908_v22 = vld [vmem:[#allocation3 + $0x1ef] sm:$0xff]  ;;  %v4277_v52 = vld [vmem:[#allocation3 + $0x127] sm:$0xff]  ;;  %v4436_v14 = vmax.f32 %v4372_v58, %v4404_v50  ;;  %5716 = vmatmul.mubr.msk.f32.gmra.mxu0 %vm215_vm1, %v3130_v0  ;;  %3584 = vst.msk [vmem:[#allocation2 + $0x210] sm:$0xff] %vm215_vm1, %v3130_v0  ;;  %v3067_v23 = vmax.f32 %v3003_v7, %v3035_v35  ;;  %v4020_v58 = vmax.f32 %v7968_v8, %v7931_v1 }
 0x1b0   : > { %v3099_v31 = vld [vmem:[#allocation3 + $0x1ea] sm:$0xff]  ;;  %v2940_v63 = vmax.f32 %v2876_v51, %v2908_v22  ;;  %v3100_v13 = vld [vmem:[#allocation3 + $0x1f2] sm:$0xff]  ;;  %v4309_v29 = vmax.f32 %v4245_v53, %v4277_v52  ;;  %5747 = vmatprep.mubr.msk.f32.mxu1 %vm215_vm1, %v4499_v38 }
 0x1b1   : > { %v4341_v20 = vld [vmem:[#allocation3 + $0x128] sm:$0xff]  ;;  %4226 = vst.msk [vmem:[#allocation3 + $0x1f8] sm:$0x3] %vm219_vm2, %v4162_v49  ;;  %v4342_v56 = vld [vmem:[#allocation3 + $0x130] sm:$0xff]  ;;  %v4500_v42 = vmax.f32 %v4436_v14, %v4468_v5  ;;  %v7995_v5 = vpop.f32.mrf.mxu1  ;;  %v3131_v53 = vmax.f32 %v3067_v23, %v3099_v31  ;;  %v3773_v14 = vmax.f32 %v7927_v59, %v7938_v45 }
 0x1b2   : > { %v4246_v32 = vld [vmem:[#allocation3 + $0x12e] sm:$0xff]  ;;  %v3004_v19 = vmax.f32 %v2940_v63, %v2972_v21  ;;  %v4247_v51 = vld [vmem:[#allocation3 + $0x146] sm:$0xff]  ;;  %v4373_v22 = vmax.f32 %v4309_v29, %v4341_v20  ;;  %v4021_v63 = vmax.f32 %v7980_v41, %v7938_v45 }
 0x1b3   : > { %v4278_v18 = vld [vmem:[#allocation3 + $0x12f] sm:$0xff]  ;;  %v4279_v35 = vld [vmem:[#allocation3 + $0x147] sm:$0xff]  ;;  %5748 = vmatmul.mubr.msk.f32.gmra.mxu1 %vm215_vm1, %v4500_v42  ;;  %5718 = vmatprep.mubr.msk.f32.mxu0 %vm215_vm1, %v3131_v53  ;;  %3585 = vst.msk [vmem:[#allocation2 + $0x228] sm:$0xff] %vm215_vm1, %v3131_v53 }
 0x1b4   : > { %v4405_v50 = vld [vmem:[#allocation3 + $0x129] sm:$0xff]  ;;  %v4310_v54 = vmax.f32 %v4246_v32, %v4278_v18  ;;  %v4406_v49 = vld [vmem:[#allocation3 + $0x131] sm:$0xff]  ;;  %v3068_v52 = vmax.f32 %v3004_v19, %v7965_v61  ;;  %v4311_v0 = vmax.f32 %v4247_v51, %v4279_v35  ;;  %v8008_v18 = vmax.f32 %v3769_v39, %v7938_v45 }
 0x1b5   : > { %v4469_v11 = vld [vmem:[#allocation3 + $0x12a] sm:$0xff]  ;;  %v4470_v27 = vld [vmem:[#allocation3 + $0x132] sm:$0xff]  ;;  %v4437_v20 = vmax.f32 %v4373_v22, %v4405_v50 }
 0x1b6   : > { %v4343_v21 = vld [vmem:[#allocation3 + $0x148] sm:$0xff]  ;;  %v4374_v46 = vmax.f32 %v4310_v54, %v4342_v56  ;;  %v4344_v32 = vld [vmem:[#allocation3 + $0x150] sm:$0xff]  ;;  %v3132_v61 = vmax.f32 %v3068_v52, %v3100_v13 }
 0x1b7   : > { %v4248_v7 = vld [vmem:[#allocation3 + $0x14e] sm:$0xff]  ;;  %v4375_v23 = vmax.f32 %v4311_v0, %v4343_v21  ;;  %v4249_v19 = vld [vmem:[#allocation3 + $0x166] sm:$0xff]  ;;  %v4501_v59 = vmax.f32 %v4437_v20, %v4469_v11 }
 0x1b8   : > { %v4280_v8 = vld [vmem:[#allocation3 + $0x14f] sm:$0xff]  ;;  %v4438_v56 = vmax.f32 %v4374_v46, %v4406_v49  ;;  %v4281_v41 = vld [vmem:[#allocation3 + $0x167] sm:$0xff]  ;;  %5719 = vmatmul.mubr.msk.f32.gmra.mxu0 %vm215_vm1, %v3132_v61  ;;  %3586 = vst.msk [vmem:[#allocation2 + $0x230] sm:$0xff] %vm215_vm1, %v3132_v61 }
 0x1b9   : > { %v4407_v38 = vld [vmem:[#allocation3 + $0x149] sm:$0xff]  ;;  %v4312_v29 = vmax.f32 %v4248_v7, %v4280_v8  ;;  %v4408_v31 = vld [vmem:[#allocation3 + $0x151] sm:$0xff]  ;;  %v4313_v35 = vmax.f32 %v4249_v19, %v4281_v41  ;;  %v8012_v7 = vpop.f32.mrf.mxu1  ;;  %v8014_v8 = vpop.f32.mrf.mxu0  ;;  %5750 = vmatprep.mubr.msk.f32.mxu1 %vm215_vm1, %v4501_v59 }
 0x1ba   : > { %v4345_v42 = vld [vmem:[#allocation3 + $0x168] sm:$0xff]  ;;  %v4472_v22 = vld [vmem:[#allocation3 + $0x152] sm:$0xff]  ;;  %v4439_v0 = vmax.f32 %v4375_v23, %v4407_v38  ;;  %v362_v38 = vld [vmem:[#allocation4] sm:$0xff] }
 0x1bb   : > { %v8010_v54 = vld [vmem:[#allocation2 + $0x208] sm:$0xff]  ;;  %v4376_v51 = vmax.f32 %v4312_v29, %v4344_v32  ;;  %v8026_v46 = vld [vmem:[#allocation2 + $0x210] sm:$0xff]  ;;  %v4377_v20 = vmax.f32 %v4313_v35, %v4345_v42 }
 0x1bc   : > { %v4471_v50 = vld [vmem:[#allocation3 + $0x14a] sm:$0xff]  ;;  %v3776_v13 = vmax.f32 %v7931_v1, %v8010_v54  ;;  %v8019_v39 = vmax.f32 %v3772_v16, %v8010_v54  ;;  %v4024_v49 = vmax.f32 %v7990_v17, %v8010_v54  ;;  %v4148_v21 = vmax.f32 %v4020_v58, %v8010_v54 }
 0x1bd   : > { %v4409_v11 = vld [vmem:[#allocation3 + $0x169] sm:$0xff]  ;;  %v4502_v1 = vmax.f32 %v4438_v56, %v4470_v27  ;;  %v4440_v16 = vmax.f32 %v4376_v51, %v4408_v31  ;;  %v4149_v17 = vmax.f32 %v4021_v63, %v8026_v46  ;;  %v3777_v58 = vmax.f32 %v7938_v45, %v8026_v46  ;;  %v8038_v41 = vld [vmem:[#allocation3 + $0x171] sm:$0xff]  ;;  %v366_v45 = vld [vmem:[#allocation4 + $0x20] sm:$0xff]  ;;  %v8041_v51 = vpop.f32.mrf.mxu1 }
 0x1be   : > { %v4250_v53 = vld [vmem:[#allocation3 + $0x16e] sm:$0xff]  ;;  %4212 = vst.msk [vmem:[#allocation3 + $0x188] sm:$0xff] %vm215_vm1, %v4148_v21  ;;  %v8034_v61 = vmax.f32 %v3773_v14, %v8026_v46  ;;  %v365_v31 = vld [vmem:[#allocation4 + $0x18] sm:$0xff]  ;;  %v4503_v56 = vmax.f32 %v4439_v0, %v4471_v50  ;;  %v4441_v23 = vmax.f32 %v4377_v20, %v4409_v11  ;;  %v8043_v14 = vpop.f32.mrf.mxu0  ;;  %v721_v21 = vadd.f32 %v7390_v36, %v362_v38  ;;  %v370_v36 = vld [vmem:[#allocation4 + $0x40] sm:$0xff] }
 0x1bf   : > { %v4282_v52 = vld [vmem:[#allocation3 + $0x16f] sm:$0xff]  ;;  %5751 = vmatmul.mubr.msk.f32.gmra.mxu1 %vm215_vm1, %v4502_v1  ;;  %v4504_v63 = vmax.f32 %v4440_v16, %v4472_v22  ;;  %4213 = vst.msk [vmem:[#allocation3 + $0x190] sm:$0xff] %vm215_vm1, %v4149_v17  ;;  %v724_v19 = vadd.f32 %v7404_v44, %v365_v31  ;;  %v369_v22 = vld [vmem:[#allocation4 + $0x38] sm:$0xff] }
 0x1c0   : > { %v4473_v29 = vld [vmem:[#allocation3 + $0x16a] sm:$0xff]  ;;  %v4314_v42 = vmax.f32 %v4250_v53, %v4282_v52  ;;  %5753 = vmatprep.mubr.msk.f32.mxu1 %vm215_vm1, %v4503_v56  ;;  %v4474_v20 = vld [vmem:[#allocation3 + $0x172] sm:$0xff]  ;;  %754 = vst.msk [vmem:[#allocation4] sm:$0xff] %vm297_vm3, %v721_v21 }
 0x1c1   : > { %v4346_v32 = vld [vmem:[#allocation3 + $0x170] sm:$0xff]  ;;  %v363_v27 = vld [vmem:[#allocation4 + $0x8] sm:$0xff]  ;;  %v4505_v0 = vmax.f32 %v4441_v23, %v4473_v29  ;;  %757 = vst.msk [vmem:[#allocation4 + $0x18] sm:$0xff] %vm297_vm3, %v724_v19  ;;  %v728_v29 = vadd.f32 %v7463_v40, %v369_v22  ;;  %v729_v19 = vadd.f32 %v7499_v26, %v370_v36  ;;  %v374_v40 = vld [vmem:[#allocation4 + $0x60] sm:$0xff]  ;;  %v8068_v23 = vpop.f32.mrf.mxu1 }
 0x1c2   : > { %v364_v54 = vld [vmem:[#allocation4 + $0x10] sm:$0xff]  ;;  %v367_v59 = vld [vmem:[#allocation4 + $0x28] sm:$0xff]  ;;  %v722_v35 = vadd.f32 %v7371_v2, %v363_v27  ;;  %v4378_v16 = vmax.f32 %v4314_v42, %v4346_v32  ;;  %v725_v2 = vadd.f32 %v7444_v9, %v366_v45  ;;  %v373_v32 = vld [vmem:[#allocation4 + $0x58] sm:$0xff]  ;;  %v8070_v42 = vpop.f32.mrf.mxu0  ;;  %v8421_v45 = vmax.f32 %v8008_v18, %v8026_v46 }
 0x1c3   : > { %v723_v50 = vadd.f32 %v7423_v15, %v364_v54  ;;  %v368_v11 = vld [vmem:[#allocation4 + $0x30] sm:$0xff]  ;;  %v371_v53 = vld [vmem:[#allocation4 + $0x48] sm:$0xff]  ;;  %v726_v17 = vadd.f32 %v7434_v60, %v367_v59  ;;  %5754 = vmatmul.mubr.msk.f32.gmra.mxu1 %vm215_vm1, %v4504_v63  ;;  %v377_v56 = vld [vmem:[#allocation4 + $0x78] sm:$0xff]  ;;  %761 = vst.msk [vmem:[#allocation4 + $0x38] sm:$0xff] %vm297_vm3, %v728_v29  ;;  %v8098_v36 = vpop.f32.mrf.mxu1 }
 0x1c4   : > { %v3840_v52 = vld [vmem:[#allocation2 + $0x228] sm:$0xff]  ;;  %v8050_v1 = vld [vmem:[#allocation2 + $0x250] sm:$0xff]  ;;  %755 = vst.msk [vmem:[#allocation4 + $0x8] sm:$0xff] %vm297_vm3, %v722_v35  ;;  %758 = vst.msk [vmem:[#allocation4 + $0x20] sm:$0xff] %vm297_vm3, %v725_v2  ;;  %5756 = vmatprep.mubr.msk.f32.mxu1 %vm215_vm1, %v4505_v0 }
 0x1c5   : > { %v3904_v27 = vmax.f32 %v3776_v13, %v3840_v52  ;;  %v4028_v44 = vmax.f32 %v8019_v39, %v3840_v52  ;;  %v4152_v15 = vmax.f32 %v4024_v49, %v3840_v52  ;;  %756 = vst.msk [vmem:[#allocation4 + $0x10] sm:$0xff] %vm297_vm3, %v723_v50  ;;  %v372_v38 = vld [vmem:[#allocation4 + $0x50] sm:$0xff]  ;;  %v375_v60 = vld [vmem:[#allocation4 + $0x68] sm:$0xff]  ;;  %v4442_v13 = vmax.f32 %v4378_v16, %v8038_v41  ;;  %v378_v26 = vld [vmem:[#allocation4 + $0x80] sm:$0xff] }
 0x1c6   : > { %v3841_v31 = vld [vmem:[#allocation2 + $0x230] sm:$0xff]  ;;  %759 = vst.msk [vmem:[#allocation4 + $0x28] sm:$0xff] %vm297_vm3, %v726_v17  ;;  %v727_v39 = vadd.f32 %v7479_v37, %v368_v11  ;;  %v730_v49 = vadd.f32 %v7490_v48, %v371_v53  ;;  %v379_v48 = vld [vmem:[#allocation4 + $0x88] sm:$0xff]  ;;  %762 = vst.msk [vmem:[#allocation4 + $0x40] sm:$0xff] %vm297_vm3, %v729_v19 }
 0x1c7   : > { %v4097_v9 = vld [vmem:[#allocation2 + $0x270] sm:$0xff]  ;;  %v4032_v63 = vmax.f32 %v3904_v27, %v7871_v6  ;;  %v4156_v41 = vmax.f32 %v4028_v44, %v7871_v6  ;;  %4216 = vst.msk [vmem:[#allocation3 + $0x1a8] sm:$0xff] %vm215_vm1, %v4152_v15  ;;  %v3905_v54 = vmax.f32 %v3777_v58, %v3841_v31  ;;  %v4029_v59 = vmax.f32 %v8034_v61, %v3841_v31  ;;  %v4251_v50 = vld [vmem:[#allocation3 + $0x186] sm:$0xff]  ;;  %v381_v52 = vld [vmem:[#allocation4 + $0x98] sm:$0xff]  ;;  %v8100_v27 = vpop.f32.mrf.mxu0 }
 0x1c8   : > { %v376_v37 = vld [vmem:[#allocation4 + $0x70] sm:$0xff]  ;;  %v4153_v35 = vmax.f32 %v8421_v45, %v3841_v31  ;;  %v4506_v21 = vmax.f32 %v4442_v13, %v4474_v20  ;;  %v4283_v22 = vld [vmem:[#allocation3 + $0x187] sm:$0xff]  ;;  %760 = vst.msk [vmem:[#allocation4 + $0x30] sm:$0xff] %vm297_vm3, %v727_v39  ;;  %763 = vst.msk [vmem:[#allocation4 + $0x48] sm:$0xff] %vm297_vm3, %v730_v49  ;;  %v732_v58 = vadd.f32 %v7519_v43, %v373_v32 }
 0x1c9   : > { %v4347_v6 = vld [vmem:[#allocation3 + $0x188] sm:$0xff]  ;;  %v731_v61 = vadd.f32 %v7550_v25, %v372_v38  ;;  %v4160_v11 = vmax.f32 %v4032_v63, %v7914_v33  ;;  %4220 = vst.msk [vmem:[#allocation3 + $0x1c8] sm:$0xff] %vm215_vm1, %v4156_v41  ;;  %v4033_v18 = vmax.f32 %v3905_v54, %v8050_v1  ;;  %v4157_v46 = vmax.f32 %v4029_v59, %v8050_v1  ;;  %v380_v0 = vld [vmem:[#allocation4 + $0x90] sm:$0xff]  ;;  %v382_v2 = vld [vmem:[#allocation4 + $0xa0] sm:$0xff] }
 0x1ca   : > { %v4315_v53 = vmax.f32 %v4251_v50, %v4283_v22  ;;  %v383_v16 = vld [vmem:[#allocation4 + $0xa8] sm:$0xff]  ;;  %4217 = vst.msk [vmem:[#allocation3 + $0x1b0] sm:$0xff] %vm215_vm1, %v4153_v35  ;;  %5757 = vmatmul.mubr.msk.f32.gmra.mxu1 %vm215_vm1, %v4506_v21  ;;  %v734_v25 = vadd.f32 %v7567_v47, %v375_v60  ;;  %v733_v33 = vadd.f32 %v7600_v28, %v374_v40  ;;  %v4348_v47 = vld [vmem:[#allocation3 + $0x190] sm:$0xff]  ;;  %v1751_v31 = vld [vmem:[#allocation4] sm:$0xff] }
 0x1cb   : > { %v4411_v20 = vld [vmem:[#allocation3 + $0x189] sm:$0xff]  ;;  %765 = vst.msk [vmem:[#allocation4 + $0x58] sm:$0xff] %vm297_vm3, %v732_v58  ;;  %764 = vst.msk [vmem:[#allocation4 + $0x50] sm:$0xff] %vm297_vm3, %v731_v61  ;;  %v736_v1 = vadd.f32 %v7628_v57, %v377_v56  ;;  %v735_v17 = vadd.f32 %v7660_v30, %v376_v37  ;;  %v4161_v44 = vmax.f32 %v4033_v18, %v4097_v9  ;;  %v4412_v30 = vld [vmem:[#allocation3 + $0x191] sm:$0xff]  ;;  %v8125_v18 = vpop.f32.mrf.mxu1 }
 0x1cc   : > { %v4252_v43 = vld [vmem:[#allocation3 + $0x18e] sm:$0xff]  ;;  %4221 = vst.msk [vmem:[#allocation3 + $0x1d0] sm:$0xff] %vm215_vm1, %v4157_v46  ;;  %4224 = vst.msk [vmem:[#allocation3 + $0x1e8] sm:$0xff] %vm215_vm1, %v4160_v11  ;;  %v4379_v15 = vmax.f32 %v4315_v53, %v4347_v6  ;;  %v738_v28 = vadd.f32 %v7744_v34, %v379_v48  ;;  %v737_v57 = vadd.f32 %v7780_v4, %v378_v26  ;;  %v8423_v39 = vld [vmem:[#allocation9_spill] sm:$0xff]  ;;  %v8127_v46 = vpop.f32.mrf.mxu0 }
 0x1cd   : > { %v4475_v29 = vld [vmem:[#allocation3 + $0x18a] sm:$0xff]  ;;  %767 = vst.msk [vmem:[#allocation4 + $0x68] sm:$0xff] %vm297_vm3, %v734_v25  ;;  %766 = vst.msk [vmem:[#allocation4 + $0x60] sm:$0xff] %vm297_vm3, %v733_v33  ;;  %v739_v49 = vadd.f32 %v8423_v39, %v380_v0  ;;  %v4476_v40 = vld [vmem:[#allocation3 + $0x192] sm:$0xff]  ;;  %v741_v26 = vadd.f32 %v7875_v55, %v382_v2 }
 0x1ce   : > { %v4284_v32 = vld [vmem:[#allocation3 + $0x18f] sm:$0xff]  ;;  %769 = vst.msk [vmem:[#allocation4 + $0x78] sm:$0xff] %vm297_vm3, %v736_v1  ;;  %768 = vst.msk [vmem:[#allocation4 + $0x70] sm:$0xff] %vm297_vm3, %v735_v17  ;;  %v4443_v4 = vmax.f32 %v4379_v15, %v4411_v20  ;;  %v8425_v56 = vld [vmem:[#allocation5_spill] sm:$0xff] }
 0x1cf   : > { %v4316_v38 = vmax.f32 %v4252_v43, %v4284_v32  ;;  %v1752_v60 = vld [vmem:[#allocation4 + $0x8] sm:$0xff]  ;;  %v8422_v9 = vld [vmem:[#allocation7_spill] sm:$0xff]  ;;  %4225 = vst.msk [vmem:[#allocation3 + $0x1f0] sm:$0xff] %vm215_vm1, %v4161_v44  ;;  %v1754_v59 = vld [vmem:[#allocation4 + $0x18] sm:$0xff] }
 0x1d0   : > { %v740_v13 = vadd.f32 %v8422_v9, %v381_v52  ;;  %v8424_v19 = vld [vmem:[#allocation11_spill] sm:$0xff]  ;;  %v2110_v63 = vadd.f32 %v8425_v56, %v1752_v60  ;;  %771 = vst.msk [vmem:[#allocation4 + $0x88] sm:$0xff] %vm297_vm3, %v738_v28  ;;  %v8426_v41 = vld [vmem:[#allocation6_spill] sm:$0xff]  ;;  %770 = vst.msk [vmem:[#allocation4 + $0x80] sm:$0xff] %vm297_vm3, %v737_v57  ;;  %v4507_v55 = vmax.f32 %v4443_v4, %v4475_v29  ;;  %v8144_v60 = vpop.f32.mrf.mxu0 }
 0x1d1   : > { %v742_v34 = vadd.f32 %v8424_v19, %v383_v16  ;;  %v2109_v54 = vadd.f32 %v8426_v41, %v1751_v31  ;;  %v1753_v37 = vld [vmem:[#allocation4 + $0x10] sm:$0xff]  ;;  %v1756_v48 = vld [vmem:[#allocation4 + $0x28] sm:$0xff]  ;;  %v4380_v45 = vmax.f32 %v4316_v38, %v4348_v47  ;;  %v8427_v22 = vld [vmem:[#allocation8_spill] sm:$0xff]  ;;  %772 = vst.msk [vmem:[#allocation4 + $0x90] sm:$0xff] %vm297_vm3, %v739_v49 }
 0x1d2   : > { %v4253_v35 = vld [vmem:[#allocation3 + $0x1a6] sm:$0xff]  ;;  %v2112_v6 = vadd.f32 %v8427_v22, %v1754_v59  ;;  %773 = vst.msk [vmem:[#allocation4 + $0x98] sm:$0xff] %vm297_vm3, %v740_v13  ;;  %v2114_v11 = vadd.f32 %v7873_v12, %v1756_v48  ;;  %2142 = vst.msk [vmem:[#allocation4 + $0x8] sm:$0xff] %vm297_vm3, %v2110_v63  ;;  %v1758_v0 = vld [vmem:[#allocation4 + $0x38] sm:$0xff]  ;;  %5759 = vmatprep.mubr.msk.f32.mxu1 %vm215_vm1, %v4507_v55 }
 0x1d3   : > { %v4285_v21 = vld [vmem:[#allocation3 + $0x1a7] sm:$0xff]  ;;  %775 = vst.msk [vmem:[#allocation4 + $0xa8] sm:$0xff] %vm297_vm3, %v742_v34  ;;  %2141 = vst.msk [vmem:[#allocation4] sm:$0xff] %vm297_vm3, %v2109_v54  ;;  %v385_v16 = vld [vmem:[#allocation4 + $0xb8] sm:$0xff]  ;;  %v4444_v20 = vmax.f32 %v4380_v45, %v4412_v30 }
 0x1d4   : > { %v4349_v50 = vld [vmem:[#allocation3 + $0x1a8] sm:$0xff]  ;;  %v4317_v53 = vmax.f32 %v4253_v35, %v4285_v21  ;;  %v1755_v52 = vld [vmem:[#allocation4 + $0x20] sm:$0xff]  ;;  %774 = vst.msk [vmem:[#allocation4 + $0xa0] sm:$0xff] %vm297_vm3, %v741_v26  ;;  %2144 = vst.msk [vmem:[#allocation4 + $0x18] sm:$0xff] %vm297_vm3, %v2112_v6 }
 0x1d5   : > { %v8428_v58 = vld [vmem:[#allocation10_spill] sm:$0xff]  ;;  %2146 = vst.msk [vmem:[#allocation4 + $0x28] sm:$0xff] %vm297_vm3, %v2114_v11  ;;  %v2113_v33 = vadd.f32 %v7900_v10, %v1755_v52  ;;  %v8429_v1 = vld [vmem:[#allocation13_spill] sm:$0xff]  ;;  %v8430_v2 = vld [vmem:[#allocation12_spill] sm:$0xff]  ;;  %v4508_v28 = vmax.f32 %v4444_v20, %v4476_v40  ;;  %v8142_v10 = vpop.f32.mrf.mxu1 }
 0x1d6   : > { %v2111_v61 = vadd.f32 %v8428_v58, %v1753_v37  ;;  %v4255_v43 = vld [vmem:[#allocation3 + $0x1c6] sm:$0xff]  ;;  %v2116_v17 = vadd.f32 %v8429_v1, %v1758_v0  ;;  %v744_v44 = vadd.f32 %v8430_v2, %v385_v16  ;;  %v4381_v15 = vmax.f32 %v4317_v53, %v4349_v50  ;;  %v4254_v32 = vld [vmem:[#allocation3 + $0x1ae] sm:$0xff]  ;;  %v8149_v50 = vpop.f32.mrf.mxu0 }
 0x1d7   : > { %v4287_v12 = vld [vmem:[#allocation3 + $0x1c7] sm:$0xff]  ;;  %v4286_v38 = vld [vmem:[#allocation3 + $0x1af] sm:$0xff]  ;;  %2145 = vst.msk [vmem:[#allocation4 + $0x20] sm:$0xff] %vm297_vm3, %v2113_v33  ;;  %5760 = vmatmul.mubr.msk.f32.gmra.mxu1 %vm215_vm1, %v4508_v28  ;;  %v8147_v21 = vpop.f32.mrf.mxu1 }
 0x1d8   : > { %v4351_v25 = vld [vmem:[#allocation3 + $0x1c8] sm:$0xff]  ;;  %2143 = vst.msk [vmem:[#allocation4 + $0x10] sm:$0xff] %vm297_vm3, %v2111_v61  ;;  %v4319_v47 = vmax.f32 %v4255_v43, %v4287_v12  ;;  %v4350_v30 = vld [vmem:[#allocation3 + $0x1b0] sm:$0xff]  ;;  %2148 = vst.msk [vmem:[#allocation4 + $0x38] sm:$0xff] %vm297_vm3, %v2116_v17  ;;  %v4318_v9 = vmax.f32 %v4254_v32, %v4286_v38 }
 0x1d9   : > { %v4413_v29 = vld [vmem:[#allocation3 + $0x1a9] sm:$0xff]  ;;  %777 = vst.msk [vmem:[#allocation4 + $0xb8] sm:$0xff] %vm297_vm3, %v744_v44  ;;  %v4414_v13 = vld [vmem:[#allocation3 + $0x1b1] sm:$0xff]  ;;  %v8433_v28 = vld [vmem:[#allocation17_spill] sm:$0xff] }
 0x1da   : > { %v4477_v57 = vld [vmem:[#allocation3 + $0x1aa] sm:$0xff]  ;;  %v4445_v31 = vmax.f32 %v4381_v15, %v4413_v29  ;;  %v4383_v39 = vmax.f32 %v4319_v47, %v4351_v25  ;;  %v4478_v19 = vld [vmem:[#allocation3 + $0x1b2] sm:$0xff]  ;;  %v4382_v63 = vmax.f32 %v4318_v9, %v4350_v30  ;;  %v1759_v30 = vld [vmem:[#allocation4 + $0x40] sm:$0xff]  ;;  %v8155_v9 = vpop.f32.mrf.mxu1 }
 0x1db   : > { %v4415_v49 = vld [vmem:[#allocation3 + $0x1c9] sm:$0xff]  ;;  %v4416_v37 = vld [vmem:[#allocation3 + $0x1d1] sm:$0xff] }
 0x1dc   : > { %v4256_v34 = vld [vmem:[#allocation3 + $0x1ce] sm:$0xff]  ;;  %v4509_v56 = vmax.f32 %v4445_v31, %v4477_v57  ;;  %v4447_v41 = vmax.f32 %v4383_v39, %v4415_v49  ;;  %v4257_v48 = vld [vmem:[#allocation3 + $0x1e6] sm:$0xff]  ;;  %v4446_v22 = vmax.f32 %v4382_v63, %v4414_v13  ;;  %v8157_v13 = vpop.f32.mrf.mxu0 }
 0x1dd   : > { %v4288_v4 = vld [vmem:[#allocation3 + $0x1cf] sm:$0xff]  ;;  %v4289_v45 = vld [vmem:[#allocation3 + $0x1e7] sm:$0xff] }
 0x1de   : > { %v4352_v40 = vld [vmem:[#allocation3 + $0x1d0] sm:$0xff]  ;;  %v4320_v59 = vmax.f32 %v4256_v34, %v4288_v4  ;;  %v4353_v35 = vld [vmem:[#allocation3 + $0x1e8] sm:$0xff]  ;;  %5762 = vmatprep.mubr.msk.f32.mxu1 %vm215_vm1, %v4509_v56  ;;  %v4321_v58 = vmax.f32 %v4257_v48, %v4289_v45  ;;  %v4510_v43 = vmax.f32 %v4446_v22, %v4478_v19  ;;  %v386_v31 = vld [vmem:[#allocation4 + $0xc0] sm:$0xff]  ;;  %v2117_v4 = vadd.f32 %v7972_v62, %v1759_v30 }
 0x1df   : > { %v4479_v54 = vld [vmem:[#allocation3 + $0x1ca] sm:$0xff]  ;;  %v4480_v26 = vld [vmem:[#allocation3 + $0x1d2] sm:$0xff] }
 0x1e0   : > { %v4384_v6 = vmax.f32 %v4320_v59, %v4352_v40  ;;  %v4417_v61 = vld [vmem:[#allocation3 + $0x1e9] sm:$0xff]  ;;  %v4511_v53 = vmax.f32 %v4447_v41, %v4479_v54  ;;  %v4418_v20 = vld [vmem:[#allocation3 + $0x1f1] sm:$0xff]  ;;  %v4385_v25 = vmax.f32 %v4321_v58, %v4353_v35  ;;  %5763 = vmatmul.mubr.msk.f32.gmra.mxu1 %vm215_vm1, %v4510_v43  ;;  %2149 = vst.msk [vmem:[#allocation4 + $0x40] sm:$0xff] %vm297_vm3, %v2117_v4 }
 0x1e1   : > { %v4258_v11 = vld [vmem:[#allocation3 + $0x1ee] sm:$0xff]  ;;  %v8434_v19 = vld [vmem:[#allocation16_spill] sm:$0xff] }
 0x1e2   : > { %v4290_v55 = vld [vmem:[#allocation3 + $0x1ef] sm:$0xff]  ;;  %v4448_v12 = vmax.f32 %v4384_v6, %v4416_v37  ;;  %v4449_v49 = vmax.f32 %v4385_v25, %v4417_v61  ;;  %v1762_v40 = vld [vmem:[#allocation4 + $0x58] sm:$0xff]  ;;  %5765 = vmatprep.mubr.msk.f32.mxu1 %vm215_vm1, %v4511_v53  ;;  %v1763_v61 = vld [vmem:[#allocation4 + $0x60] sm:$0xff] }
 0x1e3   : > { %v4481_v52 = vld [vmem:[#allocation3 + $0x1ea] sm:$0xff]  ;;  %v4322_v0 = vmax.f32 %v4258_v11, %v4290_v55  ;;  %v4482_v33 = vld [vmem:[#allocation3 + $0x1f2] sm:$0xff]  ;;  %v2120_v37 = vadd.f32 %v7995_v5, %v1762_v40  ;;  %v390_v11 = vld [vmem:[#allocation4 + $0xe0] sm:$0xff]  ;;  %v2121_v53 = vadd.f32 %v8068_v23, %v1763_v61 }
 0x1e4   : > { %v4354_v16 = vld [vmem:[#allocation3 + $0x1f0] sm:$0xff]  ;;  %v1760_v2 = vld [vmem:[#allocation4 + $0x48] sm:$0xff]  ;;  %v4512_v39 = vmax.f32 %v4448_v12, %v4480_v26  ;;  %v389_v56 = vld [vmem:[#allocation4 + $0xd8] sm:$0xff]  ;;  %v4513_v35 = vmax.f32 %v4449_v49, %v4481_v52 }
 0x1e5   : > { %v1757_v1 = vld [vmem:[#allocation4 + $0x30] sm:$0xff]  ;;  %v4386_v44 = vmax.f32 %v4322_v0, %v4354_v16  ;;  %v8432_v32 = vld [vmem:[#allocation14_spill] sm:$0xff]  ;;  %v2118_v57 = vadd.f32 %v8433_v28, %v1760_v2  ;;  %v748_v48 = vadd.f32 %v7974_v3, %v389_v56  ;;  %v1766_v55 = vld [vmem:[#allocation4 + $0x78] sm:$0xff]  ;;  %2152 = vst.msk [vmem:[#allocation4 + $0x58] sm:$0xff] %vm297_vm3, %v2120_v37  ;;  %v5681_v16 = vpop.f32.mrf.mxu0 }
 0x1e6   : > { %v384_v17 = vld [vmem:[#allocation4 + $0xb0] sm:$0xff]  ;;  %v387_v38 = vld [vmem:[#allocation4 + $0xc8] sm:$0xff]  ;;  %v393_v52 = vld [vmem:[#allocation4 + $0xf8] sm:$0xff]  ;;  %5766 = vmatmul.mubr.msk.f32.gmra.mxu1 %vm215_vm1, %v4512_v39  ;;  %2153 = vst.msk [vmem:[#allocation4 + $0x60] sm:$0xff] %vm297_vm3, %v2121_v53 }
 0x1e7   : > { %v8431_v15 = vld [vmem:[#allocation15_spill] sm:$0xff]  ;;  %v743_v47 = vadd.f32 %v8432_v32, %v384_v17  ;;  %v746_v34 = vadd.f32 %v8434_v19, %v387_v38  ;;  %v4450_v41 = vmax.f32 %v4386_v44, %v4418_v20  ;;  %2150 = vst.msk [vmem:[#allocation4 + $0x48] sm:$0xff] %vm297_vm3, %v2118_v57  ;;  %v8435_v54 = vld [vmem:[#allocation18_spill] sm:$0xff]  ;;  %781 = vst.msk [vmem:[#allocation4 + $0xd8] sm:$0xff] %vm297_vm3, %v748_v48  ;;  %5768 = vmatprep.mubr.msk.f32.mxu1 %vm215_vm1, %v4513_v35 }
 0x1e8   : > { %v2115_v29 = vadd.f32 %v8431_v15, %v1757_v1  ;;  %v1761_v63 = vld [vmem:[#allocation4 + $0x50] sm:$0xff]  ;;  %v745_v59 = vadd.f32 %v8435_v54, %v386_v31  ;;  %v1764_v62 = vld [vmem:[#allocation4 + $0x68] sm:$0xff]  ;;  %v2124_v20 = vadd.f32 %v8098_v36, %v1766_v55  ;;  %v1767_v12 = vld [vmem:[#allocation4 + $0x80] sm:$0xff] }
 0x1e9   : > { %776 = vst.msk [vmem:[#allocation4 + $0xb0] sm:$0xff] %vm297_vm3, %v743_v47  ;;  %v388_v26 = vld [vmem:[#allocation4 + $0xd0] sm:$0xff]  ;;  %v391_v45 = vld [vmem:[#allocation4 + $0xe8] sm:$0xff]  ;;  %779 = vst.msk [vmem:[#allocation4 + $0xc8] sm:$0xff] %vm297_vm3, %v746_v34  ;;  %v2119_v22 = vadd.f32 %v8012_v7, %v1761_v63  ;;  %v2122_v58 = vadd.f32 %v8041_v51, %v1764_v62  ;;  %v4514_v5 = vmax.f32 %v4450_v41, %v4482_v33  ;;  %v2040_v51 = vpop.f32.mrf.mxu1 }
 0x1ea   : > { %2147 = vst.msk [vmem:[#allocation4 + $0x30] sm:$0xff] %vm297_vm3, %v2115_v29  ;;  %v747_v6 = vadd.f32 %v7997_v24, %v388_v26  ;;  %778 = vst.msk [vmem:[#allocation4 + $0xc0] sm:$0xff] %vm297_vm3, %v745_v59  ;;  %v750_v3 = vadd.f32 %v8014_v8, %v391_v45  ;;  %v749_v7 = vadd.f32 %v8043_v14, %v390_v11  ;;  %v1765_v24 = vld [vmem:[#allocation4 + $0x70] sm:$0xff]  ;;  %v1768_v43 = vld [vmem:[#allocation4 + $0x88] sm:$0xff] }
 0x1eb   : > { %v392_v0 = vld [vmem:[#allocation4 + $0xf0] sm:$0xff]  ;;  %2151 = vst.msk [vmem:[#allocation4 + $0x50] sm:$0xff] %vm297_vm3, %v2119_v22  ;;  %2154 = vst.msk [vmem:[#allocation4 + $0x68] sm:$0xff] %vm297_vm3, %v2122_v58  ;;  %v752_v8 = vadd.f32 %v8070_v42, %v393_v52  ;;  %v2123_v23 = vadd.f32 %v8125_v18, %v1765_v24  ;;  %v3134_v25 = vld [vmem:[#allocation4 + $0x8] sm:$0xff]  ;;  %v2126_v33 = vadd.f32 %v8142_v10, %v1768_v43  ;;  %v5655_v32 = vpop.f32.mrf.mxu1  ;;  %5769 = vmatmul.mubr.msk.f32.gmra.mxu1 %vm215_vm1, %v4514_v5 }
 0x1ec   : > { %780 = vst.msk [vmem:[#allocation4 + $0xd0] sm:$0xff] %vm297_vm3, %v747_v6  ;;  %v751_v14 = vadd.f32 %v8100_v27, %v392_v0  ;;  %783 = vst.msk [vmem:[#allocation4 + $0xe8] sm:$0xff] %vm297_vm3, %v750_v3  ;;  %v2125_v36 = vadd.f32 %v8147_v21, %v1767_v12  ;;  %v3492_v42 = vadd.f32 %v8127_v46, %v3134_v25  ;;  %v1770_v18 = vld [vmem:[#allocation4 + $0x98] sm:$0xff]  ;;  %v3133_v1 = vld [vmem:[#allocation4] sm:$0xff]  ;;  %v3352_v46 = vpop.f32.mrf.mxu0 }
 0x1ed   : > { %782 = vst.msk [vmem:[#allocation4 + $0xe0] sm:$0xff] %vm297_vm3, %v749_v7  ;;  %v1769_v27 = vld [vmem:[#allocation4 + $0x90] sm:$0xff]  ;;  %2156 = vst.msk [vmem:[#allocation4 + $0x78] sm:$0xff] %vm297_vm3, %v2124_v20  ;;  %v2128_v17 = vadd.f32 %v8155_v9, %v1770_v18  ;;  %v3491_v2 = vadd.f32 %v8144_v60, %v3133_v1  ;;  %v3136_v44 = vld [vmem:[#allocation4 + $0x18] sm:$0xff]  ;;  %v2050_v30 = vpop.f32.mrf.mxu1 }
 0x1ee   : > { %785 = vst.msk [vmem:[#allocation4 + $0xf8] sm:$0xff] %vm297_vm3, %v752_v8  ;;  %2155 = vst.msk [vmem:[#allocation4 + $0x70] sm:$0xff] %vm297_vm3, %v2123_v23  ;;  %v2127_v10 = vadd.f32 %v2040_v51, %v1769_v27  ;;  %v1772_v21 = vld [vmem:[#allocation4 + $0xa8] sm:$0xff]  ;;  %v3135_v15 = vld [vmem:[#allocation4 + $0x10] sm:$0xff]  ;;  %v3494_v29 = vadd.f32 %v8149_v50, %v3136_v44  ;;  %v5684_v39 = vpop.f32.mrf.mxu0 }
 0x1ef   : > { %784 = vst.msk [vmem:[#allocation4 + $0xf0] sm:$0xff] %vm297_vm3, %v751_v14  ;;  %2158 = vst.msk [vmem:[#allocation4 + $0x88] sm:$0xff] %vm297_vm3, %v2126_v33  ;;  %v3493_v47 = vadd.f32 %v8157_v13, %v3135_v15  ;;  %v3138_v28 = vld [vmem:[#allocation4 + $0x28] sm:$0xff]  ;;  %v2130_v60 = vadd.f32 %v5655_v32, %v1772_v21  ;;  %v3137_v38 = vld [vmem:[#allocation4 + $0x20] sm:$0xff]  ;;  %v5658_v56 = vpop.f32.mrf.mxu1 }
 0x1f0   : > { %2157 = vst.msk [vmem:[#allocation4 + $0x80] sm:$0xff] %vm297_vm3, %v2125_v36  ;;  %3524 = vst.msk [vmem:[#allocation4 + $0x8] sm:$0xff] %vm297_vm3, %v3492_v42  ;;  %v3496_v57 = vadd.f32 %v5681_v16, %v3138_v28  ;;  %v1771_v50 = vld [vmem:[#allocation4 + $0xa0] sm:$0xff]  ;;  %v3495_v31 = vadd.f32 %v3352_v46, %v3137_v38  ;;  %v3140_v13 = vld [vmem:[#allocation4 + $0x38] sm:$0xff]  ;;  %v3362_v34 = vpop.f32.mrf.mxu0 }
 0x1f1   : > { %2160 = vst.msk [vmem:[#allocation4 + $0x98] sm:$0xff] %vm297_vm3, %v2128_v17  ;;  %3523 = vst.msk [vmem:[#allocation4] sm:$0xff] %vm297_vm3, %v3491_v2  ;;  %v2129_v9 = vadd.f32 %v2050_v30, %v1771_v50  ;;  %v3498_v49 = vadd.f32 %v5684_v39, %v3140_v13  ;;  %v3139_v19 = vld [vmem:[#allocation4 + $0x30] sm:$0xff]  ;;  %v1774_v40 = vld [vmem:[#allocation4 + $0xb8] sm:$0xff]  ;;  %v2060_v54 = vpop.f32.mrf.mxu1 }
 0x1f2   : > { %2159 = vst.msk [vmem:[#allocation4 + $0x90] sm:$0xff] %vm297_vm3, %v2127_v10  ;;  %3526 = vst.msk [vmem:[#allocation4 + $0x18] sm:$0xff] %vm297_vm3, %v3494_v29  ;;  %v3497_v4 = vadd.f32 %v3362_v34, %v3139_v19  ;;  %v2132_v63 = vadd.f32 %v5658_v56, %v1774_v40  ;;  %v1773_v41 = vld [vmem:[#allocation4 + $0xb0] sm:$0xff]  ;;  %v1776_v37 = vld [vmem:[#allocation4 + $0xc8] sm:$0xff]  ;;  %v5687_v6 = vpop.f32.mrf.mxu0 }
 0x1f3   : > { %3525 = vst.msk [vmem:[#allocation4 + $0x10] sm:$0xff] %vm297_vm3, %v3493_v47  ;;  %2162 = vst.msk [vmem:[#allocation4 + $0xa8] sm:$0xff] %vm297_vm3, %v2130_v60  ;;  %v2131_v59 = vadd.f32 %v2060_v54, %v1773_v41  ;;  %v5661_v48 = vpop.f32.mrf.mxu1  ;;  %v1775_v62 = vld [vmem:[#allocation4 + $0xc0] sm:$0xff]  ;;  %v3142_v22 = vld [vmem:[#allocation4 + $0x48] sm:$0xff] }
 0x1f4   : > { %3528 = vst.msk [vmem:[#allocation4 + $0x28] sm:$0xff] %vm297_vm3, %v3496_v57  ;;  %3527 = vst.msk [vmem:[#allocation4 + $0x20] sm:$0xff] %vm297_vm3, %v3495_v31  ;;  %v2134_v26 = vadd.f32 %v5661_v48, %v1776_v37  ;;  %v3500_v58 = vadd.f32 %v5687_v6, %v3142_v22  ;;  %v3141_v61 = vld [vmem:[#allocation4 + $0x40] sm:$0xff]  ;;  %v3372_v11 = vpop.f32.mrf.mxu0  ;;  %v1778_v5 = vld [vmem:[#allocation4 + $0xd8] sm:$0xff] }
 0x1f5   : > { %2161 = vst.msk [vmem:[#allocation4 + $0xa0] sm:$0xff] %vm297_vm3, %v2129_v9  ;;  %3530 = vst.msk [vmem:[#allocation4 + $0x38] sm:$0xff] %vm297_vm3, %v3498_v49  ;;  %v2070_v45 = vpop.f32.mrf.mxu1  ;;  %v3499_v55 = vadd.f32 %v3372_v11, %v3141_v61  ;;  %v1777_v7 = vld [vmem:[#allocation4 + $0xd0] sm:$0xff]  ;;  %v3144_v0 = vld [vmem:[#allocation4 + $0x58] sm:$0xff] }
 0x1f6   : > { %3529 = vst.msk [vmem:[#allocation4 + $0x30] sm:$0xff] %vm297_vm3, %v3497_v4  ;;  %2164 = vst.msk [vmem:[#allocation4 + $0xb8] sm:$0xff] %vm297_vm3, %v2132_v63  ;;  %v2133_v35 = vadd.f32 %v2070_v45, %v1775_v62  ;;  %v5690_v51 = vpop.f32.mrf.mxu0  ;;  %v3143_v20 = vld [vmem:[#allocation4 + $0x50] sm:$0xff]  ;;  %v1780_v14 = vld [vmem:[#allocation4 + $0xe8] sm:$0xff] }
 0x1f7   : > { %2163 = vst.msk [vmem:[#allocation4 + $0xb0] sm:$0xff] %vm297_vm3, %v2131_v59  ;;  %2166 = vst.msk [vmem:[#allocation4 + $0xc8] sm:$0xff] %vm297_vm3, %v2134_v26  ;;  %v5664_v3 = vpop.f32.mrf.mxu1  ;;  %v3502_v16 = vadd.f32 %v5690_v51, %v3144_v0  ;;  %v1779_v25 = vld [vmem:[#allocation4 + $0xe0] sm:$0xff]  ;;  %v3146_v36 = vld [vmem:[#allocation4 + $0x68] sm:$0xff] }
 0x1f8   : > { %2165 = vst.msk [vmem:[#allocation4 + $0xc0] sm:$0xff] %vm297_vm3, %v2133_v35  ;;  %3532 = vst.msk [vmem:[#allocation4 + $0x48] sm:$0xff] %vm297_vm3, %v3500_v58  ;;  %v2136_v53 = vadd.f32 %v5664_v3, %v1778_v5  ;;  %v3382_v8 = vpop.f32.mrf.mxu0  ;;  %v3145_v27 = vld [vmem:[#allocation4 + $0x60] sm:$0xff]  ;;  %v1782_v10 = vld [vmem:[#allocation4 + $0xf8] sm:$0xff] }
 0x1f9   : > { %3531 = vst.msk [vmem:[#allocation4 + $0x40] sm:$0xff] %vm297_vm3, %v3499_v55  ;;  %v2080_v52 = vpop.f32.mrf.mxu1  ;;  %3534 = vst.msk [vmem:[#allocation4 + $0x58] sm:$0xff] %vm297_vm3, %v3502_v16  ;;  %v3501_v23 = vadd.f32 %v3382_v8, %v3143_v20  ;;  %v1781_v15 = vld [vmem:[#allocation4 + $0xf0] sm:$0xff]  ;;  %v4516_v32 = vld [vmem:[#allocation4 + $0x8] sm:$0xff] }
 0x1fa   : > { %2168 = vst.msk [vmem:[#allocation4 + $0xd8] sm:$0xff] %vm297_vm3, %v2136_v53  ;;  %v2135_v24 = vadd.f32 %v2080_v52, %v1777_v7  ;;  %v5693_v42 = vpop.f32.mrf.mxu0  ;;  %v3148_v60 = vld [vmem:[#allocation4 + $0x78] sm:$0xff]  ;;  %v4515_v38 = vld [vmem:[#allocation4] sm:$0xff]  ;;  %v3147_v9 = vld [vmem:[#allocation4 + $0x70] sm:$0xff] }
 0x1fb   : > { %3533 = vst.msk [vmem:[#allocation4 + $0x50] sm:$0xff] %vm297_vm3, %v3501_v23  ;;  %v5667_v43 = vpop.f32.mrf.mxu1  ;;  %v3504_v1 = vadd.f32 %v5693_v42, %v3146_v36  ;;  %v8241_v49 = vld [vmem:[%s8403_s2] ss:$0 sm:$0xff]  ;;  %v4518_v19 = vld [vmem:[#allocation4 + $0x18] sm:$0xff]  ;;  %v4517_v63 = vld [vmem:[#allocation4 + $0x10] sm:$0xff] }
 0x1fc   : > { %2167 = vst.msk [vmem:[#allocation4 + $0xd0] sm:$0xff] %vm297_vm3, %v2135_v24  ;;  %v2138_v12 = vadd.f32 %v5667_v43, %v1780_v14  ;;  %v3392_v17 = vpop.f32.mrf.mxu0  ;;  %v3150_v62 = vld [vmem:[#allocation4 + $0x88] sm:$0xff]  ;;  %v3149_v61 = vld [vmem:[#allocation4 + $0x80] sm:$0xff]  ;;  %v3152_v0 = vld [vmem:[#allocation4 + $0x98] sm:$0xff] }
 0x1fd   : > { %v2090_v33 = vpop.f32.mrf.mxu1  ;;  %3536 = vst.msk [vmem:[#allocation4 + $0x68] sm:$0xff] %vm297_vm3, %v3504_v1  ;;  %v3503_v2 = vadd.f32 %v3392_v17, %v3145_v27  ;;  %v4520_v20 = vld [vmem:[#allocation4 + $0x28] sm:$0xff]  ;;  %v4519_v42 = vld [vmem:[#allocation4 + $0x20] sm:$0xff] }
 0x1fe   : > { %2170 = vst.msk [vmem:[#allocation4 + $0xe8] sm:$0xff] %vm297_vm3, %v2138_v12  ;;  %v2137_v18 = vadd.f32 %v2090_v33, %v1779_v25  ;;  %v3151_v33 = vld [vmem:[#allocation4 + $0x90] sm:$0xff] }
 0x1ff   : > { %3535 = vst.msk [vmem:[#allocation4 + $0x60] sm:$0xff] %vm297_vm3, %v3503_v2 }
 0x200   : > { %2169 = vst.msk [vmem:[#allocation4 + $0xe0] sm:$0xff] %vm297_vm3, %v2137_v18 }
 0x202   : > { %v5670_v44 = vpop.f32.mrf.mxu1 }
 0x203   : > { %v2140_v21 = vadd.f32 %v5670_v44, %v1782_v10 }
 0x204   : > { %v2100_v46 = vpop.f32.mrf.mxu1 }
 0x205   : > { %2172 = vst.msk [vmem:[#allocation4 + $0xf8] sm:$0xff] %vm297_vm3, %v2140_v21  ;;  %v2139_v29 = vadd.f32 %v2100_v46, %v1781_v15  ;;  %v4522_v46 = vld [vmem:[#allocation4 + $0x38] sm:$0xff] }
 0x206   : > { %v5725_v47 = vpop.f32.mrf.mxu1 }
 0x207   : > { %2171 = vst.msk [vmem:[#allocation4 + $0xf0] sm:$0xff] %vm297_vm3, %v2139_v29  ;;  %v4874_v28 = vadd.f32 %v5725_v47, %v4516_v32 }
 0x208   : > { %v4714_v50 = vpop.f32.mrf.mxu1 }
 0x209   : > { %4906 = vst.msk [vmem:[#allocation4 + $0x8] sm:$0xff] %vm297_vm3, %v4874_v28  ;;  %v4873_v31 = vadd.f32 %v4714_v50, %v4515_v38 }
 0x20a   : > { %v5696_v57 = vpop.f32.mrf.mxu0 }
 0x20b   : > { %v3506_v30 = vadd.f32 %v5696_v57, %v3148_v60  ;;  %4905 = vst.msk [vmem:[#allocation4] sm:$0xff] %vm297_vm3, %v4873_v31  ;;  %v4521_v57 = vld [vmem:[#allocation4 + $0x30] sm:$0xff] }
 0x20c   : > { %v3402_v13 = vpop.f32.mrf.mxu0 }
 0x20d   : > { %3538 = vst.msk [vmem:[#allocation4 + $0x78] sm:$0xff] %vm297_vm3, %v3506_v30  ;;  %v3505_v39 = vadd.f32 %v3402_v13, %v3147_v9 }
 0x20f   : > { %3537 = vst.msk [vmem:[#allocation4 + $0x70] sm:$0xff] %vm297_vm3, %v3505_v39  ;;  %v3154_v39 = vld [vmem:[#allocation4 + $0xa8] sm:$0xff] }
 0x210   : > { %v4941_v4 = vld [vmem:[#allocation4 + $0x8] sm:$0xff] }
 0x211   : > { %v4980_v56 = vadd.f32 %v8241_v49, %v4941_v4 }
 0x212   : > { %v5728_v34 = vpop.f32.mrf.mxu1  ;;  %v4940_v54 = vld [vmem:[#allocation4] sm:$0xff] }
 0x213   : > { %v4876_v40 = vadd.f32 %v5728_v34, %v4518_v19  ;;  %v5012_v37 = vadd.f32 3.0, %v4980_v56  ;;  %v4979_v48 = vadd.f32 %v8241_v49, %v4940_v54 }
 0x214   : > { %v4724_v41 = vpop.f32.mrf.mxu1 }
 0x215   : > { %4908 = vst.msk [vmem:[#allocation4 + $0x18] sm:$0xff] %vm297_vm3, %v4876_v40  ;;  %v4875_v59 = vadd.f32 %v4724_v41, %v4517_v63  ;;  %v5044_v26 = vmax.f32 %v5012_v37, 0.0  ;;  %v5011_v35 = vadd.f32 3.0, %v4979_v48  ;;  %v3153_v63 = vld [vmem:[#allocation4 + $0xa0] sm:$0xff] }
 0x217   : > { %4907 = vst.msk [vmem:[#allocation4 + $0x10] sm:$0xff] %vm297_vm3, %v4875_v59  ;;  %v5076_v6 = vmin.f32 %v5044_v26, 6.0  ;;  %v5043_v58 = vmax.f32 %v5011_v35, 0.0  ;;  %v4524_v26 = vld [vmem:[#allocation4 + $0x48] sm:$0xff] }
 0x219   : > { %v5108_v5 = vmul.f32 %v5076_v6, %v4980_v56  ;;  %v5075_v3 = vmin.f32 %v5043_v58, 6.0  ;;  %v3156_v58 = vld [vmem:[#allocation4 + $0xb8] sm:$0xff] }
 0x21a   : > { %v5699_v45 = vpop.f32.mrf.mxu0 }
 0x21b   : > { %v3508_v22 = vadd.f32 %v5699_v45, %v3150_v62  ;;  %v5141_v52 = vmul.f32 0.16666667, %v5108_v5  ;;  %v5107_v24 = vmul.f32 %v5075_v3, %v4979_v48 }
 0x21c   : > { %v3412_v11 = vpop.f32.mrf.mxu0  ;;  %v4943_v53 = vld [vmem:[#allocation4 + $0x18] sm:$0xff] }
 0x21d   : > { %3540 = vst.msk [vmem:[#allocation4 + $0x88] sm:$0xff] %vm297_vm3, %v3508_v22  ;;  %v3507_v55 = vadd.f32 %v3412_v11, %v3149_v61  ;;  %v4982_v7 = vadd.f32 %v8241_v49, %v4943_v53  ;;  %5173 = vst.msk [vmem:[%s8253_s5 + $0x8] sm:$0xff] %vm297_vm3, %v5141_v52  ;;  %v5140_v25 = vmul.f32 0.16666667, %v5107_v24  ;;  %v4523_v52 = vld [vmem:[#allocation4 + $0x40] sm:$0xff] }
 0x21e   : > { %v4942_v16 = vld [vmem:[#allocation4 + $0x10] sm:$0xff] }
 0x21f   : > { %3539 = vst.msk [vmem:[#allocation4 + $0x80] sm:$0xff] %vm297_vm3, %v3507_v55  ;;  %v5014_v23 = vadd.f32 3.0, %v4982_v7  ;;  %v4981_v43 = vadd.f32 %v8241_v49, %v4942_v16  ;;  %5172 = vst.msk [vmem:[%s8253_s5] sm:$0xff] %vm297_vm3, %v5140_v25  ;;  %v4526_v25 = vld [vmem:[#allocation4 + $0x58] sm:$0xff] }
 0x221   : > { %v5046_v1 = vmax.f32 %v5014_v23, 0.0  ;;  %v5013_v27 = vadd.f32 3.0, %v4981_v43 }
 0x223   : > { %v5731_v8 = vpop.f32.mrf.mxu1  ;;  %v5078_v10 = vmin.f32 %v5046_v1, 6.0  ;;  %v5045_v44 = vmax.f32 %v5013_v27, 0.0  ;;  %v4525_v27 = vld [vmem:[#allocation4 + $0x50] sm:$0xff] }
 0x224   : > { %v5702_v51 = vpop.f32.mrf.mxu0  ;;  %v4878_v12 = vadd.f32 %v5731_v8, %v4520_v20 }
 0x225   : > { %v3510_v14 = vadd.f32 %v5702_v51, %v3152_v0  ;;  %v4734_v18 = vpop.f32.mrf.mxu1  ;;  %v5110_v21 = vmul.f32 %v5078_v10, %v4982_v7  ;;  %v5077_v15 = vmin.f32 %v5045_v44, 6.0  ;;  %v3155_v0 = vld [vmem:[#allocation4 + $0xb0] sm:$0xff] }
 0x226   : > { %v3422_v36 = vpop.f32.mrf.mxu0  ;;  %4910 = vst.msk [vmem:[#allocation4 + $0x28] sm:$0xff] %vm297_vm3, %v4878_v12  ;;  %v4877_v2 = vadd.f32 %v4734_v18, %v4519_v42 }
 0x227   : > { %3542 = vst.msk [vmem:[#allocation4 + $0x98] sm:$0xff] %vm297_vm3, %v3510_v14  ;;  %v3509_v17 = vadd.f32 %v3422_v36, %v3151_v33  ;;  %v5143_v32 = vmul.f32 0.16666667, %v5110_v21  ;;  %v5109_v47 = vmul.f32 %v5077_v15, %v4981_v43 }
 0x228   : > { %4909 = vst.msk [vmem:[#allocation4 + $0x20] sm:$0xff] %vm297_vm3, %v4877_v2 }
 0x229   : > { %3541 = vst.msk [vmem:[#allocation4 + $0x90] sm:$0xff] %vm297_vm3, %v3509_v17  ;;  %5175 = vst.msk [vmem:[%s8253_s5 + $0x18] sm:$0xff] %vm297_vm3, %v5143_v32  ;;  %v5142_v50 = vmul.f32 0.16666667, %v5109_v47 }
 0x22b   : > { %v5734_v29 = vpop.f32.mrf.mxu1  ;;  %5174 = vst.msk [vmem:[%s8253_s5 + $0x10] sm:$0xff] %vm297_vm3, %v5142_v50 }
 0x22c   : > { %v4880_v28 = vadd.f32 %v5734_v29, %v4522_v46 }
 0x22d   : > { %v4945_v60 = vld [vmem:[#allocation4 + $0x28] sm:$0xff]  ;;  %v4744_v38 = vpop.f32.mrf.mxu1 }
 0x22e   : > { %v4984_v30 = vadd.f32 %v8241_v49, %v4945_v60  ;;  %4912 = vst.msk [vmem:[#allocation4 + $0x38] sm:$0xff] %vm297_vm3, %v4880_v28  ;;  %v4879_v31 = vadd.f32 %v4744_v38, %v4521_v57  ;;  %v3158_v28 = vld [vmem:[#allocation4 + $0xc8] sm:$0xff] }
 0x22f   : > { %v4944_v9 = vld [vmem:[#allocation4 + $0x20] sm:$0xff] }
 0x230   : > { %v5016_v13 = vadd.f32 3.0, %v4984_v30  ;;  %v4983_v34 = vadd.f32 %v8241_v49, %v4944_v9  ;;  %4911 = vst.msk [vmem:[#allocation4 + $0x30] sm:$0xff] %vm297_vm3, %v4879_v31 }
 0x232   : > { %v5048_v40 = vmax.f32 %v5016_v13, 0.0  ;;  %v5015_v56 = vadd.f32 3.0, %v4983_v34 }
 0x234   : > { %v5080_v59 = vmin.f32 %v5048_v40, 6.0  ;;  %v5047_v37 = vmax.f32 %v5015_v56, 0.0 }
 0x235   : > { %v5705_v19 = vpop.f32.mrf.mxu0  ;;  %v4947_v48 = vld [vmem:[#allocation4 + $0x38] sm:$0xff] }
 0x236   : > { %v3512_v4 = vadd.f32 %v5705_v19, %v3154_v39  ;;  %v5112_v45 = vmul.f32 %v5080_v59, %v4984_v30  ;;  %v5079_v35 = vmin.f32 %v5047_v37, 6.0  ;;  %v4986_v22 = vadd.f32 %v8241_v49, %v4947_v48  ;;  %v3157_v30 = vld [vmem:[#allocation4 + $0xc0] sm:$0xff]  ;;  %v3159_v48 = vld [vmem:[#allocation4 + $0xd0] sm:$0xff] }
 0x237   : > { %v3432_v41 = vpop.f32.mrf.mxu0  ;;  %v4946_v11 = vld [vmem:[#allocation4 + $0x30] sm:$0xff] }
 0x238   : > { %3544 = vst.msk [vmem:[#allocation4 + $0xa8] sm:$0xff] %vm297_vm3, %v3512_v4  ;;  %v3511_v54 = vadd.f32 %v3432_v41, %v3153_v63  ;;  %v5145_v5 = vmul.f32 0.16666667, %v5112_v45  ;;  %v5111_v3 = vmul.f32 %v5079_v35, %v4983_v34  ;;  %v5018_v53 = vadd.f32 3.0, %v4986_v22  ;;  %v3160_v4 = vld [vmem:[#allocation4 + $0xd8] sm:$0xff] }
 0x239   : > { %v4985_v24 = vadd.f32 %v8241_v49, %v4946_v11  ;;  %v4527_v11 = vld [vmem:[#allocation4 + $0x60] sm:$0xff] }
 0x23a   : > { %3543 = vst.msk [vmem:[#allocation4 + $0xa0] sm:$0xff] %vm297_vm3, %v3511_v54  ;;  %5177 = vst.msk [vmem:[%s8253_s5 + $0x28] sm:$0xff] %vm297_vm3, %v5145_v5  ;;  %v5144_v20 = vmul.f32 0.16666667, %v5111_v3  ;;  %v5050_v8 = vmax.f32 %v5018_v53, 0.0 }
 0x23b   : > { %v5017_v14 = vadd.f32 3.0, %v4985_v24 }
 0x23c   : > { %5176 = vst.msk [vmem:[%s8253_s5 + $0x20] sm:$0xff] %vm297_vm3, %v5144_v20  ;;  %v5082_v43 = vmin.f32 %v5050_v8, 6.0 }
 0x23d   : > { %v5049_v12 = vmax.f32 %v5017_v14, 0.0 }
 0x23e   : > { %v5737_v62 = vpop.f32.mrf.mxu1  ;;  %v5114_v36 = vmul.f32 %v5082_v43, %v4986_v22 }
 0x23f   : > { %v4882_v6 = vadd.f32 %v5737_v62, %v4524_v26  ;;  %v5081_v18 = vmin.f32 %v5049_v12, 6.0  ;;  %v4528_v62 = vld [vmem:[#allocation4 + $0x68] sm:$0xff] }
 0x240   : > { %v5708_v61 = vpop.f32.mrf.mxu0  ;;  %v4754_v55 = vpop.f32.mrf.mxu1  ;;  %v5147_v2 = vmul.f32 0.16666667, %v5114_v36 }
 0x241   : > { %v3514_v7 = vadd.f32 %v5708_v61, %v3156_v58  ;;  %4914 = vst.msk [vmem:[#allocation4 + $0x48] sm:$0xff] %vm297_vm3, %v4882_v6  ;;  %v4881_v16 = vadd.f32 %v4754_v55, %v4523_v52  ;;  %v5113_v21 = vmul.f32 %v5081_v18, %v4985_v24 }
 0x242   : > { %v3442_v51 = vpop.f32.mrf.mxu0  ;;  %5179 = vst.msk [vmem:[%s8253_s5 + $0x38] sm:$0xff] %vm297_vm3, %v5147_v2 }
 0x243   : > { %3546 = vst.msk [vmem:[#allocation4 + $0xb8] sm:$0xff] %vm297_vm3, %v3514_v7  ;;  %v3513_v23 = vadd.f32 %v3442_v51, %v3155_v0  ;;  %4913 = vst.msk [vmem:[#allocation4 + $0x40] sm:$0xff] %vm297_vm3, %v4881_v16  ;;  %v5146_v29 = vmul.f32 0.16666667, %v5113_v21  ;;  %v4530_v0 = vld [vmem:[#allocation4 + $0x78] sm:$0xff] }
 0x245   : > { %3545 = vst.msk [vmem:[#allocation4 + $0xb0] sm:$0xff] %vm297_vm3, %v3513_v23  ;;  %5178 = vst.msk [vmem:[%s8253_s5 + $0x30] sm:$0xff] %vm297_vm3, %v5146_v29  ;;  %v4529_v23 = vld [vmem:[#allocation4 + $0x70] sm:$0xff] }
 0x248   : > { %v5740_v33 = vpop.f32.mrf.mxu1  ;;  %v4949_v1 = vld [vmem:[#allocation4 + $0x48] sm:$0xff] }
 0x249   : > { %v4884_v42 = vadd.f32 %v5740_v33, %v4526_v25  ;;  %v4988_v10 = vadd.f32 %v8241_v49, %v4949_v1 }
 0x24a   : > { %v4764_v17 = vpop.f32.mrf.mxu1  ;;  %v4948_v46 = vld [vmem:[#allocation4 + $0x40] sm:$0xff] }
 0x24b   : > { %4916 = vst.msk [vmem:[#allocation4 + $0x58] sm:$0xff] %vm297_vm3, %v4884_v42  ;;  %v4883_v44 = vadd.f32 %v4764_v17, %v4525_v27  ;;  %v5020_v15 = vadd.f32 3.0, %v4988_v10  ;;  %v4987_v32 = vadd.f32 %v8241_v49, %v4948_v46  ;;  %v3162_v27 = vld [vmem:[#allocation4 + $0xe8] sm:$0xff]  ;;  %v3161_v46 = vld [vmem:[#allocation4 + $0xe0] sm:$0xff] }
 0x24d   : > { %4915 = vst.msk [vmem:[#allocation4 + $0x50] sm:$0xff] %vm297_vm3, %v4883_v44  ;;  %v5052_v47 = vmax.f32 %v5020_v15, 0.0  ;;  %v5019_v38 = vadd.f32 3.0, %v4987_v32 }
 0x24f   : > { %v5084_v50 = vmin.f32 %v5052_v47, 6.0  ;;  %v5051_v9 = vmax.f32 %v5019_v38, 0.0  ;;  %v4532_v47 = vld [vmem:[#allocation4 + $0x88] sm:$0xff] }
 0x251   : > { %v5711_v60 = vpop.f32.mrf.mxu0  ;;  %v5116_v19 = vmul.f32 %v5084_v50, %v4988_v10  ;;  %v5083_v56 = vmin.f32 %v5051_v9, 6.0 }
 0x252   : > { %v3516_v57 = vadd.f32 %v5711_v60, %v3158_v28  ;;  %v4951_v39 = vld [vmem:[#allocation4 + $0x58] sm:$0xff] }
 0x253   : > { %v3452_v31 = vpop.f32.mrf.mxu0  ;;  %v4990_v34 = vadd.f32 %v8241_v49, %v4951_v39  ;;  %v5149_v54 = vmul.f32 0.16666667, %v5116_v19  ;;  %v5115_v35 = vmul.f32 %v5083_v56, %v4987_v32  ;;  %v3164_v56 = vld [vmem:[#allocation4 + $0xf8] sm:$0xff] }
 0x254   : > { %3548 = vst.msk [vmem:[#allocation4 + $0xc8] sm:$0xff] %vm297_vm3, %v3516_v57  ;;  %v3515_v13 = vadd.f32 %v3452_v31, %v3157_v30  ;;  %v4950_v41 = vld [vmem:[#allocation4 + $0x50] sm:$0xff] }
 0x255   : > { %v5022_v59 = vadd.f32 3.0, %v4990_v34  ;;  %v4989_v37 = vadd.f32 %v8241_v49, %v4950_v41  ;;  %5181 = vst.msk [vmem:[%s8253_s5 + $0x48] sm:$0xff] %vm297_vm3, %v5149_v54  ;;  %v5148_v5 = vmul.f32 0.16666667, %v5115_v35  ;;  %v4534_v35 = vld [vmem:[#allocation4 + $0x98] sm:$0xff] }
 0x256   : > { %3547 = vst.msk [vmem:[#allocation4 + $0xc0] sm:$0xff] %vm297_vm3, %v3515_v13  ;;  %v4531_v13 = vld [vmem:[#allocation4 + $0x80] sm:$0xff] }
 0x257   : > { %v5054_v58 = vmax.f32 %v5022_v59, 0.0  ;;  %v5021_v61 = vadd.f32 3.0, %v4989_v37  ;;  %5180 = vst.msk [vmem:[%s8253_s5 + $0x40] sm:$0xff] %vm297_vm3, %v5148_v5 }
 0x258   : > { %v5714_v40 = vpop.f32.mrf.mxu0 }
 0x259   : > { %v3518_v63 = vadd.f32 %v5714_v40, %v3160_v4  ;;  %v5086_v53 = vmin.f32 %v5054_v58, 6.0  ;;  %v5053_v7 = vmax.f32 %v5021_v61, 0.0 }
 0x25a   : > { %v3462_v26 = vpop.f32.mrf.mxu0 }
 0x25b   : > { %v5743_v45 = vpop.f32.mrf.mxu1  ;;  %3550 = vst.msk [vmem:[#allocation4 + $0xd8] sm:$0xff] %vm297_vm3, %v3518_v63  ;;  %v3517_v22 = vadd.f32 %v3462_v26, %v3159_v48  ;;  %v5118_v52 = vmul.f32 %v5086_v53, %v4990_v34  ;;  %v5085_v24 = vmin.f32 %v5053_v7, 6.0  ;;  %v3163_v26 = vld [vmem:[#allocation4 + $0xf0] sm:$0xff] }
 0x25c   : > { %v4886_v6 = vadd.f32 %v5743_v45, %v4528_v62 }
 0x25d   : > { %v4774_v55 = vpop.f32.mrf.mxu1  ;;  %3549 = vst.msk [vmem:[#allocation4 + $0xd0] sm:$0xff] %vm297_vm3, %v3517_v22  ;;  %v5151_v20 = vmul.f32 0.16666667, %v5118_v52  ;;  %v5117_v8 = vmul.f32 %v5085_v24, %v4989_v37  ;;  %v4536_v24 = vld [vmem:[#allocation4 + $0xa8] sm:$0xff] }
 0x25e   : > { %4918 = vst.msk [vmem:[#allocation4 + $0x68] sm:$0xff] %vm297_vm3, %v4886_v6  ;;  %v4885_v3 = vadd.f32 %v4774_v55, %v4527_v11  ;;  %v4533_v11 = vld [vmem:[#allocation4 + $0x90] sm:$0xff] }
 0x25f   : > { %5183 = vst.msk [vmem:[%s8253_s5 + $0x58] sm:$0xff] %vm297_vm3, %v5151_v20  ;;  %v5150_v12 = vmul.f32 0.16666667, %v5117_v8 }
 0x260   : > { %4917 = vst.msk [vmem:[#allocation4 + $0x60] sm:$0xff] %vm297_vm3, %v4885_v3 }
 0x261   : > { %5182 = vst.msk [vmem:[%s8253_s5 + $0x50] sm:$0xff] %vm297_vm3, %v5150_v12 }
 0x262   : > { %v5746_v51 = vpop.f32.mrf.mxu1 }
 0x263   : > { %v4888_v16 = vadd.f32 %v5746_v51, %v4530_v0 }
 0x264   : > { %v4784_v14 = vpop.f32.mrf.mxu1 }
 0x265   : > { %4920 = vst.msk [vmem:[#allocation4 + $0x78] sm:$0xff] %vm297_vm3, %v4888_v16  ;;  %v4887_v43 = vadd.f32 %v4784_v14, %v4529_v23  ;;  %v4953_v25 = vld [vmem:[#allocation4 + $0x68] sm:$0xff]  ;;  %v4535_v14 = vld [vmem:[#allocation4 + $0xa0] sm:$0xff] }
 0x266   : > { %v4992_v33 = vadd.f32 %v8241_v49, %v4953_v25 }
 0x267   : > { %4919 = vst.msk [vmem:[#allocation4 + $0x70] sm:$0xff] %vm297_vm3, %v4887_v43  ;;  %v4952_v36 = vld [vmem:[#allocation4 + $0x60] sm:$0xff] }
 0x268   : > { %v5024_v42 = vadd.f32 3.0, %v4992_v33  ;;  %v4991_v18 = vadd.f32 %v8241_v49, %v4952_v36  ;;  %v4538_v36 = vld [vmem:[#allocation4 + $0xb8] sm:$0xff] }
 0x26a   : > { %v5056_v1 = vmax.f32 %v5024_v42, 0.0  ;;  %v5023_v2 = vadd.f32 3.0, %v4991_v18 }
 0x26c   : > { %v4955_v44 = vld [vmem:[#allocation4 + $0x78] sm:$0xff]  ;;  %v5088_v21 = vmin.f32 %v5056_v1, 6.0  ;;  %v5055_v15 = vmax.f32 %v5023_v2, 0.0  ;;  %v4537_v2 = vld [vmem:[#allocation4 + $0xb0] sm:$0xff] }
 0x26d   : > { %v4994_v32 = vadd.f32 %v8241_v49, %v4955_v44 }
 0x26e   : > { %v4954_v57 = vld [vmem:[#allocation4 + $0x70] sm:$0xff]  ;;  %v5120_v50 = vmul.f32 %v5088_v21, %v4992_v33  ;;  %v5087_v30 = vmin.f32 %v5055_v15, 6.0 }
 0x26f   : > { %v5717_v17 = vpop.f32.mrf.mxu0  ;;  %v5026_v31 = vadd.f32 3.0, %v4994_v32  ;;  %v4993_v9 = vadd.f32 %v8241_v49, %v4954_v57 }
 0x270   : > { %v3520_v10 = vadd.f32 %v5717_v17, %v3162_v27  ;;  %v5153_v34 = vmul.f32 0.16666667, %v5120_v50  ;;  %v5119_v4 = vmul.f32 %v5087_v30, %v4991_v18 }
 0x271   : > { %v3472_v29 = vpop.f32.mrf.mxu0  ;;  %v5058_v40 = vmax.f32 %v5026_v31, 0.0  ;;  %v5025_v41 = vadd.f32 3.0, %v4993_v9 }
 0x272   : > { %3552 = vst.msk [vmem:[#allocation4 + $0xe8] sm:$0xff] %vm297_vm3, %v3520_v10  ;;  %v3519_v60 = vadd.f32 %v3472_v29, %v3161_v46  ;;  %5185 = vst.msk [vmem:[%s8253_s5 + $0x68] sm:$0xff] %vm297_vm3, %v5153_v34  ;;  %v5152_v59 = vmul.f32 0.16666667, %v5119_v4 }
 0x273   : > { %v5749_v28 = vpop.f32.mrf.mxu1  ;;  %v5090_v37 = vmin.f32 %v5058_v40, 6.0  ;;  %v5057_v48 = vmax.f32 %v5025_v41, 0.0 }
 0x274   : > { %v4890_v38 = vadd.f32 %v5749_v28, %v4532_v47  ;;  %3551 = vst.msk [vmem:[#allocation4 + $0xe0] sm:$0xff] %vm297_vm3, %v3519_v60  ;;  %5184 = vst.msk [vmem:[%s8253_s5 + $0x60] sm:$0xff] %vm297_vm3, %v5152_v59  ;;  %v4540_v59 = vld [vmem:[#allocation4 + $0xc8] sm:$0xff] }
 0x275   : > { %v4794_v39 = vpop.f32.mrf.mxu1  ;;  %v5122_v6 = vmul.f32 %v5090_v37, %v4994_v32  ;;  %v5089_v58 = vmin.f32 %v5057_v48, 6.0 }
 0x276   : > { %4922 = vst.msk [vmem:[#allocation4 + $0x88] sm:$0xff] %vm297_vm3, %v4890_v38  ;;  %v4889_v19 = vadd.f32 %v4794_v39, %v4531_v13 }
 0x277   : > { %v5155_v5 = vmul.f32 0.16666667, %v5122_v6  ;;  %v5121_v3 = vmul.f32 %v5089_v58, %v4993_v9  ;;  %v4539_v58 = vld [vmem:[#allocation4 + $0xc0] sm:$0xff] }
 0x278   : > { %v5720_v63 = vpop.f32.mrf.mxu0  ;;  %4921 = vst.msk [vmem:[#allocation4 + $0x80] sm:$0xff] %vm297_vm3, %v4889_v19 }
 0x279   : > { %v3522_v54 = vadd.f32 %v5720_v63, %v3164_v56  ;;  %5187 = vst.msk [vmem:[%s8253_s5 + $0x78] sm:$0xff] %vm297_vm3, %v5155_v5  ;;  %v5154_v51 = vmul.f32 0.16666667, %v5121_v3 }
 0x27a   : > { %v3482_v62 = vpop.f32.mrf.mxu0 }
 0x27b   : > { %3554 = vst.msk [vmem:[#allocation4 + $0xf8] sm:$0xff] %vm297_vm3, %v3522_v54  ;;  %v3521_v45 = vadd.f32 %v3482_v62, %v3163_v26  ;;  %5186 = vst.msk [vmem:[%s8253_s5 + $0x70] sm:$0xff] %vm297_vm3, %v5154_v51  ;;  %v4542_v51 = vld [vmem:[#allocation4 + $0xd8] sm:$0xff] }
 0x27d   : > { %3553 = vst.msk [vmem:[#allocation4 + $0xf0] sm:$0xff] %vm297_vm3, %v3521_v45  ;;  %v4957_v53 = vld [vmem:[#allocation4 + $0x88] sm:$0xff] }
 0x27e   : > { %v4996_v52 = vadd.f32 %v8241_v49, %v4957_v53 }
 0x27f   : > { %v5752_v22 = vpop.f32.mrf.mxu1  ;;  %v4956_v16 = vld [vmem:[#allocation4 + $0x80] sm:$0xff] }
 0x280   : > { %v4892_v61 = vadd.f32 %v5752_v22, %v4534_v35  ;;  %v5028_v8 = vadd.f32 3.0, %v4996_v52  ;;  %v4995_v23 = vadd.f32 %v8241_v49, %v4956_v16 }
 0x281   : > { %v4804_v55 = vpop.f32.mrf.mxu1 }
 0x282   : > { %4924 = vst.msk [vmem:[#allocation4 + $0x98] sm:$0xff] %vm297_vm3, %v4892_v61  ;;  %v4891_v7 = vadd.f32 %v4804_v55, %v4533_v11  ;;  %v5060_v25 = vmax.f32 %v5028_v8, 0.0  ;;  %v5027_v33 = vadd.f32 3.0, %v4995_v23 }
 0x283   : > { %v5755_v0 = vpop.f32.mrf.mxu1 }
 0x284   : > { %4923 = vst.msk [vmem:[#allocation4 + $0x90] sm:$0xff] %vm297_vm3, %v4891_v7  ;;  %v4894_v20 = vadd.f32 %v5755_v0, %v4536_v24  ;;  %v5092_v1 = vmin.f32 %v5060_v25, 6.0  ;;  %v5059_v27 = vmax.f32 %v5027_v33, 0.0 }
 0x285   : > { %v4814_v43 = vpop.f32.mrf.mxu1 }
 0x286   : > { %4926 = vst.msk [vmem:[#allocation4 + $0xa8] sm:$0xff] %vm297_vm3, %v4894_v20  ;;  %v4893_v12 = vadd.f32 %v4814_v43, %v4535_v14  ;;  %v5124_v15 = vmul.f32 %v5092_v1, %v4996_v52  ;;  %v5091_v46 = vmin.f32 %v5059_v27, 6.0  ;;  %v4541_v43 = vld [vmem:[#allocation4 + $0xd0] sm:$0xff] }
 0x288   : > { %4925 = vst.msk [vmem:[#allocation4 + $0xa0] sm:$0xff] %vm297_vm3, %v4893_v12  ;;  %v5157_v28 = vmul.f32 0.16666667, %v5124_v15  ;;  %v5123_v60 = vmul.f32 %v5091_v46, %v4995_v23 }
 0x289   : > { %v4959_v17 = vld [vmem:[#allocation4 + $0x98] sm:$0xff] }
 0x28a   : > { %v5758_v42 = vpop.f32.mrf.mxu1  ;;  %v4998_v44 = vadd.f32 %v8241_v49, %v4959_v17  ;;  %5189 = vst.msk [vmem:[%s8253_s5 + $0x88] sm:$0xff] %vm297_vm3, %v5157_v28  ;;  %v5156_v31 = vmul.f32 0.16666667, %v5123_v60  ;;  %v4546_v28 = vld [vmem:[#allocation4 + $0xf8] sm:$0xff] }
 0x28b   : > { %v4896_v18 = vadd.f32 %v5758_v42, %v4538_v36  ;;  %v4958_v29 = vld [vmem:[#allocation4 + $0x90] sm:$0xff] }
 0x28c   : > { %v4824_v10 = vpop.f32.mrf.mxu1  ;;  %v5030_v32 = vadd.f32 3.0, %v4998_v44  ;;  %v4997_v47 = vadd.f32 %v8241_v49, %v4958_v29  ;;  %5188 = vst.msk [vmem:[%s8253_s5 + $0x80] sm:$0xff] %vm297_vm3, %v5156_v31  ;;  %v4545_v31 = vld [vmem:[#allocation4 + $0xf0] sm:$0xff] }
 0x28d   : > { %4928 = vst.msk [vmem:[#allocation4 + $0xb8] sm:$0xff] %vm297_vm3, %v4896_v18  ;;  %v4895_v21 = vadd.f32 %v4824_v10, %v4537_v2  ;;  %v4961_v57 = vld [vmem:[#allocation4 + $0xa8] sm:$0xff] }
 0x28e   : > { %v5062_v38 = vmax.f32 %v5030_v32, 0.0  ;;  %v5029_v50 = vadd.f32 3.0, %v4997_v47  ;;  %v5000_v30 = vadd.f32 %v8241_v49, %v4961_v57  ;;  %v4544_v18 = vld [vmem:[#allocation4 + $0xe8] sm:$0xff] }
 0x28f   : > { %4927 = vst.msk [vmem:[#allocation4 + $0xb0] sm:$0xff] %vm297_vm3, %v4895_v21  ;;  %v4960_v9 = vld [vmem:[#allocation4 + $0xa0] sm:$0xff] }
 0x290   : > { %v5094_v13 = vmin.f32 %v5062_v38, 6.0  ;;  %v5061_v39 = vmax.f32 %v5029_v50, 0.0  ;;  %v5032_v19 = vadd.f32 3.0, %v5000_v30  ;;  %v4999_v34 = vadd.f32 %v8241_v49, %v4960_v9  ;;  %v4543_v21 = vld [vmem:[#allocation4 + $0xe0] sm:$0xff] }
 0x292   : > { %v5126_v56 = vmul.f32 %v5094_v13, %v4998_v44  ;;  %v5093_v63 = vmin.f32 %v5061_v39, 6.0  ;;  %v5064_v41 = vmax.f32 %v5032_v19, 0.0  ;;  %v5031_v54 = vadd.f32 3.0, %v4999_v34 }
 0x294   : > { %v4963_v4 = vld [vmem:[#allocation4 + $0xb8] sm:$0xff]  ;;  %v5159_v45 = vmul.f32 0.16666667, %v5126_v56  ;;  %v5125_v35 = vmul.f32 %v5093_v63, %v4997_v47  ;;  %v5096_v22 = vmin.f32 %v5064_v41, 6.0  ;;  %v5063_v6 = vmax.f32 %v5031_v54, 0.0 }
 0x295   : > { %v5002_v37 = vadd.f32 %v8241_v49, %v4963_v4 }
 0x296   : > { %v4962_v48 = vld [vmem:[#allocation4 + $0xb0] sm:$0xff]  ;;  %5191 = vst.msk [vmem:[%s8253_s5 + $0x98] sm:$0xff] %vm297_vm3, %v5159_v45  ;;  %v5158_v5 = vmul.f32 0.16666667, %v5125_v35  ;;  %v5128_v3 = vmul.f32 %v5096_v22, %v5000_v30  ;;  %v5095_v53 = vmin.f32 %v5063_v6, 6.0 }
 0x297   : > { %v5761_v40 = vpop.f32.mrf.mxu1  ;;  %v5034_v61 = vadd.f32 3.0, %v5002_v37  ;;  %v5001_v11 = vadd.f32 %v8241_v49, %v4962_v48 }
 0x298   : > { %v4898_v26 = vadd.f32 %v5761_v40, %v4540_v59  ;;  %5190 = vst.msk [vmem:[%s8253_s5 + $0x90] sm:$0xff] %vm297_vm3, %v5158_v5  ;;  %v5161_v24 = vmul.f32 0.16666667, %v5128_v3  ;;  %v5127_v0 = vmul.f32 %v5095_v53, %v4999_v34 }
 0x299   : > { %v4834_v62 = vpop.f32.mrf.mxu1  ;;  %v5066_v7 = vmax.f32 %v5034_v61, 0.0  ;;  %v5033_v52 = vadd.f32 3.0, %v5001_v11 }
 0x29a   : > { %4930 = vst.msk [vmem:[#allocation4 + $0xc8] sm:$0xff] %vm297_vm3, %v4898_v26  ;;  %v4897_v55 = vadd.f32 %v4834_v62, %v4539_v58  ;;  %5193 = vst.msk [vmem:[%s8253_s5 + $0xa8] sm:$0xff] %vm297_vm3, %v5161_v24  ;;  %v5160_v14 = vmul.f32 0.16666667, %v5127_v0 }
 0x29b   : > { %v5098_v20 = vmin.f32 %v5066_v7, 6.0  ;;  %v5065_v8 = vmax.f32 %v5033_v52, 0.0 }
 0x29c   : > { %4929 = vst.msk [vmem:[#allocation4 + $0xc0] sm:$0xff] %vm297_vm3, %v4897_v55  ;;  %5192 = vst.msk [vmem:[%s8253_s5 + $0xa0] sm:$0xff] %vm297_vm3, %v5160_v14 }
 0x29d   : > { %v5130_v25 = vmul.f32 %v5098_v20, %v5002_v37  ;;  %v5097_v33 = vmin.f32 %v5065_v8, 6.0 }
 0x29f   : > { %v5163_v27 = vmul.f32 0.16666667, %v5130_v25  ;;  %v5129_v17 = vmul.f32 %v5097_v33, %v5001_v11 }
 0x2a0   : > { %v5764_v16 = vpop.f32.mrf.mxu1 }
 0x2a1   : > { %v4900_v23 = vadd.f32 %v5764_v16, %v4542_v51  ;;  %v4965_v42 = vld [vmem:[#allocation4 + $0xc8] sm:$0xff]  ;;  %5195 = vst.msk [vmem:[%s8253_s5 + $0xb8] sm:$0xff] %vm297_vm3, %v5163_v27  ;;  %v5162_v46 = vmul.f32 0.16666667, %v5129_v17 }
 0x2a2   : > { %v4844_v12 = vpop.f32.mrf.mxu1  ;;  %v5004_v2 = vadd.f32 %v8241_v49, %v4965_v42 }
 0x2a3   : > { %4932 = vst.msk [vmem:[#allocation4 + $0xd8] sm:$0xff] %vm297_vm3, %v4900_v23  ;;  %v4899_v36 = vadd.f32 %v4844_v12, %v4541_v43  ;;  %v4964_v44 = vld [vmem:[#allocation4 + $0xc0] sm:$0xff]  ;;  %5194 = vst.msk [vmem:[%s8253_s5 + $0xb0] sm:$0xff] %vm297_vm3, %v5162_v46 }
 0x2a4   : > { %v5036_v29 = vadd.f32 3.0, %v5004_v2  ;;  %v5003_v32 = vadd.f32 %v8241_v49, %v4964_v44 }
 0x2a5   : > { %4931 = vst.msk [vmem:[#allocation4 + $0xd0] sm:$0xff] %vm297_vm3, %v4899_v36 }
 0x2a6   : > { %v5767_v1 = vpop.f32.mrf.mxu1  ;;  %v5068_v57 = vmax.f32 %v5036_v29, 0.0  ;;  %v5035_v38 = vadd.f32 3.0, %v5003_v32 }
 0x2a7   : > { %v4902_v10 = vadd.f32 %v5767_v1, %v4544_v18 }
 0x2a8   : > { %v4854_v15 = vpop.f32.mrf.mxu1  ;;  %v5100_v13 = vmin.f32 %v5068_v57, 6.0  ;;  %v5067_v39 = vmax.f32 %v5035_v38, 0.0 }
 0x2a9   : > { %4934 = vst.msk [vmem:[#allocation4 + $0xe8] sm:$0xff] %vm297_vm3, %v4902_v10  ;;  %v4901_v47 = vadd.f32 %v4854_v15, %v4543_v21 }
 0x2aa   : > { %v4967_v30 = vld [vmem:[#allocation4 + $0xd8] sm:$0xff]  ;;  %v5132_v40 = vmul.f32 %v5100_v13, %v5004_v2  ;;  %v5099_v56 = vmin.f32 %v5067_v39, 6.0 }
 0x2ab   : > { %v5770_v60 = vpop.f32.mrf.mxu1  ;;  %4933 = vst.msk [vmem:[#allocation4 + $0xe0] sm:$0xff] %vm297_vm3, %v4901_v47  ;;  %v5006_v19 = vadd.f32 %v8241_v49, %v4967_v30 }
 0x2ac   : > { %v4904_v50 = vadd.f32 %v5770_v60, %v4546_v28  ;;  %v4966_v4 = vld [vmem:[#allocation4 + $0xd0] sm:$0xff]  ;;  %v5165_v59 = vmul.f32 0.16666667, %v5132_v40  ;;  %v5131_v37 = vmul.f32 %v5099_v56, %v5003_v32 }
 0x2ad   : > { %v4864_v9 = vpop.f32.mrf.mxu1  ;;  %v5038_v63 = vadd.f32 3.0, %v5006_v19  ;;  %v5005_v41 = vadd.f32 %v8241_v49, %v4966_v4 }
 0x2ae   : > { %4936 = vst.msk [vmem:[#allocation4 + $0xf8] sm:$0xff] %vm297_vm3, %v4904_v50  ;;  %v4903_v34 = vadd.f32 %v4864_v9, %v4545_v31  ;;  %5197 = vst.msk [vmem:[%s8253_s5 + $0xc8] sm:$0xff] %vm297_vm3, %v5165_v59  ;;  %v5164_v35 = vmul.f32 0.16666667, %v5131_v37 }
 0x2af   : > { %v5070_v48 = vmax.f32 %v5038_v63, 0.0  ;;  %v5037_v26 = vadd.f32 3.0, %v5005_v41 }
 0x2b0   : > { %4935 = vst.msk [vmem:[#allocation4 + $0xf0] sm:$0xff] %vm297_vm3, %v4903_v34  ;;  %v4969_v54 = vld [vmem:[#allocation4 + $0xe8] sm:$0xff]  ;;  %5196 = vst.msk [vmem:[%s8253_s5 + $0xc0] sm:$0xff] %vm297_vm3, %v5164_v35 }
 0x2b1   : > { %v5008_v62 = vadd.f32 %v8241_v49, %v4969_v54  ;;  %v5102_v22 = vmin.f32 %v5070_v48, 6.0  ;;  %v5069_v6 = vmax.f32 %v5037_v26, 0.0 }
 0x2b2   : > { %v4968_v45 = vld [vmem:[#allocation4 + $0xe0] sm:$0xff] }
 0x2b3   : > { %v5007_v58 = vadd.f32 %v8241_v49, %v4968_v45  ;;  %v5040_v61 = vadd.f32 3.0, %v5008_v62  ;;  %v5134_v55 = vmul.f32 %v5102_v22, %v5006_v19  ;;  %v5101_v5 = vmin.f32 %v5069_v6, 6.0 }
 0x2b5   : > { %v4971_v11 = vld [vmem:[#allocation4 + $0xf8] sm:$0xff]  ;;  %v5039_v3 = vadd.f32 3.0, %v5007_v58  ;;  %v5072_v7 = vmax.f32 %v5040_v61, 0.0  ;;  %v5167_v24 = vmul.f32 0.16666667, %v5134_v55  ;;  %v5133_v0 = vmul.f32 %v5101_v5, %v5005_v41 }
 0x2b6   : > { %v5010_v53 = vadd.f32 %v8241_v49, %v4971_v11 }
 0x2b7   : > { %v4970_v52 = vld [vmem:[#allocation4 + $0xf0] sm:$0xff]  ;;  %v5071_v51 = vmax.f32 %v5039_v3, 0.0  ;;  %v5104_v20 = vmin.f32 %v5072_v7, 6.0  ;;  %5199 = vst.msk [vmem:[%s8253_s5 + $0xd8] sm:$0xff] %vm297_vm3, %v5167_v24  ;;  %v5166_v23 = vmul.f32 0.16666667, %v5133_v0 }
 0x2b8   : > { %v5042_v16 = vadd.f32 3.0, %v5010_v53  ;;  %v5009_v8 = vadd.f32 %v8241_v49, %v4970_v52 }
 0x2b9   : > { %v5103_v14 = vmin.f32 %v5071_v51, 6.0  ;;  %v5136_v12 = vmul.f32 %v5104_v20, %v5008_v62  ;;  %5198 = vst.msk [vmem:[%s8253_s5 + $0xd0] sm:$0xff] %vm297_vm3, %v5166_v23 }
 0x2ba   : > { %v5074_v43 = vmax.f32 %v5042_v16, 0.0  ;;  %v5041_v25 = vadd.f32 3.0, %v5009_v8 }
 0x2bb   : > { %v5135_v33 = vmul.f32 %v5103_v14, %v5007_v58  ;;  %v5169_v42 = vmul.f32 0.16666667, %v5136_v12 }
 0x2bc   : > { %v5106_v36 = vmin.f32 %v5074_v43, 6.0  ;;  %v5073_v18 = vmax.f32 %v5041_v25, 0.0 }
 0x2bd   : > { %v5168_v1 = vmul.f32 0.16666667, %v5135_v33  ;;  %5201 = vst.msk [vmem:[%s8253_s5 + $0xe8] sm:$0xff] %vm297_vm3, %v5169_v42 }
 0x2be   : > { %v5138_v27 = vmul.f32 %v5106_v36, %v5010_v53  ;;  %v5105_v49 = vmin.f32 %v5073_v18, 6.0 }
 0x2bf   : > { %5200 = vst.msk [vmem:[%s8253_s5 + $0xe0] sm:$0xff] %vm297_vm3, %v5168_v1 }
 0x2c0   : > { %v5171_v17 = vmul.f32 0.16666667, %v5138_v27  ;;  %v5137_v2 = vmul.f32 %v5105_v49, %v5009_v8 }
 0x2c2   : > { %5203 = vst.msk [vmem:[%s8253_s5 + $0xf8] sm:$0xff] %vm297_vm3, %v5171_v17  ;;  %v5170_v10 = vmul.f32 0.16666667, %v5137_v2 }
 0x2c4   : > { %5202 = vst.msk [vmem:[%s8253_s5 + $0xf0] sm:$0xff] %vm297_vm3, %v5170_v10 }
 0x2c5 PF: > { %s13_s14 = sadd.s32 1, %s5821_s14   ;;  %s8436_s12 = smov %s5817_s13 }
 0x2c6   : > { %p10_p5 = scmp.ge.s32.totalorder %s13_s14, 4   ;;  %s8437_s13 = smov %s8439_s15 }
 0x2c8   :  { %12 = sbr.rel (!%p10_p5) target bundleno = 2 (0x2), region = 80 }

</bundles_post_ra>
